<compile_context>
chip_gen: v5e
topology: v5e:2x2
jax: 0.10.0
libtpu: 0.0.40
codegen_flags: <defaults>
</compile_context>

<pallas_src>
import numpy as np

import jax
import jax.numpy as jnp
from jax.experimental import pallas as pl
from jax.experimental.pallas import tpu as pltpu


LEAKY_SLOPE = 0.1


# ----------------------------------------------------------------------------
# Host-side constant builders: im2col gather / 2x nearest upsample as 0/1 mats
# ----------------------------------------------------------------------------
def _gather_taps(h, w, stride, pad=1, k=3):
    """G^T per tap: (k*k, H*W, Ho*Wo); column m selects padded input pixel."""
    ho = (h + 2 * pad - k) // stride + 1
    wo = (w + 2 * pad - k) // stride + 1
    g = np.zeros((k * k, h * w, ho * wo), np.float32)
    for i in range(k):
        for j in range(k):
            t = i * k + j
            for y in range(ho):
                for x in range(wo):
                    r = y * stride + i - pad
                    c = x * stride + j - pad
                    if 0 <= r < h and 0 <= c < w:
                        g[t, r * w + c, y * wo + x] = 1.0
    return jnp.asarray(g, jnp.bfloat16)


def _upsample2x_mat(h, w):
    """U^T: (H*W, 4*H*W) nearest-neighbour 2x upsample as a matmul."""
    ho, wo = 2 * h, 2 * w
    u = np.zeros((h * w, ho * wo), np.float32)
    for y in range(ho):
        for x in range(wo):
            u[(y // 2) * w + (x // 2), y * wo + x] = 1.0
    return jnp.asarray(u, jnp.bfloat16)


# ----------------------------------------------------------------------------
# Fused Pallas kernel: the entire backbone -> neck -> head, VMEM resident
# ----------------------------------------------------------------------------
def _ppyolo_fused_kernel(
        x_ref,
        g0, g1, g2, g3, gs3, gs4, gs5, u5_ref, u4_ref,
        w_bb0, b_bb0, w_bb1, b_bb1, w_bb2, b_bb2, w_bb3, b_bb3,
        w_l3, b_l3, w_l4, b_l4, w_l5, b_l5,
        w_s3, b_s3, w_s4, b_s4, w_s5, b_s5,
        w_h3, b_h3, w_h4, b_h4, w_h5, b_h5,
        o3_ref, o4_ref, o5_ref):
    bf16 = jnp.bfloat16
    f32 = jnp.float32

    def act(z, leaky):
        return jnp.where(z > 0, z, LEAKY_SLOPE * z) if leaky else z

    def conv3x3(a, g_ref, w_ref, b_ref, leaky=True):
        # a: (Cin, HWin) bf16, g_ref: (9, HWin, Mout), w_ref: (9, Cout, Cin)
        cout = w_ref.shape[1]
        mout = g_ref.shape[2]
        acc = jnp.zeros((cout, mout), f32)
        for t in range(9):                       # in-kernel im2col: gather tap
            gathered = jnp.dot(a, g_ref[t], preferred_element_type=f32)
            acc = acc + jnp.dot(w_ref[t], gathered.astype(bf16),
                                preferred_element_type=f32)
        return act(acc + b_ref[...], leaky)      # bias + leaky in f32

    def conv1x1(a, w_ref, b_ref, leaky=True):
        acc = jnp.dot(w_ref[...], a, preferred_element_type=f32) + b_ref[...]
        return act(acc, leaky)

    x = x_ref[0].astype(bf16)                                   # (Cin, 256)

    # ---- backbone ----
    s0 = conv3x3(x, g0, w_bb0, b_bb0)                           # (8, 256)
    f3 = conv3x3(s0.astype(bf16), g1, w_bb1, b_bb1)             # (16, 64)
    f4 = conv3x3(f3.astype(bf16), g2, w_bb2, b_bb2)             # (32, 16)
    f5 = conv3x3(f4.astype(bf16), g3, w_bb3, b_bb3)             # (64, 4)

    # ---- neck (FPN-lite): laterals, top-down nearest upsample, smooth ----
    l5 = conv1x1(f5.astype(bf16), w_l5, b_l5)                   # (16, 4)
    l4 = conv1x1(f4.astype(bf16), w_l4, b_l4)                   # (16, 16)
    l3 = conv1x1(f3.astype(bf16), w_l3, b_l3)                   # (16, 64)

    p5 = l5
    p4 = l4 + jnp.dot(p5.astype(bf16), u5_ref[...],
                      preferred_element_type=f32)               # (16, 16)
    p3 = l3 + jnp.dot(p4.astype(bf16), u4_ref[...],
                      preferred_element_type=f32)               # (16, 64)

    p5 = conv3x3(p5.astype(bf16), gs5, w_s5, b_s5)              # (16, 4)
    p4 = conv3x3(p4.astype(bf16), gs4, w_s4, b_s4)              # (16, 16)
    p3 = conv3x3(p3.astype(bf16), gs3, w_s3, b_s3)              # (16, 64)

    # ---- yolo head (linear 1x1) -> outputs are already channel-major ----
    o3_ref[0] = conv1x1(p3.astype(bf16), w_h3, b_h3, leaky=False)   # (27, 64)
    o4_ref[0] = conv1x1(p4.astype(bf16), w_h4, b_h4, leaky=False)   # (27, 16)
    o5_ref[0] = conv1x1(p5.astype(bf16), w_h5, b_h5, leaky=False)   # (27, 4)


# ----------------------------------------------------------------------------
# Deterministic parameter construction (synthetic weights, no checkpoint)
# ----------------------------------------------------------------------------
def _conv_params(key, kh, kw, cin, cout):
    kw_key, b_key = jax.random.split(key)
    fan_in = kh * kw * cin
    w = jax.random.normal(kw_key, (kh, kw, cin, cout), jnp.float32) * (1.0 / fan_in) ** 0.5
    b = jax.random.normal(b_key, (cout,), jnp.float32) * 0.01
    return w, b


def make_ppyolo_params(in_ch=4, neck_ch=16, num_anchors=3, num_classes=4, seed=0):
    keys = jax.random.split(jax.random.PRNGKey(seed), 16)
    p = {}
    p["bb0"] = _conv_params(keys[0], 3, 3, in_ch, 8)
    p["bb1"] = _conv_params(keys[1], 3, 3, 8, 16)
    p["bb2"] = _conv_params(keys[2], 3, 3, 16, 32)
    p["bb3"] = _conv_params(keys[3], 3, 3, 32, 64)
    p["lat3"] = _conv_params(keys[4], 1, 1, 16, neck_ch)
    p["lat4"] = _conv_params(keys[5], 1, 1, 32, neck_ch)
    p["lat5"] = _conv_params(keys[6], 1, 1, 64, neck_ch)
    p["smooth3"] = _conv_params(keys[7], 3, 3, neck_ch, neck_ch)
    p["smooth4"] = _conv_params(keys[8], 3, 3, neck_ch, neck_ch)
    p["smooth5"] = _conv_params(keys[9], 3, 3, neck_ch, neck_ch)
    out_ch = num_anchors * (5 + num_classes)
    p["head3"] = _conv_params(keys[10], 1, 1, neck_ch, out_ch)
    p["head4"] = _conv_params(keys[11], 1, 1, neck_ch, out_ch)
    p["head5"] = _conv_params(keys[12], 1, 1, neck_ch, out_ch)
    return p


def _prep_3x3(w, b):
    kh, kw, cin, cout = w.shape
    wt = jnp.transpose(w.reshape(kh * kw, cin, cout), (0, 2, 1)).astype(jnp.bfloat16)
    return wt, b.reshape(cout, 1).astype(jnp.float32)


def _prep_1x1(w, b):
    _, _, cin, cout = w.shape
    wt = jnp.transpose(w.reshape(cin, cout)).astype(jnp.bfloat16)
    return wt, b.reshape(cout, 1).astype(jnp.float32)


# ----------------------------------------------------------------------------
# PPYOLO forward: one fused pallas_call
# ----------------------------------------------------------------------------
def ppyolo_forward(params, x_nchw, im_size=None, gt_bbox=None, targets=None):
    # TODO(synk): training branch (loss with gt_bbox/targets) and bbox decoding
    #             with im_size are head-specific and not reproduced here; this
    #             returns the raw per-level yolo head prediction maps.
    b, cin, h, w = x_nchw.shape
    hw = h * w
    h3, w3 = h // 2, w // 2
    h4, w4 = h3 // 2, w3 // 2
    h5, w5 = h4 // 2, w4 // 2
    nout = params["head3"][0].shape[-1]

    x2d = x_nchw.reshape(b, cin, hw).astype(jnp.float32)  # NCHW -> (B, C, HW), free

    flat_inputs = [
        x2d,
        _gather_taps(h, w, 1), _gather_taps(h, w, 2),
        _gather_taps(h3, w3, 2), _gather_taps(h4, w4, 2),
        _gather_taps(h3, w3, 1), _gather_taps(h4, w4, 1), _gather_taps(h5, w5, 1),
        _upsample2x_mat(h5, w5), _upsample2x_mat(h4, w4),
        *_prep_3x3(*params["bb0"]), *_prep_3x3(*params["bb1"]),
        *_prep_3x3(*params["bb2"]), *_prep_3x3(*params["bb3"]),
        *_prep_1x1(*params["lat3"]), *_prep_1x1(*params["lat4"]),
        *_prep_1x1(*params["lat5"]),
        *_prep_3x3(*params["smooth3"]), *_prep_3x3(*params["smooth4"]),
        *_prep_3x3(*params["smooth5"]),
        *_prep_1x1(*params["head3"]), *_prep_1x1(*params["head4"]),
        *_prep_1x1(*params["head5"]),
    ]

    def _const_spec(a):
        zeros = (0,) * a.ndim
        return pl.BlockSpec(a.shape, lambda i, _z=zeros: _z)

    in_specs = [pl.BlockSpec((1, cin, hw), lambda i: (i, 0, 0))]
    in_specs += [_const_spec(a) for a in flat_inputs[1:]]

    out_shape = (jax.ShapeDtypeStruct((b, nout, h3 * w3), jnp.float32),
                 jax.ShapeDtypeStruct((b, nout, h4 * w4), jnp.float32),
                 jax.ShapeDtypeStruct((b, nout, h5 * w5), jnp.float32))
    out_specs = (pl.BlockSpec((1, nout, h3 * w3), lambda i: (i, 0, 0)),
                 pl.BlockSpec((1, nout, h4 * w4), lambda i: (i, 0, 0)),
                 pl.BlockSpec((1, nout, h5 * w5), lambda i: (i, 0, 0)))

    o3, o4, o5 = pl.pallas_call(
        _ppyolo_fused_kernel,
        out_shape=out_shape,
        grid=(b,),
        in_specs=in_specs,
        out_specs=out_specs,
        compiler_params=pltpu.CompilerParams(
            dimension_semantics=("parallel",)),  # one image per TC on v7x
    )(*flat_inputs)

    # (B, C, HW) -> NCHW maps; splitting the last dim is a free reshape.
    return (o3.reshape(b, nout, h3, w3),
            o4.reshape(b, nout, h4, w4),
            o5.reshape(b, nout, h5, w5))


# ----------------------------------------------------------------------------
# Pure-JAX f32 reference (same math, host-side im2col) for a sanity check
# ----------------------------------------------------------------------------
def _ref_conv2d(x_nhwc, w, b, *, stride=1, padding=0, leaky=True):
    n, h, wd, cin = x_nhwc.shape
    kh, kw, _, cout = w.shape
    x_p = jnp.pad(x_nhwc, ((0, 0), (padding, padding), (padding, padding), (0, 0)))
    ho = (h + 2 * padding - kh) // stride + 1
    wo = (wd + 2 * padding - kw) // stride + 1
    patches = []
    for i in range(kh):
        for j in range(kw):
            patches.append(x_p[:, i:i + ho * stride:stride, j:j + wo * stride:stride, :])
    cols = jnp.concatenate(patches, axis=-1).reshape(n * ho * wo, kh * kw * cin)
    out = cols @ w.reshape(kh * kw * cin, cout) + b
    if leaky:
        out = jnp.where(out > 0, out, LEAKY_SLOPE * out)
    return out.reshape(n, ho, wo, cout)


def _ref_forward(params, x_nchw):
    x = jnp.transpose(x_nchw, (0, 2, 3, 1))
    s0 = _ref_conv2d(x, *params["bb0"], stride=1, padding=1)
    f3 = _ref_conv2d(s0, *params["bb1"], stride=2, padding=1)
    f4 = _ref_conv2d(f3, *params["bb2"], stride=2, padding=1)
    f5 = _ref_conv2d(f4, *params["bb3"], stride=2, padding=1)
    l5 = _ref_conv2d(f5, *params["lat5"], stride=1, padding=0)
    l4 = _ref_conv2d(f4, *params["lat4"], stride=1, padding=0)
    l3 = _ref_conv2d(f3, *params["lat3"], stride=1, padding=0)
    up = lambda t: jnp.repeat(jnp.repeat(t, 2, axis=1), 2, axis=2)
    p5 = l5
    p4 = l4 + up(p5)
    p3 = l3 + up(p4)
    p5 = _ref_conv2d(p5, *params["smooth5"], stride=1, padding=1)
    p4 = _ref_conv2d(p4, *params["smooth4"], stride=1, padding=1)
    p3 = _ref_conv2d(p3, *params["smooth3"], stride=1, padding=1)
    o3 = _ref_conv2d(p3, *params["head3"], stride=1, padding=0, leaky=False)
    o4 = _ref_conv2d(p4, *params["head4"], stride=1, padding=0, leaky=False)
    o5 = _ref_conv2d(p5, *params["head5"], stride=1, padding=0, leaky=False)
    t = lambda a: jnp.transpose(a, (0, 3, 1, 2))
    return t(o3), t(o4), t(o5)


if __name__ == "__main__":
    key = jax.random.PRNGKey(0)
    x = jax.random.normal(key, (2, 4, 16, 16), jnp.float32)  # NCHW input
    params = make_ppyolo_params(in_ch=4, neck_ch=16, num_anchors=3, num_classes=4)

    outs = jax.jit(ppyolo_forward)(params, x)
    outs = jax.block_until_ready(outs)

    expected = [(2, 27, 8, 8), (2, 27, 4, 4), (2, 27, 2, 2)]
    assert [tuple(o.shape) for o in outs] == expected, [o.shape for o in outs]
    assert all(bool(jnp.all(jnp.isfinite(o))) for o in outs)

    # Loose tolerance: the fused kernel uses bf16 MXU operands (f32 accumulate),
    # the reference is pure f32.  This catches gross indexing/weight-layout bugs.
    refs = _ref_forward(params, x)
    for o, r in zip(outs, refs):
        rel = float(jnp.linalg.norm(o - r) / (jnp.linalg.norm(r) + 1e-6))
        assert rel < 0.15, f"relative error too large: {rel}"

    print("KERNEL_OK")
</pallas_src>

<mosaic_0001>
module attributes {stable_mosaic.version = 11 : i64} {
  func.func @_ppyolo_fused_kernel(%arg0: i32, %arg1: memref<1x4x256xf32, #tpu.memory_space<vmem>>, %arg2: memref<9x256x256xbf16, #tpu.memory_space<vmem>>, %arg3: memref<9x256x64xbf16, #tpu.memory_space<vmem>>, %arg4: memref<9x64x16xbf16, #tpu.memory_space<vmem>>, %arg5: memref<9x16x4xbf16, #tpu.memory_space<vmem>>, %arg6: memref<9x64x64xbf16, #tpu.memory_space<vmem>>, %arg7: memref<9x16x16xbf16, #tpu.memory_space<vmem>>, %arg8: memref<9x4x4xbf16, #tpu.memory_space<vmem>>, %arg9: memref<4x16xbf16, #tpu.memory_space<vmem>>, %arg10: memref<16x64xbf16, #tpu.memory_space<vmem>>, %arg11: memref<9x8x4xbf16, #tpu.memory_space<vmem>>, %arg12: memref<8x1xf32, #tpu.memory_space<vmem>>, %arg13: memref<9x16x8xbf16, #tpu.memory_space<vmem>>, %arg14: memref<16x1xf32, #tpu.memory_space<vmem>>, %arg15: memref<9x32x16xbf16, #tpu.memory_space<vmem>>, %arg16: memref<32x1xf32, #tpu.memory_space<vmem>>, %arg17: memref<9x64x32xbf16, #tpu.memory_space<vmem>>, %arg18: memref<64x1xf32, #tpu.memory_space<vmem>>, %arg19: memref<16x16xbf16, #tpu.memory_space<vmem>>, %arg20: memref<16x1xf32, #tpu.memory_space<vmem>>, %arg21: memref<16x32xbf16, #tpu.memory_space<vmem>>, %arg22: memref<16x1xf32, #tpu.memory_space<vmem>>, %arg23: memref<16x64xbf16, #tpu.memory_space<vmem>>, %arg24: memref<16x1xf32, #tpu.memory_space<vmem>>, %arg25: memref<9x16x16xbf16, #tpu.memory_space<vmem>>, %arg26: memref<16x1xf32, #tpu.memory_space<vmem>>, %arg27: memref<9x16x16xbf16, #tpu.memory_space<vmem>>, %arg28: memref<16x1xf32, #tpu.memory_space<vmem>>, %arg29: memref<9x16x16xbf16, #tpu.memory_space<vmem>>, %arg30: memref<16x1xf32, #tpu.memory_space<vmem>>, %arg31: memref<27x16xbf16, #tpu.memory_space<vmem>>, %arg32: memref<27x1xf32, #tpu.memory_space<vmem>>, %arg33: memref<27x16xbf16, #tpu.memory_space<vmem>>, %arg34: memref<27x1xf32, #tpu.memory_space<vmem>>, %arg35: memref<27x16xbf16, #tpu.memory_space<vmem>>, %arg36: memref<27x1xf32, #tpu.memory_space<vmem>>, %arg37: memref<1x27x64xf32, #tpu.memory_space<vmem>>, %arg38: memref<1x27x16xf32, #tpu.memory_space<vmem>>, %arg39: memref<1x27x4xf32, #tpu.memory_space<vmem>>) attributes {dimension_semantics = [#tpu.dimension_semantics<parallel>], iteration_bounds = array<i64: 2>, scalar_prefetch = 0 : i64, scratch_operands = 0 : i64, tpu.core_type = #tpu.core_type<tc>, window_params = [{transform_indices = @transform_0, window_bounds = array<i64: 1, 4, 256>}, {pipeline_mode = #tpu.pipeline_mode<synchronous>, transform_indices = @transform_1, window_bounds = array<i64: 9, 256, 256>}, {pipeline_mode = #tpu.pipeline_mode<synchronous>, transform_indices = @transform_2, window_bounds = array<i64: 9, 256, 64>}, {pipeline_mode = #tpu.pipeline_mode<synchronous>, transform_indices = @transform_3, window_bounds = array<i64: 9, 64, 16>}, {pipeline_mode = #tpu.pipeline_mode<synchronous>, transform_indices = @transform_4, window_bounds = array<i64: 9, 16, 4>}, {pipeline_mode = #tpu.pipeline_mode<synchronous>, transform_indices = @transform_5, window_bounds = array<i64: 9, 64, 64>}, {pipeline_mode = #tpu.pipeline_mode<synchronous>, transform_indices = @transform_6, window_bounds = array<i64: 9, 16, 16>}, {pipeline_mode = #tpu.pipeline_mode<synchronous>, transform_indices = @transform_7, window_bounds = array<i64: 9, 4, 4>}, {pipeline_mode = #tpu.pipeline_mode<synchronous>, transform_indices = @transform_8, window_bounds = array<i64: 4, 16>}, {pipeline_mode = #tpu.pipeline_mode<synchronous>, transform_indices = @transform_9, window_bounds = array<i64: 16, 64>}, {pipeline_mode = #tpu.pipeline_mode<synchronous>, transform_indices = @transform_10, window_bounds = array<i64: 9, 8, 4>}, {pipeline_mode = #tpu.pipeline_mode<synchronous>, transform_indices = @transform_11, window_bounds = array<i64: 8, 1>}, {pipeline_mode = #tpu.pipeline_mode<synchronous>, transform_indices = @transform_12, window_bounds = array<i64: 9, 16, 8>}, {pipeline_mode = #tpu.pipeline_mode<synchronous>, transform_indices = @transform_13, window_bounds = array<i64: 16, 1>}, {pipeline_mode = #tpu.pipeline_mode<synchronous>, transform_indices = @transform_14, window_bounds = array<i64: 9, 32, 16>}, {pipeline_mode = #tpu.pipeline_mode<synchronous>, transform_indices = @transform_15, window_bounds = array<i64: 32, 1>}, {pipeline_mode = #tpu.pipeline_mode<synchronous>, transform_indices = @transform_16, window_bounds = array<i64: 9, 64, 32>}, {pipeline_mode = #tpu.pipeline_mode<synchronous>, transform_indices = @transform_17, window_bounds = array<i64: 64, 1>}, {pipeline_mode = #tpu.pipeline_mode<synchronous>, transform_indices = @transform_18, window_bounds = array<i64: 16, 16>}, {pipeline_mode = #tpu.pipeline_mode<synchronous>, transform_indices = @transform_19, window_bounds = array<i64: 16, 1>}, {pipeline_mode = #tpu.pipeline_mode<synchronous>, transform_indices = @transform_20, window_bounds = array<i64: 16, 32>}, {pipeline_mode = #tpu.pipeline_mode<synchronous>, transform_indices = @transform_21, window_bounds = array<i64: 16, 1>}, {pipeline_mode = #tpu.pipeline_mode<synchronous>, transform_indices = @transform_22, window_bounds = array<i64: 16, 64>}, {pipeline_mode = #tpu.pipeline_mode<synchronous>, transform_indices = @transform_23, window_bounds = array<i64: 16, 1>}, {pipeline_mode = #tpu.pipeline_mode<synchronous>, transform_indices = @transform_24, window_bounds = array<i64: 9, 16, 16>}, {pipeline_mode = #tpu.pipeline_mode<synchronous>, transform_indices = @transform_25, window_bounds = array<i64: 16, 1>}, {pipeline_mode = #tpu.pipeline_mode<synchronous>, transform_indices = @transform_26, window_bounds = array<i64: 9, 16, 16>}, {pipeline_mode = #tpu.pipeline_mode<synchronous>, transform_indices = @transform_27, window_bounds = array<i64: 16, 1>}, {pipeline_mode = #tpu.pipeline_mode<synchronous>, transform_indices = @transform_28, window_bounds = array<i64: 9, 16, 16>}, {pipeline_mode = #tpu.pipeline_mode<synchronous>, transform_indices = @transform_29, window_bounds = array<i64: 16, 1>}, {pipeline_mode = #tpu.pipeline_mode<synchronous>, transform_indices = @transform_30, window_bounds = array<i64: 27, 16>}, {pipeline_mode = #tpu.pipeline_mode<synchronous>, transform_indices = @transform_31, window_bounds = array<i64: 27, 1>}, {pipeline_mode = #tpu.pipeline_mode<synchronous>, transform_indices = @transform_32, window_bounds = array<i64: 27, 16>}, {pipeline_mode = #tpu.pipeline_mode<synchronous>, transform_indices = @transform_33, window_bounds = array<i64: 27, 1>}, {pipeline_mode = #tpu.pipeline_mode<synchronous>, transform_indices = @transform_34, window_bounds = array<i64: 27, 16>}, {pipeline_mode = #tpu.pipeline_mode<synchronous>, transform_indices = @transform_35, window_bounds = array<i64: 27, 1>}, {transform_indices = @transform_36, window_bounds = array<i64: 1, 27, 64>}, {transform_indices = @transform_37, window_bounds = array<i64: 1, 27, 16>}, {transform_indices = @transform_38, window_bounds = array<i64: 1, 27, 4>}]} {
    %c0 = arith.constant 0 : index
    %c0_0 = arith.constant 0 : index
    %c0_1 = arith.constant 0 : index
    %0 = vector.load %arg1[%c0, %c0_0, %c0_1] : memref<1x4x256xf32, #tpu.memory_space<vmem>>, vector<1x4x256xf32>
    %1 = vector.shape_cast %0 : vector<1x4x256xf32> to vector<4x256xf32>
    %2 = arith.truncf %1 : vector<4x256xf32> to vector<4x256xbf16>
    %cst = arith.constant 0.000000e+00 : f32
    %3 = vector.broadcast %cst : f32 to vector<8x256xf32>
    %c0_2 = arith.constant 0 : index
    %c0_3 = arith.constant 0 : index
    %c0_4 = arith.constant 0 : index
    %4 = vector.load %arg2[%c0_2, %c0_3, %c0_4] : memref<9x256x256xbf16, #tpu.memory_space<vmem>>, vector<1x256x256xbf16>
    %5 = vector.shape_cast %4 : vector<1x256x256xbf16> to vector<256x256xbf16>
    %cst_5 = arith.constant dense<0.000000e+00> : vector<4x256xf32>
    %6 = tpu.matmul %2, %5, %cst_5 {dimension_numbers = #tpu.dot_dimension_numbers<[1], [0], [0], [1], [0, 0, 1, 1], [], []>} : vector<4x256xbf16>, vector<256x256xbf16>, vector<4x256xf32> -> vector<4x256xf32>
    %c0_6 = arith.constant 0 : index
    %c0_7 = arith.constant 0 : index
    %c0_8 = arith.constant 0 : index
    %7 = vector.load %arg11[%c0_6, %c0_7, %c0_8] : memref<9x8x4xbf16, #tpu.memory_space<vmem>>, vector<1x8x4xbf16>
    %8 = vector.shape_cast %7 : vector<1x8x4xbf16> to vector<8x4xbf16>
    %9 = arith.truncf %6 : vector<4x256xf32> to vector<4x256xbf16>
    %cst_9 = arith.constant dense<0.000000e+00> : vector<8x256xf32>
    %10 = tpu.matmul %8, %9, %cst_9 {dimension_numbers = #tpu.dot_dimension_numbers<[1], [0], [0], [1], [0, 0, 1, 1], [], []>} : vector<8x4xbf16>, vector<4x256xbf16>, vector<8x256xf32> -> vector<8x256xf32>
    %11 = arith.addf %3, %10 : vector<8x256xf32>
    %c1 = arith.constant 1 : index
    %c0_10 = arith.constant 0 : index
    %c0_11 = arith.constant 0 : index
    %12 = vector.load %arg2[%c1, %c0_10, %c0_11] : memref<9x256x256xbf16, #tpu.memory_space<vmem>>, vector<1x256x256xbf16>
    %13 = vector.shape_cast %12 : vector<1x256x256xbf16> to vector<256x256xbf16>
    %cst_12 = arith.constant dense<0.000000e+00> : vector<4x256xf32>
    %14 = tpu.matmul %2, %13, %cst_12 {dimension_numbers = #tpu.dot_dimension_numbers<[1], [0], [0], [1], [0, 0, 1, 1], [], []>} : vector<4x256xbf16>, vector<256x256xbf16>, vector<4x256xf32> -> vector<4x256xf32>
    %c1_13 = arith.constant 1 : index
    %c0_14 = arith.constant 0 : index
    %c0_15 = arith.constant 0 : index
    %15 = vector.load %arg11[%c1_13, %c0_14, %c0_15] : memref<9x8x4xbf16, #tpu.memory_space<vmem>>, vector<1x8x4xbf16>
    %16 = vector.shape_cast %15 : vector<1x8x4xbf16> to vector<8x4xbf16>
    %17 = arith.truncf %14 : vector<4x256xf32> to vector<4x256xbf16>
    %cst_16 = arith.constant dense<0.000000e+00> : vector<8x256xf32>
    %18 = tpu.matmul %16, %17, %cst_16 {dimension_numbers = #tpu.dot_dimension_numbers<[1], [0], [0], [1], [0, 0, 1, 1], [], []>} : vector<8x4xbf16>, vector<4x256xbf16>, vector<8x256xf32> -> vector<8x256xf32>
    %19 = arith.addf %11, %18 : vector<8x256xf32>
    %c2 = arith.constant 2 : index
    %c0_17 = arith.constant 0 : index
    %c0_18 = arith.constant 0 : index
    %20 = vector.load %arg2[%c2, %c0_17, %c0_18] : memref<9x256x256xbf16, #tpu.memory_space<vmem>>, vector<1x256x256xbf16>
    %21 = vector.shape_cast %20 : vector<1x256x256xbf16> to vector<256x256xbf16>
    %cst_19 = arith.constant dense<0.000000e+00> : vector<4x256xf32>
    %22 = tpu.matmul %2, %21, %cst_19 {dimension_numbers = #tpu.dot_dimension_numbers<[1], [0], [0], [1], [0, 0, 1, 1], [], []>} : vector<4x256xbf16>, vector<256x256xbf16>, vector<4x256xf32> -> vector<4x256xf32>
    %c2_20 = arith.constant 2 : index
    %c0_21 = arith.constant 0 : index
    %c0_22 = arith.constant 0 : index
    %23 = vector.load %arg11[%c2_20, %c0_21, %c0_22] : memref<9x8x4xbf16, #tpu.memory_space<vmem>>, vector<1x8x4xbf16>
    %24 = vector.shape_cast %23 : vector<1x8x4xbf16> to vector<8x4xbf16>
    %25 = arith.truncf %22 : vector<4x256xf32> to vector<4x256xbf16>
    %cst_23 = arith.constant dense<0.000000e+00> : vector<8x256xf32>
    %26 = tpu.matmul %24, %25, %cst_23 {dimension_numbers = #tpu.dot_dimension_numbers<[1], [0], [0], [1], [0, 0, 1, 1], [], []>} : vector<8x4xbf16>, vector<4x256xbf16>, vector<8x256xf32> -> vector<8x256xf32>
    %27 = arith.addf %19, %26 : vector<8x256xf32>
    %c3 = arith.constant 3 : index
    %c0_24 = arith.constant 0 : index
    %c0_25 = arith.constant 0 : index
    %28 = vector.load %arg2[%c3, %c0_24, %c0_25] : memref<9x256x256xbf16, #tpu.memory_space<vmem>>, vector<1x256x256xbf16>
    %29 = vector.shape_cast %28 : vector<1x256x256xbf16> to vector<256x256xbf16>
    %cst_26 = arith.constant dense<0.000000e+00> : vector<4x256xf32>
    %30 = tpu.matmul %2, %29, %cst_26 {dimension_numbers = #tpu.dot_dimension_numbers<[1], [0], [0], [1], [0, 0, 1, 1], [], []>} : vector<4x256xbf16>, vector<256x256xbf16>, vector<4x256xf32> -> vector<4x256xf32>
    %c3_27 = arith.constant 3 : index
    %c0_28 = arith.constant 0 : index
    %c0_29 = arith.constant 0 : index
    %31 = vector.load %arg11[%c3_27, %c0_28, %c0_29] : memref<9x8x4xbf16, #tpu.memory_space<vmem>>, vector<1x8x4xbf16>
    %32 = vector.shape_cast %31 : vector<1x8x4xbf16> to vector<8x4xbf16>
    %33 = arith.truncf %30 : vector<4x256xf32> to vector<4x256xbf16>
    %cst_30 = arith.constant dense<0.000000e+00> : vector<8x256xf32>
    %34 = tpu.matmul %32, %33, %cst_30 {dimension_numbers = #tpu.dot_dimension_numbers<[1], [0], [0], [1], [0, 0, 1, 1], [], []>} : vector<8x4xbf16>, vector<4x256xbf16>, vector<8x256xf32> -> vector<8x256xf32>
    %35 = arith.addf %27, %34 : vector<8x256xf32>
    %c4 = arith.constant 4 : index
    %c0_31 = arith.constant 0 : index
    %c0_32 = arith.constant 0 : index
    %36 = vector.load %arg2[%c4, %c0_31, %c0_32] : memref<9x256x256xbf16, #tpu.memory_space<vmem>>, vector<1x256x256xbf16>
    %37 = vector.shape_cast %36 : vector<1x256x256xbf16> to vector<256x256xbf16>
    %cst_33 = arith.constant dense<0.000000e+00> : vector<4x256xf32>
    %38 = tpu.matmul %2, %37, %cst_33 {dimension_numbers = #tpu.dot_dimension_numbers<[1], [0], [0], [1], [0, 0, 1, 1], [], []>} : vector<4x256xbf16>, vector<256x256xbf16>, vector<4x256xf32> -> vector<4x256xf32>
    %c4_34 = arith.constant 4 : index
    %c0_35 = arith.constant 0 : index
    %c0_36 = arith.constant 0 : index
    %39 = vector.load %arg11[%c4_34, %c0_35, %c0_36] : memref<9x8x4xbf16, #tpu.memory_space<vmem>>, vector<1x8x4xbf16>
    %40 = vector.shape_cast %39 : vector<1x8x4xbf16> to vector<8x4xbf16>
    %41 = arith.truncf %38 : vector<4x256xf32> to vector<4x256xbf16>
    %cst_37 = arith.constant dense<0.000000e+00> : vector<8x256xf32>
    %42 = tpu.matmul %40, %41, %cst_37 {dimension_numbers = #tpu.dot_dimension_numbers<[1], [0], [0], [1], [0, 0, 1, 1], [], []>} : vector<8x4xbf16>, vector<4x256xbf16>, vector<8x256xf32> -> vector<8x256xf32>
    %43 = arith.addf %35, %42 : vector<8x256xf32>
    %c5 = arith.constant 5 : index
    %c0_38 = arith.constant 0 : index
    %c0_39 = arith.constant 0 : index
    %44 = vector.load %arg2[%c5, %c0_38, %c0_39] : memref<9x256x256xbf16, #tpu.memory_space<vmem>>, vector<1x256x256xbf16>
    %45 = vector.shape_cast %44 : vector<1x256x256xbf16> to vector<256x256xbf16>
    %cst_40 = arith.constant dense<0.000000e+00> : vector<4x256xf32>
    %46 = tpu.matmul %2, %45, %cst_40 {dimension_numbers = #tpu.dot_dimension_numbers<[1], [0], [0], [1], [0, 0, 1, 1], [], []>} : vector<4x256xbf16>, vector<256x256xbf16>, vector<4x256xf32> -> vector<4x256xf32>
    %c5_41 = arith.constant 5 : index
    %c0_42 = arith.constant 0 : index
    %c0_43 = arith.constant 0 : index
    %47 = vector.load %arg11[%c5_41, %c0_42, %c0_43] : memref<9x8x4xbf16, #tpu.memory_space<vmem>>, vector<1x8x4xbf16>
    %48 = vector.shape_cast %47 : vector<1x8x4xbf16> to vector<8x4xbf16>
    %49 = arith.truncf %46 : vector<4x256xf32> to vector<4x256xbf16>
    %cst_44 = arith.constant dense<0.000000e+00> : vector<8x256xf32>
    %50 = tpu.matmul %48, %49, %cst_44 {dimension_numbers = #tpu.dot_dimension_numbers<[1], [0], [0], [1], [0, 0, 1, 1], [], []>} : vector<8x4xbf16>, vector<4x256xbf16>, vector<8x256xf32> -> vector<8x256xf32>
    %51 = arith.addf %43, %50 : vector<8x256xf32>
    %c6 = arith.constant 6 : index
    %c0_45 = arith.constant 0 : index
    %c0_46 = arith.constant 0 : index
    %52 = vector.load %arg2[%c6, %c0_45, %c0_46] : memref<9x256x256xbf16, #tpu.memory_space<vmem>>, vector<1x256x256xbf16>
    %53 = vector.shape_cast %52 : vector<1x256x256xbf16> to vector<256x256xbf16>
    %cst_47 = arith.constant dense<0.000000e+00> : vector<4x256xf32>
    %54 = tpu.matmul %2, %53, %cst_47 {dimension_numbers = #tpu.dot_dimension_numbers<[1], [0], [0], [1], [0, 0, 1, 1], [], []>} : vector<4x256xbf16>, vector<256x256xbf16>, vector<4x256xf32> -> vector<4x256xf32>
    %c6_48 = arith.constant 6 : index
    %c0_49 = arith.constant 0 : index
    %c0_50 = arith.constant 0 : index
    %55 = vector.load %arg11[%c6_48, %c0_49, %c0_50] : memref<9x8x4xbf16, #tpu.memory_space<vmem>>, vector<1x8x4xbf16>
    %56 = vector.shape_cast %55 : vector<1x8x4xbf16> to vector<8x4xbf16>
    %57 = arith.truncf %54 : vector<4x256xf32> to vector<4x256xbf16>
    %cst_51 = arith.constant dense<0.000000e+00> : vector<8x256xf32>
    %58 = tpu.matmul %56, %57, %cst_51 {dimension_numbers = #tpu.dot_dimension_numbers<[1], [0], [0], [1], [0, 0, 1, 1], [], []>} : vector<8x4xbf16>, vector<4x256xbf16>, vector<8x256xf32> -> vector<8x256xf32>
    %59 = arith.addf %51, %58 : vector<8x256xf32>
    %c7 = arith.constant 7 : index
    %c0_52 = arith.constant 0 : index
    %c0_53 = arith.constant 0 : index
    %60 = vector.load %arg2[%c7, %c0_52, %c0_53] : memref<9x256x256xbf16, #tpu.memory_space<vmem>>, vector<1x256x256xbf16>
    %61 = vector.shape_cast %60 : vector<1x256x256xbf16> to vector<256x256xbf16>
    %cst_54 = arith.constant dense<0.000000e+00> : vector<4x256xf32>
    %62 = tpu.matmul %2, %61, %cst_54 {dimension_numbers = #tpu.dot_dimension_numbers<[1], [0], [0], [1], [0, 0, 1, 1], [], []>} : vector<4x256xbf16>, vector<256x256xbf16>, vector<4x256xf32> -> vector<4x256xf32>
    %c7_55 = arith.constant 7 : index
    %c0_56 = arith.constant 0 : index
    %c0_57 = arith.constant 0 : index
    %63 = vector.load %arg11[%c7_55, %c0_56, %c0_57] : memref<9x8x4xbf16, #tpu.memory_space<vmem>>, vector<1x8x4xbf16>
    %64 = vector.shape_cast %63 : vector<1x8x4xbf16> to vector<8x4xbf16>
    %65 = arith.truncf %62 : vector<4x256xf32> to vector<4x256xbf16>
    %cst_58 = arith.constant dense<0.000000e+00> : vector<8x256xf32>
    %66 = tpu.matmul %64, %65, %cst_58 {dimension_numbers = #tpu.dot_dimension_numbers<[1], [0], [0], [1], [0, 0, 1, 1], [], []>} : vector<8x4xbf16>, vector<4x256xbf16>, vector<8x256xf32> -> vector<8x256xf32>
    %67 = arith.addf %59, %66 : vector<8x256xf32>
    %c8 = arith.constant 8 : index
    %c0_59 = arith.constant 0 : index
    %c0_60 = arith.constant 0 : index
    %68 = vector.load %arg2[%c8, %c0_59, %c0_60] : memref<9x256x256xbf16, #tpu.memory_space<vmem>>, vector<1x256x256xbf16>
    %69 = vector.shape_cast %68 : vector<1x256x256xbf16> to vector<256x256xbf16>
    %cst_61 = arith.constant dense<0.000000e+00> : vector<4x256xf32>
    %70 = tpu.matmul %2, %69, %cst_61 {dimension_numbers = #tpu.dot_dimension_numbers<[1], [0], [0], [1], [0, 0, 1, 1], [], []>} : vector<4x256xbf16>, vector<256x256xbf16>, vector<4x256xf32> -> vector<4x256xf32>
    %c8_62 = arith.constant 8 : index
    %c0_63 = arith.constant 0 : index
    %c0_64 = arith.constant 0 : index
    %71 = vector.load %arg11[%c8_62, %c0_63, %c0_64] : memref<9x8x4xbf16, #tpu.memory_space<vmem>>, vector<1x8x4xbf16>
    %72 = vector.shape_cast %71 : vector<1x8x4xbf16> to vector<8x4xbf16>
    %73 = arith.truncf %70 : vector<4x256xf32> to vector<4x256xbf16>
    %cst_65 = arith.constant dense<0.000000e+00> : vector<8x256xf32>
    %74 = tpu.matmul %72, %73, %cst_65 {dimension_numbers = #tpu.dot_dimension_numbers<[1], [0], [0], [1], [0, 0, 1, 1], [], []>} : vector<8x4xbf16>, vector<4x256xbf16>, vector<8x256xf32> -> vector<8x256xf32>
    %75 = arith.addf %67, %74 : vector<8x256xf32>
    %c0_66 = arith.constant 0 : index
    %c0_67 = arith.constant 0 : index
    %76 = vector.load %arg12[%c0_66, %c0_67] : memref<8x1xf32, #tpu.memory_space<vmem>>, vector<8x1xf32>
    %77 = vector.broadcast %76 : vector<8x1xf32> to vector<8x256xf32>
    %78 = arith.addf %75, %77 : vector<8x256xf32>
    %cst_68 = arith.constant 0.000000e+00 : f32
    %79 = vector.broadcast %cst_68 : f32 to vector<8x256xf32>
    %80 = arith.cmpf ogt, %78, %79 : vector<8x256xf32>
    %cst_69 = arith.constant 1.000000e-01 : f32
    %81 = vector.broadcast %cst_69 : f32 to vector<8x256xf32>
    %82 = arith.mulf %81, %78 : vector<8x256xf32>
    %83 = arith.select %80, %78, %82 : vector<8x256xi1>, vector<8x256xf32>
    %84 = arith.truncf %83 : vector<8x256xf32> to vector<8x256xbf16>
    %cst_70 = arith.constant 0.000000e+00 : f32
    %85 = vector.broadcast %cst_70 : f32 to vector<16x64xf32>
    %c0_71 = arith.constant 0 : index
    %c0_72 = arith.constant 0 : index
    %c0_73 = arith.constant 0 : index
    %86 = vector.load %arg3[%c0_71, %c0_72, %c0_73] : memref<9x256x64xbf16, #tpu.memory_space<vmem>>, vector<1x256x64xbf16>
    %87 = vector.shape_cast %86 : vector<1x256x64xbf16> to vector<256x64xbf16>
    %cst_74 = arith.constant dense<0.000000e+00> : vector<8x64xf32>
    %88 = tpu.matmul %84, %87, %cst_74 {dimension_numbers = #tpu.dot_dimension_numbers<[1], [0], [0], [1], [0, 0, 1, 1], [], []>} : vector<8x256xbf16>, vector<256x64xbf16>, vector<8x64xf32> -> vector<8x64xf32>
    %c0_75 = arith.constant 0 : index
    %c0_76 = arith.constant 0 : index
    %c0_77 = arith.constant 0 : index
    %89 = vector.load %arg13[%c0_75, %c0_76, %c0_77] : memref<9x16x8xbf16, #tpu.memory_space<vmem>>, vector<1x16x8xbf16>
    %90 = vector.shape_cast %89 : vector<1x16x8xbf16> to vector<16x8xbf16>
    %91 = arith.truncf %88 : vector<8x64xf32> to vector<8x64xbf16>
    %cst_78 = arith.constant dense<0.000000e+00> : vector<16x64xf32>
    %92 = tpu.matmul %90, %91, %cst_78 {dimension_numbers = #tpu.dot_dimension_numbers<[1], [0], [0], [1], [0, 0, 1, 1], [], []>} : vector<16x8xbf16>, vector<8x64xbf16>, vector<16x64xf32> -> vector<16x64xf32>
    %93 = arith.addf %85, %92 : vector<16x64xf32>
    %c1_79 = arith.constant 1 : index
    %c0_80 = arith.constant 0 : index
    %c0_81 = arith.constant 0 : index
    %94 = vector.load %arg3[%c1_79, %c0_80, %c0_81] : memref<9x256x64xbf16, #tpu.memory_space<vmem>>, vector<1x256x64xbf16>
    %95 = vector.shape_cast %94 : vector<1x256x64xbf16> to vector<256x64xbf16>
    %cst_82 = arith.constant dense<0.000000e+00> : vector<8x64xf32>
    %96 = tpu.matmul %84, %95, %cst_82 {dimension_numbers = #tpu.dot_dimension_numbers<[1], [0], [0], [1], [0, 0, 1, 1], [], []>} : vector<8x256xbf16>, vector<256x64xbf16>, vector<8x64xf32> -> vector<8x64xf32>
    %c1_83 = arith.constant 1 : index
    %c0_84 = arith.constant 0 : index
    %c0_85 = arith.constant 0 : index
    %97 = vector.load %arg13[%c1_83, %c0_84, %c0_85] : memref<9x16x8xbf16, #tpu.memory_space<vmem>>, vector<1x16x8xbf16>
    %98 = vector.shape_cast %97 : vector<1x16x8xbf16> to vector<16x8xbf16>
    %99 = arith.truncf %96 : vector<8x64xf32> to vector<8x64xbf16>
    %cst_86 = arith.constant dense<0.000000e+00> : vector<16x64xf32>
    %100 = tpu.matmul %98, %99, %cst_86 {dimension_numbers = #tpu.dot_dimension_numbers<[1], [0], [0], [1], [0, 0, 1, 1], [], []>} : vector<16x8xbf16>, vector<8x64xbf16>, vector<16x64xf32> -> vector<16x64xf32>
    %101 = arith.addf %93, %100 : vector<16x64xf32>
    %c2_87 = arith.constant 2 : index
    %c0_88 = arith.constant 0 : index
    %c0_89 = arith.constant 0 : index
    %102 = vector.load %arg3[%c2_87, %c0_88, %c0_89] : memref<9x256x64xbf16, #tpu.memory_space<vmem>>, vector<1x256x64xbf16>
    %103 = vector.shape_cast %102 : vector<1x256x64xbf16> to vector<256x64xbf16>
    %cst_90 = arith.constant dense<0.000000e+00> : vector<8x64xf32>
    %104 = tpu.matmul %84, %103, %cst_90 {dimension_numbers = #tpu.dot_dimension_numbers<[1], [0], [0], [1], [0, 0, 1, 1], [], []>} : vector<8x256xbf16>, vector<256x64xbf16>, vector<8x64xf32> -> vector<8x64xf32>
    %c2_91 = arith.constant 2 : index
    %c0_92 = arith.constant 0 : index
    %c0_93 = arith.constant 0 : index
    %105 = vector.load %arg13[%c2_91, %c0_92, %c0_93] : memref<9x16x8xbf16, #tpu.memory_space<vmem>>, vector<1x16x8xbf16>
    %106 = vector.shape_cast %105 : vector<1x16x8xbf16> to vector<16x8xbf16>
    %107 = arith.truncf %104 : vector<8x64xf32> to vector<8x64xbf16>
    %cst_94 = arith.constant dense<0.000000e+00> : vector<16x64xf32>
    %108 = tpu.matmul %106, %107, %cst_94 {dimension_numbers = #tpu.dot_dimension_numbers<[1], [0], [0], [1], [0, 0, 1, 1], [], []>} : vector<16x8xbf16>, vector<8x64xbf16>, vector<16x64xf32> -> vector<16x64xf32>
    %109 = arith.addf %101, %108 : vector<16x64xf32>
    %c3_95 = arith.constant 3 : index
    %c0_96 = arith.constant 0 : index
    %c0_97 = arith.constant 0 : index
    %110 = vector.load %arg3[%c3_95, %c0_96, %c0_97] : memref<9x256x64xbf16, #tpu.memory_space<vmem>>, vector<1x256x64xbf16>
    %111 = vector.shape_cast %110 : vector<1x256x64xbf16> to vector<256x64xbf16>
    %cst_98 = arith.constant dense<0.000000e+00> : vector<8x64xf32>
    %112 = tpu.matmul %84, %111, %cst_98 {dimension_numbers = #tpu.dot_dimension_numbers<[1], [0], [0], [1], [0, 0, 1, 1], [], []>} : vector<8x256xbf16>, vector<256x64xbf16>, vector<8x64xf32> -> vector<8x64xf32>
    %c3_99 = arith.constant 3 : index
    %c0_100 = arith.constant 0 : index
    %c0_101 = arith.constant 0 : index
    %113 = vector.load %arg13[%c3_99, %c0_100, %c0_101] : memref<9x16x8xbf16, #tpu.memory_space<vmem>>, vector<1x16x8xbf16>
    %114 = vector.shape_cast %113 : vector<1x16x8xbf16> to vector<16x8xbf16>
    %115 = arith.truncf %112 : vector<8x64xf32> to vector<8x64xbf16>
    %cst_102 = arith.constant dense<0.000000e+00> : vector<16x64xf32>
    %116 = tpu.matmul %114, %115, %cst_102 {dimension_numbers = #tpu.dot_dimension_numbers<[1], [0], [0], [1], [0, 0, 1, 1], [], []>} : vector<16x8xbf16>, vector<8x64xbf16>, vector<16x64xf32> -> vector<16x64xf32>
    %117 = arith.addf %109, %116 : vector<16x64xf32>
    %c4_103 = arith.constant 4 : index
    %c0_104 = arith.constant 0 : index
    %c0_105 = arith.constant 0 : index
    %118 = vector.load %arg3[%c4_103, %c0_104, %c0_105] : memref<9x256x64xbf16, #tpu.memory_space<vmem>>, vector<1x256x64xbf16>
    %119 = vector.shape_cast %118 : vector<1x256x64xbf16> to vector<256x64xbf16>
    %cst_106 = arith.constant dense<0.000000e+00> : vector<8x64xf32>
    %120 = tpu.matmul %84, %119, %cst_106 {dimension_numbers = #tpu.dot_dimension_numbers<[1], [0], [0], [1], [0, 0, 1, 1], [], []>} : vector<8x256xbf16>, vector<256x64xbf16>, vector<8x64xf32> -> vector<8x64xf32>
    %c4_107 = arith.constant 4 : index
    %c0_108 = arith.constant 0 : index
    %c0_109 = arith.constant 0 : index
    %121 = vector.load %arg13[%c4_107, %c0_108, %c0_109] : memref<9x16x8xbf16, #tpu.memory_space<vmem>>, vector<1x16x8xbf16>
    %122 = vector.shape_cast %121 : vector<1x16x8xbf16> to vector<16x8xbf16>
    %123 = arith.truncf %120 : vector<8x64xf32> to vector<8x64xbf16>
    %cst_110 = arith.constant dense<0.000000e+00> : vector<16x64xf32>
    %124 = tpu.matmul %122, %123, %cst_110 {dimension_numbers = #tpu.dot_dimension_numbers<[1], [0], [0], [1], [0, 0, 1, 1], [], []>} : vector<16x8xbf16>, vector<8x64xbf16>, vector<16x64xf32> -> vector<16x64xf32>
    %125 = arith.addf %117, %124 : vector<16x64xf32>
    %c5_111 = arith.constant 5 : index
    %c0_112 = arith.constant 0 : index
    %c0_113 = arith.constant 0 : index
    %126 = vector.load %arg3[%c5_111, %c0_112, %c0_113] : memref<9x256x64xbf16, #tpu.memory_space<vmem>>, vector<1x256x64xbf16>
    %127 = vector.shape_cast %126 : vector<1x256x64xbf16> to vector<256x64xbf16>
    %cst_114 = arith.constant dense<0.000000e+00> : vector<8x64xf32>
    %128 = tpu.matmul %84, %127, %cst_114 {dimension_numbers = #tpu.dot_dimension_numbers<[1], [0], [0], [1], [0, 0, 1, 1], [], []>} : vector<8x256xbf16>, vector<256x64xbf16>, vector<8x64xf32> -> vector<8x64xf32>
    %c5_115 = arith.constant 5 : index
    %c0_116 = arith.constant 0 : index
    %c0_117 = arith.constant 0 : index
    %129 = vector.load %arg13[%c5_115, %c0_116, %c0_117] : memref<9x16x8xbf16, #tpu.memory_space<vmem>>, vector<1x16x8xbf16>
    %130 = vector.shape_cast %129 : vector<1x16x8xbf16> to vector<16x8xbf16>
    %131 = arith.truncf %128 : vector<8x64xf32> to vector<8x64xbf16>
    %cst_118 = arith.constant dense<0.000000e+00> : vector<16x64xf32>
    %132 = tpu.matmul %130, %131, %cst_118 {dimension_numbers = #tpu.dot_dimension_numbers<[1], [0], [0], [1], [0, 0, 1, 1], [], []>} : vector<16x8xbf16>, vector<8x64xbf16>, vector<16x64xf32> -> vector<16x64xf32>
    %133 = arith.addf %125, %132 : vector<16x64xf32>
    %c6_119 = arith.constant 6 : index
    %c0_120 = arith.constant 0 : index
    %c0_121 = arith.constant 0 : index
    %134 = vector.load %arg3[%c6_119, %c0_120, %c0_121] : memref<9x256x64xbf16, #tpu.memory_space<vmem>>, vector<1x256x64xbf16>
    %135 = vector.shape_cast %134 : vector<1x256x64xbf16> to vector<256x64xbf16>
    %cst_122 = arith.constant dense<0.000000e+00> : vector<8x64xf32>
    %136 = tpu.matmul %84, %135, %cst_122 {dimension_numbers = #tpu.dot_dimension_numbers<[1], [0], [0], [1], [0, 0, 1, 1], [], []>} : vector<8x256xbf16>, vector<256x64xbf16>, vector<8x64xf32> -> vector<8x64xf32>
    %c6_123 = arith.constant 6 : index
    %c0_124 = arith.constant 0 : index
    %c0_125 = arith.constant 0 : index
    %137 = vector.load %arg13[%c6_123, %c0_124, %c0_125] : memref<9x16x8xbf16, #tpu.memory_space<vmem>>, vector<1x16x8xbf16>
    %138 = vector.shape_cast %137 : vector<1x16x8xbf16> to vector<16x8xbf16>
    %139 = arith.truncf %136 : vector<8x64xf32> to vector<8x64xbf16>
    %cst_126 = arith.constant dense<0.000000e+00> : vector<16x64xf32>
    %140 = tpu.matmul %138, %139, %cst_126 {dimension_numbers = #tpu.dot_dimension_numbers<[1], [0], [0], [1], [0, 0, 1, 1], [], []>} : vector<16x8xbf16>, vector<8x64xbf16>, vector<16x64xf32> -> vector<16x64xf32>
    %141 = arith.addf %133, %140 : vector<16x64xf32>
    %c7_127 = arith.constant 7 : index
    %c0_128 = arith.constant 0 : index
    %c0_129 = arith.constant 0 : index
    %142 = vector.load %arg3[%c7_127, %c0_128, %c0_129] : memref<9x256x64xbf16, #tpu.memory_space<vmem>>, vector<1x256x64xbf16>
    %143 = vector.shape_cast %142 : vector<1x256x64xbf16> to vector<256x64xbf16>
    %cst_130 = arith.constant dense<0.000000e+00> : vector<8x64xf32>
    %144 = tpu.matmul %84, %143, %cst_130 {dimension_numbers = #tpu.dot_dimension_numbers<[1], [0], [0], [1], [0, 0, 1, 1], [], []>} : vector<8x256xbf16>, vector<256x64xbf16>, vector<8x64xf32> -> vector<8x64xf32>
    %c7_131 = arith.constant 7 : index
    %c0_132 = arith.constant 0 : index
    %c0_133 = arith.constant 0 : index
    %145 = vector.load %arg13[%c7_131, %c0_132, %c0_133] : memref<9x16x8xbf16, #tpu.memory_space<vmem>>, vector<1x16x8xbf16>
    %146 = vector.shape_cast %145 : vector<1x16x8xbf16> to vector<16x8xbf16>
    %147 = arith.truncf %144 : vector<8x64xf32> to vector<8x64xbf16>
    %cst_134 = arith.constant dense<0.000000e+00> : vector<16x64xf32>
    %148 = tpu.matmul %146, %147, %cst_134 {dimension_numbers = #tpu.dot_dimension_numbers<[1], [0], [0], [1], [0, 0, 1, 1], [], []>} : vector<16x8xbf16>, vector<8x64xbf16>, vector<16x64xf32> -> vector<16x64xf32>
    %149 = arith.addf %141, %148 : vector<16x64xf32>
    %c8_135 = arith.constant 8 : index
    %c0_136 = arith.constant 0 : index
    %c0_137 = arith.constant 0 : index
    %150 = vector.load %arg3[%c8_135, %c0_136, %c0_137] : memref<9x256x64xbf16, #tpu.memory_space<vmem>>, vector<1x256x64xbf16>
    %151 = vector.shape_cast %150 : vector<1x256x64xbf16> to vector<256x64xbf16>
    %cst_138 = arith.constant dense<0.000000e+00> : vector<8x64xf32>
    %152 = tpu.matmul %84, %151, %cst_138 {dimension_numbers = #tpu.dot_dimension_numbers<[1], [0], [0], [1], [0, 0, 1, 1], [], []>} : vector<8x256xbf16>, vector<256x64xbf16>, vector<8x64xf32> -> vector<8x64xf32>
    %c8_139 = arith.constant 8 : index
    %c0_140 = arith.constant 0 : index
    %c0_141 = arith.constant 0 : index
    %153 = vector.load %arg13[%c8_139, %c0_140, %c0_141] : memref<9x16x8xbf16, #tpu.memory_space<vmem>>, vector<1x16x8xbf16>
    %154 = vector.shape_cast %153 : vector<1x16x8xbf16> to vector<16x8xbf16>
    %155 = arith.truncf %152 : vector<8x64xf32> to vector<8x64xbf16>
    %cst_142 = arith.constant dense<0.000000e+00> : vector<16x64xf32>
    %156 = tpu.matmul %154, %155, %cst_142 {dimension_numbers = #tpu.dot_dimension_numbers<[1], [0], [0], [1], [0, 0, 1, 1], [], []>} : vector<16x8xbf16>, vector<8x64xbf16>, vector<16x64xf32> -> vector<16x64xf32>
    %157 = arith.addf %149, %156 : vector<16x64xf32>
    %c0_143 = arith.constant 0 : index
    %c0_144 = arith.constant 0 : index
    %158 = vector.load %arg14[%c0_143, %c0_144] : memref<16x1xf32, #tpu.memory_space<vmem>>, vector<16x1xf32>
    %159 = vector.broadcast %158 : vector<16x1xf32> to vector<16x64xf32>
    %160 = arith.addf %157, %159 : vector<16x64xf32>
    %cst_145 = arith.constant 0.000000e+00 : f32
    %161 = vector.broadcast %cst_145 : f32 to vector<16x64xf32>
    %162 = arith.cmpf ogt, %160, %161 : vector<16x64xf32>
    %cst_146 = arith.constant 1.000000e-01 : f32
    %163 = vector.broadcast %cst_146 : f32 to vector<16x64xf32>
    %164 = arith.mulf %163, %160 : vector<16x64xf32>
    %165 = arith.select %162, %160, %164 : vector<16x64xi1>, vector<16x64xf32>
    %166 = arith.truncf %165 : vector<16x64xf32> to vector<16x64xbf16>
    %cst_147 = arith.constant 0.000000e+00 : f32
    %167 = vector.broadcast %cst_147 : f32 to vector<32x16xf32>
    %c0_148 = arith.constant 0 : index
    %c0_149 = arith.constant 0 : index
    %c0_150 = arith.constant 0 : index
    %168 = vector.load %arg4[%c0_148, %c0_149, %c0_150] : memref<9x64x16xbf16, #tpu.memory_space<vmem>>, vector<1x64x16xbf16>
    %169 = vector.shape_cast %168 : vector<1x64x16xbf16> to vector<64x16xbf16>
    %cst_151 = arith.constant dense<0.000000e+00> : vector<16x16xf32>
    %170 = tpu.matmul %166, %169, %cst_151 {dimension_numbers = #tpu.dot_dimension_numbers<[1], [0], [0], [1], [0, 0, 1, 1], [], []>} : vector<16x64xbf16>, vector<64x16xbf16>, vector<16x16xf32> -> vector<16x16xf32>
    %c0_152 = arith.constant 0 : index
    %c0_153 = arith.constant 0 : index
    %c0_154 = arith.constant 0 : index
    %171 = vector.load %arg15[%c0_152, %c0_153, %c0_154] : memref<9x32x16xbf16, #tpu.memory_space<vmem>>, vector<1x32x16xbf16>
    %172 = vector.shape_cast %171 : vector<1x32x16xbf16> to vector<32x16xbf16>
    %173 = arith.truncf %170 : vector<16x16xf32> to vector<16x16xbf16>
    %cst_155 = arith.constant dense<0.000000e+00> : vector<32x16xf32>
    %174 = tpu.matmul %172, %173, %cst_155 {dimension_numbers = #tpu.dot_dimension_numbers<[1], [0], [0], [1], [0, 0, 1, 1], [], []>} : vector<32x16xbf16>, vector<16x16xbf16>, vector<32x16xf32> -> vector<32x16xf32>
    %175 = arith.addf %167, %174 : vector<32x16xf32>
    %c1_156 = arith.constant 1 : index
    %c0_157 = arith.constant 0 : index
    %c0_158 = arith.constant 0 : index
    %176 = vector.load %arg4[%c1_156, %c0_157, %c0_158] : memref<9x64x16xbf16, #tpu.memory_space<vmem>>, vector<1x64x16xbf16>
    %177 = vector.shape_cast %176 : vector<1x64x16xbf16> to vector<64x16xbf16>
    %cst_159 = arith.constant dense<0.000000e+00> : vector<16x16xf32>
    %178 = tpu.matmul %166, %177, %cst_159 {dimension_numbers = #tpu.dot_dimension_numbers<[1], [0], [0], [1], [0, 0, 1, 1], [], []>} : vector<16x64xbf16>, vector<64x16xbf16>, vector<16x16xf32> -> vector<16x16xf32>
    %c1_160 = arith.constant 1 : index
    %c0_161 = arith.constant 0 : index
    %c0_162 = arith.constant 0 : index
    %179 = vector.load %arg15[%c1_160, %c0_161, %c0_162] : memref<9x32x16xbf16, #tpu.memory_space<vmem>>, vector<1x32x16xbf16>
    %180 = vector.shape_cast %179 : vector<1x32x16xbf16> to vector<32x16xbf16>
    %181 = arith.truncf %178 : vector<16x16xf32> to vector<16x16xbf16>
    %cst_163 = arith.constant dense<0.000000e+00> : vector<32x16xf32>
    %182 = tpu.matmul %180, %181, %cst_163 {dimension_numbers = #tpu.dot_dimension_numbers<[1], [0], [0], [1], [0, 0, 1, 1], [], []>} : vector<32x16xbf16>, vector<16x16xbf16>, vector<32x16xf32> -> vector<32x16xf32>
    %183 = arith.addf %175, %182 : vector<32x16xf32>
    %c2_164 = arith.constant 2 : index
    %c0_165 = arith.constant 0 : index
    %c0_166 = arith.constant 0 : index
    %184 = vector.load %arg4[%c2_164, %c0_165, %c0_166] : memref<9x64x16xbf16, #tpu.memory_space<vmem>>, vector<1x64x16xbf16>
    %185 = vector.shape_cast %184 : vector<1x64x16xbf16> to vector<64x16xbf16>
    %cst_167 = arith.constant dense<0.000000e+00> : vector<16x16xf32>
    %186 = tpu.matmul %166, %185, %cst_167 {dimension_numbers = #tpu.dot_dimension_numbers<[1], [0], [0], [1], [0, 0, 1, 1], [], []>} : vector<16x64xbf16>, vector<64x16xbf16>, vector<16x16xf32> -> vector<16x16xf32>
    %c2_168 = arith.constant 2 : index
    %c0_169 = arith.constant 0 : index
    %c0_170 = arith.constant 0 : index
    %187 = vector.load %arg15[%c2_168, %c0_169, %c0_170] : memref<9x32x16xbf16, #tpu.memory_space<vmem>>, vector<1x32x16xbf16>
    %188 = vector.shape_cast %187 : vector<1x32x16xbf16> to vector<32x16xbf16>
    %189 = arith.truncf %186 : vector<16x16xf32> to vector<16x16xbf16>
    %cst_171 = arith.constant dense<0.000000e+00> : vector<32x16xf32>
    %190 = tpu.matmul %188, %189, %cst_171 {dimension_numbers = #tpu.dot_dimension_numbers<[1], [0], [0], [1], [0, 0, 1, 1], [], []>} : vector<32x16xbf16>, vector<16x16xbf16>, vector<32x16xf32> -> vector<32x16xf32>
    %191 = arith.addf %183, %190 : vector<32x16xf32>
    %c3_172 = arith.constant 3 : index
    %c0_173 = arith.constant 0 : index
    %c0_174 = arith.constant 0 : index
    %192 = vector.load %arg4[%c3_172, %c0_173, %c0_174] : memref<9x64x16xbf16, #tpu.memory_space<vmem>>, vector<1x64x16xbf16>
    %193 = vector.shape_cast %192 : vector<1x64x16xbf16> to vector<64x16xbf16>
    %cst_175 = arith.constant dense<0.000000e+00> : vector<16x16xf32>
    %194 = tpu.matmul %166, %193, %cst_175 {dimension_numbers = #tpu.dot_dimension_numbers<[1], [0], [0], [1], [0, 0, 1, 1], [], []>} : vector<16x64xbf16>, vector<64x16xbf16>, vector<16x16xf32> -> vector<16x16xf32>
    %c3_176 = arith.constant 3 : index
    %c0_177 = arith.constant 0 : index
    %c0_178 = arith.constant 0 : index
    %195 = vector.load %arg15[%c3_176, %c0_177, %c0_178] : memref<9x32x16xbf16, #tpu.memory_space<vmem>>, vector<1x32x16xbf16>
    %196 = vector.shape_cast %195 : vector<1x32x16xbf16> to vector<32x16xbf16>
    %197 = arith.truncf %194 : vector<16x16xf32> to vector<16x16xbf16>
    %cst_179 = arith.constant dense<0.000000e+00> : vector<32x16xf32>
    %198 = tpu.matmul %196, %197, %cst_179 {dimension_numbers = #tpu.dot_dimension_numbers<[1], [0], [0], [1], [0, 0, 1, 1], [], []>} : vector<32x16xbf16>, vector<16x16xbf16>, vector<32x16xf32> -> vector<32x16xf32>
    %199 = arith.addf %191, %198 : vector<32x16xf32>
    %c4_180 = arith.constant 4 : index
    %c0_181 = arith.constant 0 : index
    %c0_182 = arith.constant 0 : index
    %200 = vector.load %arg4[%c4_180, %c0_181, %c0_182] : memref<9x64x16xbf16, #tpu.memory_space<vmem>>, vector<1x64x16xbf16>
    %201 = vector.shape_cast %200 : vector<1x64x16xbf16> to vector<64x16xbf16>
    %cst_183 = arith.constant dense<0.000000e+00> : vector<16x16xf32>
    %202 = tpu.matmul %166, %201, %cst_183 {dimension_numbers = #tpu.dot_dimension_numbers<[1], [0], [0], [1], [0, 0, 1, 1], [], []>} : vector<16x64xbf16>, vector<64x16xbf16>, vector<16x16xf32> -> vector<16x16xf32>
    %c4_184 = arith.constant 4 : index
    %c0_185 = arith.constant 0 : index
    %c0_186 = arith.constant 0 : index
    %203 = vector.load %arg15[%c4_184, %c0_185, %c0_186] : memref<9x32x16xbf16, #tpu.memory_space<vmem>>, vector<1x32x16xbf16>
    %204 = vector.shape_cast %203 : vector<1x32x16xbf16> to vector<32x16xbf16>
    %205 = arith.truncf %202 : vector<16x16xf32> to vector<16x16xbf16>
    %cst_187 = arith.constant dense<0.000000e+00> : vector<32x16xf32>
    %206 = tpu.matmul %204, %205, %cst_187 {dimension_numbers = #tpu.dot_dimension_numbers<[1], [0], [0], [1], [0, 0, 1, 1], [], []>} : vector<32x16xbf16>, vector<16x16xbf16>, vector<32x16xf32> -> vector<32x16xf32>
    %207 = arith.addf %199, %206 : vector<32x16xf32>
    %c5_188 = arith.constant 5 : index
    %c0_189 = arith.constant 0 : index
    %c0_190 = arith.constant 0 : index
    %208 = vector.load %arg4[%c5_188, %c0_189, %c0_190] : memref<9x64x16xbf16, #tpu.memory_space<vmem>>, vector<1x64x16xbf16>
    %209 = vector.shape_cast %208 : vector<1x64x16xbf16> to vector<64x16xbf16>
    %cst_191 = arith.constant dense<0.000000e+00> : vector<16x16xf32>
    %210 = tpu.matmul %166, %209, %cst_191 {dimension_numbers = #tpu.dot_dimension_numbers<[1], [0], [0], [1], [0, 0, 1, 1], [], []>} : vector<16x64xbf16>, vector<64x16xbf16>, vector<16x16xf32> -> vector<16x16xf32>
    %c5_192 = arith.constant 5 : index
    %c0_193 = arith.constant 0 : index
    %c0_194 = arith.constant 0 : index
    %211 = vector.load %arg15[%c5_192, %c0_193, %c0_194] : memref<9x32x16xbf16, #tpu.memory_space<vmem>>, vector<1x32x16xbf16>
    %212 = vector.shape_cast %211 : vector<1x32x16xbf16> to vector<32x16xbf16>
    %213 = arith.truncf %210 : vector<16x16xf32> to vector<16x16xbf16>
    %cst_195 = arith.constant dense<0.000000e+00> : vector<32x16xf32>
    %214 = tpu.matmul %212, %213, %cst_195 {dimension_numbers = #tpu.dot_dimension_numbers<[1], [0], [0], [1], [0, 0, 1, 1], [], []>} : vector<32x16xbf16>, vector<16x16xbf16>, vector<32x16xf32> -> vector<32x16xf32>
    %215 = arith.addf %207, %214 : vector<32x16xf32>
    %c6_196 = arith.constant 6 : index
    %c0_197 = arith.constant 0 : index
    %c0_198 = arith.constant 0 : index
    %216 = vector.load %arg4[%c6_196, %c0_197, %c0_198] : memref<9x64x16xbf16, #tpu.memory_space<vmem>>, vector<1x64x16xbf16>
    %217 = vector.shape_cast %216 : vector<1x64x16xbf16> to vector<64x16xbf16>
    %cst_199 = arith.constant dense<0.000000e+00> : vector<16x16xf32>
    %218 = tpu.matmul %166, %217, %cst_199 {dimension_numbers = #tpu.dot_dimension_numbers<[1], [0], [0], [1], [0, 0, 1, 1], [], []>} : vector<16x64xbf16>, vector<64x16xbf16>, vector<16x16xf32> -> vector<16x16xf32>
    %c6_200 = arith.constant 6 : index
    %c0_201 = arith.constant 0 : index
    %c0_202 = arith.constant 0 : index
    %219 = vector.load %arg15[%c6_200, %c0_201, %c0_202] : memref<9x32x16xbf16, #tpu.memory_space<vmem>>, vector<1x32x16xbf16>
    %220 = vector.shape_cast %219 : vector<1x32x16xbf16> to vector<32x16xbf16>
    %221 = arith.truncf %218 : vector<16x16xf32> to vector<16x16xbf16>
    %cst_203 = arith.constant dense<0.000000e+00> : vector<32x16xf32>
    %222 = tpu.matmul %220, %221, %cst_203 {dimension_numbers = #tpu.dot_dimension_numbers<[1], [0], [0], [1], [0, 0, 1, 1], [], []>} : vector<32x16xbf16>, vector<16x16xbf16>, vector<32x16xf32> -> vector<32x16xf32>
    %223 = arith.addf %215, %222 : vector<32x16xf32>
    %c7_204 = arith.constant 7 : index
    %c0_205 = arith.constant 0 : index
    %c0_206 = arith.constant 0 : index
    %224 = vector.load %arg4[%c7_204, %c0_205, %c0_206] : memref<9x64x16xbf16, #tpu.memory_space<vmem>>, vector<1x64x16xbf16>
    %225 = vector.shape_cast %224 : vector<1x64x16xbf16> to vector<64x16xbf16>
    %cst_207 = arith.constant dense<0.000000e+00> : vector<16x16xf32>
    %226 = tpu.matmul %166, %225, %cst_207 {dimension_numbers = #tpu.dot_dimension_numbers<[1], [0], [0], [1], [0, 0, 1, 1], [], []>} : vector<16x64xbf16>, vector<64x16xbf16>, vector<16x16xf32> -> vector<16x16xf32>
    %c7_208 = arith.constant 7 : index
    %c0_209 = arith.constant 0 : index
    %c0_210 = arith.constant 0 : index
    %227 = vector.load %arg15[%c7_208, %c0_209, %c0_210] : memref<9x32x16xbf16, #tpu.memory_space<vmem>>, vector<1x32x16xbf16>
    %228 = vector.shape_cast %227 : vector<1x32x16xbf16> to vector<32x16xbf16>
    %229 = arith.truncf %226 : vector<16x16xf32> to vector<16x16xbf16>
    %cst_211 = arith.constant dense<0.000000e+00> : vector<32x16xf32>
    %230 = tpu.matmul %228, %229, %cst_211 {dimension_numbers = #tpu.dot_dimension_numbers<[1], [0], [0], [1], [0, 0, 1, 1], [], []>} : vector<32x16xbf16>, vector<16x16xbf16>, vector<32x16xf32> -> vector<32x16xf32>
    %231 = arith.addf %223, %230 : vector<32x16xf32>
    %c8_212 = arith.constant 8 : index
    %c0_213 = arith.constant 0 : index
    %c0_214 = arith.constant 0 : index
    %232 = vector.load %arg4[%c8_212, %c0_213, %c0_214] : memref<9x64x16xbf16, #tpu.memory_space<vmem>>, vector<1x64x16xbf16>
    %233 = vector.shape_cast %232 : vector<1x64x16xbf16> to vector<64x16xbf16>
    %cst_215 = arith.constant dense<0.000000e+00> : vector<16x16xf32>
    %234 = tpu.matmul %166, %233, %cst_215 {dimension_numbers = #tpu.dot_dimension_numbers<[1], [0], [0], [1], [0, 0, 1, 1], [], []>} : vector<16x64xbf16>, vector<64x16xbf16>, vector<16x16xf32> -> vector<16x16xf32>
    %c8_216 = arith.constant 8 : index
    %c0_217 = arith.constant 0 : index
    %c0_218 = arith.constant 0 : index
    %235 = vector.load %arg15[%c8_216, %c0_217, %c0_218] : memref<9x32x16xbf16, #tpu.memory_space<vmem>>, vector<1x32x16xbf16>
    %236 = vector.shape_cast %235 : vector<1x32x16xbf16> to vector<32x16xbf16>
    %237 = arith.truncf %234 : vector<16x16xf32> to vector<16x16xbf16>
    %cst_219 = arith.constant dense<0.000000e+00> : vector<32x16xf32>
    %238 = tpu.matmul %236, %237, %cst_219 {dimension_numbers = #tpu.dot_dimension_numbers<[1], [0], [0], [1], [0, 0, 1, 1], [], []>} : vector<32x16xbf16>, vector<16x16xbf16>, vector<32x16xf32> -> vector<32x16xf32>
    %239 = arith.addf %231, %238 : vector<32x16xf32>
    %c0_220 = arith.constant 0 : index
    %c0_221 = arith.constant 0 : index
    %240 = vector.load %arg16[%c0_220, %c0_221] : memref<32x1xf32, #tpu.memory_space<vmem>>, vector<32x1xf32>
    %241 = vector.broadcast %240 : vector<32x1xf32> to vector<32x16xf32>
    %242 = arith.addf %239, %241 : vector<32x16xf32>
    %cst_222 = arith.constant 0.000000e+00 : f32
    %243 = vector.broadcast %cst_222 : f32 to vector<32x16xf32>
    %244 = arith.cmpf ogt, %242, %243 : vector<32x16xf32>
    %cst_223 = arith.constant 1.000000e-01 : f32
    %245 = vector.broadcast %cst_223 : f32 to vector<32x16xf32>
    %246 = arith.mulf %245, %242 : vector<32x16xf32>
    %247 = arith.select %244, %242, %246 : vector<32x16xi1>, vector<32x16xf32>
    %248 = arith.truncf %247 : vector<32x16xf32> to vector<32x16xbf16>
    %cst_224 = arith.constant 0.000000e+00 : f32
    %249 = vector.broadcast %cst_224 : f32 to vector<64x4xf32>
    %c0_225 = arith.constant 0 : index
    %c0_226 = arith.constant 0 : index
    %c0_227 = arith.constant 0 : index
    %250 = vector.load %arg5[%c0_225, %c0_226, %c0_227] : memref<9x16x4xbf16, #tpu.memory_space<vmem>>, vector<1x16x4xbf16>
    %251 = vector.shape_cast %250 : vector<1x16x4xbf16> to vector<16x4xbf16>
    %cst_228 = arith.constant dense<0.000000e+00> : vector<32x4xf32>
    %252 = tpu.matmul %248, %251, %cst_228 {dimension_numbers = #tpu.dot_dimension_numbers<[1], [0], [0], [1], [0, 0, 1, 1], [], []>} : vector<32x16xbf16>, vector<16x4xbf16>, vector<32x4xf32> -> vector<32x4xf32>
    %c0_229 = arith.constant 0 : index
    %c0_230 = arith.constant 0 : index
    %c0_231 = arith.constant 0 : index
    %253 = vector.load %arg17[%c0_229, %c0_230, %c0_231] : memref<9x64x32xbf16, #tpu.memory_space<vmem>>, vector<1x64x32xbf16>
    %254 = vector.shape_cast %253 : vector<1x64x32xbf16> to vector<64x32xbf16>
    %255 = arith.truncf %252 : vector<32x4xf32> to vector<32x4xbf16>
    %cst_232 = arith.constant dense<0.000000e+00> : vector<64x4xf32>
    %256 = tpu.matmul %254, %255, %cst_232 {dimension_numbers = #tpu.dot_dimension_numbers<[1], [0], [0], [1], [0, 0, 1, 1], [], []>} : vector<64x32xbf16>, vector<32x4xbf16>, vector<64x4xf32> -> vector<64x4xf32>
    %257 = arith.addf %249, %256 : vector<64x4xf32>
    %c1_233 = arith.constant 1 : index
    %c0_234 = arith.constant 0 : index
    %c0_235 = arith.constant 0 : index
    %258 = vector.load %arg5[%c1_233, %c0_234, %c0_235] : memref<9x16x4xbf16, #tpu.memory_space<vmem>>, vector<1x16x4xbf16>
    %259 = vector.shape_cast %258 : vector<1x16x4xbf16> to vector<16x4xbf16>
    %cst_236 = arith.constant dense<0.000000e+00> : vector<32x4xf32>
    %260 = tpu.matmul %248, %259, %cst_236 {dimension_numbers = #tpu.dot_dimension_numbers<[1], [0], [0], [1], [0, 0, 1, 1], [], []>} : vector<32x16xbf16>, vector<16x4xbf16>, vector<32x4xf32> -> vector<32x4xf32>
    %c1_237 = arith.constant 1 : index
    %c0_238 = arith.constant 0 : index
    %c0_239 = arith.constant 0 : index
    %261 = vector.load %arg17[%c1_237, %c0_238, %c0_239] : memref<9x64x32xbf16, #tpu.memory_space<vmem>>, vector<1x64x32xbf16>
    %262 = vector.shape_cast %261 : vector<1x64x32xbf16> to vector<64x32xbf16>
    %263 = arith.truncf %260 : vector<32x4xf32> to vector<32x4xbf16>
    %cst_240 = arith.constant dense<0.000000e+00> : vector<64x4xf32>
    %264 = tpu.matmul %262, %263, %cst_240 {dimension_numbers = #tpu.dot_dimension_numbers<[1], [0], [0], [1], [0, 0, 1, 1], [], []>} : vector<64x32xbf16>, vector<32x4xbf16>, vector<64x4xf32> -> vector<64x4xf32>
    %265 = arith.addf %257, %264 : vector<64x4xf32>
    %c2_241 = arith.constant 2 : index
    %c0_242 = arith.constant 0 : index
    %c0_243 = arith.constant 0 : index
    %266 = vector.load %arg5[%c2_241, %c0_242, %c0_243] : memref<9x16x4xbf16, #tpu.memory_space<vmem>>, vector<1x16x4xbf16>
    %267 = vector.shape_cast %266 : vector<1x16x4xbf16> to vector<16x4xbf16>
    %cst_244 = arith.constant dense<0.000000e+00> : vector<32x4xf32>
    %268 = tpu.matmul %248, %267, %cst_244 {dimension_numbers = #tpu.dot_dimension_numbers<[1], [0], [0], [1], [0, 0, 1, 1], [], []>} : vector<32x16xbf16>, vector<16x4xbf16>, vector<32x4xf32> -> vector<32x4xf32>
    %c2_245 = arith.constant 2 : index
    %c0_246 = arith.constant 0 : index
    %c0_247 = arith.constant 0 : index
    %269 = vector.load %arg17[%c2_245, %c0_246, %c0_247] : memref<9x64x32xbf16, #tpu.memory_space<vmem>>, vector<1x64x32xbf16>
    %270 = vector.shape_cast %269 : vector<1x64x32xbf16> to vector<64x32xbf16>
    %271 = arith.truncf %268 : vector<32x4xf32> to vector<32x4xbf16>
    %cst_248 = arith.constant dense<0.000000e+00> : vector<64x4xf32>
    %272 = tpu.matmul %270, %271, %cst_248 {dimension_numbers = #tpu.dot_dimension_numbers<[1], [0], [0], [1], [0, 0, 1, 1], [], []>} : vector<64x32xbf16>, vector<32x4xbf16>, vector<64x4xf32> -> vector<64x4xf32>
    %273 = arith.addf %265, %272 : vector<64x4xf32>
    %c3_249 = arith.constant 3 : index
    %c0_250 = arith.constant 0 : index
    %c0_251 = arith.constant 0 : index
    %274 = vector.load %arg5[%c3_249, %c0_250, %c0_251] : memref<9x16x4xbf16, #tpu.memory_space<vmem>>, vector<1x16x4xbf16>
    %275 = vector.shape_cast %274 : vector<1x16x4xbf16> to vector<16x4xbf16>
    %cst_252 = arith.constant dense<0.000000e+00> : vector<32x4xf32>
    %276 = tpu.matmul %248, %275, %cst_252 {dimension_numbers = #tpu.dot_dimension_numbers<[1], [0], [0], [1], [0, 0, 1, 1], [], []>} : vector<32x16xbf16>, vector<16x4xbf16>, vector<32x4xf32> -> vector<32x4xf32>
    %c3_253 = arith.constant 3 : index
    %c0_254 = arith.constant 0 : index
    %c0_255 = arith.constant 0 : index
    %277 = vector.load %arg17[%c3_253, %c0_254, %c0_255] : memref<9x64x32xbf16, #tpu.memory_space<vmem>>, vector<1x64x32xbf16>
    %278 = vector.shape_cast %277 : vector<1x64x32xbf16> to vector<64x32xbf16>
    %279 = arith.truncf %276 : vector<32x4xf32> to vector<32x4xbf16>
    %cst_256 = arith.constant dense<0.000000e+00> : vector<64x4xf32>
    %280 = tpu.matmul %278, %279, %cst_256 {dimension_numbers = #tpu.dot_dimension_numbers<[1], [0], [0], [1], [0, 0, 1, 1], [], []>} : vector<64x32xbf16>, vector<32x4xbf16>, vector<64x4xf32> -> vector<64x4xf32>
    %281 = arith.addf %273, %280 : vector<64x4xf32>
    %c4_257 = arith.constant 4 : index
    %c0_258 = arith.constant 0 : index
    %c0_259 = arith.constant 0 : index
    %282 = vector.load %arg5[%c4_257, %c0_258, %c0_259] : memref<9x16x4xbf16, #tpu.memory_space<vmem>>, vector<1x16x4xbf16>
    %283 = vector.shape_cast %282 : vector<1x16x4xbf16> to vector<16x4xbf16>
    %cst_260 = arith.constant dense<0.000000e+00> : vector<32x4xf32>
    %284 = tpu.matmul %248, %283, %cst_260 {dimension_numbers = #tpu.dot_dimension_numbers<[1], [0], [0], [1], [0, 0, 1, 1], [], []>} : vector<32x16xbf16>, vector<16x4xbf16>, vector<32x4xf32> -> vector<32x4xf32>
    %c4_261 = arith.constant 4 : index
    %c0_262 = arith.constant 0 : index
    %c0_263 = arith.constant 0 : index
    %285 = vector.load %arg17[%c4_261, %c0_262, %c0_263] : memref<9x64x32xbf16, #tpu.memory_space<vmem>>, vector<1x64x32xbf16>
    %286 = vector.shape_cast %285 : vector<1x64x32xbf16> to vector<64x32xbf16>
    %287 = arith.truncf %284 : vector<32x4xf32> to vector<32x4xbf16>
    %cst_264 = arith.constant dense<0.000000e+00> : vector<64x4xf32>
    %288 = tpu.matmul %286, %287, %cst_264 {dimension_numbers = #tpu.dot_dimension_numbers<[1], [0], [0], [1], [0, 0, 1, 1], [], []>} : vector<64x32xbf16>, vector<32x4xbf16>, vector<64x4xf32> -> vector<64x4xf32>
    %289 = arith.addf %281, %288 : vector<64x4xf32>
    %c5_265 = arith.constant 5 : index
    %c0_266 = arith.constant 0 : index
    %c0_267 = arith.constant 0 : index
    %290 = vector.load %arg5[%c5_265, %c0_266, %c0_267] : memref<9x16x4xbf16, #tpu.memory_space<vmem>>, vector<1x16x4xbf16>
    %291 = vector.shape_cast %290 : vector<1x16x4xbf16> to vector<16x4xbf16>
    %cst_268 = arith.constant dense<0.000000e+00> : vector<32x4xf32>
    %292 = tpu.matmul %248, %291, %cst_268 {dimension_numbers = #tpu.dot_dimension_numbers<[1], [0], [0], [1], [0, 0, 1, 1], [], []>} : vector<32x16xbf16>, vector<16x4xbf16>, vector<32x4xf32> -> vector<32x4xf32>
    %c5_269 = arith.constant 5 : index
    %c0_270 = arith.constant 0 : index
    %c0_271 = arith.constant 0 : index
    %293 = vector.load %arg17[%c5_269, %c0_270, %c0_271] : memref<9x64x32xbf16, #tpu.memory_space<vmem>>, vector<1x64x32xbf16>
    %294 = vector.shape_cast %293 : vector<1x64x32xbf16> to vector<64x32xbf16>
    %295 = arith.truncf %292 : vector<32x4xf32> to vector<32x4xbf16>
    %cst_272 = arith.constant dense<0.000000e+00> : vector<64x4xf32>
    %296 = tpu.matmul %294, %295, %cst_272 {dimension_numbers = #tpu.dot_dimension_numbers<[1], [0], [0], [1], [0, 0, 1, 1], [], []>} : vector<64x32xbf16>, vector<32x4xbf16>, vector<64x4xf32> -> vector<64x4xf32>
    %297 = arith.addf %289, %296 : vector<64x4xf32>
    %c6_273 = arith.constant 6 : index
    %c0_274 = arith.constant 0 : index
    %c0_275 = arith.constant 0 : index
    %298 = vector.load %arg5[%c6_273, %c0_274, %c0_275] : memref<9x16x4xbf16, #tpu.memory_space<vmem>>, vector<1x16x4xbf16>
    %299 = vector.shape_cast %298 : vector<1x16x4xbf16> to vector<16x4xbf16>
    %cst_276 = arith.constant dense<0.000000e+00> : vector<32x4xf32>
    %300 = tpu.matmul %248, %299, %cst_276 {dimension_numbers = #tpu.dot_dimension_numbers<[1], [0], [0], [1], [0, 0, 1, 1], [], []>} : vector<32x16xbf16>, vector<16x4xbf16>, vector<32x4xf32> -> vector<32x4xf32>
    %c6_277 = arith.constant 6 : index
    %c0_278 = arith.constant 0 : index
    %c0_279 = arith.constant 0 : index
    %301 = vector.load %arg17[%c6_277, %c0_278, %c0_279] : memref<9x64x32xbf16, #tpu.memory_space<vmem>>, vector<1x64x32xbf16>
    %302 = vector.shape_cast %301 : vector<1x64x32xbf16> to vector<64x32xbf16>
    %303 = arith.truncf %300 : vector<32x4xf32> to vector<32x4xbf16>
    %cst_280 = arith.constant dense<0.000000e+00> : vector<64x4xf32>
    %304 = tpu.matmul %302, %303, %cst_280 {dimension_numbers = #tpu.dot_dimension_numbers<[1], [0], [0], [1], [0, 0, 1, 1], [], []>} : vector<64x32xbf16>, vector<32x4xbf16>, vector<64x4xf32> -> vector<64x4xf32>
    %305 = arith.addf %297, %304 : vector<64x4xf32>
    %c7_281 = arith.constant 7 : index
    %c0_282 = arith.constant 0 : index
    %c0_283 = arith.constant 0 : index
    %306 = vector.load %arg5[%c7_281, %c0_282, %c0_283] : memref<9x16x4xbf16, #tpu.memory_space<vmem>>, vector<1x16x4xbf16>
    %307 = vector.shape_cast %306 : vector<1x16x4xbf16> to vector<16x4xbf16>
    %cst_284 = arith.constant dense<0.000000e+00> : vector<32x4xf32>
    %308 = tpu.matmul %248, %307, %cst_284 {dimension_numbers = #tpu.dot_dimension_numbers<[1], [0], [0], [1], [0, 0, 1, 1], [], []>} : vector<32x16xbf16>, vector<16x4xbf16>, vector<32x4xf32> -> vector<32x4xf32>
    %c7_285 = arith.constant 7 : index
    %c0_286 = arith.constant 0 : index
    %c0_287 = arith.constant 0 : index
    %309 = vector.load %arg17[%c7_285, %c0_286, %c0_287] : memref<9x64x32xbf16, #tpu.memory_space<vmem>>, vector<1x64x32xbf16>
    %310 = vector.shape_cast %309 : vector<1x64x32xbf16> to vector<64x32xbf16>
    %311 = arith.truncf %308 : vector<32x4xf32> to vector<32x4xbf16>
    %cst_288 = arith.constant dense<0.000000e+00> : vector<64x4xf32>
    %312 = tpu.matmul %310, %311, %cst_288 {dimension_numbers = #tpu.dot_dimension_numbers<[1], [0], [0], [1], [0, 0, 1, 1], [], []>} : vector<64x32xbf16>, vector<32x4xbf16>, vector<64x4xf32> -> vector<64x4xf32>
    %313 = arith.addf %305, %312 : vector<64x4xf32>
    %c8_289 = arith.constant 8 : index
    %c0_290 = arith.constant 0 : index
    %c0_291 = arith.constant 0 : index
    %314 = vector.load %arg5[%c8_289, %c0_290, %c0_291] : memref<9x16x4xbf16, #tpu.memory_space<vmem>>, vector<1x16x4xbf16>
    %315 = vector.shape_cast %314 : vector<1x16x4xbf16> to vector<16x4xbf16>
    %cst_292 = arith.constant dense<0.000000e+00> : vector<32x4xf32>
    %316 = tpu.matmul %248, %315, %cst_292 {dimension_numbers = #tpu.dot_dimension_numbers<[1], [0], [0], [1], [0, 0, 1, 1], [], []>} : vector<32x16xbf16>, vector<16x4xbf16>, vector<32x4xf32> -> vector<32x4xf32>
    %c8_293 = arith.constant 8 : index
    %c0_294 = arith.constant 0 : index
    %c0_295 = arith.constant 0 : index
    %317 = vector.load %arg17[%c8_293, %c0_294, %c0_295] : memref<9x64x32xbf16, #tpu.memory_space<vmem>>, vector<1x64x32xbf16>
    %318 = vector.shape_cast %317 : vector<1x64x32xbf16> to vector<64x32xbf16>
    %319 = arith.truncf %316 : vector<32x4xf32> to vector<32x4xbf16>
    %cst_296 = arith.constant dense<0.000000e+00> : vector<64x4xf32>
    %320 = tpu.matmul %318, %319, %cst_296 {dimension_numbers = #tpu.dot_dimension_numbers<[1], [0], [0], [1], [0, 0, 1, 1], [], []>} : vector<64x32xbf16>, vector<32x4xbf16>, vector<64x4xf32> -> vector<64x4xf32>
    %321 = arith.addf %313, %320 : vector<64x4xf32>
    %c0_297 = arith.constant 0 : index
    %c0_298 = arith.constant 0 : index
    %322 = vector.load %arg18[%c0_297, %c0_298] : memref<64x1xf32, #tpu.memory_space<vmem>>, vector<64x1xf32>
    %323 = vector.broadcast %322 : vector<64x1xf32> to vector<64x4xf32>
    %324 = arith.addf %321, %323 : vector<64x4xf32>
    %cst_299 = arith.constant 0.000000e+00 : f32
    %325 = vector.broadcast %cst_299 : f32 to vector<64x4xf32>
    %326 = arith.cmpf ogt, %324, %325 : vector<64x4xf32>
    %cst_300 = arith.constant 1.000000e-01 : f32
    %327 = vector.broadcast %cst_300 : f32 to vector<64x4xf32>
    %328 = arith.mulf %327, %324 : vector<64x4xf32>
    %329 = arith.select %326, %324, %328 : vector<64x4xi1>, vector<64x4xf32>
    %330 = arith.truncf %329 : vector<64x4xf32> to vector<64x4xbf16>
    %c0_301 = arith.constant 0 : index
    %c0_302 = arith.constant 0 : index
    %331 = vector.load %arg23[%c0_301, %c0_302] : memref<16x64xbf16, #tpu.memory_space<vmem>>, vector<16x64xbf16>
    %cst_303 = arith.constant dense<0.000000e+00> : vector<16x4xf32>
    %332 = tpu.matmul %331, %330, %cst_303 {dimension_numbers = #tpu.dot_dimension_numbers<[1], [0], [0], [1], [0, 0, 1, 1], [], []>} : vector<16x64xbf16>, vector<64x4xbf16>, vector<16x4xf32> -> vector<16x4xf32>
    %c0_304 = arith.constant 0 : index
    %c0_305 = arith.constant 0 : index
    %333 = vector.load %arg24[%c0_304, %c0_305] : memref<16x1xf32, #tpu.memory_space<vmem>>, vector<16x1xf32>
    %334 = vector.broadcast %333 : vector<16x1xf32> to vector<16x4xf32>
    %335 = arith.addf %332, %334 : vector<16x4xf32>
    %cst_306 = arith.constant 0.000000e+00 : f32
    %336 = vector.broadcast %cst_306 : f32 to vector<16x4xf32>
    %337 = arith.cmpf ogt, %335, %336 : vector<16x4xf32>
    %cst_307 = arith.constant 1.000000e-01 : f32
    %338 = vector.broadcast %cst_307 : f32 to vector<16x4xf32>
    %339 = arith.mulf %338, %335 : vector<16x4xf32>
    %340 = arith.select %337, %335, %339 : vector<16x4xi1>, vector<16x4xf32>
    %341 = arith.truncf %247 : vector<32x16xf32> to vector<32x16xbf16>
    %c0_308 = arith.constant 0 : index
    %c0_309 = arith.constant 0 : index
    %342 = vector.load %arg21[%c0_308, %c0_309] : memref<16x32xbf16, #tpu.memory_space<vmem>>, vector<16x32xbf16>
    %cst_310 = arith.constant dense<0.000000e+00> : vector<16x16xf32>
    %343 = tpu.matmul %342, %341, %cst_310 {dimension_numbers = #tpu.dot_dimension_numbers<[1], [0], [0], [1], [0, 0, 1, 1], [], []>} : vector<16x32xbf16>, vector<32x16xbf16>, vector<16x16xf32> -> vector<16x16xf32>
    %c0_311 = arith.constant 0 : index
    %c0_312 = arith.constant 0 : index
    %344 = vector.load %arg22[%c0_311, %c0_312] : memref<16x1xf32, #tpu.memory_space<vmem>>, vector<16x1xf32>
    %345 = vector.broadcast %344 : vector<16x1xf32> to vector<16x16xf32>
    %346 = arith.addf %343, %345 : vector<16x16xf32>
    %cst_313 = arith.constant 0.000000e+00 : f32
    %347 = vector.broadcast %cst_313 : f32 to vector<16x16xf32>
    %348 = arith.cmpf ogt, %346, %347 : vector<16x16xf32>
    %cst_314 = arith.constant 1.000000e-01 : f32
    %349 = vector.broadcast %cst_314 : f32 to vector<16x16xf32>
    %350 = arith.mulf %349, %346 : vector<16x16xf32>
    %351 = arith.select %348, %346, %350 : vector<16x16xi1>, vector<16x16xf32>
    %352 = arith.truncf %165 : vector<16x64xf32> to vector<16x64xbf16>
    %c0_315 = arith.constant 0 : index
    %c0_316 = arith.constant 0 : index
    %353 = vector.load %arg19[%c0_315, %c0_316] : memref<16x16xbf16, #tpu.memory_space<vmem>>, vector<16x16xbf16>
    %cst_317 = arith.constant dense<0.000000e+00> : vector<16x64xf32>
    %354 = tpu.matmul %353, %352, %cst_317 {dimension_numbers = #tpu.dot_dimension_numbers<[1], [0], [0], [1], [0, 0, 1, 1], [], []>} : vector<16x16xbf16>, vector<16x64xbf16>, vector<16x64xf32> -> vector<16x64xf32>
    %c0_318 = arith.constant 0 : index
    %c0_319 = arith.constant 0 : index
    %355 = vector.load %arg20[%c0_318, %c0_319] : memref<16x1xf32, #tpu.memory_space<vmem>>, vector<16x1xf32>
    %356 = vector.broadcast %355 : vector<16x1xf32> to vector<16x64xf32>
    %357 = arith.addf %354, %356 : vector<16x64xf32>
    %cst_320 = arith.constant 0.000000e+00 : f32
    %358 = vector.broadcast %cst_320 : f32 to vector<16x64xf32>
    %359 = arith.cmpf ogt, %357, %358 : vector<16x64xf32>
    %cst_321 = arith.constant 1.000000e-01 : f32
    %360 = vector.broadcast %cst_321 : f32 to vector<16x64xf32>
    %361 = arith.mulf %360, %357 : vector<16x64xf32>
    %362 = arith.select %359, %357, %361 : vector<16x64xi1>, vector<16x64xf32>
    %363 = arith.truncf %340 : vector<16x4xf32> to vector<16x4xbf16>
    %c0_322 = arith.constant 0 : index
    %c0_323 = arith.constant 0 : index
    %364 = vector.load %arg9[%c0_322, %c0_323] : memref<4x16xbf16, #tpu.memory_space<vmem>>, vector<4x16xbf16>
    %cst_324 = arith.constant dense<0.000000e+00> : vector<16x16xf32>
    %365 = tpu.matmul %363, %364, %cst_324 {dimension_numbers = #tpu.dot_dimension_numbers<[1], [0], [0], [1], [0, 0, 1, 1], [], []>} : vector<16x4xbf16>, vector<4x16xbf16>, vector<16x16xf32> -> vector<16x16xf32>
    %366 = arith.addf %351, %365 : vector<16x16xf32>
    %367 = arith.truncf %366 : vector<16x16xf32> to vector<16x16xbf16>
    %c0_325 = arith.constant 0 : index
    %c0_326 = arith.constant 0 : index
    %368 = vector.load %arg10[%c0_325, %c0_326] : memref<16x64xbf16, #tpu.memory_space<vmem>>, vector<16x64xbf16>
    %cst_327 = arith.constant dense<0.000000e+00> : vector<16x64xf32>
    %369 = tpu.matmul %367, %368, %cst_327 {dimension_numbers = #tpu.dot_dimension_numbers<[1], [0], [0], [1], [0, 0, 1, 1], [], []>} : vector<16x16xbf16>, vector<16x64xbf16>, vector<16x64xf32> -> vector<16x64xf32>
    %370 = arith.addf %362, %369 : vector<16x64xf32>
    %371 = arith.truncf %340 : vector<16x4xf32> to vector<16x4xbf16>
    %cst_328 = arith.constant 0.000000e+00 : f32
    %372 = vector.broadcast %cst_328 : f32 to vector<16x4xf32>
    %c0_329 = arith.constant 0 : index
    %c0_330 = arith.constant 0 : index
    %c0_331 = arith.constant 0 : index
    %373 = vector.load %arg8[%c0_329, %c0_330, %c0_331] : memref<9x4x4xbf16, #tpu.memory_space<vmem>>, vector<1x4x4xbf16>
    %374 = vector.shape_cast %373 : vector<1x4x4xbf16> to vector<4x4xbf16>
    %cst_332 = arith.constant dense<0.000000e+00> : vector<16x4xf32>
    %375 = tpu.matmul %371, %374, %cst_332 {dimension_numbers = #tpu.dot_dimension_numbers<[1], [0], [0], [1], [0, 0, 1, 1], [], []>} : vector<16x4xbf16>, vector<4x4xbf16>, vector<16x4xf32> -> vector<16x4xf32>
    %c0_333 = arith.constant 0 : index
    %c0_334 = arith.constant 0 : index
    %c0_335 = arith.constant 0 : index
    %376 = vector.load %arg29[%c0_333, %c0_334, %c0_335] : memref<9x16x16xbf16, #tpu.memory_space<vmem>>, vector<1x16x16xbf16>
    %377 = vector.shape_cast %376 : vector<1x16x16xbf16> to vector<16x16xbf16>
    %378 = arith.truncf %375 : vector<16x4xf32> to vector<16x4xbf16>
    %cst_336 = arith.constant dense<0.000000e+00> : vector<16x4xf32>
    %379 = tpu.matmul %377, %378, %cst_336 {dimension_numbers = #tpu.dot_dimension_numbers<[1], [0], [0], [1], [0, 0, 1, 1], [], []>} : vector<16x16xbf16>, vector<16x4xbf16>, vector<16x4xf32> -> vector<16x4xf32>
    %380 = arith.addf %372, %379 : vector<16x4xf32>
    %c1_337 = arith.constant 1 : index
    %c0_338 = arith.constant 0 : index
    %c0_339 = arith.constant 0 : index
    %381 = vector.load %arg8[%c1_337, %c0_338, %c0_339] : memref<9x4x4xbf16, #tpu.memory_space<vmem>>, vector<1x4x4xbf16>
    %382 = vector.shape_cast %381 : vector<1x4x4xbf16> to vector<4x4xbf16>
    %cst_340 = arith.constant dense<0.000000e+00> : vector<16x4xf32>
    %383 = tpu.matmul %371, %382, %cst_340 {dimension_numbers = #tpu.dot_dimension_numbers<[1], [0], [0], [1], [0, 0, 1, 1], [], []>} : vector<16x4xbf16>, vector<4x4xbf16>, vector<16x4xf32> -> vector<16x4xf32>
    %c1_341 = arith.constant 1 : index
    %c0_342 = arith.constant 0 : index
    %c0_343 = arith.constant 0 : index
    %384 = vector.load %arg29[%c1_341, %c0_342, %c0_343] : memref<9x16x16xbf16, #tpu.memory_space<vmem>>, vector<1x16x16xbf16>
    %385 = vector.shape_cast %384 : vector<1x16x16xbf16> to vector<16x16xbf16>
    %386 = arith.truncf %383 : vector<16x4xf32> to vector<16x4xbf16>
    %cst_344 = arith.constant dense<0.000000e+00> : vector<16x4xf32>
    %387 = tpu.matmul %385, %386, %cst_344 {dimension_numbers = #tpu.dot_dimension_numbers<[1], [0], [0], [1], [0, 0, 1, 1], [], []>} : vector<16x16xbf16>, vector<16x4xbf16>, vector<16x4xf32> -> vector<16x4xf32>
    %388 = arith.addf %380, %387 : vector<16x4xf32>
    %c2_345 = arith.constant 2 : index
    %c0_346 = arith.constant 0 : index
    %c0_347 = arith.constant 0 : index
    %389 = vector.load %arg8[%c2_345, %c0_346, %c0_347] : memref<9x4x4xbf16, #tpu.memory_space<vmem>>, vector<1x4x4xbf16>
    %390 = vector.shape_cast %389 : vector<1x4x4xbf16> to vector<4x4xbf16>
    %cst_348 = arith.constant dense<0.000000e+00> : vector<16x4xf32>
    %391 = tpu.matmul %371, %390, %cst_348 {dimension_numbers = #tpu.dot_dimension_numbers<[1], [0], [0], [1], [0, 0, 1, 1], [], []>} : vector<16x4xbf16>, vector<4x4xbf16>, vector<16x4xf32> -> vector<16x4xf32>
    %c2_349 = arith.constant 2 : index
    %c0_350 = arith.constant 0 : index
    %c0_351 = arith.constant 0 : index
    %392 = vector.load %arg29[%c2_349, %c0_350, %c0_351] : memref<9x16x16xbf16, #tpu.memory_space<vmem>>, vector<1x16x16xbf16>
    %393 = vector.shape_cast %392 : vector<1x16x16xbf16> to vector<16x16xbf16>
    %394 = arith.truncf %391 : vector<16x4xf32> to vector<16x4xbf16>
    %cst_352 = arith.constant dense<0.000000e+00> : vector<16x4xf32>
    %395 = tpu.matmul %393, %394, %cst_352 {dimension_numbers = #tpu.dot_dimension_numbers<[1], [0], [0], [1], [0, 0, 1, 1], [], []>} : vector<16x16xbf16>, vector<16x4xbf16>, vector<16x4xf32> -> vector<16x4xf32>
    %396 = arith.addf %388, %395 : vector<16x4xf32>
    %c3_353 = arith.constant 3 : index
    %c0_354 = arith.constant 0 : index
    %c0_355 = arith.constant 0 : index
    %397 = vector.load %arg8[%c3_353, %c0_354, %c0_355] : memref<9x4x4xbf16, #tpu.memory_space<vmem>>, vector<1x4x4xbf16>
    %398 = vector.shape_cast %397 : vector<1x4x4xbf16> to vector<4x4xbf16>
    %cst_356 = arith.constant dense<0.000000e+00> : vector<16x4xf32>
    %399 = tpu.matmul %371, %398, %cst_356 {dimension_numbers = #tpu.dot_dimension_numbers<[1], [0], [0], [1], [0, 0, 1, 1], [], []>} : vector<16x4xbf16>, vector<4x4xbf16>, vector<16x4xf32> -> vector<16x4xf32>
    %c3_357 = arith.constant 3 : index
    %c0_358 = arith.constant 0 : index
    %c0_359 = arith.constant 0 : index
    %400 = vector.load %arg29[%c3_357, %c0_358, %c0_359] : memref<9x16x16xbf16, #tpu.memory_space<vmem>>, vector<1x16x16xbf16>
    %401 = vector.shape_cast %400 : vector<1x16x16xbf16> to vector<16x16xbf16>
    %402 = arith.truncf %399 : vector<16x4xf32> to vector<16x4xbf16>
    %cst_360 = arith.constant dense<0.000000e+00> : vector<16x4xf32>
    %403 = tpu.matmul %401, %402, %cst_360 {dimension_numbers = #tpu.dot_dimension_numbers<[1], [0], [0], [1], [0, 0, 1, 1], [], []>} : vector<16x16xbf16>, vector<16x4xbf16>, vector<16x4xf32> -> vector<16x4xf32>
    %404 = arith.addf %396, %403 : vector<16x4xf32>
    %c4_361 = arith.constant 4 : index
    %c0_362 = arith.constant 0 : index
    %c0_363 = arith.constant 0 : index
    %405 = vector.load %arg8[%c4_361, %c0_362, %c0_363] : memref<9x4x4xbf16, #tpu.memory_space<vmem>>, vector<1x4x4xbf16>
    %406 = vector.shape_cast %405 : vector<1x4x4xbf16> to vector<4x4xbf16>
    %cst_364 = arith.constant dense<0.000000e+00> : vector<16x4xf32>
    %407 = tpu.matmul %371, %406, %cst_364 {dimension_numbers = #tpu.dot_dimension_numbers<[1], [0], [0], [1], [0, 0, 1, 1], [], []>} : vector<16x4xbf16>, vector<4x4xbf16>, vector<16x4xf32> -> vector<16x4xf32>
    %c4_365 = arith.constant 4 : index
    %c0_366 = arith.constant 0 : index
    %c0_367 = arith.constant 0 : index
    %408 = vector.load %arg29[%c4_365, %c0_366, %c0_367] : memref<9x16x16xbf16, #tpu.memory_space<vmem>>, vector<1x16x16xbf16>
    %409 = vector.shape_cast %408 : vector<1x16x16xbf16> to vector<16x16xbf16>
    %410 = arith.truncf %407 : vector<16x4xf32> to vector<16x4xbf16>
    %cst_368 = arith.constant dense<0.000000e+00> : vector<16x4xf32>
    %411 = tpu.matmul %409, %410, %cst_368 {dimension_numbers = #tpu.dot_dimension_numbers<[1], [0], [0], [1], [0, 0, 1, 1], [], []>} : vector<16x16xbf16>, vector<16x4xbf16>, vector<16x4xf32> -> vector<16x4xf32>
    %412 = arith.addf %404, %411 : vector<16x4xf32>
    %c5_369 = arith.constant 5 : index
    %c0_370 = arith.constant 0 : index
    %c0_371 = arith.constant 0 : index
    %413 = vector.load %arg8[%c5_369, %c0_370, %c0_371] : memref<9x4x4xbf16, #tpu.memory_space<vmem>>, vector<1x4x4xbf16>
    %414 = vector.shape_cast %413 : vector<1x4x4xbf16> to vector<4x4xbf16>
    %cst_372 = arith.constant dense<0.000000e+00> : vector<16x4xf32>
    %415 = tpu.matmul %371, %414, %cst_372 {dimension_numbers = #tpu.dot_dimension_numbers<[1], [0], [0], [1], [0, 0, 1, 1], [], []>} : vector<16x4xbf16>, vector<4x4xbf16>, vector<16x4xf32> -> vector<16x4xf32>
    %c5_373 = arith.constant 5 : index
    %c0_374 = arith.constant 0 : index
    %c0_375 = arith.constant 0 : index
    %416 = vector.load %arg29[%c5_373, %c0_374, %c0_375] : memref<9x16x16xbf16, #tpu.memory_space<vmem>>, vector<1x16x16xbf16>
    %417 = vector.shape_cast %416 : vector<1x16x16xbf16> to vector<16x16xbf16>
    %418 = arith.truncf %415 : vector<16x4xf32> to vector<16x4xbf16>
    %cst_376 = arith.constant dense<0.000000e+00> : vector<16x4xf32>
    %419 = tpu.matmul %417, %418, %cst_376 {dimension_numbers = #tpu.dot_dimension_numbers<[1], [0], [0], [1], [0, 0, 1, 1], [], []>} : vector<16x16xbf16>, vector<16x4xbf16>, vector<16x4xf32> -> vector<16x4xf32>
    %420 = arith.addf %412, %419 : vector<16x4xf32>
    %c6_377 = arith.constant 6 : index
    %c0_378 = arith.constant 0 : index
    %c0_379 = arith.constant 0 : index
    %421 = vector.load %arg8[%c6_377, %c0_378, %c0_379] : memref<9x4x4xbf16, #tpu.memory_space<vmem>>, vector<1x4x4xbf16>
    %422 = vector.shape_cast %421 : vector<1x4x4xbf16> to vector<4x4xbf16>
    %cst_380 = arith.constant dense<0.000000e+00> : vector<16x4xf32>
    %423 = tpu.matmul %371, %422, %cst_380 {dimension_numbers = #tpu.dot_dimension_numbers<[1], [0], [0], [1], [0, 0, 1, 1], [], []>} : vector<16x4xbf16>, vector<4x4xbf16>, vector<16x4xf32> -> vector<16x4xf32>
    %c6_381 = arith.constant 6 : index
    %c0_382 = arith.constant 0 : index
    %c0_383 = arith.constant 0 : index
    %424 = vector.load %arg29[%c6_381, %c0_382, %c0_383] : memref<9x16x16xbf16, #tpu.memory_space<vmem>>, vector<1x16x16xbf16>
    %425 = vector.shape_cast %424 : vector<1x16x16xbf16> to vector<16x16xbf16>
    %426 = arith.truncf %423 : vector<16x4xf32> to vector<16x4xbf16>
    %cst_384 = arith.constant dense<0.000000e+00> : vector<16x4xf32>
    %427 = tpu.matmul %425, %426, %cst_384 {dimension_numbers = #tpu.dot_dimension_numbers<[1], [0], [0], [1], [0, 0, 1, 1], [], []>} : vector<16x16xbf16>, vector<16x4xbf16>, vector<16x4xf32> -> vector<16x4xf32>
    %428 = arith.addf %420, %427 : vector<16x4xf32>
    %c7_385 = arith.constant 7 : index
    %c0_386 = arith.constant 0 : index
    %c0_387 = arith.constant 0 : index
    %429 = vector.load %arg8[%c7_385, %c0_386, %c0_387] : memref<9x4x4xbf16, #tpu.memory_space<vmem>>, vector<1x4x4xbf16>
    %430 = vector.shape_cast %429 : vector<1x4x4xbf16> to vector<4x4xbf16>
    %cst_388 = arith.constant dense<0.000000e+00> : vector<16x4xf32>
    %431 = tpu.matmul %371, %430, %cst_388 {dimension_numbers = #tpu.dot_dimension_numbers<[1], [0], [0], [1], [0, 0, 1, 1], [], []>} : vector<16x4xbf16>, vector<4x4xbf16>, vector<16x4xf32> -> vector<16x4xf32>
    %c7_389 = arith.constant 7 : index
    %c0_390 = arith.constant 0 : index
    %c0_391 = arith.constant 0 : index
    %432 = vector.load %arg29[%c7_389, %c0_390, %c0_391] : memref<9x16x16xbf16, #tpu.memory_space<vmem>>, vector<1x16x16xbf16>
    %433 = vector.shape_cast %432 : vector<1x16x16xbf16> to vector<16x16xbf16>
    %434 = arith.truncf %431 : vector<16x4xf32> to vector<16x4xbf16>
    %cst_392 = arith.constant dense<0.000000e+00> : vector<16x4xf32>
    %435 = tpu.matmul %433, %434, %cst_392 {dimension_numbers = #tpu.dot_dimension_numbers<[1], [0], [0], [1], [0, 0, 1, 1], [], []>} : vector<16x16xbf16>, vector<16x4xbf16>, vector<16x4xf32> -> vector<16x4xf32>
    %436 = arith.addf %428, %435 : vector<16x4xf32>
    %c8_393 = arith.constant 8 : index
    %c0_394 = arith.constant 0 : index
    %c0_395 = arith.constant 0 : index
    %437 = vector.load %arg8[%c8_393, %c0_394, %c0_395] : memref<9x4x4xbf16, #tpu.memory_space<vmem>>, vector<1x4x4xbf16>
    %438 = vector.shape_cast %437 : vector<1x4x4xbf16> to vector<4x4xbf16>
    %cst_396 = arith.constant dense<0.000000e+00> : vector<16x4xf32>
    %439 = tpu.matmul %371, %438, %cst_396 {dimension_numbers = #tpu.dot_dimension_numbers<[1], [0], [0], [1], [0, 0, 1, 1], [], []>} : vector<16x4xbf16>, vector<4x4xbf16>, vector<16x4xf32> -> vector<16x4xf32>
    %c8_397 = arith.constant 8 : index
    %c0_398 = arith.constant 0 : index
    %c0_399 = arith.constant 0 : index
    %440 = vector.load %arg29[%c8_397, %c0_398, %c0_399] : memref<9x16x16xbf16, #tpu.memory_space<vmem>>, vector<1x16x16xbf16>
    %441 = vector.shape_cast %440 : vector<1x16x16xbf16> to vector<16x16xbf16>
    %442 = arith.truncf %439 : vector<16x4xf32> to vector<16x4xbf16>
    %cst_400 = arith.constant dense<0.000000e+00> : vector<16x4xf32>
    %443 = tpu.matmul %441, %442, %cst_400 {dimension_numbers = #tpu.dot_dimension_numbers<[1], [0], [0], [1], [0, 0, 1, 1], [], []>} : vector<16x16xbf16>, vector<16x4xbf16>, vector<16x4xf32> -> vector<16x4xf32>
    %444 = arith.addf %436, %443 : vector<16x4xf32>
    %c0_401 = arith.constant 0 : index
    %c0_402 = arith.constant 0 : index
    %445 = vector.load %arg30[%c0_401, %c0_402] : memref<16x1xf32, #tpu.memory_space<vmem>>, vector<16x1xf32>
    %446 = vector.broadcast %445 : vector<16x1xf32> to vector<16x4xf32>
    %447 = arith.addf %444, %446 : vector<16x4xf32>
    %cst_403 = arith.constant 0.000000e+00 : f32
    %448 = vector.broadcast %cst_403 : f32 to vector<16x4xf32>
    %449 = arith.cmpf ogt, %447, %448 : vector<16x4xf32>
    %cst_404 = arith.constant 1.000000e-01 : f32
    %450 = vector.broadcast %cst_404 : f32 to vector<16x4xf32>
    %451 = arith.mulf %450, %447 : vector<16x4xf32>
    %452 = arith.select %449, %447, %451 : vector<16x4xi1>, vector<16x4xf32>
    %453 = arith.truncf %366 : vector<16x16xf32> to vector<16x16xbf16>
    %cst_405 = arith.constant 0.000000e+00 : f32
    %454 = vector.broadcast %cst_405 : f32 to vector<16x16xf32>
    %c0_406 = arith.constant 0 : index
    %c0_407 = arith.constant 0 : index
    %c0_408 = arith.constant 0 : index
    %455 = vector.load %arg7[%c0_406, %c0_407, %c0_408] : memref<9x16x16xbf16, #tpu.memory_space<vmem>>, vector<1x16x16xbf16>
    %456 = vector.shape_cast %455 : vector<1x16x16xbf16> to vector<16x16xbf16>
    %cst_409 = arith.constant dense<0.000000e+00> : vector<16x16xf32>
    %457 = tpu.matmul %453, %456, %cst_409 {dimension_numbers = #tpu.dot_dimension_numbers<[1], [0], [0], [1], [0, 0, 1, 1], [], []>} : vector<16x16xbf16>, vector<16x16xbf16>, vector<16x16xf32> -> vector<16x16xf32>
    %c0_410 = arith.constant 0 : index
    %c0_411 = arith.constant 0 : index
    %c0_412 = arith.constant 0 : index
    %458 = vector.load %arg27[%c0_410, %c0_411, %c0_412] : memref<9x16x16xbf16, #tpu.memory_space<vmem>>, vector<1x16x16xbf16>
    %459 = vector.shape_cast %458 : vector<1x16x16xbf16> to vector<16x16xbf16>
    %460 = arith.truncf %457 : vector<16x16xf32> to vector<16x16xbf16>
    %cst_413 = arith.constant dense<0.000000e+00> : vector<16x16xf32>
    %461 = tpu.matmul %459, %460, %cst_413 {dimension_numbers = #tpu.dot_dimension_numbers<[1], [0], [0], [1], [0, 0, 1, 1], [], []>} : vector<16x16xbf16>, vector<16x16xbf16>, vector<16x16xf32> -> vector<16x16xf32>
    %462 = arith.addf %454, %461 : vector<16x16xf32>
    %c1_414 = arith.constant 1 : index
    %c0_415 = arith.constant 0 : index
    %c0_416 = arith.constant 0 : index
    %463 = vector.load %arg7[%c1_414, %c0_415, %c0_416] : memref<9x16x16xbf16, #tpu.memory_space<vmem>>, vector<1x16x16xbf16>
    %464 = vector.shape_cast %463 : vector<1x16x16xbf16> to vector<16x16xbf16>
    %cst_417 = arith.constant dense<0.000000e+00> : vector<16x16xf32>
    %465 = tpu.matmul %453, %464, %cst_417 {dimension_numbers = #tpu.dot_dimension_numbers<[1], [0], [0], [1], [0, 0, 1, 1], [], []>} : vector<16x16xbf16>, vector<16x16xbf16>, vector<16x16xf32> -> vector<16x16xf32>
    %c1_418 = arith.constant 1 : index
    %c0_419 = arith.constant 0 : index
    %c0_420 = arith.constant 0 : index
    %466 = vector.load %arg27[%c1_418, %c0_419, %c0_420] : memref<9x16x16xbf16, #tpu.memory_space<vmem>>, vector<1x16x16xbf16>
    %467 = vector.shape_cast %466 : vector<1x16x16xbf16> to vector<16x16xbf16>
    %468 = arith.truncf %465 : vector<16x16xf32> to vector<16x16xbf16>
    %cst_421 = arith.constant dense<0.000000e+00> : vector<16x16xf32>
    %469 = tpu.matmul %467, %468, %cst_421 {dimension_numbers = #tpu.dot_dimension_numbers<[1], [0], [0], [1], [0, 0, 1, 1], [], []>} : vector<16x16xbf16>, vector<16x16xbf16>, vector<16x16xf32> -> vector<16x16xf32>
    %470 = arith.addf %462, %469 : vector<16x16xf32>
    %c2_422 = arith.constant 2 : index
    %c0_423 = arith.constant 0 : index
    %c0_424 = arith.constant 0 : index
    %471 = vector.load %arg7[%c2_422, %c0_423, %c0_424] : memref<9x16x16xbf16, #tpu.memory_space<vmem>>, vector<1x16x16xbf16>
    %472 = vector.shape_cast %471 : vector<1x16x16xbf16> to vector<16x16xbf16>
    %cst_425 = arith.constant dense<0.000000e+00> : vector<16x16xf32>
    %473 = tpu.matmul %453, %472, %cst_425 {dimension_numbers = #tpu.dot_dimension_numbers<[1], [0], [0], [1], [0, 0, 1, 1], [], []>} : vector<16x16xbf16>, vector<16x16xbf16>, vector<16x16xf32> -> vector<16x16xf32>
    %c2_426 = arith.constant 2 : index
    %c0_427 = arith.constant 0 : index
    %c0_428 = arith.constant 0 : index
    %474 = vector.load %arg27[%c2_426, %c0_427, %c0_428] : memref<9x16x16xbf16, #tpu.memory_space<vmem>>, vector<1x16x16xbf16>
    %475 = vector.shape_cast %474 : vector<1x16x16xbf16> to vector<16x16xbf16>
    %476 = arith.truncf %473 : vector<16x16xf32> to vector<16x16xbf16>
    %cst_429 = arith.constant dense<0.000000e+00> : vector<16x16xf32>
    %477 = tpu.matmul %475, %476, %cst_429 {dimension_numbers = #tpu.dot_dimension_numbers<[1], [0], [0], [1], [0, 0, 1, 1], [], []>} : vector<16x16xbf16>, vector<16x16xbf16>, vector<16x16xf32> -> vector<16x16xf32>
    %478 = arith.addf %470, %477 : vector<16x16xf32>
    %c3_430 = arith.constant 3 : index
    %c0_431 = arith.constant 0 : index
    %c0_432 = arith.constant 0 : index
    %479 = vector.load %arg7[%c3_430, %c0_431, %c0_432] : memref<9x16x16xbf16, #tpu.memory_space<vmem>>, vector<1x16x16xbf16>
    %480 = vector.shape_cast %479 : vector<1x16x16xbf16> to vector<16x16xbf16>
    %cst_433 = arith.constant dense<0.000000e+00> : vector<16x16xf32>
    %481 = tpu.matmul %453, %480, %cst_433 {dimension_numbers = #tpu.dot_dimension_numbers<[1], [0], [0], [1], [0, 0, 1, 1], [], []>} : vector<16x16xbf16>, vector<16x16xbf16>, vector<16x16xf32> -> vector<16x16xf32>
    %c3_434 = arith.constant 3 : index
    %c0_435 = arith.constant 0 : index
    %c0_436 = arith.constant 0 : index
    %482 = vector.load %arg27[%c3_434, %c0_435, %c0_436] : memref<9x16x16xbf16, #tpu.memory_space<vmem>>, vector<1x16x16xbf16>
    %483 = vector.shape_cast %482 : vector<1x16x16xbf16> to vector<16x16xbf16>
    %484 = arith.truncf %481 : vector<16x16xf32> to vector<16x16xbf16>
    %cst_437 = arith.constant dense<0.000000e+00> : vector<16x16xf32>
    %485 = tpu.matmul %483, %484, %cst_437 {dimension_numbers = #tpu.dot_dimension_numbers<[1], [0], [0], [1], [0, 0, 1, 1], [], []>} : vector<16x16xbf16>, vector<16x16xbf16>, vector<16x16xf32> -> vector<16x16xf32>
    %486 = arith.addf %478, %485 : vector<16x16xf32>
    %c4_438 = arith.constant 4 : index
    %c0_439 = arith.constant 0 : index
    %c0_440 = arith.constant 0 : index
    %487 = vector.load %arg7[%c4_438, %c0_439, %c0_440] : memref<9x16x16xbf16, #tpu.memory_space<vmem>>, vector<1x16x16xbf16>
    %488 = vector.shape_cast %487 : vector<1x16x16xbf16> to vector<16x16xbf16>
    %cst_441 = arith.constant dense<0.000000e+00> : vector<16x16xf32>
    %489 = tpu.matmul %453, %488, %cst_441 {dimension_numbers = #tpu.dot_dimension_numbers<[1], [0], [0], [1], [0, 0, 1, 1], [], []>} : vector<16x16xbf16>, vector<16x16xbf16>, vector<16x16xf32> -> vector<16x16xf32>
    %c4_442 = arith.constant 4 : index
    %c0_443 = arith.constant 0 : index
    %c0_444 = arith.constant 0 : index
    %490 = vector.load %arg27[%c4_442, %c0_443, %c0_444] : memref<9x16x16xbf16, #tpu.memory_space<vmem>>, vector<1x16x16xbf16>
    %491 = vector.shape_cast %490 : vector<1x16x16xbf16> to vector<16x16xbf16>
    %492 = arith.truncf %489 : vector<16x16xf32> to vector<16x16xbf16>
    %cst_445 = arith.constant dense<0.000000e+00> : vector<16x16xf32>
    %493 = tpu.matmul %491, %492, %cst_445 {dimension_numbers = #tpu.dot_dimension_numbers<[1], [0], [0], [1], [0, 0, 1, 1], [], []>} : vector<16x16xbf16>, vector<16x16xbf16>, vector<16x16xf32> -> vector<16x16xf32>
    %494 = arith.addf %486, %493 : vector<16x16xf32>
    %c5_446 = arith.constant 5 : index
    %c0_447 = arith.constant 0 : index
    %c0_448 = arith.constant 0 : index
    %495 = vector.load %arg7[%c5_446, %c0_447, %c0_448] : memref<9x16x16xbf16, #tpu.memory_space<vmem>>, vector<1x16x16xbf16>
    %496 = vector.shape_cast %495 : vector<1x16x16xbf16> to vector<16x16xbf16>
    %cst_449 = arith.constant dense<0.000000e+00> : vector<16x16xf32>
    %497 = tpu.matmul %453, %496, %cst_449 {dimension_numbers = #tpu.dot_dimension_numbers<[1], [0], [0], [1], [0, 0, 1, 1], [], []>} : vector<16x16xbf16>, vector<16x16xbf16>, vector<16x16xf32> -> vector<16x16xf32>
    %c5_450 = arith.constant 5 : index
    %c0_451 = arith.constant 0 : index
    %c0_452 = arith.constant 0 : index
    %498 = vector.load %arg27[%c5_450, %c0_451, %c0_452] : memref<9x16x16xbf16, #tpu.memory_space<vmem>>, vector<1x16x16xbf16>
    %499 = vector.shape_cast %498 : vector<1x16x16xbf16> to vector<16x16xbf16>
    %500 = arith.truncf %497 : vector<16x16xf32> to vector<16x16xbf16>
    %cst_453 = arith.constant dense<0.000000e+00> : vector<16x16xf32>
    %501 = tpu.matmul %499, %500, %cst_453 {dimension_numbers = #tpu.dot_dimension_numbers<[1], [0], [0], [1], [0, 0, 1, 1], [], []>} : vector<16x16xbf16>, vector<16x16xbf16>, vector<16x16xf32> -> vector<16x16xf32>
    %502 = arith.addf %494, %501 : vector<16x16xf32>
    %c6_454 = arith.constant 6 : index
    %c0_455 = arith.constant 0 : index
    %c0_456 = arith.constant 0 : index
    %503 = vector.load %arg7[%c6_454, %c0_455, %c0_456] : memref<9x16x16xbf16, #tpu.memory_space<vmem>>, vector<1x16x16xbf16>
    %504 = vector.shape_cast %503 : vector<1x16x16xbf16> to vector<16x16xbf16>
    %cst_457 = arith.constant dense<0.000000e+00> : vector<16x16xf32>
    %505 = tpu.matmul %453, %504, %cst_457 {dimension_numbers = #tpu.dot_dimension_numbers<[1], [0], [0], [1], [0, 0, 1, 1], [], []>} : vector<16x16xbf16>, vector<16x16xbf16>, vector<16x16xf32> -> vector<16x16xf32>
    %c6_458 = arith.constant 6 : index
    %c0_459 = arith.constant 0 : index
    %c0_460 = arith.constant 0 : index
    %506 = vector.load %arg27[%c6_458, %c0_459, %c0_460] : memref<9x16x16xbf16, #tpu.memory_space<vmem>>, vector<1x16x16xbf16>
    %507 = vector.shape_cast %506 : vector<1x16x16xbf16> to vector<16x16xbf16>
    %508 = arith.truncf %505 : vector<16x16xf32> to vector<16x16xbf16>
    %cst_461 = arith.constant dense<0.000000e+00> : vector<16x16xf32>
    %509 = tpu.matmul %507, %508, %cst_461 {dimension_numbers = #tpu.dot_dimension_numbers<[1], [0], [0], [1], [0, 0, 1, 1], [], []>} : vector<16x16xbf16>, vector<16x16xbf16>, vector<16x16xf32> -> vector<16x16xf32>
    %510 = arith.addf %502, %509 : vector<16x16xf32>
    %c7_462 = arith.constant 7 : index
    %c0_463 = arith.constant 0 : index
    %c0_464 = arith.constant 0 : index
    %511 = vector.load %arg7[%c7_462, %c0_463, %c0_464] : memref<9x16x16xbf16, #tpu.memory_space<vmem>>, vector<1x16x16xbf16>
    %512 = vector.shape_cast %511 : vector<1x16x16xbf16> to vector<16x16xbf16>
    %cst_465 = arith.constant dense<0.000000e+00> : vector<16x16xf32>
    %513 = tpu.matmul %453, %512, %cst_465 {dimension_numbers = #tpu.dot_dimension_numbers<[1], [0], [0], [1], [0, 0, 1, 1], [], []>} : vector<16x16xbf16>, vector<16x16xbf16>, vector<16x16xf32> -> vector<16x16xf32>
    %c7_466 = arith.constant 7 : index
    %c0_467 = arith.constant 0 : index
    %c0_468 = arith.constant 0 : index
    %514 = vector.load %arg27[%c7_466, %c0_467, %c0_468] : memref<9x16x16xbf16, #tpu.memory_space<vmem>>, vector<1x16x16xbf16>
    %515 = vector.shape_cast %514 : vector<1x16x16xbf16> to vector<16x16xbf16>
    %516 = arith.truncf %513 : vector<16x16xf32> to vector<16x16xbf16>
    %cst_469 = arith.constant dense<0.000000e+00> : vector<16x16xf32>
    %517 = tpu.matmul %515, %516, %cst_469 {dimension_numbers = #tpu.dot_dimension_numbers<[1], [0], [0], [1], [0, 0, 1, 1], [], []>} : vector<16x16xbf16>, vector<16x16xbf16>, vector<16x16xf32> -> vector<16x16xf32>
    %518 = arith.addf %510, %517 : vector<16x16xf32>
    %c8_470 = arith.constant 8 : index
    %c0_471 = arith.constant 0 : index
    %c0_472 = arith.constant 0 : index
    %519 = vector.load %arg7[%c8_470, %c0_471, %c0_472] : memref<9x16x16xbf16, #tpu.memory_space<vmem>>, vector<1x16x16xbf16>
    %520 = vector.shape_cast %519 : vector<1x16x16xbf16> to vector<16x16xbf16>
    %cst_473 = arith.constant dense<0.000000e+00> : vector<16x16xf32>
    %521 = tpu.matmul %453, %520, %cst_473 {dimension_numbers = #tpu.dot_dimension_numbers<[1], [0], [0], [1], [0, 0, 1, 1], [], []>} : vector<16x16xbf16>, vector<16x16xbf16>, vector<16x16xf32> -> vector<16x16xf32>
    %c8_474 = arith.constant 8 : index
    %c0_475 = arith.constant 0 : index
    %c0_476 = arith.constant 0 : index
    %522 = vector.load %arg27[%c8_474, %c0_475, %c0_476] : memref<9x16x16xbf16, #tpu.memory_space<vmem>>, vector<1x16x16xbf16>
    %523 = vector.shape_cast %522 : vector<1x16x16xbf16> to vector<16x16xbf16>
    %524 = arith.truncf %521 : vector<16x16xf32> to vector<16x16xbf16>
    %cst_477 = arith.constant dense<0.000000e+00> : vector<16x16xf32>
    %525 = tpu.matmul %523, %524, %cst_477 {dimension_numbers = #tpu.dot_dimension_numbers<[1], [0], [0], [1], [0, 0, 1, 1], [], []>} : vector<16x16xbf16>, vector<16x16xbf16>, vector<16x16xf32> -> vector<16x16xf32>
    %526 = arith.addf %518, %525 : vector<16x16xf32>
    %c0_478 = arith.constant 0 : index
    %c0_479 = arith.constant 0 : index
    %527 = vector.load %arg28[%c0_478, %c0_479] : memref<16x1xf32, #tpu.memory_space<vmem>>, vector<16x1xf32>
    %528 = vector.broadcast %527 : vector<16x1xf32> to vector<16x16xf32>
    %529 = arith.addf %526, %528 : vector<16x16xf32>
    %cst_480 = arith.constant 0.000000e+00 : f32
    %530 = vector.broadcast %cst_480 : f32 to vector<16x16xf32>
    %531 = arith.cmpf ogt, %529, %530 : vector<16x16xf32>
    %cst_481 = arith.constant 1.000000e-01 : f32
    %532 = vector.broadcast %cst_481 : f32 to vector<16x16xf32>
    %533 = arith.mulf %532, %529 : vector<16x16xf32>
    %534 = arith.select %531, %529, %533 : vector<16x16xi1>, vector<16x16xf32>
    %535 = arith.truncf %370 : vector<16x64xf32> to vector<16x64xbf16>
    %cst_482 = arith.constant 0.000000e+00 : f32
    %536 = vector.broadcast %cst_482 : f32 to vector<16x64xf32>
    %c0_483 = arith.constant 0 : index
    %c0_484 = arith.constant 0 : index
    %c0_485 = arith.constant 0 : index
    %537 = vector.load %arg6[%c0_483, %c0_484, %c0_485] : memref<9x64x64xbf16, #tpu.memory_space<vmem>>, vector<1x64x64xbf16>
    %538 = vector.shape_cast %537 : vector<1x64x64xbf16> to vector<64x64xbf16>
    %cst_486 = arith.constant dense<0.000000e+00> : vector<16x64xf32>
    %539 = tpu.matmul %535, %538, %cst_486 {dimension_numbers = #tpu.dot_dimension_numbers<[1], [0], [0], [1], [0, 0, 1, 1], [], []>} : vector<16x64xbf16>, vector<64x64xbf16>, vector<16x64xf32> -> vector<16x64xf32>
    %c0_487 = arith.constant 0 : index
    %c0_488 = arith.constant 0 : index
    %c0_489 = arith.constant 0 : index
    %540 = vector.load %arg25[%c0_487, %c0_488, %c0_489] : memref<9x16x16xbf16, #tpu.memory_space<vmem>>, vector<1x16x16xbf16>
    %541 = vector.shape_cast %540 : vector<1x16x16xbf16> to vector<16x16xbf16>
    %542 = arith.truncf %539 : vector<16x64xf32> to vector<16x64xbf16>
    %cst_490 = arith.constant dense<0.000000e+00> : vector<16x64xf32>
    %543 = tpu.matmul %541, %542, %cst_490 {dimension_numbers = #tpu.dot_dimension_numbers<[1], [0], [0], [1], [0, 0, 1, 1], [], []>} : vector<16x16xbf16>, vector<16x64xbf16>, vector<16x64xf32> -> vector<16x64xf32>
    %544 = arith.addf %536, %543 : vector<16x64xf32>
    %c1_491 = arith.constant 1 : index
    %c0_492 = arith.constant 0 : index
    %c0_493 = arith.constant 0 : index
    %545 = vector.load %arg6[%c1_491, %c0_492, %c0_493] : memref<9x64x64xbf16, #tpu.memory_space<vmem>>, vector<1x64x64xbf16>
    %546 = vector.shape_cast %545 : vector<1x64x64xbf16> to vector<64x64xbf16>
    %cst_494 = arith.constant dense<0.000000e+00> : vector<16x64xf32>
    %547 = tpu.matmul %535, %546, %cst_494 {dimension_numbers = #tpu.dot_dimension_numbers<[1], [0], [0], [1], [0, 0, 1, 1], [], []>} : vector<16x64xbf16>, vector<64x64xbf16>, vector<16x64xf32> -> vector<16x64xf32>
    %c1_495 = arith.constant 1 : index
    %c0_496 = arith.constant 0 : index
    %c0_497 = arith.constant 0 : index
    %548 = vector.load %arg25[%c1_495, %c0_496, %c0_497] : memref<9x16x16xbf16, #tpu.memory_space<vmem>>, vector<1x16x16xbf16>
    %549 = vector.shape_cast %548 : vector<1x16x16xbf16> to vector<16x16xbf16>
    %550 = arith.truncf %547 : vector<16x64xf32> to vector<16x64xbf16>
    %cst_498 = arith.constant dense<0.000000e+00> : vector<16x64xf32>
    %551 = tpu.matmul %549, %550, %cst_498 {dimension_numbers = #tpu.dot_dimension_numbers<[1], [0], [0], [1], [0, 0, 1, 1], [], []>} : vector<16x16xbf16>, vector<16x64xbf16>, vector<16x64xf32> -> vector<16x64xf32>
    %552 = arith.addf %544, %551 : vector<16x64xf32>
    %c2_499 = arith.constant 2 : index
    %c0_500 = arith.constant 0 : index
    %c0_501 = arith.constant 0 : index
    %553 = vector.load %arg6[%c2_499, %c0_500, %c0_501] : memref<9x64x64xbf16, #tpu.memory_space<vmem>>, vector<1x64x64xbf16>
    %554 = vector.shape_cast %553 : vector<1x64x64xbf16> to vector<64x64xbf16>
    %cst_502 = arith.constant dense<0.000000e+00> : vector<16x64xf32>
    %555 = tpu.matmul %535, %554, %cst_502 {dimension_numbers = #tpu.dot_dimension_numbers<[1], [0], [0], [1], [0, 0, 1, 1], [], []>} : vector<16x64xbf16>, vector<64x64xbf16>, vector<16x64xf32> -> vector<16x64xf32>
    %c2_503 = arith.constant 2 : index
    %c0_504 = arith.constant 0 : index
    %c0_505 = arith.constant 0 : index
    %556 = vector.load %arg25[%c2_503, %c0_504, %c0_505] : memref<9x16x16xbf16, #tpu.memory_space<vmem>>, vector<1x16x16xbf16>
    %557 = vector.shape_cast %556 : vector<1x16x16xbf16> to vector<16x16xbf16>
    %558 = arith.truncf %555 : vector<16x64xf32> to vector<16x64xbf16>
    %cst_506 = arith.constant dense<0.000000e+00> : vector<16x64xf32>
    %559 = tpu.matmul %557, %558, %cst_506 {dimension_numbers = #tpu.dot_dimension_numbers<[1], [0], [0], [1], [0, 0, 1, 1], [], []>} : vector<16x16xbf16>, vector<16x64xbf16>, vector<16x64xf32> -> vector<16x64xf32>
    %560 = arith.addf %552, %559 : vector<16x64xf32>
    %c3_507 = arith.constant 3 : index
    %c0_508 = arith.constant 0 : index
    %c0_509 = arith.constant 0 : index
    %561 = vector.load %arg6[%c3_507, %c0_508, %c0_509] : memref<9x64x64xbf16, #tpu.memory_space<vmem>>, vector<1x64x64xbf16>
    %562 = vector.shape_cast %561 : vector<1x64x64xbf16> to vector<64x64xbf16>
    %cst_510 = arith.constant dense<0.000000e+00> : vector<16x64xf32>
    %563 = tpu.matmul %535, %562, %cst_510 {dimension_numbers = #tpu.dot_dimension_numbers<[1], [0], [0], [1], [0, 0, 1, 1], [], []>} : vector<16x64xbf16>, vector<64x64xbf16>, vector<16x64xf32> -> vector<16x64xf32>
    %c3_511 = arith.constant 3 : index
    %c0_512 = arith.constant 0 : index
    %c0_513 = arith.constant 0 : index
    %564 = vector.load %arg25[%c3_511, %c0_512, %c0_513] : memref<9x16x16xbf16, #tpu.memory_space<vmem>>, vector<1x16x16xbf16>
    %565 = vector.shape_cast %564 : vector<1x16x16xbf16> to vector<16x16xbf16>
    %566 = arith.truncf %563 : vector<16x64xf32> to vector<16x64xbf16>
    %cst_514 = arith.constant dense<0.000000e+00> : vector<16x64xf32>
    %567 = tpu.matmul %565, %566, %cst_514 {dimension_numbers = #tpu.dot_dimension_numbers<[1], [0], [0], [1], [0, 0, 1, 1], [], []>} : vector<16x16xbf16>, vector<16x64xbf16>, vector<16x64xf32> -> vector<16x64xf32>
    %568 = arith.addf %560, %567 : vector<16x64xf32>
    %c4_515 = arith.constant 4 : index
    %c0_516 = arith.constant 0 : index
    %c0_517 = arith.constant 0 : index
    %569 = vector.load %arg6[%c4_515, %c0_516, %c0_517] : memref<9x64x64xbf16, #tpu.memory_space<vmem>>, vector<1x64x64xbf16>
    %570 = vector.shape_cast %569 : vector<1x64x64xbf16> to vector<64x64xbf16>
    %cst_518 = arith.constant dense<0.000000e+00> : vector<16x64xf32>
    %571 = tpu.matmul %535, %570, %cst_518 {dimension_numbers = #tpu.dot_dimension_numbers<[1], [0], [0], [1], [0, 0, 1, 1], [], []>} : vector<16x64xbf16>, vector<64x64xbf16>, vector<16x64xf32> -> vector<16x64xf32>
    %c4_519 = arith.constant 4 : index
    %c0_520 = arith.constant 0 : index
    %c0_521 = arith.constant 0 : index
    %572 = vector.load %arg25[%c4_519, %c0_520, %c0_521] : memref<9x16x16xbf16, #tpu.memory_space<vmem>>, vector<1x16x16xbf16>
    %573 = vector.shape_cast %572 : vector<1x16x16xbf16> to vector<16x16xbf16>
    %574 = arith.truncf %571 : vector<16x64xf32> to vector<16x64xbf16>
    %cst_522 = arith.constant dense<0.000000e+00> : vector<16x64xf32>
    %575 = tpu.matmul %573, %574, %cst_522 {dimension_numbers = #tpu.dot_dimension_numbers<[1], [0], [0], [1], [0, 0, 1, 1], [], []>} : vector<16x16xbf16>, vector<16x64xbf16>, vector<16x64xf32> -> vector<16x64xf32>
    %576 = arith.addf %568, %575 : vector<16x64xf32>
    %c5_523 = arith.constant 5 : index
    %c0_524 = arith.constant 0 : index
    %c0_525 = arith.constant 0 : index
    %577 = vector.load %arg6[%c5_523, %c0_524, %c0_525] : memref<9x64x64xbf16, #tpu.memory_space<vmem>>, vector<1x64x64xbf16>
    %578 = vector.shape_cast %577 : vector<1x64x64xbf16> to vector<64x64xbf16>
    %cst_526 = arith.constant dense<0.000000e+00> : vector<16x64xf32>
    %579 = tpu.matmul %535, %578, %cst_526 {dimension_numbers = #tpu.dot_dimension_numbers<[1], [0], [0], [1], [0, 0, 1, 1], [], []>} : vector<16x64xbf16>, vector<64x64xbf16>, vector<16x64xf32> -> vector<16x64xf32>
    %c5_527 = arith.constant 5 : index
    %c0_528 = arith.constant 0 : index
    %c0_529 = arith.constant 0 : index
    %580 = vector.load %arg25[%c5_527, %c0_528, %c0_529] : memref<9x16x16xbf16, #tpu.memory_space<vmem>>, vector<1x16x16xbf16>
    %581 = vector.shape_cast %580 : vector<1x16x16xbf16> to vector<16x16xbf16>
    %582 = arith.truncf %579 : vector<16x64xf32> to vector<16x64xbf16>
    %cst_530 = arith.constant dense<0.000000e+00> : vector<16x64xf32>
    %583 = tpu.matmul %581, %582, %cst_530 {dimension_numbers = #tpu.dot_dimension_numbers<[1], [0], [0], [1], [0, 0, 1, 1], [], []>} : vector<16x16xbf16>, vector<16x64xbf16>, vector<16x64xf32> -> vector<16x64xf32>
    %584 = arith.addf %576, %583 : vector<16x64xf32>
    %c6_531 = arith.constant 6 : index
    %c0_532 = arith.constant 0 : index
    %c0_533 = arith.constant 0 : index
    %585 = vector.load %arg6[%c6_531, %c0_532, %c0_533] : memref<9x64x64xbf16, #tpu.memory_space<vmem>>, vector<1x64x64xbf16>
    %586 = vector.shape_cast %585 : vector<1x64x64xbf16> to vector<64x64xbf16>
    %cst_534 = arith.constant dense<0.000000e+00> : vector<16x64xf32>
    %587 = tpu.matmul %535, %586, %cst_534 {dimension_numbers = #tpu.dot_dimension_numbers<[1], [0], [0], [1], [0, 0, 1, 1], [], []>} : vector<16x64xbf16>, vector<64x64xbf16>, vector<16x64xf32> -> vector<16x64xf32>
    %c6_535 = arith.constant 6 : index
    %c0_536 = arith.constant 0 : index
    %c0_537 = arith.constant 0 : index
    %588 = vector.load %arg25[%c6_535, %c0_536, %c0_537] : memref<9x16x16xbf16, #tpu.memory_space<vmem>>, vector<1x16x16xbf16>
    %589 = vector.shape_cast %588 : vector<1x16x16xbf16> to vector<16x16xbf16>
    %590 = arith.truncf %587 : vector<16x64xf32> to vector<16x64xbf16>
    %cst_538 = arith.constant dense<0.000000e+00> : vector<16x64xf32>
    %591 = tpu.matmul %589, %590, %cst_538 {dimension_numbers = #tpu.dot_dimension_numbers<[1], [0], [0], [1], [0, 0, 1, 1], [], []>} : vector<16x16xbf16>, vector<16x64xbf16>, vector<16x64xf32> -> vector<16x64xf32>
    %592 = arith.addf %584, %591 : vector<16x64xf32>
    %c7_539 = arith.constant 7 : index
    %c0_540 = arith.constant 0 : index
    %c0_541 = arith.constant 0 : index
    %593 = vector.load %arg6[%c7_539, %c0_540, %c0_541] : memref<9x64x64xbf16, #tpu.memory_space<vmem>>, vector<1x64x64xbf16>
    %594 = vector.shape_cast %593 : vector<1x64x64xbf16> to vector<64x64xbf16>
    %cst_542 = arith.constant dense<0.000000e+00> : vector<16x64xf32>
    %595 = tpu.matmul %535, %594, %cst_542 {dimension_numbers = #tpu.dot_dimension_numbers<[1], [0], [0], [1], [0, 0, 1, 1], [], []>} : vector<16x64xbf16>, vector<64x64xbf16>, vector<16x64xf32> -> vector<16x64xf32>
    %c7_543 = arith.constant 7 : index
    %c0_544 = arith.constant 0 : index
    %c0_545 = arith.constant 0 : index
    %596 = vector.load %arg25[%c7_543, %c0_544, %c0_545] : memref<9x16x16xbf16, #tpu.memory_space<vmem>>, vector<1x16x16xbf16>
    %597 = vector.shape_cast %596 : vector<1x16x16xbf16> to vector<16x16xbf16>
    %598 = arith.truncf %595 : vector<16x64xf32> to vector<16x64xbf16>
    %cst_546 = arith.constant dense<0.000000e+00> : vector<16x64xf32>
    %599 = tpu.matmul %597, %598, %cst_546 {dimension_numbers = #tpu.dot_dimension_numbers<[1], [0], [0], [1], [0, 0, 1, 1], [], []>} : vector<16x16xbf16>, vector<16x64xbf16>, vector<16x64xf32> -> vector<16x64xf32>
    %600 = arith.addf %592, %599 : vector<16x64xf32>
    %c8_547 = arith.constant 8 : index
    %c0_548 = arith.constant 0 : index
    %c0_549 = arith.constant 0 : index
    %601 = vector.load %arg6[%c8_547, %c0_548, %c0_549] : memref<9x64x64xbf16, #tpu.memory_space<vmem>>, vector<1x64x64xbf16>
    %602 = vector.shape_cast %601 : vector<1x64x64xbf16> to vector<64x64xbf16>
    %cst_550 = arith.constant dense<0.000000e+00> : vector<16x64xf32>
    %603 = tpu.matmul %535, %602, %cst_550 {dimension_numbers = #tpu.dot_dimension_numbers<[1], [0], [0], [1], [0, 0, 1, 1], [], []>} : vector<16x64xbf16>, vector<64x64xbf16>, vector<16x64xf32> -> vector<16x64xf32>
    %c8_551 = arith.constant 8 : index
    %c0_552 = arith.constant 0 : index
    %c0_553 = arith.constant 0 : index
    %604 = vector.load %arg25[%c8_551, %c0_552, %c0_553] : memref<9x16x16xbf16, #tpu.memory_space<vmem>>, vector<1x16x16xbf16>
    %605 = vector.shape_cast %604 : vector<1x16x16xbf16> to vector<16x16xbf16>
    %606 = arith.truncf %603 : vector<16x64xf32> to vector<16x64xbf16>
    %cst_554 = arith.constant dense<0.000000e+00> : vector<16x64xf32>
    %607 = tpu.matmul %605, %606, %cst_554 {dimension_numbers = #tpu.dot_dimension_numbers<[1], [0], [0], [1], [0, 0, 1, 1], [], []>} : vector<16x16xbf16>, vector<16x64xbf16>, vector<16x64xf32> -> vector<16x64xf32>
    %608 = arith.addf %600, %607 : vector<16x64xf32>
    %c0_555 = arith.constant 0 : index
    %c0_556 = arith.constant 0 : index
    %609 = vector.load %arg26[%c0_555, %c0_556] : memref<16x1xf32, #tpu.memory_space<vmem>>, vector<16x1xf32>
    %610 = vector.broadcast %609 : vector<16x1xf32> to vector<16x64xf32>
    %611 = arith.addf %608, %610 : vector<16x64xf32>
    %cst_557 = arith.constant 0.000000e+00 : f32
    %612 = vector.broadcast %cst_557 : f32 to vector<16x64xf32>
    %613 = arith.cmpf ogt, %611, %612 : vector<16x64xf32>
    %cst_558 = arith.constant 1.000000e-01 : f32
    %614 = vector.broadcast %cst_558 : f32 to vector<16x64xf32>
    %615 = arith.mulf %614, %611 : vector<16x64xf32>
    %616 = arith.select %613, %611, %615 : vector<16x64xi1>, vector<16x64xf32>
    %617 = arith.truncf %616 : vector<16x64xf32> to vector<16x64xbf16>
    %c0_559 = arith.constant 0 : index
    %c0_560 = arith.constant 0 : index
    %618 = vector.load %arg31[%c0_559, %c0_560] : memref<27x16xbf16, #tpu.memory_space<vmem>>, vector<27x16xbf16>
    %cst_561 = arith.constant dense<0.000000e+00> : vector<27x64xf32>
    %619 = tpu.matmul %618, %617, %cst_561 {dimension_numbers = #tpu.dot_dimension_numbers<[1], [0], [0], [1], [0, 0, 1, 1], [], []>} : vector<27x16xbf16>, vector<16x64xbf16>, vector<27x64xf32> -> vector<27x64xf32>
    %c0_562 = arith.constant 0 : index
    %c0_563 = arith.constant 0 : index
    %620 = vector.load %arg32[%c0_562, %c0_563] : memref<27x1xf32, #tpu.memory_space<vmem>>, vector<27x1xf32>
    %621 = vector.broadcast %620 : vector<27x1xf32> to vector<27x64xf32>
    %622 = arith.addf %619, %621 : vector<27x64xf32>
    %c0_564 = arith.constant 0 : index
    %c0_565 = arith.constant 0 : index
    %c0_566 = arith.constant 0 : index
    %623 = vector.load %arg37[%c0_564, %c0_565, %c0_566] : memref<1x27x64xf32, #tpu.memory_space<vmem>>, vector<1x27x64xf32>
    %624 = vector.shape_cast %623 : vector<1x27x64xf32> to vector<27x64xf32>
    %625 = vector.shape_cast %622 : vector<27x64xf32> to vector<1x27x64xf32>
    tpu.vector_store %arg37[%c0_564, %c0_565, %c0_566], %625 {strides = array<i32>} : memref<1x27x64xf32, #tpu.memory_space<vmem>>, vector<1x27x64xf32>,
    %626 = arith.truncf %534 : vector<16x16xf32> to vector<16x16xbf16>
    %c0_567 = arith.constant 0 : index
    %c0_568 = arith.constant 0 : index
    %627 = vector.load %arg33[%c0_567, %c0_568] : memref<27x16xbf16, #tpu.memory_space<vmem>>, vector<27x16xbf16>
    %cst_569 = arith.constant dense<0.000000e+00> : vector<27x16xf32>
    %628 = tpu.matmul %627, %626, %cst_569 {dimension_numbers = #tpu.dot_dimension_numbers<[1], [0], [0], [1], [0, 0, 1, 1], [], []>} : vector<27x16xbf16>, vector<16x16xbf16>, vector<27x16xf32> -> vector<27x16xf32>
    %c0_570 = arith.constant 0 : index
    %c0_571 = arith.constant 0 : index
    %629 = vector.load %arg34[%c0_570, %c0_571] : memref<27x1xf32, #tpu.memory_space<vmem>>, vector<27x1xf32>
    %630 = vector.broadcast %629 : vector<27x1xf32> to vector<27x16xf32>
    %631 = arith.addf %628, %630 : vector<27x16xf32>
    %c0_572 = arith.constant 0 : index
    %c0_573 = arith.constant 0 : index
    %c0_574 = arith.constant 0 : index
    %632 = vector.load %arg38[%c0_572, %c0_573, %c0_574] : memref<1x27x16xf32, #tpu.memory_space<vmem>>, vector<1x27x16xf32>
    %633 = vector.shape_cast %632 : vector<1x27x16xf32> to vector<27x16xf32>
    %634 = vector.shape_cast %631 : vector<27x16xf32> to vector<1x27x16xf32>
    tpu.vector_store %arg38[%c0_572, %c0_573, %c0_574], %634 {strides = array<i32>} : memref<1x27x16xf32, #tpu.memory_space<vmem>>, vector<1x27x16xf32>,
    %635 = arith.truncf %452 : vector<16x4xf32> to vector<16x4xbf16>
    %c0_575 = arith.constant 0 : index
    %c0_576 = arith.constant 0 : index
    %636 = vector.load %arg35[%c0_575, %c0_576] : memref<27x16xbf16, #tpu.memory_space<vmem>>, vector<27x16xbf16>
    %cst_577 = arith.constant dense<0.000000e+00> : vector<27x4xf32>
    %637 = tpu.matmul %636, %635, %cst_577 {dimension_numbers = #tpu.dot_dimension_numbers<[1], [0], [0], [1], [0, 0, 1, 1], [], []>} : vector<27x16xbf16>, vector<16x4xbf16>, vector<27x4xf32> -> vector<27x4xf32>
    %c0_578 = arith.constant 0 : index
    %c0_579 = arith.constant 0 : index
    %638 = vector.load %arg36[%c0_578, %c0_579] : memref<27x1xf32, #tpu.memory_space<vmem>>, vector<27x1xf32>
    %639 = vector.broadcast %638 : vector<27x1xf32> to vector<27x4xf32>
    %640 = arith.addf %637, %639 : vector<27x4xf32>
    %c0_580 = arith.constant 0 : index
    %c0_581 = arith.constant 0 : index
    %c0_582 = arith.constant 0 : index
    %641 = vector.load %arg39[%c0_580, %c0_581, %c0_582] : memref<1x27x4xf32, #tpu.memory_space<vmem>>, vector<1x27x4xf32>
    %642 = vector.shape_cast %641 : vector<1x27x4xf32> to vector<27x4xf32>
    %643 = vector.shape_cast %640 : vector<27x4xf32> to vector<1x27x4xf32>
    tpu.vector_store %arg39[%c0_580, %c0_581, %c0_582], %643 {strides = array<i32>} : memref<1x27x4xf32, #tpu.memory_space<vmem>>, vector<1x27x4xf32>,
    return
  }
  func.func @transform_0(%arg0: i32) -> (i32, i32, i32) {
    %c0_i32 = arith.constant 0 : i32
    %c0_i32_0 = arith.constant 0 : i32
    %c0_i32_1 = arith.constant 0 : i32
    return %arg0, %c0_i32, %c0_i32_0 : i32, i32, i32
  }
  func.func @transform_1(%arg0: i32) -> (i32, i32, i32) {
    %c0_i32 = arith.constant 0 : i32
    %c0_i32_0 = arith.constant 0 : i32
    %c0_i32_1 = arith.constant 0 : i32
    %c0_i32_2 = arith.constant 0 : i32
    return %c0_i32, %c0_i32_0, %c0_i32_1 : i32, i32, i32
  }
  func.func @transform_2(%arg0: i32) -> (i32, i32, i32) {
    %c0_i32 = arith.constant 0 : i32
    %c0_i32_0 = arith.constant 0 : i32
    %c0_i32_1 = arith.constant 0 : i32
    %c0_i32_2 = arith.constant 0 : i32
    return %c0_i32, %c0_i32_0, %c0_i32_1 : i32, i32, i32
  }
  func.func @transform_3(%arg0: i32) -> (i32, i32, i32) {
    %c0_i32 = arith.constant 0 : i32
    %c0_i32_0 = arith.constant 0 : i32
    %c0_i32_1 = arith.constant 0 : i32
    %c0_i32_2 = arith.constant 0 : i32
    return %c0_i32, %c0_i32_0, %c0_i32_1 : i32, i32, i32
  }
  func.func @transform_4(%arg0: i32) -> (i32, i32, i32) {
    %c0_i32 = arith.constant 0 : i32
    %c0_i32_0 = arith.constant 0 : i32
    %c0_i32_1 = arith.constant 0 : i32
    %c0_i32_2 = arith.constant 0 : i32
    return %c0_i32, %c0_i32_0, %c0_i32_1 : i32, i32, i32
  }
  func.func @transform_5(%arg0: i32) -> (i32, i32, i32) {
    %c0_i32 = arith.constant 0 : i32
    %c0_i32_0 = arith.constant 0 : i32
    %c0_i32_1 = arith.constant 0 : i32
    %c0_i32_2 = arith.constant 0 : i32
    return %c0_i32, %c0_i32_0, %c0_i32_1 : i32, i32, i32
  }
  func.func @transform_6(%arg0: i32) -> (i32, i32, i32) {
    %c0_i32 = arith.constant 0 : i32
    %c0_i32_0 = arith.constant 0 : i32
    %c0_i32_1 = arith.constant 0 : i32
    %c0_i32_2 = arith.constant 0 : i32
    return %c0_i32, %c0_i32_0, %c0_i32_1 : i32, i32, i32
  }
  func.func @transform_7(%arg0: i32) -> (i32, i32, i32) {
    %c0_i32 = arith.constant 0 : i32
    %c0_i32_0 = arith.constant 0 : i32
    %c0_i32_1 = arith.constant 0 : i32
    %c0_i32_2 = arith.constant 0 : i32
    return %c0_i32, %c0_i32_0, %c0_i32_1 : i32, i32, i32
  }
  func.func @transform_8(%arg0: i32) -> (i32, i32) {
    %c0_i32 = arith.constant 0 : i32
    %c0_i32_0 = arith.constant 0 : i32
    %c0_i32_1 = arith.constant 0 : i32
    return %c0_i32, %c0_i32_0 : i32, i32
  }
  func.func @transform_9(%arg0: i32) -> (i32, i32) {
    %c0_i32 = arith.constant 0 : i32
    %c0_i32_0 = arith.constant 0 : i32
    %c0_i32_1 = arith.constant 0 : i32
    return %c0_i32, %c0_i32_0 : i32, i32
  }
  func.func @transform_10(%arg0: i32) -> (i32, i32, i32) {
    %c0_i32 = arith.constant 0 : i32
    %c0_i32_0 = arith.constant 0 : i32
    %c0_i32_1 = arith.constant 0 : i32
    %c0_i32_2 = arith.constant 0 : i32
    return %c0_i32, %c0_i32_0, %c0_i32_1 : i32, i32, i32
  }
  func.func @transform_11(%arg0: i32) -> (i32, i32) {
    %c0_i32 = arith.constant 0 : i32
    %c0_i32_0 = arith.constant 0 : i32
    %c0_i32_1 = arith.constant 0 : i32
    return %c0_i32, %c0_i32_0 : i32, i32
  }
  func.func @transform_12(%arg0: i32) -> (i32, i32, i32) {
    %c0_i32 = arith.constant 0 : i32
    %c0_i32_0 = arith.constant 0 : i32
    %c0_i32_1 = arith.constant 0 : i32
    %c0_i32_2 = arith.constant 0 : i32
    return %c0_i32, %c0_i32_0, %c0_i32_1 : i32, i32, i32
  }
  func.func @transform_13(%arg0: i32) -> (i32, i32) {
    %c0_i32 = arith.constant 0 : i32
    %c0_i32_0 = arith.constant 0 : i32
    %c0_i32_1 = arith.constant 0 : i32
    return %c0_i32, %c0_i32_0 : i32, i32
  }
  func.func @transform_14(%arg0: i32) -> (i32, i32, i32) {
    %c0_i32 = arith.constant 0 : i32
    %c0_i32_0 = arith.constant 0 : i32
    %c0_i32_1 = arith.constant 0 : i32
    %c0_i32_2 = arith.constant 0 : i32
    return %c0_i32, %c0_i32_0, %c0_i32_1 : i32, i32, i32
  }
  func.func @transform_15(%arg0: i32) -> (i32, i32) {
    %c0_i32 = arith.constant 0 : i32
    %c0_i32_0 = arith.constant 0 : i32
    %c0_i32_1 = arith.constant 0 : i32
    return %c0_i32, %c0_i32_0 : i32, i32
  }
  func.func @transform_16(%arg0: i32) -> (i32, i32, i32) {
    %c0_i32 = arith.constant 0 : i32
    %c0_i32_0 = arith.constant 0 : i32
    %c0_i32_1 = arith.constant 0 : i32
    %c0_i32_2 = arith.constant 0 : i32
    return %c0_i32, %c0_i32_0, %c0_i32_1 : i32, i32, i32
  }
  func.func @transform_17(%arg0: i32) -> (i32, i32) {
    %c0_i32 = arith.constant 0 : i32
    %c0_i32_0 = arith.constant 0 : i32
    %c0_i32_1 = arith.constant 0 : i32
    return %c0_i32, %c0_i32_0 : i32, i32
  }
  func.func @transform_18(%arg0: i32) -> (i32, i32) {
    %c0_i32 = arith.constant 0 : i32
    %c0_i32_0 = arith.constant 0 : i32
    %c0_i32_1 = arith.constant 0 : i32
    return %c0_i32, %c0_i32_0 : i32, i32
  }
  func.func @transform_19(%arg0: i32) -> (i32, i32) {
    %c0_i32 = arith.constant 0 : i32
    %c0_i32_0 = arith.constant 0 : i32
    %c0_i32_1 = arith.constant 0 : i32
    return %c0_i32, %c0_i32_0 : i32, i32
  }
  func.func @transform_20(%arg0: i32) -> (i32, i32) {
    %c0_i32 = arith.constant 0 : i32
    %c0_i32_0 = arith.constant 0 : i32
    %c0_i32_1 = arith.constant 0 : i32
    return %c0_i32, %c0_i32_0 : i32, i32
  }
  func.func @transform_21(%arg0: i32) -> (i32, i32) {
    %c0_i32 = arith.constant 0 : i32
    %c0_i32_0 = arith.constant 0 : i32
    %c0_i32_1 = arith.constant 0 : i32
    return %c0_i32, %c0_i32_0 : i32, i32
  }
  func.func @transform_22(%arg0: i32) -> (i32, i32) {
    %c0_i32 = arith.constant 0 : i32
    %c0_i32_0 = arith.constant 0 : i32
    %c0_i32_1 = arith.constant 0 : i32
    return %c0_i32, %c0_i32_0 : i32, i32
  }
  func.func @transform_23(%arg0: i32) -> (i32, i32) {
    %c0_i32 = arith.constant 0 : i32
    %c0_i32_0 = arith.constant 0 : i32
    %c0_i32_1 = arith.constant 0 : i32
    return %c0_i32, %c0_i32_0 : i32, i32
  }
  func.func @transform_24(%arg0: i32) -> (i32, i32, i32) {
    %c0_i32 = arith.constant 0 : i32
    %c0_i32_0 = arith.constant 0 : i32
    %c0_i32_1 = arith.constant 0 : i32
    %c0_i32_2 = arith.constant 0 : i32
    return %c0_i32, %c0_i32_0, %c0_i32_1 : i32, i32, i32
  }
  func.func @transform_25(%arg0: i32) -> (i32, i32) {
    %c0_i32 = arith.constant 0 : i32
    %c0_i32_0 = arith.constant 0 : i32
    %c0_i32_1 = arith.constant 0 : i32
    return %c0_i32, %c0_i32_0 : i32, i32
  }
  func.func @transform_26(%arg0: i32) -> (i32, i32, i32) {
    %c0_i32 = arith.constant 0 : i32
    %c0_i32_0 = arith.constant 0 : i32
    %c0_i32_1 = arith.constant 0 : i32
    %c0_i32_2 = arith.constant 0 : i32
    return %c0_i32, %c0_i32_0, %c0_i32_1 : i32, i32, i32
  }
  func.func @transform_27(%arg0: i32) -> (i32, i32) {
    %c0_i32 = arith.constant 0 : i32
    %c0_i32_0 = arith.constant 0 : i32
    %c0_i32_1 = arith.constant 0 : i32
    return %c0_i32, %c0_i32_0 : i32, i32
  }
  func.func @transform_28(%arg0: i32) -> (i32, i32, i32) {
    %c0_i32 = arith.constant 0 : i32
    %c0_i32_0 = arith.constant 0 : i32
    %c0_i32_1 = arith.constant 0 : i32
    %c0_i32_2 = arith.constant 0 : i32
    return %c0_i32, %c0_i32_0, %c0_i32_1 : i32, i32, i32
  }
  func.func @transform_29(%arg0: i32) -> (i32, i32) {
    %c0_i32 = arith.constant 0 : i32
    %c0_i32_0 = arith.constant 0 : i32
    %c0_i32_1 = arith.constant 0 : i32
    return %c0_i32, %c0_i32_0 : i32, i32
  }
  func.func @transform_30(%arg0: i32) -> (i32, i32) {
    %c0_i32 = arith.constant 0 : i32
    %c0_i32_0 = arith.constant 0 : i32
    %c0_i32_1 = arith.constant 0 : i32
    return %c0_i32, %c0_i32_0 : i32, i32
  }
  func.func @transform_31(%arg0: i32) -> (i32, i32) {
    %c0_i32 = arith.constant 0 : i32
    %c0_i32_0 = arith.constant 0 : i32
    %c0_i32_1 = arith.constant 0 : i32
    return %c0_i32, %c0_i32_0 : i32, i32
  }
  func.func @transform_32(%arg0: i32) -> (i32, i32) {
    %c0_i32 = arith.constant 0 : i32
    %c0_i32_0 = arith.constant 0 : i32
    %c0_i32_1 = arith.constant 0 : i32
    return %c0_i32, %c0_i32_0 : i32, i32
  }
  func.func @transform_33(%arg0: i32) -> (i32, i32) {
    %c0_i32 = arith.constant 0 : i32
    %c0_i32_0 = arith.constant 0 : i32
    %c0_i32_1 = arith.constant 0 : i32
    return %c0_i32, %c0_i32_0 : i32, i32
  }
  func.func @transform_34(%arg0: i32) -> (i32, i32) {
    %c0_i32 = arith.constant 0 : i32
    %c0_i32_0 = arith.constant 0 : i32
    %c0_i32_1 = arith.constant 0 : i32
    return %c0_i32, %c0_i32_0 : i32, i32
  }
  func.func @transform_35(%arg0: i32) -> (i32, i32) {
    %c0_i32 = arith.constant 0 : i32
    %c0_i32_0 = arith.constant 0 : i32
    %c0_i32_1 = arith.constant 0 : i32
    return %c0_i32, %c0_i32_0 : i32, i32
  }
  func.func @transform_36(%arg0: i32) -> (i32, i32, i32) {
    %c0_i32 = arith.constant 0 : i32
    %c0_i32_0 = arith.constant 0 : i32
    %c0_i32_1 = arith.constant 0 : i32
    return %arg0, %c0_i32, %c0_i32_0 : i32, i32, i32
  }
  func.func @transform_37(%arg0: i32) -> (i32, i32, i32) {
    %c0_i32 = arith.constant 0 : i32
    %c0_i32_0 = arith.constant 0 : i32
    %c0_i32_1 = arith.constant 0 : i32
    return %arg0, %c0_i32, %c0_i32_0 : i32, i32, i32
  }
  func.func @transform_38(%arg0: i32) -> (i32, i32, i32) {
    %c0_i32 = arith.constant 0 : i32
    %c0_i32_0 = arith.constant 0 : i32
    %c0_i32_1 = arith.constant 0 : i32
    return %arg0, %c0_i32, %c0_i32_0 : i32, i32, i32
  }
}

</mosaic_0001>

<bundles_post_ra>
// kernel: ppyolo_forward.1
= control target key start
LH: loop header
LB: loop body
LE: loop exit
PB: predicated region body
PF: predicated region fallthrough
CT: control target
= control target key end

     0   :  { %s13554_s6 = smov 1   ;;  %s13555_s10 = smov 2   ;;  %s15333_s0 = inlined_call_operand.smem [shape: u32[39], index: -1, kind: input, shape index: {}] }
   0x1   :  { %s13604_s5 = sld [smem:[%s15333_s0]]   ;;  %s13556_s14 = smov 3  }
   0x2   :  { %s13609_s9 = sld [smem:[%s15333_s0 + %s13554_s6]]   ;;  %s13557_s18 = smov 4  }
   0x3   :  { %s13614_s13 = sld [smem:[%s15333_s0 + %s13555_s10]]   ;;  %s13558_s22 = smov 5  }
   0x4   :  { %s13619_s17 = sld [smem:[%s15333_s0 + %s13556_s14]]   ;;  %s13559_s26 = smov 6  }
   0x5   :  { %s13624_s21 = sld [smem:[%s15333_s0 + %s13557_s18]]   ;;  %s13560_s30 = smov 7  }
   0x6   :  { %s13629_s25 = sld [smem:[%s15333_s0 + %s13558_s22]]   ;;  %s13561_s4 = smov 8  }
   0x7   :  { %s13634_s29 = sld [smem:[%s15333_s0 + %s13559_s26]]   ;;  %s13562_s10 = smov 9  }
   0x8   :  { %s13639_s3 = sld [smem:[%s15333_s0 + %s13560_s30]]   ;;  %s13563_s15 = smov 10  }
   0x9   :  { %s13644_s8 = sld [smem:[%s15333_s0 + %s13561_s4]]   ;;  %s13564_s20 = smov 11  }
   0xa   :  { %15357 = sst [smem:[#allocation5_spill]] %s13619_s17  ;;  %s13565_s26 = smov 12  }
   0xb   :  { %15358 = sst [smem:[#allocation6_spill]] %s13624_s21  ;;  %s13566_s1 = smov 13  }
   0xc   :  { %15359 = sst [smem:[#allocation7_spill]] %s13629_s25  ;;  %s13567_s7 = smov 14  }
   0xd   :  { %15360 = sst [smem:[#allocation8_spill]] %s13634_s29  ;;  %s13569_s22 = smov 16  }
   0xe   :  { %15361 = sst [smem:[#allocation9_spill]] %s13639_s3  ;;  %s13570_s28 = smov 17  }
   0xf   :  { %15362 = sst [smem:[#allocation10_spill]] %s13644_s8 }
  0x10   :  { %s13649_s14 = sld [smem:[%s15333_s0 + %s13562_s10]]  }
  0x11   :  { %s13654_s19 = sld [smem:[%s15333_s0 + %s13563_s15]]   ;;  %s13568_s15 = smov 15  }
  0x12   :  { %s13659_s24 = sld [smem:[%s15333_s0 + %s13564_s20]]  }
  0x13   :  { %s13664_s30 = sld [smem:[%s15333_s0 + %s13565_s26]]  }
  0x14   :  { %s13669_s6 = sld [smem:[%s15333_s0 + %s13566_s1]]  }
  0x15   :  { %s13674_s12 = sld [smem:[%s15333_s0 + %s13567_s7]]   ;;  %s13571_s7 = smov 18  }
  0x16   :  { %15363 = sst [smem:[#allocation11_spill]] %s13649_s14 }
  0x17   :  { %s13679_s20 = sld [smem:[%s15333_s0 + %s13568_s15]]   ;;  %s13572_s15 = smov 19  }
  0x18   :  { %s13684_s27 = sld [smem:[%s15333_s0 + %s13569_s22]]   ;;  %s13573_s22 = smov 20  }
  0x19   :  { %15364 = sst [smem:[#allocation12_spill]] %s13664_s30 }
  0x1a   :  { %s13689_s4 = sld [smem:[%s15333_s0 + %s13570_s28]]   ;;  %s13574_s28 = smov 21  }
  0x1b   :  { %15365 = sst [smem:[#allocation13_spill]] %s13674_s12 }
  0x1c   :  { %s13694_s25 = sld [smem:[%s15333_s0 + %s13571_s7]]   ;;  %s13575_s7 = smov 22  }
  0x1d   :  { %s13699_s29 = sld [smem:[%s15333_s0 + %s13572_s15]]   ;;  %s13576_s15 = smov 23  }
  0x1e   :  { %15366 = sst [smem:[#allocation14_spill]] %s13684_s27 }
  0x1f   :  { %s13704_s14 = sld [smem:[%s15333_s0 + %s13573_s22]]   ;;  %s13577_s22 = smov 24  }
  0x20   :  { %s13709_s3 = sld [smem:[%s15333_s0 + %s13574_s28]]   ;;  %s13578_s28 = smov 25  }
  0x21   :  { %s13714_s8 = sld [smem:[%s15333_s0 + %s13575_s7]]   ;;  %s13579_s7 = smov 26  }
  0x22   :  { %15367 = sst [smem:[#allocation15_spill]] %s13694_s25 }
  0x23   :  { %15368 = sst [smem:[#allocation16_spill]] %s13699_s29 }
  0x24   :  { %s13719_s25 = sld [smem:[%s15333_s0 + %s13576_s15]]   ;;  %s13580_s15 = smov 27  }
  0x25   :  { %15369 = sst [smem:[#allocation17_spill]] %s13704_s14 }
  0x26   :  { %15370 = sst [smem:[#allocation18_spill]] %s13709_s3 }
  0x27   :  { %15371 = sst [smem:[#allocation19_spill]] %s13714_s8 }
  0x28   :  { %s13724_s14 = sld [smem:[%s15333_s0 + %s13577_s22]]   ;;  %s13581_s22 = smov 28  }
  0x29   :  { %s13729_s27 = sld [smem:[%s15333_s0 + %s13578_s28]]   ;;  %s13582_s28 = smov 29  }
  0x2a   :  { %s13734_s8 = sld [smem:[%s15333_s0 + %s13579_s7]]   ;;  %s13583_s7 = smov 30  }
  0x2b   :  { %s13739_s21 = sld [smem:[%s15333_s0 + %s13580_s15]]   ;;  %s13584_s15 = smov 31  }
  0x2c   :  { %s13749_s12 = sld [smem:[%s15333_s0 + %s13582_s28]]   ;;  %s13586_s28 = smov 33  }
  0x2d   :  { %s13759_s17 = sld [smem:[%s15333_s0 + %s13584_s15]]   ;;  %s13588_s15 = smov 35  }
  0x2e   :  { %15372 = sst [smem:[#allocation20_spill]] %s13724_s14 }
  0x2f   :  { %s13744_s14 = sld [smem:[%s15333_s0 + %s13581_s22]]   ;;  %s13585_s22 = smov 32  }
  0x30   :  { %15373 = sst [smem:[#allocation21_spill]] %s13734_s8 }
  0x31   :  { %15374 = sst [smem:[#allocation22_spill]] %s13739_s21 }
  0x32   :  { %s13754_s8 = sld [smem:[%s15333_s0 + %s13583_s7]]   ;;  %s13587_s7 = smov 34  }
  0x33   :  { %s13769_s21 = sld [smem:[%s15333_s0 + %s13586_s28]]   ;;  %s13590_s28 = smov 37  }
  0x34   :  { %s13779_s29 = sld [smem:[%s15333_s0 + %s13588_s15]]  }
  0x35   :  { %15375 = sst [smem:[#allocation23_spill]] %s13744_s14 }
  0x36   :  { %s13764_s14 = sld [smem:[%s15333_s0 + %s13585_s22]]   ;;  %s13589_s22 = smov 36  }
  0x37   :  { %s13789_s30 = sld [smem:[%s15333_s0 + %s13590_s28]]  }
  0x38   :  { %15376 = sst [smem:[#allocation24_spill]] %s13754_s8 }
  0x39   :  { %s13774_s8 = sld [smem:[%s15333_s0 + %s13587_s7]]   ;;  %s13591_s7 = smov 38  }
  0x3c   :  { %15377 = sst [smem:[#allocation25_spill]] %s13764_s14 }
  0x3d   :  { %s13784_s14 = sld [smem:[%s15333_s0 + %s13589_s22]]  }
  0x3f   :  { %15378 = sst [smem:[#allocation26_spill]] %s13774_s8 }
  0x40   :  { %s13794_s8 = sld [smem:[%s15333_s0 + %s13591_s7]]  }
  0x41   :  { %83 = vsyncpa [#allocation3], 0  ;;  %s13796_s15 = smov 0  }
  0x42 LB: > { %s15379_s3 = sld [smem:[#allocation18_spill]]  ;;  %s947_s16 = sshll.u32 %s13614_s13, 4  ;;  %s13552_s15 = sphi %s13796_s15, %s89_s15   ;;  %s948_s16 = int_to_ptr.hbm [resolvable:$true] %s947_s16 }
  0x43   : > { %s13803_s18 = sadd.s32 4294967295, %s13552_s15   ;;  %p9555_p0 = scmp.ge.s32.totalorder %s13552_s15, 1 }
  0x44   : > { %p933_p1 = scmp.lt.s32.totalorder %s13552_s15, 3  ;;  %p13457_p2 = scmp.eq.s32.totalorder %s13803_s18, 0 }
  0x45   : > { %s13592_s22 = smov [#allocation2]   ;;  %s13512_s28 = sshra.s32 %s948_s16, 4  ;;  %s13513_s28 = int_to_ptr.hbm [resolvable:$true] %s13512_s28 }
  0x46   : > { %p13808_p3 = pnand %p9555_p0, %p933_p1  ;;  %s949_s23 = sshll.u32 %s13592_s22, 4  ;;  %s950_s23 = int_to_ptr.vmem [resolvable:$true] %s949_s23 }
  0x47   : > { %s13514_s1 = scalar_lea.hbm %s13513_s28, 1152  ;;  %s13519_s2 = scalar_lea.hbm %s13614_s13, 1152 }
  0x48   : > { %p13453_p4 = pneg %p13808_p3  ;;  %p13515_p6 = scmp.ne.s32.totalorder %s13513_s28, %s13514_s1 }
  0x49   : > { %p13520_p10 = scmp.lt.s32.totalorder %s13513_s28, %s13614_s13  ;;  %p13521_p11 = scmp.lt.s32.totalorder %s13519_s2, %s13514_s1 }
  0x4a   : > { %p13816_p5 = pnand %p13457_p2, %p13453_p4 }
  0x4b   : > { %p13522_p12 = por %p13521_p11, %p13520_p10 }
  0x4c   : > { %p13516_p7 = pneg %p13816_p5 }
  0x4e   : > { %p13517_p8 = pnand %p13516_p7, %p13515_p6 }
  0x50   : > { %p13518_p9 = pneg %p13517_p8 }
  0x52   : > { %p13523_p13 = pnand %p13522_p12, %p13518_p9 }
  0x54   : > { %13526 = shalt.err (!%p13523_p13)
}
  0x55   : > { %s13593_s7 = smov 64   ;;  %s13594_s10 = smov 4  }
  0x56   : > { %13456 = dma.hbm_to_vmem [thread:$0]  (!%p13816_p5), %s948_s16, 18432, %s950_s23, [#allocation3], %s13593_s7, %s13593_s7, %s13594_s10  }
  0x57   : > { %1072 = sbr.rel (%p13808_p3) target bundleno = 5780 (0x1694), region = 164 }
  0x5c   : > { %13547 = dma.done.wait (%p13457_p2), [#allocation3], 18432  }
  0x5d   : > { %13549 = vsyncadd (%p13457_p2), [#allocation3], 4294948864  ;;  %v9626_v0 = vld [vmem:[%s13609_s9 + $0x70] sm:$0xf]  ;;  %v12842_v1 = vld [vmem:[%s13609_s9 + $0x74] sm:$0xf0] }
  0x5e   : > { %v9690_v2 = vld [vmem:[%s13609_s9 + $0xf0] sm:$0xf]  ;;  %v9627_v3 = vor.u32 %v12842_v1, %v9626_v0  ;;  %v12858_v4 = vld [vmem:[%s13609_s9 + $0xf4] sm:$0xf0]  ;;  %v12841_v5 = vld [vmem:[%s13609_s9 + $0x74] sm:$0xf] }
  0x5f   : > { %v9628_v6 = vld [vmem:[%s13609_s9 + $0x78] sm:$0xf0]  ;;  %v9691_v7 = vor.u32 %v12858_v4, %v9690_v2  ;;  %v12857_v9 = vld [vmem:[%s13609_s9 + $0xf4] sm:$0xf]  ;;  %v9618_v11 = vld [vmem:[%s13609_s9 + $0x60] sm:$0xf] }
  0x60   : > { %v9631_v8 = vor.u32 %v12841_v5, %v9628_v6  ;;  %v9692_v10 = vld [vmem:[%s13609_s9 + $0xf8] sm:$0xf0]  ;;  %1399 = vmatpush.bf16.msra.mxu0 %v9627_v3  ;;  %v12840_v13 = vld [vmem:[%s13609_s9 + $0x64] sm:$0xf0]  ;;  %v9682_v14 = vld [vmem:[%s13609_s9 + $0xe0] sm:$0xf] }
  0x61   : > { %v9695_v12 = vor.u32 %v12857_v9, %v9692_v10  ;;  %v12856_v15 = vld [vmem:[%s13609_s9 + $0xe4] sm:$0xf0]  ;;  %1412 = vmatpush.bf16.msra.mxu1 %v9691_v7  ;;  %v9619_v16 = vor.u32 %v12840_v13, %v9618_v11  ;;  %v12839_v18 = vld [vmem:[%s13609_s9 + $0x64] sm:$0xf]  ;;  %v9620_v19 = vld [vmem:[%s13609_s9 + $0x68] sm:$0xf0] }
  0x62   : > { %1425 = vmatpush.bf16.msra.mxu2 %v9631_v8  ;;  %v9683_v17 = vor.u32 %v12856_v15, %v9682_v14  ;;  %v12855_v20 = vld [vmem:[%s13609_s9 + $0xe4] sm:$0xf]  ;;  %v9623_v21 = vor.u32 %v12839_v18, %v9620_v19  ;;  %v9684_v22 = vld [vmem:[%s13609_s9 + $0xe8] sm:$0xf0]  ;;  %v9610_v23 = vld [vmem:[%s13609_s9 + $0x50] sm:$0xf] }
  0x63   : > { %1438 = vmatpush.bf16.msra.mxu3 %v9695_v12  ;;  %v12838_v24 = vld [vmem:[%s13609_s9 + $0x54] sm:$0xf0]  ;;  %v9687_v25 = vor.u32 %v12855_v20, %v9684_v22  ;;  %v9674_v26 = vld [vmem:[%s13609_s9 + $0xd0] sm:$0xf]  ;;  %v12837_v28 = vld [vmem:[%s13609_s9 + $0x54] sm:$0xf] }
  0x64   : > { %v12854_v27 = vld [vmem:[%s13609_s9 + $0xd4] sm:$0xf0]  ;;  %1400 = vmatpush.bf16.msra.mxu0 %v9619_v16  ;;  %v9611_v29 = vor.u32 %v12838_v24, %v9610_v23  ;;  %v9612_v30 = vld [vmem:[%s13609_s9 + $0x58] sm:$0xf0]  ;;  %v12853_v31 = vld [vmem:[%s13609_s9 + $0xd4] sm:$0xf] }
  0x65   : > { %v9676_v32 = vld [vmem:[%s13609_s9 + $0xd8] sm:$0xf0]  ;;  %1413 = vmatpush.bf16.msra.mxu1 %v9683_v17  ;;  %v9675_v33 = vor.u32 %v12854_v27, %v9674_v26  ;;  %v9615_v34 = vor.u32 %v12837_v28, %v9612_v30  ;;  %v9602_v35 = vld [vmem:[%s13609_s9 + $0x40] sm:$0xf]  ;;  %v12836_v36 = vld [vmem:[%s13609_s9 + $0x44] sm:$0xf0] }
  0x66   : > { %1426 = vmatpush.bf16.msra.mxu2 %v9623_v21  ;;  %v9666_v37 = vld [vmem:[%s13609_s9 + $0xc0] sm:$0xf]  ;;  %v9679_v38 = vor.u32 %v12853_v31, %v9676_v32  ;;  %v12852_v39 = vld [vmem:[%s13609_s9 + $0xc4] sm:$0xf0]  ;;  %v12835_v40 = vld [vmem:[%s13609_s9 + $0x44] sm:$0xf]  ;;  %v9603_v44 = vor.u32 %v12836_v36, %v9602_v35 }
  0x67   : > { %1439 = vmatpush.bf16.msra.mxu3 %v9687_v25  ;;  %v9604_v41 = vld [vmem:[%s13609_s9 + $0x48] sm:$0xf0]  ;;  %v12851_v42 = vld [vmem:[%s13609_s9 + $0xc4] sm:$0xf]  ;;  %p1177_p0 = scmp.lt.s32.totalorder %s13803_s18, 1  ;;  %v9667_v45 = vor.u32 %v12852_v39, %v9666_v37  ;;  %vm1707_vm0 = vcmask 1041408  }
  0x68   : > { %v9668_v43 = vld [vmem:[%s13609_s9 + $0xc8] sm:$0xf0]  ;;  %1401 = vmatpush.bf16.msra.mxu0 %v9611_v29  ;;  %v9607_v46 = vor.u32 %v12835_v40, %v9604_v41  ;;  %v9594_v47 = vld [vmem:[%s13609_s9 + $0x30] sm:$0xf]  ;;  %v12834_v48 = vld [vmem:[%s13609_s9 + $0x34] sm:$0xf0] }
  0x69   : > { %1414 = vmatpush.bf16.msra.mxu1 %v9675_v33  ;;  %v9658_v49 = vld [vmem:[%s13609_s9 + $0xb0] sm:$0xf]  ;;  %v9671_v50 = vor.u32 %v12851_v42, %v9668_v43  ;;  %v12850_v51 = vld [vmem:[%s13609_s9 + $0xb4] sm:$0xf0]  ;;  %v12833_v52 = vld [vmem:[%s13609_s9 + $0x34] sm:$0xf]  ;;  %v9595_v56 = vor.u32 %v12834_v48, %v9594_v47 }
  0x6a   : > { %1427 = vmatpush.bf16.msra.mxu2 %v9615_v34  ;;  %v9596_v53 = vld [vmem:[%s13609_s9 + $0x38] sm:$0xf0]  ;;  %v12849_v54 = vld [vmem:[%s13609_s9 + $0xb4] sm:$0xf]  ;;  %s15404_s18 = smov (!%p1177_p0, %s13803_s18), 1  ;;  %v9659_v57 = vor.u32 %v12850_v51, %v9658_v49  ;;  %vm1703_vm1 = vcmask 31744  }
  0x6b   : > { %1440 = vmatpush.bf16.msra.mxu3 %v9679_v38  ;;  %v9660_v55 = vld [vmem:[%s13609_s9 + $0xb8] sm:$0xf0]  ;;  %v9599_v58 = vor.u32 %v12833_v52, %v9596_v53  ;;  %v9586_v59 = vld [vmem:[%s13609_s9 + $0x20] sm:$0xf]  ;;  %v12832_v60 = vld [vmem:[%s13609_s9 + $0x24] sm:$0xf0] }
  0x6c   : > { %1402 = vmatpush.bf16.msra.mxu0 %v9603_v44  ;;  %v9650_v61 = vld [vmem:[%s13609_s9 + $0xa0] sm:$0xf]  ;;  %v9663_v62 = vor.u32 %v12849_v54, %v9660_v55  ;;  %v12848_v63 = vld [vmem:[%s13609_s9 + $0xa4] sm:$0xf0]  ;;  %v12831_v0 = vld [vmem:[%s13609_s9 + $0x24] sm:$0xf]  ;;  %v9587_v4 = vor.u32 %v12832_v60, %v9586_v59 }
  0x6d   : > { %1415 = vmatpush.bf16.msra.mxu1 %v9667_v45  ;;  %v9588_v1 = vld [vmem:[%s13609_s9 + $0x28] sm:$0xf0]  ;;  %v12847_v2 = vld [vmem:[%s13609_s9 + $0xa4] sm:$0xf]  ;;  %s12823_s11 = sshll.u32 %s15404_s18, 3  ;;  %v9651_v5 = vor.u32 %v12848_v63, %v9650_v61  ;;  %s15382_s0 = sld [smem:[#allocation12_spill]] }
  0x6e   : > { %1428 = vmatpush.bf16.msra.mxu2 %v9607_v46  ;;  %v9652_v3 = vld [vmem:[%s13609_s9 + $0xa8] sm:$0xf0]  ;;  %v9591_v6 = vor.u32 %v12831_v0, %v9588_v1  ;;  %v9578_v7 = vld [vmem:[%s13609_s9 + $0x10] sm:$0xf]  ;;  %v12830_v8 = vld [vmem:[%s13609_s9 + $0x14] sm:$0xf0]  ;;  %s1181_s16 = scalar_lea.vmem %s13604_s5, %s12823_s11 }
  0x6f   : > { %1441 = vmatpush.bf16.msra.mxu3 %v9671_v50  ;;  %v9642_v9 = vld [vmem:[%s13609_s9 + $0x90] sm:$0xf]  ;;  %v9655_v10 = vor.u32 %v12847_v2, %v9652_v3  ;;  %v12846_v11 = vld [vmem:[%s13609_s9 + $0x94] sm:$0xf0]  ;;  %v12829_v12 = vld [vmem:[%s13609_s9 + $0x14] sm:$0xf]  ;;  %v9579_v17 = vor.u32 %v12830_v8, %v9578_v7 }
  0x70   : > { %1403 = vmatpush.bf16.msra.mxu0 %v9595_v56  ;;  %v9580_v13 = vld [vmem:[%s13609_s9 + $0x18] sm:$0xf0]  ;;  %v12845_v14 = vld [vmem:[%s13609_s9 + $0x94] sm:$0xf]  ;;  %v9570_v16 = vld [vmem:[%s13609_s9] sm:$0xf]  ;;  %v9643_v21 = vor.u32 %v12846_v11, %v9642_v9 }
  0x71   : > { %1416 = vmatpush.bf16.msra.mxu1 %v9659_v57  ;;  %v9644_v15 = vld [vmem:[%s13609_s9 + $0x98] sm:$0xf0]  ;;  %v12828_v18 = vld [vmem:[%s13609_s9 + $0x4] sm:$0xf0]  ;;  %v9634_v19 = vld [vmem:[%s13609_s9 + $0x80] sm:$0xf]  ;;  %v9583_v22 = vor.u32 %v12829_v12, %v9580_v13 }
  0x72   : > { %1429 = vmatpush.bf16.msra.mxu2 %v9599_v58  ;;  %v12844_v20 = vld [vmem:[%s13609_s9 + $0x84] sm:$0xf0]  ;;  %v12827_v23 = vld [vmem:[%s13609_s9 + $0x4] sm:$0xf]  ;;  %v9572_v24 = vld [vmem:[%s13609_s9 + $0x8] sm:$0xf0]  ;;  %v9647_v26 = vor.u32 %v12845_v14, %v9644_v15  ;;  %v9571_v33 = vor.u32 %v12828_v18, %v9570_v16 }
  0x73   : > { %1442 = vmatpush.bf16.msra.mxu3 %v9663_v62  ;;  %v12843_v25 = vld [vmem:[%s13609_s9 + $0x84] sm:$0xf]  ;;  %v9636_v27 = vld [vmem:[%s13609_s9 + $0x88] sm:$0xf0]  ;;  %v9786_v28 = vld [vmem:[%s13609_s9 + $0x170] sm:$0xf]  ;;  %v9635_v36 = vor.u32 %v12844_v20, %v9634_v19  ;;  %v9575_v37 = vor.u32 %v12827_v23, %v9572_v24 }
  0x74   : > { %1404 = vmatpush.bf16.msra.mxu0 %v9587_v4  ;;  %v12874_v29 = vld [vmem:[%s13609_s9 + $0x174] sm:$0xf0]  ;;  %v9850_v30 = vld [vmem:[%s13609_s9 + $0x1f0] sm:$0xf]  ;;  %v1198_v32 = vld [vmem:[%s1181_s16] sm:$0xff]  ;;  %v9639_v40 = vor.u32 %v12843_v25, %v9636_v27  ;;  %vm4118_vm4 = vcmask 1043456  }
  0x75   : > { %1417 = vmatpush.bf16.msra.mxu1 %v9651_v5  ;;  %v12890_v31 = vld [vmem:[%s13609_s9 + $0x1f4] sm:$0xf0]  ;;  %v12873_v34 = vld [vmem:[%s13609_s9 + $0x174] sm:$0xf]  ;;  %v9788_v35 = vld [vmem:[%s13609_s9 + $0x178] sm:$0xf0]  ;;  %v9787_v41 = vor.u32 %v12874_v29, %v9786_v28 }
  0x76   : > { %1430 = vmatpush.bf16.msra.mxu2 %v9591_v6  ;;  %1200 = vst [vmem:[#allocation1] ss:$2 sm:$0xff] %v1198_v32  ;;  %v12889_v38 = vld [vmem:[%s13609_s9 + $0x1f4] sm:$0xf]  ;;  %v9852_v39 = vld [vmem:[%s13609_s9 + $0x1f8] sm:$0xf0]  ;;  %v9851_v42 = vor.u32 %v12890_v31, %v9850_v30  ;;  %v9791_v43 = vor.u32 %v12873_v34, %v9788_v35 }
  0x77   : > { %1443 = vmatpush.bf16.msra.mxu3 %v9655_v10  ;;  %v9778_v44 = vld [vmem:[%s13609_s9 + $0x160] sm:$0xf]  ;;  %v12872_v45 = vld [vmem:[%s13609_s9 + $0x164] sm:$0xf0]  ;;  %v9855_v47 = vor.u32 %v12889_v38, %v9852_v39  ;;  %v12871_v49 = vld [vmem:[%s13609_s9 + $0x164] sm:$0xf] }
  0x78   : > { %1405 = vmatpush.bf16.msra.mxu0 %v9579_v17  ;;  %v9842_v46 = vld [vmem:[%s13609_s9 + $0x1e0] sm:$0xf]  ;;  %v12888_v48 = vld [vmem:[%s13609_s9 + $0x1e4] sm:$0xf0]  ;;  %v9780_v50 = vld [vmem:[%s13609_s9 + $0x168] sm:$0xf0]  ;;  %v9779_v53 = vor.u32 %v12872_v45, %v9778_v44 }
  0x79   : > { %1418 = vmatpush.bf16.msra.mxu1 %v9643_v21  ;;  %v12887_v51 = vld [vmem:[%s13609_s9 + $0x1e4] sm:$0xf]  ;;  %v9844_v52 = vld [vmem:[%s13609_s9 + $0x1e8] sm:$0xf0]  ;;  %v9770_v54 = vld [vmem:[%s13609_s9 + $0x150] sm:$0xf]  ;;  %v9843_v57 = vor.u32 %v12888_v48, %v9842_v46  ;;  %v9783_v58 = vor.u32 %v12871_v49, %v9780_v50 }
  0x7a   : > { %1431 = vmatpush.bf16.msra.mxu2 %v9583_v22  ;;  %v12870_v55 = vld [vmem:[%s13609_s9 + $0x154] sm:$0xf0]  ;;  %v9834_v56 = vld [vmem:[%s13609_s9 + $0x1d0] sm:$0xf]  ;;  %v9847_v61 = vor.u32 %v12887_v51, %v9844_v52  ;;  %v12869_v1 = vld [vmem:[%s13609_s9 + $0x154] sm:$0xf] }
  0x7b   : > { %1444 = vmatpush.bf16.msra.mxu3 %v9647_v26  ;;  %v12886_v0 = vld [vmem:[%s13609_s9 + $0x1d4] sm:$0xf0]  ;;  %v9772_v2 = vld [vmem:[%s13609_s9 + $0x158] sm:$0xf0]  ;;  %v12885_v3 = vld [vmem:[%s13609_s9 + $0x1d4] sm:$0xf]  ;;  %v9771_v5 = vor.u32 %v12870_v55, %v9770_v54 }
  0x7c   : > { %1406 = vmatpush.bf16.msra.mxu0 %v9571_v33  ;;  %v9836_v4 = vld [vmem:[%s13609_s9 + $0x1d8] sm:$0xf0]  ;;  %v9835_v6 = vor.u32 %v12886_v0, %v9834_v56  ;;  %v9775_v7 = vor.u32 %v12869_v1, %v9772_v2  ;;  %v9762_v8 = vld [vmem:[%s13609_s9 + $0x140] sm:$0xf]  ;;  %v12868_v9 = vld [vmem:[%s13609_s9 + $0x144] sm:$0xf0] }
  0x7d   : > { %1419 = vmatpush.bf16.msra.mxu1 %v9635_v36  ;;  %v1201_v59 = vld.sshfl [vmem:[#allocation1] sm:$0xff pattern:$0x75316420]  ;;  %v1202_v60 = vld.sshfl [vmem:[#allocation1 + $0x8] sm:$0xff pattern:$0x75316420]  ;;  %v9839_v11 = vor.u32 %v12885_v3, %v9836_v4  ;;  %v9763_v17 = vor.u32 %v12868_v9, %v9762_v8 }
  0x7e   : > { %1432 = vmatpush.bf16.msra.mxu2 %v9575_v37  ;;  %v13923_v62 = vpack.c.bf16 %v1201_v59, %v1201_v59  ;;  %v13925_v63 = vpack.c.bf16 %v1202_v60, %v1202_v60  ;;  %v9826_v10 = vld [vmem:[%s13609_s9 + $0x1c0] sm:$0xf]  ;;  %v12884_v12 = vld [vmem:[%s13609_s9 + $0x1c4] sm:$0xf0]  ;;  %v12867_v13 = vld [vmem:[%s13609_s9 + $0x144] sm:$0xf] }
  0x7f   : > { %1445 = vmatpush.bf16.msra.mxu3 %v9639_v40  ;;  %v9764_v14 = vld [vmem:[%s13609_s9 + $0x148] sm:$0xf0]  ;;  %v12883_v15 = vld [vmem:[%s13609_s9 + $0x1c4] sm:$0xf]  ;;  %v9827_v18 = vor.u32 %v12884_v12, %v9826_v10  ;;  %v9754_v20 = vld [vmem:[%s13609_s9 + $0x130] sm:$0xf] }
  0x80   : > { %1647 = vmatpush.bf16.msrb.mxu0 %v9787_v41  ;;  %1420 = vmatmul.bf16.vlgmr.msra.gmra.mxu1 %v13925_v63  ;;  %v9828_v16 = vld [vmem:[%s13609_s9 + $0x1c8] sm:$0xf0]  ;;  %v9767_v19 = vor.u32 %v12867_v13, %v9764_v14  ;;  %v12866_v21 = vld [vmem:[%s13609_s9 + $0x134] sm:$0xf0]  ;;  %v9818_v22 = vld [vmem:[%s13609_s9 + $0x1b0] sm:$0xf] }
  0x81   : > { %1660 = vmatpush.bf16.msrb.mxu1 %v9851_v42  ;;  %1407 = vmatmul.bf16.vlgmr.msra.gmra.mxu0 %v13923_v62  ;;  %v9831_v23 = vor.u32 %v12883_v15, %v9828_v16  ;;  %v12882_v24 = vld [vmem:[%s13609_s9 + $0x1b4] sm:$0xf0]  ;;  %v12865_v25 = vld [vmem:[%s13609_s9 + $0x134] sm:$0xf]  ;;  %v9756_v26 = vld [vmem:[%s13609_s9 + $0x138] sm:$0xf0]  ;;  %v9755_v29 = vor.u32 %v12866_v21, %v9754_v20 }
  0x82   : > { %1673 = vmatpush.bf16.msrb.mxu2 %v9791_v43  ;;  %1446 = vmatmul.bf16.vlgmr.msra.gmra.mxu3 %v13925_v63  ;;  %v12881_v27 = vld [vmem:[%s13609_s9 + $0x1b4] sm:$0xf]  ;;  %v9820_v28 = vld [vmem:[%s13609_s9 + $0x1b8] sm:$0xf0]  ;;  %v9819_v30 = vor.u32 %v12882_v24, %v9818_v22  ;;  %v9759_v31 = vor.u32 %v12865_v25, %v9756_v26  ;;  %v9746_v32 = vld [vmem:[%s13609_s9 + $0x120] sm:$0xf] }
  0x83   : > { %1686 = vmatpush.bf16.msrb.mxu3 %v9855_v47  ;;  %1433 = vmatmul.bf16.vlgmr.msra.gmra.mxu2 %v13923_v62  ;;  %v12864_v33 = vld [vmem:[%s13609_s9 + $0x124] sm:$0xf0]  ;;  %v9810_v34 = vld [vmem:[%s13609_s9 + $0x1a0] sm:$0xf]  ;;  %v9823_v35 = vor.u32 %v12881_v27, %v9820_v28  ;;  %v12863_v37 = vld [vmem:[%s13609_s9 + $0x124] sm:$0xf] }
  0x84   : > { %1648 = vmatpush.bf16.msrb.mxu0 %v9779_v53  ;;  %v12880_v36 = vld [vmem:[%s13609_s9 + $0x1a4] sm:$0xf0]  ;;  %v9748_v38 = vld [vmem:[%s13609_s9 + $0x128] sm:$0xf0]  ;;  %v12879_v39 = vld [vmem:[%s13609_s9 + $0x1a4] sm:$0xf]  ;;  %v9747_v41 = vor.u32 %v12864_v33, %v9746_v32 }
  0x85   : > { %1661 = vmatpush.bf16.msrb.mxu1 %v9843_v57  ;;  %v9812_v40 = vld [vmem:[%s13609_s9 + $0x1a8] sm:$0xf0]  ;;  %v9811_v42 = vor.u32 %v12880_v36, %v9810_v34  ;;  %v9751_v43 = vor.u32 %v12863_v37, %v9748_v38  ;;  %v9738_v44 = vld [vmem:[%s13609_s9 + $0x110] sm:$0xf]  ;;  %v12862_v45 = vld [vmem:[%s13609_s9 + $0x114] sm:$0xf0] }
  0x86   : > { %1674 = vmatpush.bf16.msrb.mxu2 %v9783_v58  ;;  %v9802_v46 = vld [vmem:[%s13609_s9 + $0x190] sm:$0xf]  ;;  %v9815_v47 = vor.u32 %v12879_v39, %v9812_v40  ;;  %v12878_v48 = vld [vmem:[%s13609_s9 + $0x194] sm:$0xf0]  ;;  %v12861_v49 = vld [vmem:[%s13609_s9 + $0x114] sm:$0xf]  ;;  %v9739_v53 = vor.u32 %v12862_v45, %v9738_v44 }
  0x87   : > { %1687 = vmatpush.bf16.msrb.mxu3 %v9847_v61  ;;  %v9740_v50 = vld [vmem:[%s13609_s9 + $0x118] sm:$0xf0]  ;;  %v12877_v51 = vld [vmem:[%s13609_s9 + $0x194] sm:$0xf]  ;;  %v9803_v54 = vor.u32 %v12878_v48, %v9802_v46  ;;  %v9730_v56 = vld [vmem:[%s13609_s9 + $0x100] sm:$0xf] }
  0x88   : > { %1649 = vmatpush.bf16.msrb.mxu0 %v9771_v5  ;;  %v9804_v52 = vld [vmem:[%s13609_s9 + $0x198] sm:$0xf0]  ;;  %v9743_v55 = vor.u32 %v12861_v49, %v9740_v50  ;;  %v12860_v57 = vld [vmem:[%s13609_s9 + $0x104] sm:$0xf0]  ;;  %v9794_v58 = vld [vmem:[%s13609_s9 + $0x180] sm:$0xf] }
  0x89   : > { %1662 = vmatpush.bf16.msrb.mxu1 %v9835_v6  ;;  %v9807_v59 = vor.u32 %v12877_v51, %v9804_v52  ;;  %v12876_v60 = vld [vmem:[%s13609_s9 + $0x184] sm:$0xf0]  ;;  %v12859_v61 = vld [vmem:[%s13609_s9 + $0x104] sm:$0xf]  ;;  %v9732_v0 = vld [vmem:[%s13609_s9 + $0x108] sm:$0xf0]  ;;  %v9731_v3 = vor.u32 %v12860_v57, %v9730_v56 }
  0x8a   : > { %1675 = vmatpush.bf16.msrb.mxu2 %v9775_v7  ;;  %v12875_v1 = vld [vmem:[%s13609_s9 + $0x184] sm:$0xf]  ;;  %v9796_v2 = vld [vmem:[%s13609_s9 + $0x188] sm:$0xf0]  ;;  %v9795_v4 = vor.u32 %v12876_v60, %v9794_v58  ;;  %v9735_v5 = vor.u32 %v12859_v61, %v9732_v0  ;;  %v9951_v9 = vld [vmem:[%s13609_s9 + $0x270] sm:$0xf] }
  0x8b   : > { %1688 = vmatpush.bf16.msrb.mxu3 %v9839_v11  ;;  %v9799_v6 = vor.u32 %v12875_v1, %v9796_v2  ;;  %v12906_v10 = vld [vmem:[%s13609_s9 + $0x274] sm:$0xf0]  ;;  %v9943_v12 = vld [vmem:[%s13609_s9 + $0x260] sm:$0xf]  ;;  %v12904_v13 = vld [vmem:[%s13609_s9 + $0x264] sm:$0xf0] }
  0x8c   : > { %1650 = vmatpush.bf16.msrb.mxu0 %v9763_v17  ;;  %v9952_v11 = vor.u32 %v12906_v10, %v9951_v9  ;;  %v9944_v14 = vor.u32 %v12904_v13, %v9943_v12  ;;  %v9935_v22 = vld [vmem:[%s13609_s9 + $0x250] sm:$0xf]  ;;  %v12919_v27 = vld [vmem:[%s13609_s9 + $0x2e4] sm:$0xf]  ;;  %v10009_v28 = vld [vmem:[%s13609_s9 + $0x2e8] sm:$0xf0] }
  0x8d   : > { %1663 = vmatpush.bf16.msrb.mxu1 %v9827_v18  ;;  %v12921_v18 = vld [vmem:[%s13609_s9 + $0x2f4] sm:$0xf]  ;;  %v13994_v32 = vld [vmem:[%s13654_s19] sm:$0xf]  ;;  %v10012_v34 = vor.u32 %v12919_v27, %v10009_v28  ;;  %v10001_v38 = vld [vmem:[%s13609_s9 + $0x2d8] sm:$0xf0] }
  0x8e   : > { %1676 = vmatpush.bf16.msrb.mxu2 %v9767_v19  ;;  %v10017_v19 = vld [vmem:[%s13609_s9 + $0x2f8] sm:$0xf0]  ;;  %v12917_v37 = vld [vmem:[%s13609_s9 + $0x2d4] sm:$0xf]  ;;  %v9919_v39 = vld [vmem:[%s13609_s9 + $0x230] sm:$0xf] }
  0x8f   : > { %1689 = vmatpush.bf16.msrb.mxu3 %v9831_v23  ;;  %v12902_v23 = vld [vmem:[%s13609_s9 + $0x254] sm:$0xf0]  ;;  %v10020_v26 = vor.u32 %v12921_v18, %v10017_v19  ;;  %v9993_v44 = vld [vmem:[%s13609_s9 + $0x2c8] sm:$0xf0]  ;;  %v9911_v45 = vld [vmem:[%s13609_s9 + $0x220] sm:$0xf] }
  0x90   : > { %1651 = vmatpush.bf16.msrb.mxu0 %v9755_v29  ;;  %v9936_v24 = vor.u32 %v12902_v23, %v9935_v22  ;;  %v12898_v40 = vld [vmem:[%s13609_s9 + $0x234] sm:$0xf0]  ;;  %v12896_v46 = vld [vmem:[%s13609_s9 + $0x224] sm:$0xf0]  ;;  %v12913_v49 = vld [vmem:[%s13609_s9 + $0x2b4] sm:$0xf] }
  0x91   : > { %1664 = vmatpush.bf16.msrb.mxu1 %v9819_v30  ;;  %v9927_v30 = vld [vmem:[%s13609_s9 + $0x240] sm:$0xf]  ;;  %v9985_v50 = vld [vmem:[%s13609_s9 + $0x2b8] sm:$0xf0]  ;;  %v9903_v52 = vld [vmem:[%s13609_s9 + $0x210] sm:$0xf] }
  0x92   : > { %1677 = vmatpush.bf16.msrb.mxu2 %v9759_v31  ;;  %v12900_v31 = vld [vmem:[%s13609_s9 + $0x244] sm:$0xf0]  ;;  %v9988_v57 = vor.u32 %v12913_v49, %v9985_v50  ;;  %v9977_v60 = vld [vmem:[%s13609_s9 + $0x2a8] sm:$0xf0]  ;;  %v9895_v0 = vld [vmem:[%s13609_s9 + $0x200] sm:$0xf] }
  0x93   : > { %1690 = vmatpush.bf16.msrb.mxu3 %v9823_v35  ;;  %v9928_v33 = vor.u32 %v12900_v31, %v9927_v30  ;;  %v12892_v1 = vld [vmem:[%s13609_s9 + $0x204] sm:$0xf0]  ;;  %v9969_v9 = vld [vmem:[%s13609_s9 + $0x298] sm:$0xf0]  ;;  %v9856_v12 = vld [vmem:[%s13654_s19 + $0x4] sm:$0xf] }
  0x94   : > { %1652 = vmatpush.bf16.msrb.mxu0 %v9747_v41  ;;  %v9920_v41 = vor.u32 %v12898_v40, %v9919_v39  ;;  %v12903_v18 = vld [vmem:[%s13609_s9 + $0x264] sm:$0xf]  ;;  %v9945_v19 = vld [vmem:[%s13609_s9 + $0x268] sm:$0xf0]  ;;  %v10007_v28 = vld [vmem:[%s13609_s9 + $0x2e0] sm:$0xf] }
  0x95   : > { %1665 = vmatpush.bf16.msrb.mxu1 %v9811_v42  ;;  %v10004_v42 = vor.u32 %v12917_v37, %v10001_v38  ;;  %v12907_v23 = vld [vmem:[%s13609_s9 + $0x284] sm:$0xf]  ;;  %v9948_v27 = vor.u32 %v12903_v18, %v9945_v19  ;;  %v12954_v30 = vld [vmem:[%s13609_s9 + $0x3f4] sm:$0xf0]  ;;  %v12920_v31 = vld [vmem:[%s13609_s9 + $0x2e4] sm:$0xf0] }
  0x96   : > { %1678 = vmatpush.bf16.msrb.mxu2 %v9751_v43  ;;  %v12915_v43 = vld [vmem:[%s13609_s9 + $0x2c4] sm:$0xf]  ;;  %v10008_v39 = vor.u32 %v12920_v31, %v10007_v28  ;;  %v12910_v18 = vld [vmem:[%s13609_s9 + $0x294] sm:$0xf0]  ;;  %v10106_v31 = vld [vmem:[%s13609_s9 + $0x360] sm:$0xf] }
  0x97   : > { %1691 = vmatpush.bf16.msrb.mxu3 %v9815_v47  ;;  %v9912_v47 = vor.u32 %v12896_v46, %v9911_v45  ;;  %v9996_v48 = vor.u32 %v12915_v43, %v9993_v44  ;;  %v12952_v43 = vld [vmem:[%s13609_s9 + $0x3e4] sm:$0xf0]  ;;  %v12918_v45 = vld [vmem:[%s13609_s9 + $0x2d4] sm:$0xf0]  ;;  %v12899_v46 = vld [vmem:[%s13609_s9 + $0x244] sm:$0xf] }
  0x98   : > { %1653 = vmatpush.bf16.msrb.mxu0 %v9739_v53  ;;  %v12894_v53 = vld [vmem:[%s13609_s9 + $0x214] sm:$0xf0]  ;;  %v12891_v19 = vld [vmem:[%s13609_s9 + $0x204] sm:$0xf]  ;;  %vm4114_vm5 = vcmask 64512   ;;  %s15383_s22 = sld [smem:[#allocation16_spill]] }
  0x99   : > { %1666 = vmatpush.bf16.msrb.mxu1 %v9803_v54  ;;  %s15384_s23 = sld [smem:[#allocation22_spill]]  ;;  %vm5516_vm8 = vcmask 523264   ;;  %vm5602_vm9 = vcmask 130048   ;;  %vm6451_vm14 = vcmask 261120  }
  0x9a   : > { %1679 = vmatpush.bf16.msrb.mxu2 %v9743_v55  ;;  %v9904_v55 = vor.u32 %v12894_v53, %v9903_v52  ;;  %v10162_v52 = vld [vmem:[%s13609_s9 + $0x3d0] sm:$0xf]  ;;  %v12950_v53 = vld [vmem:[%s13609_s9 + $0x3d4] sm:$0xf0]  ;;  %s15385_s26 = sld [smem:[#allocation5_spill]] }
  0x9b   : > { %1692 = vmatpush.bf16.msrb.mxu3 %v9807_v59  ;;  %v12911_v59 = vld [vmem:[%s13609_s9 + $0x2a4] sm:$0xf]  ;;  %s15386_s28 = sld [smem:[#allocation13_spill]] }
  0x9c   : > { %1654 = vmatpush.bf16.msrb.mxu0 %v9731_v3  ;;  %v12905_v3 = vld [vmem:[%s13609_s9 + $0x274] sm:$0xf]  ;;  %s15387_s1 = sld [smem:[#allocation6_spill]] }
  0x9d   : > { %1667 = vmatpush.bf16.msrb.mxu1 %v9795_v4  ;;  %v9953_v4 = vld [vmem:[%s13609_s9 + $0x278] sm:$0xf0]  ;;  %s15388_s2 = sld [smem:[#allocation14_spill]] }
  0x9e   : > { %1680 = vmatpush.bf16.msrb.mxu2 %v9735_v5  ;;  %v9896_v5 = vor.u32 %v12892_v1, %v9895_v0  ;;  %v9956_v13 = vor.u32 %v12905_v3, %v9953_v4  ;;  %v12948_v0 = vld [vmem:[%s13609_s9 + $0x3c4] sm:$0xf0]  ;;  %v12914_v1 = vld [vmem:[%s13609_s9 + $0x2b4] sm:$0xf0]  ;;  %v9913_v3 = vld [vmem:[%s13609_s9 + $0x228] sm:$0xf0] }
  0x9f   : > { %1693 = vmatpush.bf16.msrb.mxu3 %v9799_v6  ;;  %1655 = vmatmul.bf16.vlgmr.msrb.gmra.mxu0 %v13923_v62  ;;  %v9980_v6 = vor.u32 %v12911_v59, %v9977_v60  ;;  %v9983_v60 = vld [vmem:[%s13609_s9 + $0x2b0] sm:$0xf]  ;;  %s15389_s7 = sld [smem:[#allocation17_spill]] }
  0xa0   : > { %1668 = vmatmul.bf16.vlgmr.msrb.gmra.mxu1 %v13925_v63  ;;  %1968 = vmatpush.bf16.msra.mxu0 %v9952_v11  ;;  %s15390_s10 = sld [smem:[#allocation19_spill]] }
  0xa1   : > { %1681 = vmatmul.bf16.vlgmr.msrb.gmra.mxu2 %v13923_v62  ;;  %s15391_s11 = sld [smem:[#allocation15_spill]] }
  0xa2   : > { %1694 = vmatmul.bf16.vlgmr.msrb.gmra.mxu3 %v13925_v63  ;;  %s15392_s16 = sld [smem:[#allocation10_spill]] }
  0xa4   : > { %1969 = vmatpush.bf16.msra.mxu0 %v9944_v14  ;;  %v10015_v14 = vld [vmem:[%s13609_s9 + $0x2f0] sm:$0xf] }
  0xa8   : > { %1970 = vmatpush.bf16.msra.mxu0 %v9936_v24  ;;  %v9961_v24 = vld [vmem:[%s13609_s9 + $0x288] sm:$0xf0] }
  0xac   : > { %1971 = vmatpush.bf16.msra.mxu0 %v9928_v33  ;;  %v12901_v33 = vld [vmem:[%s13609_s9 + $0x254] sm:$0xf] }
  0xb0   : > { %1972 = vmatpush.bf16.msra.mxu0 %v9920_v41  ;;  %v9999_v41 = vld [vmem:[%s13609_s9 + $0x2d0] sm:$0xf] }
  0xb1   : > { %v10000_v49 = vor.u32 %v12918_v45, %v9999_v41 }
  0xb4   : > { %1973 = vmatpush.bf16.msra.mxu0 %v9912_v47  ;;  %v9929_v47 = vld [vmem:[%s13609_s9 + $0x248] sm:$0xf0] }
  0xb5   : > { %v9932_v50 = vor.u32 %v12899_v46, %v9929_v47  ;;  %v10082_v46 = vld [vmem:[%s13609_s9 + $0x330] sm:$0xf]  ;;  %v12930_v47 = vld [vmem:[%s13609_s9 + $0x334] sm:$0xf0] }
  0xb8   : > { %1974 = vmatpush.bf16.msra.mxu0 %v9904_v55  ;;  %v12897_v55 = vld [vmem:[%s13609_s9 + $0x234] sm:$0xf] }
  0xbc   : > { %1975 = vmatpush.bf16.msra.mxu0 %v9896_v5  ;;  %v9984_v5 = vor.u32 %v12914_v1, %v9983_v60 }
  0xbf   : > { %1976 = vmatmul.bf16.vlgmr.msra.gmra.mxu0 %v13923_v62 }
  0xfd   : > { %v1421_v7 = vpop.f32.mrf.mxu1 }
  0xfe   : > { %v1408_v8 = vpop.f32.mrf.mxu0 }
  0xff   : > { %v1422_v51 = vadd.f32 %v1421_v7, %v1408_v8  ;;  %v12909_v8 = vld [vmem:[%s13609_s9 + $0x294] sm:$0xf] }
 0x100   : > { %v9972_v22 = vor.u32 %v12909_v8, %v9969_v9  ;;  %v10146_v8 = vld [vmem:[%s13609_s9 + $0x3b0] sm:$0xf]  ;;  %v12946_v9 = vld [vmem:[%s13609_s9 + $0x3b4] sm:$0xf0] }
 0x101   : > { %v1452_v61 = vpack.c.bf16 %v1422_v51, %v1422_v51  ;;  %v9991_v51 = vld [vmem:[%s13609_s9 + $0x2c0] sm:$0xf] }
 0x103   : > { %v1744_v10 = vsel %vm1707_vm0, %v1452_v61, 0  ;;  %v10154_v61 = vld [vmem:[%s13609_s9 + $0x3c0] sm:$0xf] }
 0x104   : > { %v10155_v4 = vor.u32 %v12948_v0, %v10154_v61 }
 0x105   : > { %v1423_v15 = vpop.f32.mrf.mxu1  ;;  %v1447_v17 = vpop.f32.mrf.mxu3 }
 0x106   : > { %v1434_v16 = vpop.f32.mrf.mxu2  ;;  %v1410_v20 = vpop.f32.mrf.mxu0 }
 0x107   : > { %v1448_v21 = vadd.f32 %v1447_v17, %v1434_v16  ;;  %v12922_v17 = vld [vmem:[%s13609_s9 + $0x2f4] sm:$0xf0] }
 0x109   : > { %v1453_v25 = vpack.c.bf16 %v1448_v21, %v1448_v21 }
 0x10b   : > { %v1747_v29 = vsel %vm1707_vm0, %v1453_v25, 0 }
 0x10c   : > { %1769 = vmatpush.bf16.msra.mxu3 %v1747_v29  ;;  %v10178_v29 = vld [vmem:[%s13609_s9 + $0x3f0] sm:$0xf] }
 0x10d   : > { %v1449_v36 = vpop.f32.mrf.mxu3  ;;  %v10179_v37 = vor.u32 %v12954_v30, %v10178_v29  ;;  %v9959_v29 = vld [vmem:[%s13609_s9 + $0x280] sm:$0xf]  ;;  %v12908_v30 = vld [vmem:[%s13609_s9 + $0x284] sm:$0xf0] }
 0x10e   : > { %v1436_v35 = vpop.f32.mrf.mxu2  ;;  %v9964_v36 = vor.u32 %v12907_v23, %v9961_v24 }
 0x10f   : > { %9860 = vmatmul.msk.bf16.vlgmr.msra.gmra.mxu3 %vm1703_vm1, %v13994_v32 }
 0x110   : > { %2007 = vmatpush.bf16.msrb.mxu3 %v10020_v26  ;;  %v10016_v26 = vor.u32 %v12922_v17, %v10015_v14  ;;  %v12944_v17 = vld [vmem:[%s13609_s9 + $0x3a4] sm:$0xf0] }
 0x114   : > { %2008 = vmatpush.bf16.msrb.mxu3 %v10012_v34  ;;  %v9937_v34 = vld [vmem:[%s13609_s9 + $0x258] sm:$0xf0] }
 0x115   : > { %v9940_v40 = vor.u32 %v12901_v33, %v9937_v34  ;;  %v12936_v33 = vld [vmem:[%s13609_s9 + $0x364] sm:$0xf0] }
 0x118   : > { %2009 = vmatpush.bf16.msrb.mxu3 %v10004_v42  ;;  %v10170_v42 = vld [vmem:[%s13609_s9 + $0x3e0] sm:$0xf] }
 0x11c   : > { %v1656_v54 = vpop.f32.mrf.mxu0  ;;  %2010 = vmatpush.bf16.msrb.mxu3 %v9996_v48  ;;  %v10171_v48 = vor.u32 %v12952_v43, %v10170_v42  ;;  %v10090_v43 = vld [vmem:[%s13609_s9 + $0x340] sm:$0xf] }
 0x11d   : > { %v1669_v56 = vpop.f32.mrf.mxu1 }
 0x11e   : > { %v1670_v58 = vadd.f32 %v1669_v56, %v1656_v54  ;;  %v12916_v54 = vld [vmem:[%s13609_s9 + $0x2c4] sm:$0xf0]  ;;  %v9921_v56 = vld [vmem:[%s13609_s9 + $0x238] sm:$0xf0] }
 0x11f   : > { %v9924_v59 = vor.u32 %v12897_v55, %v9921_v56  ;;  %v10058_v55 = vld [vmem:[%s13609_s9 + $0x300] sm:$0xf]  ;;  %v12924_v56 = vld [vmem:[%s13609_s9 + $0x304] sm:$0xf0] }
 0x120   : > { %v1701_v2 = vpack.c.bf16 %v1670_v58, %v1670_v58  ;;  %2011 = vmatpush.bf16.msrb.mxu3 %v9988_v57  ;;  %v10163_v57 = vor.u32 %v12950_v53, %v10162_v52  ;;  %v9992_v58 = vor.u32 %v12916_v54, %v9991_v51  ;;  %v10066_v52 = vld [vmem:[%s13609_s9 + $0x310] sm:$0xf]  ;;  %v12926_v53 = vld [vmem:[%s13609_s9 + $0x314] sm:$0xf0] }
 0x121   : > { %v10067_v54 = vor.u32 %v12926_v53, %v10066_v52  ;;  %v12927_v52 = vld [vmem:[%s13609_s9 + $0x324] sm:$0xf]  ;;  %v10076_v53 = vld [vmem:[%s13609_s9 + $0x328] sm:$0xf0] }
 0x122   : > { %v1709_v7 = vsel %vm1707_vm0, %v1701_v2, 0  ;;  %v12895_v2 = vld [vmem:[%s13609_s9 + $0x224] sm:$0xf] }
 0x123   : > { %1721 = vmatpush.bf16.msra.mxu2 %v1709_v7  ;;  %v9975_v7 = vld [vmem:[%s13609_s9 + $0x2a0] sm:$0xf] }
 0x124   : > { %v1682_v11 = vpop.f32.mrf.mxu2  ;;  %v1658_v16 = vpop.f32.mrf.mxu0  ;;  %2012 = vmatpush.bf16.msrb.mxu3 %v9980_v6  ;;  %v9916_v6 = vor.u32 %v12895_v2, %v9913_v3 }
 0x125   : > { %v1695_v15 = vpop.f32.mrf.mxu3  ;;  %v1671_v21 = vpop.f32.mrf.mxu1  ;;  %v10138_v16 = vld [vmem:[%s13609_s9 + $0x3a0] sm:$0xf] }
 0x126   : > { %v1696_v20 = vadd.f32 %v1695_v15, %v1682_v11  ;;  %9857 = vmatmul.msk.bf16.vlgmr.msra.gmra.mxu2 %vm1703_vm1, %v9856_v12  ;;  %v12893_v11 = vld [vmem:[%s13609_s9 + $0x214] sm:$0xf]  ;;  %v9967_v15 = vld [vmem:[%s13609_s9 + $0x290] sm:$0xf]  ;;  %v10139_v23 = vor.u32 %v12944_v17, %v10138_v16 }
 0x127   : > { %1756 = vmatpush.bf16.msrb.mxu2 %v1744_v10  ;;  %v12912_v10 = vld [vmem:[%s13609_s9 + $0x2a4] sm:$0xf0]  ;;  %v10114_v21 = vld [vmem:[%s13609_s9 + $0x370] sm:$0xf]  ;;  %v9968_v24 = vor.u32 %v12910_v18, %v9967_v15  ;;  %v10180_v15 = vld [vmem:[%s13609_s9 + $0x3f8] sm:$0xf0] }
 0x128   : > { %v1702_v25 = vpack.c.bf16 %v1696_v20, %v1696_v20  ;;  %2013 = vmatpush.bf16.msrb.mxu3 %v9972_v22  ;;  %v9897_v20 = vld [vmem:[%s13609_s9 + $0x208] sm:$0xf0]  ;;  %v12938_v22 = vld [vmem:[%s13609_s9 + $0x374] sm:$0xf0] }
 0x129   : > { %v10115_v28 = vor.u32 %v12938_v22, %v10114_v21 }
 0x12a   : > { %v1712_v35 = vsel %vm1707_vm0, %v1702_v25, 0  ;;  %v9900_v25 = vor.u32 %v12891_v19, %v9897_v20  ;;  %v12935_v19 = vld [vmem:[%s13609_s9 + $0x364] sm:$0xf]  ;;  %v10108_v20 = vld [vmem:[%s13609_s9 + $0x368] sm:$0xf0] }
 0x12b   : > { %1994 = vmatpush.bf16.msra.mxu2 %v9956_v13  ;;  %1734 = vmatpush.bf16.msra.mxu1 %v1712_v35  ;;  %v9976_v13 = vor.u32 %v12912_v10, %v9975_v7  ;;  %v9960_v35 = vor.u32 %v12908_v30, %v9959_v29  ;;  %v12933_v30 = vld [vmem:[%s13609_s9 + $0x354] sm:$0xf] }
 0x12c   : > { %v1684_v38 = vpop.f32.mrf.mxu2  ;;  %2014 = vmatpush.bf16.msrb.mxu3 %v9964_v36  ;;  %v10122_v36 = vld [vmem:[%s13609_s9 + $0x380] sm:$0xf] }
 0x12d   : > { %v1697_v44 = vpop.f32.mrf.mxu3  ;;  %v10107_v38 = vor.u32 %v12936_v33, %v10106_v31  ;;  %v10100_v31 = vld [vmem:[%s13609_s9 + $0x358] sm:$0xf0] }
 0x12e   : > { %9858 = vmatmul.msk.bf16.vlgmr.msra.gmra.mxu1 %vm1703_vm1, %v9856_v12  ;;  %v10147_v12 = vor.u32 %v12946_v9, %v10146_v8  ;;  %v12932_v44 = vld [vmem:[%s13609_s9 + $0x344] sm:$0xf0] }
 0x12f   : > { %1981 = vmatpush.bf16.msrb.mxu1 %v10016_v26  ;;  %1995 = vmatpush.bf16.msra.mxu2 %v9948_v27  ;;  %v10130_v26 = vld [vmem:[%s13609_s9 + $0x390] sm:$0xf]  ;;  %v12942_v27 = vld [vmem:[%s13609_s9 + $0x394] sm:$0xf0]  ;;  %v10091_v45 = vor.u32 %v12932_v44, %v10090_v43  ;;  %v10156_v43 = vld [vmem:[%s13609_s9 + $0x3c8] sm:$0xf0] }
 0x130   : > { %2267 = vmatpush.bf16.msra.mxu3 %v10179_v37  ;;  %v10131_v34 = vor.u32 %v12942_v27, %v10130_v26  ;;  %v12940_v37 = vld [vmem:[%s13609_s9 + $0x384] sm:$0xf0]  ;;  %v10172_v26 = vld [vmem:[%s13609_s9 + $0x3e8] sm:$0xf0] }
 0x131   : > { %2015 = vmatmul.bf16.vlgmr.msrb.gmra.mxu3 %v13925_v63  ;;  %v10123_v41 = vor.u32 %v12940_v37, %v10122_v36  ;;  %v12949_v36 = vld [vmem:[%s13609_s9 + $0x3d4] sm:$0xf]  ;;  %v10164_v37 = vld [vmem:[%s13609_s9 + $0x3d8] sm:$0xf0] }
 0x133   : > { %1982 = vmatpush.bf16.msrb.mxu1 %v10008_v39  ;;  %1996 = vmatpush.bf16.msra.mxu2 %v9940_v40  ;;  %v10098_v39 = vld [vmem:[%s13609_s9 + $0x350] sm:$0xf]  ;;  %v12934_v40 = vld [vmem:[%s13609_s9 + $0x354] sm:$0xf0] }
 0x134   : > { %2268 = vmatpush.bf16.msra.mxu3 %v10171_v48  ;;  %v10099_v42 = vor.u32 %v12934_v40, %v10098_v39  ;;  %v10083_v48 = vor.u32 %v12930_v47, %v10082_v46  ;;  %v12931_v39 = vld [vmem:[%s13609_s9 + $0x344] sm:$0xf]  ;;  %v10092_v40 = vld [vmem:[%s13609_s9 + $0x348] sm:$0xf0]  ;;  %v10084_v46 = vld [vmem:[%s13609_s9 + $0x338] sm:$0xf0] }
 0x135   : > { %v10095_v44 = vor.u32 %v12931_v39, %v10092_v40 }
 0x136   : > { %9859 = vmatmul.msk.bf16.vlgmr.msrb.gmra.mxu2 %vm1703_vm1, %v13994_v32  ;;  %v9905_v32 = vld [vmem:[%s13609_s9 + $0x218] sm:$0xf0] }
 0x137   : > { %1983 = vmatpush.bf16.msrb.mxu1 %v10000_v49  ;;  %1997 = vmatpush.bf16.msra.mxu2 %v9932_v50  ;;  %v9908_v14 = vor.u32 %v12893_v11, %v9905_v32  ;;  %v10074_v49 = vld [vmem:[%s13609_s9 + $0x320] sm:$0xf]  ;;  %v12928_v50 = vld [vmem:[%s13609_s9 + $0x324] sm:$0xf0]  ;;  %v12937_v11 = vld [vmem:[%s13609_s9 + $0x374] sm:$0xf] }
 0x138   : > { %2269 = vmatpush.bf16.msra.mxu3 %v10163_v57  ;;  %v10075_v51 = vor.u32 %v12928_v50, %v10074_v49  ;;  %v10059_v57 = vor.u32 %v12924_v56, %v10058_v55  ;;  %v10116_v32 = vld [vmem:[%s13609_s9 + $0x378] sm:$0xf0]  ;;  %v12945_v49 = vld [vmem:[%s13609_s9 + $0x3b4] sm:$0xf]  ;;  %v12943_v55 = vld [vmem:[%s13609_s9 + $0x3a4] sm:$0xf] }
 0x139   : > { %v10119_v18 = vor.u32 %v12937_v11, %v10116_v32  ;;  %v10148_v50 = vld [vmem:[%s13609_s9 + $0x3b8] sm:$0xf0]  ;;  %v10140_v56 = vld [vmem:[%s13609_s9 + $0x3a8] sm:$0xf0] }
 0x13b   : > { %1984 = vmatpush.bf16.msrb.mxu1 %v9992_v58  ;;  %1998 = vmatpush.bf16.msra.mxu2 %v9924_v59 }
 0x13c   : > { %2270 = vmatpush.bf16.msra.mxu3 %v10155_v4  ;;  %v1977_v60 = vpop.f32.mrf.mxu0 }
 0x13f   : > { %1985 = vmatpush.bf16.msrb.mxu1 %v9984_v5  ;;  %1999 = vmatpush.bf16.msra.mxu2 %v9916_v6 }
 0x140   : > { %2271 = vmatpush.bf16.msra.mxu3 %v10147_v12 }
 0x143   : > { %1986 = vmatpush.bf16.msrb.mxu1 %v9976_v13  ;;  %2000 = vmatpush.bf16.msra.mxu2 %v9908_v14  ;;  %v12953_v14 = vld [vmem:[%s13609_s9 + $0x3f4] sm:$0xf] }
 0x144   : > { %2272 = vmatpush.bf16.msra.mxu3 %v10139_v23  ;;  %v1979_v1 = vpop.f32.mrf.mxu0  ;;  %v10183_v23 = vor.u32 %v12953_v14, %v10180_v15 }
 0x147   : > { %1987 = vmatpush.bf16.msrb.mxu1 %v9968_v24  ;;  %2001 = vmatpush.bf16.msra.mxu2 %v9900_v25  ;;  %v10021_v24 = vld [vmem:[%s13654_s19 + $0x8] sm:$0xf]  ;;  %v12951_v25 = vld [vmem:[%s13609_s9 + $0x3e4] sm:$0xf] }
 0x148   : > { %2273 = vmatpush.bf16.msra.mxu3 %v10131_v34  ;;  %v10175_v33 = vor.u32 %v12951_v25, %v10172_v26 }
 0x14a   : > { %2002 = vmatmul.bf16.vlgmr.msra.gmra.mxu2 %v13923_v62 }
 0x14b   : > { %2254 = vmatpush.bf16.msrb.mxu2 %v10115_v28  ;;  %1988 = vmatpush.bf16.msrb.mxu1 %v9960_v35  ;;  %v10111_v28 = vor.u32 %v12935_v19, %v10108_v20  ;;  %v10269_v19 = vld [vmem:[%s13609_s9 + $0x460] sm:$0xf]  ;;  %v12968_v20 = vld [vmem:[%s13609_s9 + $0x464] sm:$0xf0] }
 0x14c   : > { %2274 = vmatpush.bf16.msra.mxu3 %v10123_v41  ;;  %v10167_v41 = vor.u32 %v12949_v36, %v10164_v37  ;;  %v10270_v25 = vor.u32 %v12968_v20, %v10269_v19  ;;  %v12964_v36 = vld [vmem:[%s13609_s9 + $0x444] sm:$0xf0]  ;;  %v10317_v37 = vld [vmem:[%s13609_s9 + $0x4c0] sm:$0xf]  ;;  %v10255_v19 = vld [vmem:[%s13609_s9 + $0x448] sm:$0xf0] }
 0x14e   : > { %1989 = vmatmul.bf16.vlgmr.msrb.gmra.mxu1 %v13925_v63 }
 0x14f   : > { %2255 = vmatpush.bf16.msrb.mxu2 %v10107_v38  ;;  %2275 = vmatmul.bf16.vlgmr.msra.gmra.mxu3 %v13925_v63  ;;  %v10103_v38 = vor.u32 %v12933_v30, %v10100_v31  ;;  %v12982_v30 = vld [vmem:[%s13609_s9 + $0x4d4] sm:$0xf0] }
 0x153   : > { %2256 = vmatpush.bf16.msrb.mxu2 %v10099_v42  ;;  %v12947_v42 = vld [vmem:[%s13609_s9 + $0x3c4] sm:$0xf] }
 0x154   : > { %v10159_v47 = vor.u32 %v12947_v42, %v10156_v43  ;;  %v12962_v42 = vld [vmem:[%s13609_s9 + $0x434] sm:$0xf0]  ;;  %v10309_v43 = vld [vmem:[%s13609_s9 + $0x4b0] sm:$0xf] }
 0x157   : > { %2257 = vmatpush.bf16.msrb.mxu2 %v10091_v45  ;;  %v12929_v45 = vld [vmem:[%s13609_s9 + $0x334] sm:$0xf] }
 0x15b   : > { %2258 = vmatpush.bf16.msrb.mxu2 %v10083_v48 }
 0x15f   : > { %2259 = vmatpush.bf16.msrb.mxu2 %v10075_v51  ;;  %v10087_v51 = vor.u32 %v12929_v45, %v10084_v46 }
 0x163   : > { %2260 = vmatpush.bf16.msrb.mxu2 %v10067_v54  ;;  %v10151_v54 = vor.u32 %v12945_v49, %v10148_v50  ;;  %v10301_v49 = vld [vmem:[%s13609_s9 + $0x4a0] sm:$0xf]  ;;  %v12976_v50 = vld [vmem:[%s13609_s9 + $0x4a4] sm:$0xf0] }
 0x167   : > { %2261 = vmatpush.bf16.msrb.mxu2 %v10059_v57  ;;  %v10079_v57 = vor.u32 %v12927_v52, %v10076_v53  ;;  %v10302_v52 = vor.u32 %v12976_v50, %v10301_v49  ;;  %v10229_v53 = vld [vmem:[%s13609_s9 + $0x410] sm:$0xf]  ;;  %v10432_v49 = vld [vmem:[%s13609_s9 + $0x560] sm:$0xf]  ;;  %v13000_v50 = vld [vmem:[%s13609_s9 + $0x564] sm:$0xf0] }
 0x16a   : > { %2262 = vmatmul.bf16.vlgmr.msrb.gmra.mxu2 %v13923_v62 }
 0x192   : > { %v1771_v58 = vpop.f32.mrf.mxu3 }
 0x19a   : > { %v1773_v59 = vpop.f32.mrf.mxu3 }
 0x19b   : > { %v10068_v59 = vld [vmem:[%s13609_s9 + $0x318] sm:$0xf0] }
 0x1a9   : > { %v1723_v61 = vpop.f32.mrf.mxu2 }
 0x1ab   : > { %v1736_v0 = vpop.f32.mrf.mxu1 }
 0x1ac   : > { %v14096_v2 = vadd.f32 %v1771_v58, %v1736_v0  ;;  %v12925_v58 = vld [vmem:[%s13609_s9 + $0x314] sm:$0xf]  ;;  %v10132_v0 = vld [vmem:[%s13609_s9 + $0x398] sm:$0xf0] }
 0x1ad   : > { %v10071_v1 = vor.u32 %v12925_v58, %v10068_v59  ;;  %v10221_v59 = vld [vmem:[%s13609_s9 + $0x400] sm:$0xf] }
 0x1b1   : > { %v1725_v3 = vpop.f32.mrf.mxu2 }
 0x1b2   : > { %v12923_v3 = vld [vmem:[%s13609_s9 + $0x304] sm:$0xf] }
 0x1b3   : > { %v1738_v4 = vpop.f32.mrf.mxu1 }
 0x1b4   : > { %v2016_v5 = vpop.f32.mrf.mxu3  ;;  %v10060_v4 = vld [vmem:[%s13609_s9 + $0x308] sm:$0xf0] }
 0x1b5   : > { %v10063_v32 = vor.u32 %v12923_v3, %v10060_v4  ;;  %v12969_v4 = vld [vmem:[%s13609_s9 + $0x474] sm:$0xf] }
 0x1b9   : > { %v1758_v6 = vpop.f32.mrf.mxu2 }
 0x1ba   : > { %v14098_v7 = vadd.f32 %v1758_v6, %v1723_v61  ;;  %v12941_v61 = vld [vmem:[%s13609_s9 + $0x394] sm:$0xf]  ;;  %v10277_v6 = vld [vmem:[%s13609_s9 + $0x470] sm:$0xf] }
 0x1bc   : > { %v2018_v8 = vpop.f32.mrf.mxu3 }
 0x1bd   : > { %v12970_v8 = vld [vmem:[%s13609_s9 + $0x474] sm:$0xf0] }
 0x1be   : > { %v10278_v15 = vor.u32 %v12970_v8, %v10277_v6 }
 0x1c1   : > { %v1760_v9 = vpop.f32.mrf.mxu2 }
 0x1c2   : > { %v12939_v9 = vld [vmem:[%s13609_s9 + $0x384] sm:$0xf] }
 0x1cb   : > { %v1990_v10 = vpop.f32.mrf.mxu1 }
 0x1cc   : > { %v1991_v12 = vadd.f32 %v1990_v10, %v1977_v60  ;;  %v10143_v60 = vor.u32 %v12943_v55, %v10140_v56  ;;  %v10124_v10 = vld [vmem:[%s13609_s9 + $0x388] sm:$0xf0]  ;;  %v10293_v55 = vld [vmem:[%s13609_s9 + $0x490] sm:$0xf]  ;;  %v12974_v56 = vld [vmem:[%s13609_s9 + $0x494] sm:$0xf0] }
 0x1cd   : > { %v2003_v13 = vpop.f32.mrf.mxu2  ;;  %v10294_v58 = vor.u32 %v12974_v56, %v10293_v55  ;;  %v10327_v56 = vld [vmem:[%s13609_s9 + $0x4d8] sm:$0xf0] }
 0x1ce   : > { %v2022_v16 = vpack.c.bf16 %v1991_v12, %v1991_v12  ;;  %v2017_v17 = vadd.f32 %v2016_v5, %v2003_v13  ;;  %v10135_v5 = vor.u32 %v12941_v61, %v10132_v0  ;;  %v10341_v12 = vld [vmem:[%s13609_s9 + $0x4f0] sm:$0xf]  ;;  %v12986_v13 = vld [vmem:[%s13609_s9 + $0x4f4] sm:$0xf0]  ;;  %v10285_v61 = vld [vmem:[%s13609_s9 + $0x480] sm:$0xf] }
 0x1cf   : > { %v12972_v0 = vld [vmem:[%s13609_s9 + $0x484] sm:$0xf0] }
 0x1d0   : > { %v2028_v21 = vsel %vm1707_vm0, %v2022_v16, 0  ;;  %v2023_v22 = vpack.c.bf16 %v2017_v17, %v2017_v17  ;;  %v10127_v16 = vor.u32 %v12939_v9, %v10124_v10  ;;  %v10286_v3 = vor.u32 %v12972_v0, %v10285_v61  ;;  %v12967_v9 = vld [vmem:[%s13609_s9 + $0x464] sm:$0xf]  ;;  %v10271_v10 = vld [vmem:[%s13609_s9 + $0x468] sm:$0xf0] }
 0x1d1   : > { %2040 = vmatpush.bf16.msrb.mxu0 %v2028_v21  ;;  %v10333_v21 = vld [vmem:[%s13609_s9 + $0x4e0] sm:$0xf]  ;;  %v12979_v61 = vld [vmem:[%s13609_s9 + $0x4c4] sm:$0xf]  ;;  %v10319_v0 = vld [vmem:[%s13609_s9 + $0x4c8] sm:$0xf0] }
 0x1d2   : > { %v2031_v27 = vsel %vm1707_vm0, %v2023_v22, 0  ;;  %v2276_v34 = vpop.f32.mrf.mxu3  ;;  %v12984_v22 = vld [vmem:[%s13609_s9 + $0x4e4] sm:$0xf0] }
 0x1d3   : > { %v1992_v29 = vpop.f32.mrf.mxu1  ;;  %2053 = vmatpush.bf16.msra.mxu1 %v2031_v27  ;;  %v10334_v26 = vor.u32 %v12984_v22, %v10333_v21  ;;  %v10261_v27 = vld [vmem:[%s13609_s9 + $0x450] sm:$0xf]  ;;  %v12961_v21 = vld [vmem:[%s13609_s9 + $0x434] sm:$0xf]  ;;  %v10247_v22 = vld [vmem:[%s13609_s9 + $0x438] sm:$0xf0] }
 0x1d4   : > { %10022 = vmatmul.msk.bf16.vlgmr.msrb.gmra.mxu0 %vm1703_vm1, %v10021_v24  ;;  %v10325_v29 = vld [vmem:[%s13609_s9 + $0x4d0] sm:$0xf] }
 0x1d5   : > { %2280 = vmatpush.bf16.msra.mxu0 %v10119_v18  ;;  %v2005_v35 = vpop.f32.mrf.mxu2  ;;  %v10342_v18 = vor.u32 %v12986_v13, %v10341_v12 }
 0x1d6   : > { %10023 = vmatmul.msk.bf16.vlgmr.msra.gmra.mxu1 %vm1703_vm1, %v10021_v24  ;;  %v14147_v24 = vld [vmem:[%s13654_s19 + $0xc] sm:$0xf]  ;;  %v10253_v35 = vld [vmem:[%s13609_s9 + $0x440] sm:$0xf] }
 0x1d7   : > { %2293 = vmatpush.bf16.msrb.mxu1 %v10183_v23  ;;  %v10254_v39 = vor.u32 %v12964_v36, %v10253_v35  ;;  %v12985_v36 = vld [vmem:[%s13609_s9 + $0x4f4] sm:$0xf] }
 0x1d9   : > { %2281 = vmatpush.bf16.msra.mxu0 %v10111_v28  ;;  %v12966_v28 = vld [vmem:[%s13609_s9 + $0x454] sm:$0xf0] }
 0x1da   : > { %v2278_v48 = vpop.f32.mrf.mxu3 }
 0x1db   : > { %2294 = vmatpush.bf16.msrb.mxu1 %v10175_v33  ;;  %v10262_v33 = vor.u32 %v12966_v28, %v10261_v27  ;;  %v12960_v48 = vld [vmem:[%s13609_s9 + $0x424] sm:$0xf0]  ;;  %v12957_v27 = vld [vmem:[%s13609_s9 + $0x414] sm:$0xf]  ;;  %v10231_v28 = vld [vmem:[%s13609_s9 + $0x418] sm:$0xf0] }
 0x1dd   : > { %2282 = vmatpush.bf16.msra.mxu0 %v10103_v38  ;;  %v12980_v38 = vld [vmem:[%s13609_s9 + $0x4c4] sm:$0xf0] }
 0x1de   : > { %v10318_v40 = vor.u32 %v12980_v38, %v10317_v37  ;;  %v10343_v37 = vld [vmem:[%s13609_s9 + $0x4f8] sm:$0xf0] }
 0x1df   : > { %2295 = vmatpush.bf16.msrb.mxu1 %v10167_v41  ;;  %v10245_v41 = vld [vmem:[%s13609_s9 + $0x430] sm:$0xf] }
 0x1e0   : > { %v10246_v45 = vor.u32 %v12962_v42, %v10245_v41  ;;  %v10346_v42 = vor.u32 %v12985_v36, %v10343_v37 }
 0x1e1   : > { %2283 = vmatpush.bf16.msra.mxu0 %v10095_v44  ;;  %v12978_v44 = vld [vmem:[%s13609_s9 + $0x4b4] sm:$0xf0] }
 0x1e2   : > { %v10310_v46 = vor.u32 %v12978_v44, %v10309_v43  ;;  %v12983_v44 = vld [vmem:[%s13609_s9 + $0x4e4] sm:$0xf] }
 0x1e3   : > { %2296 = vmatpush.bf16.msrb.mxu1 %v10159_v47  ;;  %v10237_v47 = vld [vmem:[%s13609_s9 + $0x420] sm:$0xf] }
 0x1e5   : > { %2284 = vmatpush.bf16.msra.mxu0 %v10087_v51  ;;  %v10238_v51 = vor.u32 %v12960_v48, %v10237_v47 }
 0x1e7   : > { %2297 = vmatpush.bf16.msrb.mxu1 %v10151_v54  ;;  %v12958_v54 = vld [vmem:[%s13609_s9 + $0x414] sm:$0xf0] }
 0x1e9   : > { %2285 = vmatpush.bf16.msra.mxu0 %v10079_v57  ;;  %v10230_v57 = vor.u32 %v12958_v54, %v10229_v53  ;;  %v12981_v53 = vld [vmem:[%s13609_s9 + $0x4d4] sm:$0xf]  ;;  %v10433_v54 = vor.u32 %v13000_v50, %v10432_v49  ;;  %v13012_v49 = vld [vmem:[%s13609_s9 + $0x5c4] sm:$0xf0] }
 0x1eb   : > { %2298 = vmatpush.bf16.msrb.mxu1 %v10143_v60  ;;  %v12956_v60 = vld [vmem:[%s13609_s9 + $0x404] sm:$0xf0] }
 0x1ed   : > { %2286 = vmatpush.bf16.msra.mxu0 %v10071_v1  ;;  %v2263_v11 = vpop.f32.mrf.mxu2  ;;  %v10222_v1 = vor.u32 %v12956_v60, %v10221_v59  ;;  %v10330_v60 = vor.u32 %v12981_v53, %v10327_v56  ;;  %v13010_v53 = vld [vmem:[%s13609_s9 + $0x5b4] sm:$0xf0]  ;;  %v13008_v56 = vld [vmem:[%s13609_s9 + $0x5a4] sm:$0xf0] }
 0x1ee   : > { %v2277_v14 = vadd.f32 %v2276_v34, %v2263_v11  ;;  %v10326_v34 = vor.u32 %v12982_v30, %v10325_v29  ;;  %v10234_v29 = vor.u32 %v12957_v27, %v10231_v28  ;;  %v12955_v30 = vld [vmem:[%s13609_s9 + $0x404] sm:$0xf]  ;;  %v10384_v27 = vld [vmem:[%s13609_s9 + $0x500] sm:$0xf]  ;;  %v12988_v28 = vld [vmem:[%s13609_s9 + $0x504] sm:$0xf0] }
 0x1ef   : > { %2299 = vmatpush.bf16.msrb.mxu1 %v10135_v5  ;;  %v10279_v5 = vld [vmem:[%s13609_s9 + $0x478] sm:$0xf0] }
 0x1f0   : > { %v2308_v17 = vpack.c.bf16 %v2277_v14, %v2277_v14  ;;  %v10282_v6 = vor.u32 %v12969_v4, %v10279_v5  ;;  %v12965_v14 = vld [vmem:[%s13609_s9 + $0x454] sm:$0xf] }
 0x1f1   : > { %2287 = vmatpush.bf16.msra.mxu0 %v10063_v32  ;;  %v10274_v32 = vor.u32 %v12967_v9, %v10271_v10  ;;  %v10408_v9 = vld [vmem:[%s13609_s9 + $0x530] sm:$0xf]  ;;  %v12994_v10 = vld [vmem:[%s13609_s9 + $0x534] sm:$0xf0] }
 0x1f2   : > { %v2314_v23 = vsel %vm1707_vm0, %v2308_v17, 0 }
 0x1f3   : > { %2300 = vmatpush.bf16.msrb.mxu1 %v10127_v16  ;;  %2326 = vmatpush.bf16.msra.mxu2 %v2314_v23  ;;  %v12959_v23 = vld [vmem:[%s13609_s9 + $0x424] sm:$0xf] }
 0x1f4   : > { %2288 = vmatmul.bf16.vlgmr.msra.gmra.mxu0 %v13923_v62 }
 0x1f5   : > { %2540 = vmatpush.bf16.msrb.mxu0 %v10278_v15  ;;  %v2265_v31 = vpop.f32.mrf.mxu2  ;;  %v10263_v15 = vld [vmem:[%s13609_s9 + $0x458] sm:$0xf0] }
 0x1f6   : > { %2301 = vmatmul.bf16.vlgmr.msrb.gmra.mxu1 %v13925_v63  ;;  %10185 = vmatmul.msk.bf16.vlgmr.msra.gmra.mxu2 %vm1703_vm1, %v14147_v24  ;;  %v10266_v16 = vor.u32 %v12965_v14, %v10263_v15  ;;  %v10223_v31 = vld [vmem:[%s13609_s9 + $0x408] sm:$0xf0]  ;;  %v10400_v15 = vld [vmem:[%s13609_s9 + $0x520] sm:$0xf] }
 0x1f7   : > { %2553 = vmatpush.bf16.msra.mxu1 %v10342_v18  ;;  %2566 = vmatpush.bf16.msrb.mxu2 %v10282_v6  ;;  %v12963_v18 = vld [vmem:[%s13609_s9 + $0x444] sm:$0xf]  ;;  %v10322_v6 = vor.u32 %v12979_v61, %v10319_v0  ;;  %v10303_v14 = vld [vmem:[%s13609_s9 + $0x4a8] sm:$0xf0]  ;;  %v10448_v61 = vld [vmem:[%s13609_s9 + $0x580] sm:$0xf] }
 0x1f8   : > { %v13004_v0 = vld [vmem:[%s13609_s9 + $0x584] sm:$0xf0] }
 0x1f9   : > { %2541 = vmatpush.bf16.msrb.mxu0 %v10270_v25  ;;  %v10239_v25 = vld [vmem:[%s13609_s9 + $0x428] sm:$0xf0] }
 0x1fb   : > { %2554 = vmatpush.bf16.msra.mxu1 %v10334_v26  ;;  %2567 = vmatpush.bf16.msrb.mxu2 %v10274_v32  ;;  %v10242_v26 = vor.u32 %v12959_v23, %v10239_v25  ;;  %v12971_v23 = vld [vmem:[%s13609_s9 + $0x484] sm:$0xf] }
 0x1fd   : > { %2542 = vmatpush.bf16.msrb.mxu0 %v10262_v33  ;;  %v10226_v33 = vor.u32 %v12955_v30, %v10223_v31  ;;  %v10504_v30 = vld [vmem:[%s13609_s9 + $0x5f0] sm:$0xf]  ;;  %v13018_v31 = vld [vmem:[%s13609_s9 + $0x5f4] sm:$0xf0] }
 0x1fe   : > { %v10505_v37 = vor.u32 %v13018_v31, %v10504_v30 }
 0x1ff   : > { %2555 = vmatpush.bf16.msra.mxu1 %v10326_v34  ;;  %2568 = vmatpush.bf16.msrb.mxu2 %v10266_v16  ;;  %v12992_v16 = vld [vmem:[%s13609_s9 + $0x524] sm:$0xf0] }
 0x201   : > { %2543 = vmatpush.bf16.msrb.mxu0 %v10254_v39  ;;  %v10440_v39 = vld [vmem:[%s13609_s9 + $0x570] sm:$0xf] }
 0x203   : > { %2556 = vmatpush.bf16.msra.mxu1 %v10318_v40  ;;  %v13002_v40 = vld [vmem:[%s13609_s9 + $0x574] sm:$0xf0] }
 0x204   : > { %v10441_v43 = vor.u32 %v13002_v40, %v10440_v39  ;;  %v13016_v39 = vld [vmem:[%s13609_s9 + $0x5e4] sm:$0xf0] }
 0x205   : > { %2544 = vmatpush.bf16.msrb.mxu0 %v10246_v45  ;;  %v10335_v45 = vld [vmem:[%s13609_s9 + $0x4e8] sm:$0xf0] }
 0x207   : > { %2557 = vmatpush.bf16.msra.mxu1 %v10310_v46 }
 0x209   : > { %2545 = vmatpush.bf16.msrb.mxu0 %v10238_v51 }
 0x20b   : > { %2558 = vmatpush.bf16.msra.mxu1 %v10302_v52  ;;  %v10338_v52 = vor.u32 %v12983_v44, %v10335_v45  ;;  %v10488_v44 = vld [vmem:[%s13609_s9 + $0x5d0] sm:$0xf]  ;;  %v13014_v45 = vld [vmem:[%s13609_s9 + $0x5d4] sm:$0xf0] }
 0x20d   : > { %2546 = vmatpush.bf16.msrb.mxu0 %v10230_v57  ;;  %v10424_v57 = vld [vmem:[%s13609_s9 + $0x550] sm:$0xf] }
 0x20f   : > { %2559 = vmatpush.bf16.msra.mxu1 %v10294_v58  ;;  %v12998_v58 = vld [vmem:[%s13609_s9 + $0x554] sm:$0xf0] }
 0x210   : > { %v10425_v59 = vor.u32 %v12998_v58, %v10424_v57  ;;  %v10456_v58 = vld [vmem:[%s13609_s9 + $0x590] sm:$0xf] }
 0x211   : > { %2547 = vmatpush.bf16.msrb.mxu0 %v10222_v1  ;;  %v10416_v1 = vld [vmem:[%s13609_s9 + $0x540] sm:$0xf] }
 0x213   : > { %2560 = vmatpush.bf16.msra.mxu1 %v10286_v3  ;;  %v12996_v3 = vld [vmem:[%s13609_s9 + $0x544] sm:$0xf0] }
 0x214   : > { %2548 = vmatmul.bf16.vlgmr.msrb.gmra.mxu0 %v13923_v62  ;;  %v10417_v4 = vor.u32 %v12996_v3, %v10416_v1  ;;  %v10449_v1 = vor.u32 %v13004_v0, %v10448_v61  ;;  %v10482_v61 = vld [vmem:[%s13609_s9 + $0x5c8] sm:$0xf0]  ;;  %v10579_v0 = vld [vmem:[%s13609_s9 + $0x640] sm:$0xf] }
 0x216   : > { %2561 = vmatmul.bf16.vlgmr.msra.gmra.mxu1 %v13925_v63 }
 0x251   : > { %v2042_v8 = vpop.f32.mrf.mxu0 }
 0x252   : > { %v2059_v11 = vadd.f32 %v2042_v8, %v14098_v7  ;;  %v10258_v7 = vor.u32 %v12963_v18, %v10255_v19  ;;  %v10311_v8 = vld [vmem:[%s13609_s9 + $0x4b8] sm:$0xf0]  ;;  %v12973_v19 = vld [vmem:[%s13609_s9 + $0x494] sm:$0xf] }
 0x253   : > { %v2055_v12 = vpop.f32.mrf.mxu1 }
 0x254   : > { %v14185_v13 = vadd.f32 %v2055_v12, %v14096_v2  ;;  %2569 = vmatpush.bf16.msrb.mxu2 %v10258_v7  ;;  %v10250_v2 = vor.u32 %v12961_v21, %v10247_v22  ;;  %v12975_v12 = vld [vmem:[%s13609_s9 + $0x4a4] sm:$0xf]  ;;  %v10295_v7 = vld [vmem:[%s13609_s9 + $0x498] sm:$0xf0]  ;;  %v12990_v21 = vld [vmem:[%s13609_s9 + $0x514] sm:$0xf0] }
 0x255   : > { %v10306_v18 = vor.u32 %v12975_v12, %v10303_v14  ;;  %v12997_v12 = vld [vmem:[%s13609_s9 + $0x554] sm:$0xf]  ;;  %v10426_v14 = vld [vmem:[%s13609_s9 + $0x558] sm:$0xf0] }
 0x258   : > { %2570 = vmatpush.bf16.msrb.mxu2 %v10250_v2  ;;  %v10298_v2 = vor.u32 %v12973_v19, %v10295_v7  ;;  %v12993_v7 = vld [vmem:[%s13609_s9 + $0x534] sm:$0xf] }
 0x259   : > { %v2044_v17 = vpop.f32.mrf.mxu0 }
 0x25a   : > { %v10401_v17 = vor.u32 %v12992_v16, %v10400_v15  ;;  %v10429_v15 = vor.u32 %v12997_v12, %v10426_v14  ;;  %v12995_v16 = vld [vmem:[%s13609_s9 + $0x544] sm:$0xf]  ;;  %v10563_v12 = vld [vmem:[%s13609_s9 + $0x620] sm:$0xf]  ;;  %v13024_v14 = vld [vmem:[%s13609_s9 + $0x624] sm:$0xf0] }
 0x25b   : > { %v2057_v20 = vpop.f32.mrf.mxu1 }
 0x25c   : > { %2571 = vmatpush.bf16.msrb.mxu2 %v10242_v26  ;;  %v10392_v20 = vld [vmem:[%s13609_s9 + $0x510] sm:$0xf]  ;;  %v10287_v26 = vld [vmem:[%s13609_s9 + $0x488] sm:$0xf0] }
 0x25d   : > { %v10393_v22 = vor.u32 %v12990_v21, %v10392_v20  ;;  %v10410_v20 = vld [vmem:[%s13609_s9 + $0x538] sm:$0xf0] }
 0x25e   : > { %v10413_v21 = vor.u32 %v12993_v7, %v10410_v20  ;;  %v13022_v7 = vld [vmem:[%s13609_s9 + $0x614] sm:$0xf0] }
 0x260   : > { %2572 = vmatpush.bf16.msrb.mxu2 %v10234_v29 }
 0x264   : > { %2573 = vmatpush.bf16.msrb.mxu2 %v10226_v33  ;;  %v10385_v33 = vor.u32 %v12988_v28, %v10384_v27  ;;  %v12987_v27 = vld [vmem:[%s13609_s9 + $0x504] sm:$0xf]  ;;  %v10386_v28 = vld [vmem:[%s13609_s9 + $0x508] sm:$0xf0] }
 0x267   : > { %2574 = vmatmul.bf16.vlgmr.msrb.gmra.mxu2 %v13923_v62 }
 0x268   : > { %2826 = vmatpush.bf16.msra.mxu2 %v10441_v43 }
 0x26c   : > { %2827 = vmatpush.bf16.msra.mxu2 %v10433_v54 }
 0x270   : > { %2828 = vmatpush.bf16.msra.mxu2 %v10425_v59  ;;  %v13006_v59 = vld [vmem:[%s13609_s9 + $0x594] sm:$0xf0] }
 0x271   : > { %v2289_v34 = vpop.f32.mrf.mxu0 }
 0x273   : > { %v2302_v35 = vpop.f32.mrf.mxu1 }
 0x274   : > { %v2303_v38 = vadd.f32 %v2302_v35, %v2289_v34  ;;  %2829 = vmatpush.bf16.msra.mxu2 %v10417_v4  ;;  %v10290_v35 = vor.u32 %v12971_v23, %v10287_v26  ;;  %v13001_v4 = vld [vmem:[%s13609_s9 + $0x574] sm:$0xf] }
 0x275   : > { %v12989_v23 = vld [vmem:[%s13609_s9 + $0x514] sm:$0xf] }
 0x276   : > { %v2309_v41 = vpack.c.bf16 %v2303_v38, %v2303_v38  ;;  %v10496_v38 = vld [vmem:[%s13609_s9 + $0x5e0] sm:$0xf] }
 0x278   : > { %v2317_v46 = vsel %vm1707_vm0, %v2309_v41, 0  ;;  %v14243_v41 = vld [vmem:[%s13654_s19 + $0x10] sm:$0xf] }
 0x279   : > { %v2291_v47 = vpop.f32.mrf.mxu0  ;;  %v2328_v48 = vpop.f32.mrf.mxu2  ;;  %2339 = vmatpush.bf16.msrb.mxu3 %v2317_v46 }
 0x27a   : > { %v14209_v51 = vadd.f32 %v2328_v48, %v2059_v11  ;;  %v10409_v11 = vor.u32 %v12994_v10, %v10408_v9  ;;  %v10489_v47 = vor.u32 %v13014_v45, %v10488_v44  ;;  %v10480_v48 = vld [vmem:[%s13609_s9 + $0x5c0] sm:$0xf]  ;;  %v10434_v9 = vld [vmem:[%s13609_s9 + $0x568] sm:$0xf0]  ;;  %v13015_v44 = vld [vmem:[%s13609_s9 + $0x5e4] sm:$0xf] }
 0x27b   : > { %v2304_v55 = vpop.f32.mrf.mxu1  ;;  %v10481_v50 = vor.u32 %v13012_v49, %v10480_v48  ;;  %v10498_v45 = vld [vmem:[%s13609_s9 + $0x5e8] sm:$0xf0]  ;;  %v13032_v48 = vld [vmem:[%s13609_s9 + $0x664] sm:$0xf0] }
 0x27c   : > { %10186 = vmatmul.msk.bf16.vlgmr.msrb.gmra.mxu3 %vm1703_vm1, %v14147_v24  ;;  %v12977_v24 = vld [vmem:[%s13609_s9 + $0x4b4] sm:$0xf]  ;;  %2830 = vmatpush.bf16.msra.mxu2 %v10409_v11  ;;  %v10464_v55 = vld [vmem:[%s13609_s9 + $0x5a0] sm:$0xf] }
 0x27d   : > { %2579 = vmatpush.bf16.msra.mxu3 %v10346_v42  ;;  %v10314_v32 = vor.u32 %v12977_v24, %v10311_v8  ;;  %v10497_v42 = vor.u32 %v13016_v39, %v10496_v38  ;;  %v10465_v57 = vor.u32 %v13008_v56, %v10464_v55  ;;  %v12999_v8 = vld [vmem:[%s13609_s9 + $0x564] sm:$0xf]  ;;  %v10603_v38 = vld [vmem:[%s13609_s9 + $0x670] sm:$0xf]  ;;  %v13034_v39 = vld [vmem:[%s13609_s9 + $0x674] sm:$0xf0] }
 0x27e   : > { %v10437_v10 = vor.u32 %v12999_v8, %v10434_v9  ;;  %v10490_v55 = vld [vmem:[%s13609_s9 + $0x5d8] sm:$0xf0]  ;;  %v10587_v56 = vld [vmem:[%s13609_s9 + $0x650] sm:$0xf] }
 0x280   : > { %2831 = vmatpush.bf16.msra.mxu2 %v10401_v17  ;;  %v10418_v17 = vld [vmem:[%s13609_s9 + $0x548] sm:$0xf0] }
 0x281   : > { %2580 = vmatpush.bf16.msra.mxu3 %v10338_v52  ;;  %v2330_v5 = vpop.f32.mrf.mxu2  ;;  %v10472_v52 = vld [vmem:[%s13609_s9 + $0x5b0] sm:$0xf] }
 0x282   : > { %v10473_v54 = vor.u32 %v13010_v53, %v10472_v52  ;;  %v10442_v5 = vld [vmem:[%s13609_s9 + $0x578] sm:$0xf0]  ;;  %v13013_v52 = vld [vmem:[%s13609_s9 + $0x5d4] sm:$0xf] }
 0x284   : > { %2832 = vmatpush.bf16.msra.mxu2 %v10393_v22  ;;  %v12991_v22 = vld [vmem:[%s13609_s9 + $0x524] sm:$0xf] }
 0x285   : > { %2581 = vmatpush.bf16.msra.mxu3 %v10330_v60  ;;  %v10457_v60 = vor.u32 %v13006_v59, %v10456_v58  ;;  %v10493_v59 = vor.u32 %v13013_v52, %v10490_v55  ;;  %v13040_v52 = vld [vmem:[%s13609_s9 + $0x6a4] sm:$0xf0]  ;;  %v13038_v55 = vld [vmem:[%s13609_s9 + $0x694] sm:$0xf0] }
 0x288   : > { %2833 = vmatpush.bf16.msra.mxu2 %v10385_v33 }
 0x289   : > { %2582 = vmatpush.bf16.msra.mxu3 %v10322_v6  ;;  %v10445_v6 = vor.u32 %v13001_v4, %v10442_v5  ;;  %v13009_v5 = vld [vmem:[%s13609_s9 + $0x5b4] sm:$0xf] }
 0x28b   : > { %2834 = vmatmul.bf16.vlgmr.msra.gmra.mxu2 %v13923_v62 }
 0x28d   : > { %2583 = vmatpush.bf16.msra.mxu3 %v10314_v32 }
 0x291   : > { %2584 = vmatpush.bf16.msra.mxu3 %v10306_v18  ;;  %v2549_v25 = vpop.f32.mrf.mxu0  ;;  %v10421_v18 = vor.u32 %v12995_v16, %v10418_v17  ;;  %v13005_v17 = vld [vmem:[%s13609_s9 + $0x594] sm:$0xf] }
 0x293   : > { %v2562_v29 = vpop.f32.mrf.mxu1 }
 0x294   : > { %v2563_v34 = vadd.f32 %v2562_v29, %v2549_v25  ;;  %v10394_v25 = vld [vmem:[%s13609_s9 + $0x518] sm:$0xf0]  ;;  %v10389_v29 = vor.u32 %v12987_v27, %v10386_v28  ;;  %v13050_v27 = vld [vmem:[%s13609_s9 + $0x6f4] sm:$0xf0] }
 0x295   : > { %2585 = vmatpush.bf16.msra.mxu3 %v10298_v2  ;;  %v10397_v26 = vor.u32 %v12989_v23, %v10394_v25  ;;  %v13020_v23 = vld [vmem:[%s13609_s9 + $0x604] sm:$0xf0] }
 0x296   : > { %v2594_v36 = vpack.c.bf16 %v2563_v34, %v2563_v34 }
 0x298   : > { %v2600_v40 = vsel %vm1707_vm0, %v2594_v36, 0  ;;  %v10506_v36 = vld [vmem:[%s13609_s9 + $0x5f8] sm:$0xf0] }
 0x299   : > { %2586 = vmatpush.bf16.msra.mxu3 %v10290_v35  ;;  %2612 = vmatpush.bf16.msra.mxu0 %v2600_v40  ;;  %v2551_v43 = vpop.f32.mrf.mxu0  ;;  %v13017_v35 = vld [vmem:[%s13609_s9 + $0x5f4] sm:$0xf] }
 0x29a   : > { %v10509_v43 = vor.u32 %v13017_v35, %v10506_v36  ;;  %v10659_v36 = vld [vmem:[%s13609_s9 + $0x6e0] sm:$0xf] }
 0x29b   : > { %v2564_v46 = vpop.f32.mrf.mxu1 }
 0x29c   : > { %2587 = vmatmul.bf16.vlgmr.msra.gmra.mxu3 %v13925_v63  ;;  %10348 = vmatmul.msk.bf16.vlgmr.msra.gmra.mxu0 %vm1703_vm1, %v14243_v41 }
 0x29d   : > { %2839 = vmatpush.bf16.msrb.mxu3 %v10505_v37  ;;  %2852 = vmatpush.bf16.msrb.mxu0 %v10445_v6  ;;  %v10571_v6 = vld [vmem:[%s13609_s9 + $0x630] sm:$0xf] }
 0x2a1   : > { %2840 = vmatpush.bf16.msrb.mxu3 %v10497_v42  ;;  %2853 = vmatpush.bf16.msrb.mxu0 %v10437_v10  ;;  %v13007_v10 = vld [vmem:[%s13609_s9 + $0x5a4] sm:$0xf] }
 0x2a5   : > { %2841 = vmatpush.bf16.msrb.mxu3 %v10489_v47  ;;  %2854 = vmatpush.bf16.msrb.mxu0 %v10429_v15  ;;  %v10595_v47 = vld [vmem:[%s13609_s9 + $0x660] sm:$0xf]  ;;  %v10564_v15 = vor.u32 %v13024_v14, %v10563_v12  ;;  %v10581_v12 = vld [vmem:[%s13609_s9 + $0x648] sm:$0xf0] }
 0x2a6   : > { %v10596_v53 = vor.u32 %v13032_v48, %v10595_v47  ;;  %v10635_v47 = vld [vmem:[%s13609_s9 + $0x6b0] sm:$0xf]  ;;  %v13042_v48 = vld [vmem:[%s13609_s9 + $0x6b4] sm:$0xf0] }
 0x2a9   : > { %2842 = vmatpush.bf16.msrb.mxu3 %v10481_v50  ;;  %2855 = vmatpush.bf16.msrb.mxu0 %v10421_v18  ;;  %v10501_v50 = vor.u32 %v13015_v44, %v10498_v45  ;;  %v10458_v18 = vld [vmem:[%s13609_s9 + $0x598] sm:$0xf0]  ;;  %v10643_v44 = vld [vmem:[%s13609_s9 + $0x6c0] sm:$0xf]  ;;  %v13044_v45 = vld [vmem:[%s13609_s9 + $0x6c4] sm:$0xf0] }
 0x2ad   : > { %2843 = vmatpush.bf16.msrb.mxu3 %v10473_v54  ;;  %2856 = vmatpush.bf16.msrb.mxu0 %v10413_v21  ;;  %v10461_v21 = vor.u32 %v13005_v17, %v10458_v18  ;;  %v10573_v17 = vld [vmem:[%s13609_s9 + $0x638] sm:$0xf0] }
 0x2b1   : > { %2844 = vmatpush.bf16.msrb.mxu3 %v10465_v57  ;;  %v13030_v57 = vld [vmem:[%s13609_s9 + $0x654] sm:$0xf0] }
 0x2b2   : > { %v10588_v58 = vor.u32 %v13030_v57, %v10587_v56  ;;  %v10611_v57 = vld [vmem:[%s13609_s9 + $0x680] sm:$0xf] }
 0x2b5   : > { %2845 = vmatpush.bf16.msrb.mxu3 %v10457_v60  ;;  %v13011_v60 = vld [vmem:[%s13609_s9 + $0x5c4] sm:$0xf] }
 0x2b6   : > { %v10485_v4 = vor.u32 %v13011_v60, %v10482_v61  ;;  %v13033_v60 = vld [vmem:[%s13609_s9 + $0x674] sm:$0xf]  ;;  %v10605_v61 = vld [vmem:[%s13609_s9 + $0x678] sm:$0xf0] }
 0x2b9   : > { %2846 = vmatpush.bf16.msrb.mxu3 %v10449_v1  ;;  %v13028_v1 = vld [vmem:[%s13609_s9 + $0x644] sm:$0xf0] }
 0x2bc   : > { %2847 = vmatmul.bf16.vlgmr.msrb.gmra.mxu3 %v13925_v63 }
 0x2ea   : > { %v2575_v3 = vpop.f32.mrf.mxu2 }
 0x2f2   : > { %v2577_v24 = vpop.f32.mrf.mxu2 }
 0x2f3   : > { %v13026_v24 = vld [vmem:[%s13609_s9 + $0x634] sm:$0xf0] }
 0x2f4   : > { %v10572_v8 = vor.u32 %v13026_v24, %v10571_v6 }
 0x2ff   : > { %v2341_v11 = vpop.f32.mrf.mxu3 }
 0x300   : > { %v14267_v32 = vadd.f32 %v2341_v11, %v14185_v13  ;;  %v10402_v13 = vld [vmem:[%s13609_s9 + $0x528] sm:$0xf0] }
 0x301   : > { %v10405_v2 = vor.u32 %v12991_v22, %v10402_v13  ;;  %v10466_v11 = vld [vmem:[%s13609_s9 + $0x5a8] sm:$0xf0]  ;;  %v13003_v22 = vld [vmem:[%s13609_s9 + $0x584] sm:$0xf] }
 0x302   : > { %v10469_v16 = vor.u32 %v13007_v10, %v10466_v11  ;;  %v10450_v13 = vld [vmem:[%s13609_s9 + $0x588] sm:$0xf0]  ;;  %v13027_v11 = vld [vmem:[%s13609_s9 + $0x644] sm:$0xf] }
 0x303   : > { %2857 = vmatpush.bf16.msrb.mxu0 %v10405_v2  ;;  %v10547_v2 = vld [vmem:[%s13609_s9 + $0x600] sm:$0xf]  ;;  %v10584_v14 = vor.u32 %v13027_v11, %v10581_v12  ;;  %v13037_v12 = vld [vmem:[%s13609_s9 + $0x694] sm:$0xf] }
 0x304   : > { %v10548_v28 = vor.u32 %v13020_v23, %v10547_v2  ;;  %v10549_v2 = vld [vmem:[%s13609_s9 + $0x608] sm:$0xf0] }
 0x307   : > { %v2343_v19 = vpop.f32.mrf.mxu3  ;;  %2858 = vmatpush.bf16.msrb.mxu0 %v10397_v26  ;;  %v10667_v26 = vld [vmem:[%s13609_s9 + $0x6f0] sm:$0xf] }
 0x308   : > { %v10555_v19 = vld [vmem:[%s13609_s9 + $0x610] sm:$0xf]  ;;  %v10668_v35 = vor.u32 %v13050_v27, %v10667_v26  ;;  %v13049_v27 = vld [vmem:[%s13609_s9 + $0x6f4] sm:$0xf] }
 0x309   : > { %v10556_v20 = vor.u32 %v13022_v7, %v10555_v19  ;;  %v13023_v19 = vld [vmem:[%s13609_s9 + $0x624] sm:$0xf] }
 0x30b   : > { %2859 = vmatpush.bf16.msrb.mxu0 %v10389_v29 }
 0x30e   : > { %v14284_v33 = vpop.f32.mrf.mxu2  ;;  %2860 = vmatmul.bf16.vlgmr.msrb.gmra.mxu0 %v13923_v62 }
 0x316   : > { %v2837_v49 = vpop.f32.mrf.mxu2 }
 0x317   : > { %v10636_v49 = vor.u32 %v13042_v48, %v10635_v47  ;;  %v13045_v47 = vld [vmem:[%s13609_s9 + $0x6d4] sm:$0xf] }
 0x319   : > { %v2614_v30 = vpop.f32.mrf.mxu0 }
 0x31a   : > { %v14282_v31 = vadd.f32 %v2614_v30, %v14209_v51  ;;  %v10604_v51 = vor.u32 %v13034_v39, %v10603_v38  ;;  %v10453_v30 = vor.u32 %v13003_v22, %v10450_v13  ;;  %v14329_v39 = vld [vmem:[%s13654_s19 + $0x14] sm:$0xf]  ;;  %v13019_v13 = vld [vmem:[%s13609_s9 + $0x604] sm:$0xf] }
 0x31b   : > { %v10552_v23 = vor.u32 %v13019_v13, %v10549_v2  ;;  %v13082_v13 = vld [vmem:[%s13609_s9 + $0x7f4] sm:$0xf0] }
 0x31c   : > { %3112 = vmatpush.bf16.msra.mxu0 %v10604_v51 }
 0x31f   : > { %v2588_v34 = vpop.f32.mrf.mxu3 }
 0x320   : > { %v2589_v37 = vadd.f32 %v2588_v34, %v2575_v3  ;;  %3113 = vmatpush.bf16.msra.mxu0 %v10596_v53  ;;  %v10580_v3 = vor.u32 %v13028_v1, %v10579_v0  ;;  %v10608_v0 = vor.u32 %v13033_v60, %v10605_v61 }
 0x321   : > { %v2616_v40 = vpop.f32.mrf.mxu0 }
 0x322   : > { %v2595_v42 = vpack.c.bf16 %v2589_v37, %v2589_v37  ;;  %v13048_v37 = vld [vmem:[%s13609_s9 + $0x6e4] sm:$0xf0]  ;;  %v10651_v40 = vld [vmem:[%s13609_s9 + $0x6d0] sm:$0xf] }
 0x324   : > { %v2603_v46 = vsel %vm1707_vm0, %v2595_v42, 0  ;;  %3114 = vmatpush.bf16.msra.mxu0 %v10588_v58  ;;  %v13046_v42 = vld [vmem:[%s13609_s9 + $0x6d4] sm:$0xf0]  ;;  %v13036_v58 = vld [vmem:[%s13609_s9 + $0x684] sm:$0xf0] }
 0x325   : > { %2625 = vmatpush.bf16.msrb.mxu1 %v2603_v46  ;;  %v10652_v51 = vor.u32 %v13046_v42, %v10651_v40  ;;  %v10644_v46 = vor.u32 %v13044_v45, %v10643_v44 }
 0x327   : > { %v2590_v54 = vpop.f32.mrf.mxu3 }
 0x328   : > { %10349 = vmatmul.msk.bf16.vlgmr.msrb.gmra.mxu1 %vm1703_vm1, %v14243_v41  ;;  %v10474_v41 = vld [vmem:[%s13609_s9 + $0x5b8] sm:$0xf0]  ;;  %3115 = vmatpush.bf16.msra.mxu0 %v10580_v3  ;;  %v10619_v54 = vld [vmem:[%s13609_s9 + $0x690] sm:$0xf] }
 0x329   : > { %2865 = vmatpush.bf16.msra.mxu1 %v10509_v43  ;;  %v10477_v9 = vor.u32 %v13009_v5, %v10474_v41  ;;  %v10620_v56 = vor.u32 %v13038_v55, %v10619_v54  ;;  %v10597_v5 = vld [vmem:[%s13609_s9 + $0x668] sm:$0xf0]  ;;  %v13043_v55 = vld [vmem:[%s13609_s9 + $0x6c4] sm:$0xf] }
 0x32c   : > { %3116 = vmatpush.bf16.msra.mxu0 %v10572_v8  ;;  %v13029_v8 = vld [vmem:[%s13609_s9 + $0x654] sm:$0xf] }
 0x32d   : > { %2866 = vmatpush.bf16.msra.mxu1 %v10501_v50  ;;  %v10627_v50 = vld [vmem:[%s13609_s9 + $0x6a0] sm:$0xf] }
 0x32e   : > { %v10628_v53 = vor.u32 %v13040_v52, %v10627_v50  ;;  %v10653_v50 = vld [vmem:[%s13609_s9 + $0x6d8] sm:$0xf0]  ;;  %v10750_v52 = vld [vmem:[%s13609_s9 + $0x750] sm:$0xf] }
 0x32f   : > { %v10656_v54 = vor.u32 %v13045_v47, %v10653_v50  ;;  %v10790_v47 = vld [vmem:[%s13609_s9 + $0x7a0] sm:$0xf]  ;;  %v10782_v50 = vld [vmem:[%s13609_s9 + $0x790] sm:$0xf] }
 0x330   : > { %3117 = vmatpush.bf16.msra.mxu0 %v10564_v15 }
 0x331   : > { %2867 = vmatpush.bf16.msra.mxu1 %v10493_v59  ;;  %v10612_v59 = vor.u32 %v13036_v58, %v10611_v57  ;;  %v10742_v57 = vld [vmem:[%s13609_s9 + $0x740] sm:$0xf]  ;;  %v13060_v58 = vld [vmem:[%s13609_s9 + $0x744] sm:$0xf0] }
 0x334   : > { %3118 = vmatpush.bf16.msra.mxu0 %v10556_v20  ;;  %v13021_v20 = vld [vmem:[%s13609_s9 + $0x614] sm:$0xf] }
 0x335   : > { %2868 = vmatpush.bf16.msra.mxu1 %v10485_v4  ;;  %v13031_v4 = vld [vmem:[%s13609_s9 + $0x664] sm:$0xf] }
 0x336   : > { %v10600_v41 = vor.u32 %v13031_v4, %v10597_v5 }
 0x338   : > { %3119 = vmatpush.bf16.msra.mxu0 %v10548_v28  ;;  %v10669_v28 = vld [vmem:[%s13609_s9 + $0x6f8] sm:$0xf0] }
 0x339   : > { %2869 = vmatpush.bf16.msra.mxu1 %v10477_v9  ;;  %v10589_v9 = vld [vmem:[%s13609_s9 + $0x658] sm:$0xf0] }
 0x33a   : > { %v10592_v10 = vor.u32 %v13029_v8, %v10589_v9  ;;  %v10726_v8 = vld [vmem:[%s13609_s9 + $0x720] sm:$0xf]  ;;  %v13056_v9 = vld [vmem:[%s13609_s9 + $0x724] sm:$0xf0] }
 0x33b   : > { %3120 = vmatmul.bf16.vlgmr.msra.gmra.mxu0 %v13923_v62 }
 0x33d   : > { %2870 = vmatpush.bf16.msra.mxu1 %v10469_v16  ;;  %v13025_v16 = vld [vmem:[%s13609_s9 + $0x634] sm:$0xf] }
 0x33e   : > { %v10576_v18 = vor.u32 %v13025_v16, %v10573_v17  ;;  %v13054_v16 = vld [vmem:[%s13609_s9 + $0x714] sm:$0xf0] }
 0x33f   : > { %v2848_v25 = vpop.f32.mrf.mxu3 }
 0x340   : > { %v2849_v29 = vadd.f32 %v2848_v25, %v14284_v33  ;;  %v10660_v33 = vor.u32 %v13048_v37, %v10659_v36  ;;  %v10672_v36 = vor.u32 %v13049_v27, %v10669_v28 }
 0x341   : > { %2871 = vmatpush.bf16.msra.mxu1 %v10461_v21  ;;  %v10557_v21 = vld [vmem:[%s13609_s9 + $0x618] sm:$0xf0] }
 0x342   : > { %v2880_v34 = vpack.c.bf16 %v2849_v29, %v2849_v29  ;;  %v10560_v22 = vor.u32 %v13021_v20, %v10557_v21  ;;  %v13052_v20 = vld [vmem:[%s13609_s9 + $0x704] sm:$0xf0] }
 0x344   : > { %v2886_v38 = vsel %vm1707_vm0, %v2880_v34, 0  ;;  %v13066_v34 = vld [vmem:[%s13609_s9 + $0x774] sm:$0xf0] }
 0x345   : > { %2872 = vmatpush.bf16.msra.mxu1 %v10453_v30  ;;  %2898 = vmatpush.bf16.msrb.mxu2 %v2886_v38  ;;  %v10766_v30 = vld [vmem:[%s13609_s9 + $0x770] sm:$0xf]  ;;  %v13047_v38 = vld [vmem:[%s13609_s9 + $0x6e4] sm:$0xf] }
 0x346   : > { %v10767_v37 = vor.u32 %v13066_v34, %v10766_v30  ;;  %v13080_v30 = vld [vmem:[%s13609_s9 + $0x7e4] sm:$0xf0] }
 0x347   : > { %v2850_v43 = vpop.f32.mrf.mxu3 }
 0x348   : > { %2873 = vmatmul.bf16.vlgmr.msra.gmra.mxu1 %v13925_v63  ;;  %10511 = vmatmul.msk.bf16.vlgmr.msrb.gmra.mxu2 %vm1703_vm1, %v14329_v39  ;;  %v10758_v43 = vld [vmem:[%s13609_s9 + $0x760] sm:$0xf] }
 0x349   : > { %3125 = vmatpush.bf16.msrb.mxu1 %v10668_v35  ;;  %3138 = vmatpush.bf16.msra.mxu2 %v10608_v0  ;;  %v10637_v0 = vld [vmem:[%s13609_s9 + $0x6b8] sm:$0xf0] }
 0x34d   : > { %3126 = vmatpush.bf16.msrb.mxu1 %v10660_v33  ;;  %3139 = vmatpush.bf16.msra.mxu2 %v10600_v41  ;;  %v10661_v33 = vld [vmem:[%s13609_s9 + $0x6e8] sm:$0xf0]  ;;  %v13039_v41 = vld [vmem:[%s13609_s9 + $0x6a4] sm:$0xf] }
 0x351   : > { %3127 = vmatpush.bf16.msrb.mxu1 %v10652_v51  ;;  %3140 = vmatpush.bf16.msra.mxu2 %v10592_v10  ;;  %v13064_v51 = vld [vmem:[%s13609_s9 + $0x764] sm:$0xf0]  ;;  %v10727_v10 = vor.u32 %v13056_v9, %v10726_v8  ;;  %v10744_v8 = vld [vmem:[%s13609_s9 + $0x748] sm:$0xf0] }
 0x352   : > { %v10759_v48 = vor.u32 %v13064_v51, %v10758_v43  ;;  %v10798_v51 = vld [vmem:[%s13609_s9 + $0x7b0] sm:$0xf] }
 0x355   : > { %3128 = vmatpush.bf16.msrb.mxu1 %v10644_v46  ;;  %3141 = vmatpush.bf16.msra.mxu2 %v10584_v14  ;;  %v10664_v46 = vor.u32 %v13047_v38, %v10661_v33  ;;  %v10621_v14 = vld [vmem:[%s13609_s9 + $0x698] sm:$0xf0] }
 0x359   : > { %3129 = vmatpush.bf16.msrb.mxu1 %v10636_v49  ;;  %3142 = vmatpush.bf16.msra.mxu2 %v10576_v18  ;;  %v10624_v18 = vor.u32 %v13037_v12, %v10621_v14  ;;  %v10736_v12 = vld [vmem:[%s13609_s9 + $0x738] sm:$0xf0] }
 0x35d   : > { %3130 = vmatpush.bf16.msrb.mxu1 %v10628_v53  ;;  %v13062_v53 = vld [vmem:[%s13609_s9 + $0x754] sm:$0xf0] }
 0x361   : > { %3131 = vmatpush.bf16.msrb.mxu1 %v10620_v56  ;;  %v10645_v56 = vld [vmem:[%s13609_s9 + $0x6c8] sm:$0xf0] }
 0x362   : > { %v10648_v61 = vor.u32 %v13043_v55, %v10645_v56 }
 0x365   : > { %3132 = vmatpush.bf16.msrb.mxu1 %v10612_v59  ;;  %v10743_v59 = vor.u32 %v13060_v58, %v10742_v57  ;;  %v13065_v57 = vld [vmem:[%s13609_s9 + $0x774] sm:$0xf]  ;;  %v10768_v58 = vld [vmem:[%s13609_s9 + $0x778] sm:$0xf0] }
 0x368   : > { %3133 = vmatmul.bf16.vlgmr.msrb.gmra.mxu1 %v13925_v63 }
 0x38b   : > { %v2861_v1 = vpop.f32.mrf.mxu0 }
 0x393   : > { %v2863_v3 = vpop.f32.mrf.mxu0 }
 0x394   : > { %v13058_v3 = vld [vmem:[%s13609_s9 + $0x734] sm:$0xf0] }
 0x3a5   : > { %v2627_v6 = vpop.f32.mrf.mxu1 }
 0x3a6   : > { %v14353_v24 = vadd.f32 %v2627_v6, %v14267_v32  ;;  %v10565_v32 = vld [vmem:[%s13609_s9 + $0x628] sm:$0xf0] }
 0x3a7   : > { %v10568_v7 = vor.u32 %v13023_v19, %v10565_v32  ;;  %v10629_v6 = vld [vmem:[%s13609_s9 + $0x6a8] sm:$0xf0]  ;;  %v13035_v19 = vld [vmem:[%s13609_s9 + $0x684] sm:$0xf] }
 0x3a8   : > { %v10632_v11 = vor.u32 %v13039_v41, %v10629_v6  ;;  %v10613_v32 = vld [vmem:[%s13609_s9 + $0x688] sm:$0xf0]  ;;  %v13059_v6 = vld [vmem:[%s13609_s9 + $0x744] sm:$0xf] }
 0x3a9   : > { %3143 = vmatpush.bf16.msra.mxu2 %v10568_v7  ;;  %v10710_v7 = vld [vmem:[%s13609_s9 + $0x700] sm:$0xf]  ;;  %v10747_v9 = vor.u32 %v13059_v6, %v10744_v8  ;;  %v13069_v8 = vld [vmem:[%s13609_s9 + $0x794] sm:$0xf] }
 0x3aa   : > { %v10711_v2 = vor.u32 %v13052_v20, %v10710_v7  ;;  %v10712_v7 = vld [vmem:[%s13609_s9 + $0x708] sm:$0xf0] }
 0x3ad   : > { %v2629_v15 = vpop.f32.mrf.mxu1  ;;  %3144 = vmatpush.bf16.msra.mxu2 %v10560_v22  ;;  %v10830_v22 = vld [vmem:[%s13609_s9 + $0x7f0] sm:$0xf] }
 0x3ae   : > { %v10718_v15 = vld [vmem:[%s13609_s9 + $0x710] sm:$0xf]  ;;  %v10831_v28 = vor.u32 %v13082_v13, %v10830_v22 }
 0x3af   : > { %v10719_v17 = vor.u32 %v13054_v16, %v10718_v15  ;;  %v13055_v15 = vld [vmem:[%s13609_s9 + $0x724] sm:$0xf] }
 0x3b1   : > { %3145 = vmatpush.bf16.msra.mxu2 %v10552_v23 }
 0x3b4   : > { %3146 = vmatmul.bf16.vlgmr.msra.gmra.mxu2 %v13923_v62 }
 0x3b5   : > { %3398 = vmatpush.bf16.msrb.mxu2 %v10767_v37  ;;  %v13078_v37 = vld [vmem:[%s13609_s9 + $0x7d4] sm:$0xf0] }
 0x3b8   : > { %v14367_v25 = vpop.f32.mrf.mxu0 }
 0x3b9   : > { %3399 = vmatpush.bf16.msrb.mxu2 %v10759_v48  ;;  %v13072_v48 = vld [vmem:[%s13609_s9 + $0x7a4] sm:$0xf0] }
 0x3c0   : > { %v3123_v44 = vpop.f32.mrf.mxu0 }
 0x3c1   : > { %v13074_v44 = vld [vmem:[%s13609_s9 + $0x7b4] sm:$0xf0] }
 0x3c5   : > { %v2874_v26 = vpop.f32.mrf.mxu1 }
 0x3c6   : > { %v2875_v29 = vadd.f32 %v2874_v26, %v2861_v1  ;;  %v10734_v1 = vld [vmem:[%s13609_s9 + $0x730] sm:$0xf]  ;;  %v10616_v26 = vor.u32 %v13035_v19, %v10613_v32  ;;  %v13051_v32 = vld [vmem:[%s13609_s9 + $0x704] sm:$0xf] }
 0x3c7   : > { %v10735_v4 = vor.u32 %v13058_v3, %v10734_v1  ;;  %v10715_v20 = vor.u32 %v13051_v32, %v10712_v7  ;;  %v13114_v32 = vld [vmem:[%s13609_s9 + $0x8f4] sm:$0xf0] }
 0x3c8   : > { %v2881_v35 = vpack.c.bf16 %v2875_v29, %v2875_v29  ;;  %v10822_v29 = vld [vmem:[%s13609_s9 + $0x7e0] sm:$0xf] }
 0x3ca   : > { %v2889_v40 = vsel %vm1707_vm0, %v2881_v35, 0  ;;  %v14415_v35 = vld [vmem:[%s13654_s19 + $0x18] sm:$0xf] }
 0x3cb   : > { %v2900_v42 = vpop.f32.mrf.mxu2  ;;  %2911 = vmatpush.bf16.msra.mxu3 %v2889_v40  ;;  %v10806_v40 = vld [vmem:[%s13609_s9 + $0x7c0] sm:$0xf] }
 0x3cc   : > { %v14380_v45 = vadd.f32 %v2900_v42, %v14282_v31  ;;  %v10751_v31 = vor.u32 %v13062_v53, %v10750_v52  ;;  %v13076_v42 = vld [vmem:[%s13609_s9 + $0x7c4] sm:$0xf0]  ;;  %v13070_v52 = vld [vmem:[%s13609_s9 + $0x794] sm:$0xf0] }
 0x3cd   : > { %v2876_v49 = vpop.f32.mrf.mxu1  ;;  %v10807_v43 = vor.u32 %v13076_v42, %v10806_v40  ;;  %v10783_v53 = vor.u32 %v13070_v52, %v10782_v50  ;;  %v13096_v40 = vld [vmem:[%s13609_s9 + $0x864] sm:$0xf0] }
 0x3ce   : > { %10512 = vmatmul.msk.bf16.vlgmr.msra.gmra.mxu3 %vm1703_vm1, %v14329_v39  ;;  %3400 = vmatpush.bf16.msrb.mxu2 %v10751_v31  ;;  %v13041_v39 = vld [vmem:[%s13609_s9 + $0x6b4] sm:$0xf]  ;;  %v10791_v49 = vor.u32 %v13072_v48, %v10790_v47  ;;  %v10774_v31 = vld [vmem:[%s13609_s9 + $0x780] sm:$0xf]  ;;  %v10816_v47 = vld [vmem:[%s13609_s9 + $0x7d8] sm:$0xf0] }
 0x3cf   : > { %3151 = vmatpush.bf16.msrb.mxu3 %v10672_v36  ;;  %v10640_v5 = vor.u32 %v13041_v39, %v10637_v0  ;;  %v10814_v36 = vld [vmem:[%s13609_s9 + $0x7d0] sm:$0xf]  ;;  %v10760_v39 = vld [vmem:[%s13609_s9 + $0x768] sm:$0xf0] }
 0x3d0   : > { %v10815_v33 = vor.u32 %v13078_v37, %v10814_v36  ;;  %v13079_v36 = vld [vmem:[%s13609_s9 + $0x7e4] sm:$0xf]  ;;  %v10824_v37 = vld [vmem:[%s13609_s9 + $0x7e8] sm:$0xf0]  ;;  %v10913_v48 = vld [vmem:[%s13609_s9 + $0x850] sm:$0xf] }
 0x3d2   : > { %3401 = vmatpush.bf16.msrb.mxu2 %v10743_v59  ;;  %v10771_v59 = vor.u32 %v13065_v57, %v10768_v58  ;;  %v13073_v58 = vld [vmem:[%s13609_s9 + $0x7b4] sm:$0xf] }
 0x3d3   : > { %3152 = vmatpush.bf16.msrb.mxu3 %v10664_v46  ;;  %v2902_v60 = vpop.f32.mrf.mxu2  ;;  %v10799_v46 = vor.u32 %v13074_v44, %v10798_v51  ;;  %v13077_v51 = vld [vmem:[%s13609_s9 + $0x7d4] sm:$0xf] }
 0x3d4   : > { %v10819_v52 = vor.u32 %v13077_v51, %v10816_v47  ;;  %v13104_v51 = vld [vmem:[%s13609_s9 + $0x8a4] sm:$0xf0]  ;;  %v13102_v47 = vld [vmem:[%s13609_s9 + $0x894] sm:$0xf0] }
 0x3d6   : > { %3402 = vmatpush.bf16.msrb.mxu2 %v10735_v4  ;;  %v13061_v4 = vld [vmem:[%s13609_s9 + $0x754] sm:$0xf] }
 0x3d7   : > { %3153 = vmatpush.bf16.msrb.mxu3 %v10656_v54  ;;  %v13068_v54 = vld [vmem:[%s13609_s9 + $0x784] sm:$0xf0] }
 0x3d8   : > { %v10775_v55 = vor.u32 %v13068_v54, %v10774_v31  ;;  %v10808_v31 = vld [vmem:[%s13609_s9 + $0x7c8] sm:$0xf0]  ;;  %v10905_v54 = vld [vmem:[%s13609_s9 + $0x840] sm:$0xf] }
 0x3da   : > { %3403 = vmatpush.bf16.msrb.mxu2 %v10727_v10 }
 0x3db   : > { %3154 = vmatpush.bf16.msrb.mxu3 %v10648_v61  ;;  %v13063_v61 = vld [vmem:[%s13609_s9 + $0x764] sm:$0xf] }
 0x3dc   : > { %v10763_v0 = vor.u32 %v13063_v61, %v10760_v39 }
 0x3de   : > { %3404 = vmatpush.bf16.msrb.mxu2 %v10719_v17  ;;  %v13053_v17 = vld [vmem:[%s13609_s9 + $0x714] sm:$0xf] }
 0x3df   : > { %3155 = vmatpush.bf16.msrb.mxu3 %v10640_v5  ;;  %v10752_v5 = vld [vmem:[%s13609_s9 + $0x758] sm:$0xf0] }
 0x3e0   : > { %v10755_v41 = vor.u32 %v13061_v4, %v10752_v5  ;;  %v10889_v4 = vld [vmem:[%s13609_s9 + $0x820] sm:$0xf]  ;;  %v13088_v5 = vld [vmem:[%s13609_s9 + $0x824] sm:$0xf0] }
 0x3e2   : > { %3405 = vmatpush.bf16.msrb.mxu2 %v10711_v2 }
 0x3e3   : > { %3156 = vmatpush.bf16.msrb.mxu3 %v10632_v11  ;;  %v13057_v11 = vld [vmem:[%s13609_s9 + $0x734] sm:$0xf] }
 0x3e4   : > { %v10739_v14 = vor.u32 %v13057_v11, %v10736_v12  ;;  %v13086_v11 = vld [vmem:[%s13609_s9 + $0x814] sm:$0xf0] }
 0x3e5   : > { %v3134_v21 = vpop.f32.mrf.mxu1  ;;  %3406 = vmatmul.bf16.vlgmr.msrb.gmra.mxu2 %v13923_v62 }
 0x3e6   : > { %v3135_v23 = vadd.f32 %v3134_v21, %v14367_v25  ;;  %v10823_v25 = vor.u32 %v13080_v30, %v10822_v29  ;;  %v13098_v29 = vld [vmem:[%s13609_s9 + $0x874] sm:$0xf0] }
 0x3e7   : > { %3157 = vmatpush.bf16.msrb.mxu3 %v10624_v18  ;;  %v10720_v18 = vld [vmem:[%s13609_s9 + $0x718] sm:$0xf0] }
 0x3e8   : > { %v3166_v27 = vpack.c.bf16 %v3135_v23, %v3135_v23  ;;  %v10723_v19 = vor.u32 %v13053_v17, %v10720_v18  ;;  %v13081_v23 = vld [vmem:[%s13609_s9 + $0x7f4] sm:$0xf]  ;;  %v13084_v17 = vld [vmem:[%s13609_s9 + $0x804] sm:$0xf0] }
 0x3ea   : > { %v3172_v34 = vsel %vm1707_vm0, %v3166_v27, 0 }
 0x3eb   : > { %3158 = vmatpush.bf16.msrb.mxu3 %v10616_v26  ;;  %3184 = vmatpush.bf16.msrb.mxu0 %v3172_v34  ;;  %v10832_v26 = vld [vmem:[%s13609_s9 + $0x7f8] sm:$0xf0] }
 0x3ed   : > { %v3136_v38 = vpop.f32.mrf.mxu1 }
 0x3ee   : > { %3159 = vmatmul.bf16.vlgmr.msrb.gmra.mxu3 %v13925_v63  ;;  %10674 = vmatmul.msk.bf16.vlgmr.msrb.gmra.mxu0 %vm1703_vm1, %v14415_v35 }
 0x3ef   : > { %3411 = vmatpush.bf16.msra.mxu3 %v10831_v28  ;;  %3424 = vmatpush.bf16.msra.mxu0 %v10771_v59  ;;  %v10929_v28 = vld [vmem:[%s13609_s9 + $0x870] sm:$0xf] }
 0x3f0   : > { %v10897_v59 = vld [vmem:[%s13609_s9 + $0x830] sm:$0xf] }
 0x3f3   : > { %3412 = vmatpush.bf16.msra.mxu3 %v10823_v25  ;;  %3425 = vmatpush.bf16.msra.mxu0 %v10763_v0  ;;  %v10835_v25 = vor.u32 %v13081_v23, %v10832_v26  ;;  %v13071_v0 = vld [vmem:[%s13609_s9 + $0x7a4] sm:$0xf]  ;;  %v10985_v26 = vld [vmem:[%s13609_s9 + $0x8e0] sm:$0xf] }
 0x3f7   : > { %3413 = vmatpush.bf16.msra.mxu3 %v10815_v33  ;;  %3426 = vmatpush.bf16.msra.mxu0 %v10755_v41  ;;  %v10921_v33 = vld [vmem:[%s13609_s9 + $0x860] sm:$0xf]  ;;  %v10890_v41 = vor.u32 %v13088_v5, %v10889_v4  ;;  %v10907_v4 = vld [vmem:[%s13609_s9 + $0x848] sm:$0xf0] }
 0x3f8   : > { %v10922_v44 = vor.u32 %v13096_v40, %v10921_v33  ;;  %v10961_v33 = vld [vmem:[%s13609_s9 + $0x8b0] sm:$0xf]  ;;  %v13106_v40 = vld [vmem:[%s13609_s9 + $0x8b4] sm:$0xf0] }
 0x3fb   : > { %3414 = vmatpush.bf16.msra.mxu3 %v10807_v43  ;;  %3427 = vmatpush.bf16.msra.mxu0 %v10747_v9  ;;  %v10827_v43 = vor.u32 %v13079_v36, %v10824_v37  ;;  %v10784_v9 = vld [vmem:[%s13609_s9 + $0x798] sm:$0xf0]  ;;  %v10969_v36 = vld [vmem:[%s13609_s9 + $0x8c0] sm:$0xf]  ;;  %v13108_v37 = vld [vmem:[%s13609_s9 + $0x8c4] sm:$0xf0] }
 0x3ff   : > { %3415 = vmatpush.bf16.msra.mxu3 %v10799_v46  ;;  %3428 = vmatpush.bf16.msra.mxu0 %v10739_v14  ;;  %v10787_v14 = vor.u32 %v13069_v8, %v10784_v9  ;;  %v10899_v8 = vld [vmem:[%s13609_s9 + $0x838] sm:$0xf0] }
 0x403   : > { %3416 = vmatpush.bf16.msra.mxu3 %v10791_v49  ;;  %v13094_v49 = vld [vmem:[%s13609_s9 + $0x854] sm:$0xf0] }
 0x404   : > { %v10914_v50 = vor.u32 %v13094_v49, %v10913_v48  ;;  %v10937_v49 = vld [vmem:[%s13609_s9 + $0x880] sm:$0xf] }
 0x407   : > { %3417 = vmatpush.bf16.msra.mxu3 %v10783_v53  ;;  %v13075_v53 = vld [vmem:[%s13609_s9 + $0x7c4] sm:$0xf] }
 0x408   : > { %v10811_v57 = vor.u32 %v13075_v53, %v10808_v31  ;;  %v13097_v53 = vld [vmem:[%s13609_s9 + $0x874] sm:$0xf]  ;;  %v10931_v31 = vld [vmem:[%s13609_s9 + $0x878] sm:$0xf0] }
 0x40b   : > { %3418 = vmatpush.bf16.msra.mxu3 %v10775_v55  ;;  %v13092_v55 = vld [vmem:[%s13609_s9 + $0x844] sm:$0xf0] }
 0x40e   : > { %3419 = vmatmul.bf16.vlgmr.msra.gmra.mxu3 %v13925_v63 }
 0x437   : > { %v3147_v56 = vpop.f32.mrf.mxu2 }
 0x43f   : > { %v3149_v60 = vpop.f32.mrf.mxu2 }
 0x440   : > { %v13090_v60 = vld [vmem:[%s13609_s9 + $0x834] sm:$0xf0] }
 0x441   : > { %v10898_v61 = vor.u32 %v13090_v60, %v10897_v59 }
 0x451   : > { %v2913_v1 = vpop.f32.mrf.mxu3 }
 0x452   : > { %v14439_v3 = vadd.f32 %v2913_v1, %v14353_v24  ;;  %v10728_v24 = vld [vmem:[%s13609_s9 + $0x728] sm:$0xf0] }
 0x453   : > { %v10731_v16 = vor.u32 %v13055_v15, %v10728_v24  ;;  %v10792_v1 = vld [vmem:[%s13609_s9 + $0x7a8] sm:$0xf0]  ;;  %v13067_v15 = vld [vmem:[%s13609_s9 + $0x784] sm:$0xf] }
 0x454   : > { %v10795_v6 = vor.u32 %v13071_v0, %v10792_v1  ;;  %v10776_v24 = vld [vmem:[%s13609_s9 + $0x788] sm:$0xf0]  ;;  %v13091_v1 = vld [vmem:[%s13609_s9 + $0x844] sm:$0xf] }
 0x455   : > { %3429 = vmatpush.bf16.msra.mxu0 %v10731_v16  ;;  %v10873_v16 = vld [vmem:[%s13609_s9 + $0x800] sm:$0xf]  ;;  %v10910_v5 = vor.u32 %v13091_v1, %v10907_v4  ;;  %v7313_v1 = vld [vmem:[%s13689_s4 + $0x18] sm:$0xff] }
 0x456   : > { %v10874_v7 = vor.u32 %v13084_v17, %v10873_v16  ;;  %v10875_v16 = vld [vmem:[%s13609_s9 + $0x808] sm:$0xf0] }
 0x459   : > { %v2915_v10 = vpop.f32.mrf.mxu3  ;;  %3430 = vmatpush.bf16.msra.mxu0 %v10723_v19  ;;  %v10993_v19 = vld [vmem:[%s13609_s9 + $0x8f0] sm:$0xf] }
 0x45a   : > { %v10881_v10 = vld [vmem:[%s13609_s9 + $0x810] sm:$0xf]  ;;  %v10994_v23 = vor.u32 %v13114_v32, %v10993_v19  ;;  %v13113_v32 = vld [vmem:[%s13609_s9 + $0x8f4] sm:$0xf] }
 0x45b   : > { %v10882_v12 = vor.u32 %v13086_v11, %v10881_v10  ;;  %v13087_v10 = vld [vmem:[%s13609_s9 + $0x824] sm:$0xf] }
 0x45d   : > { %3431 = vmatpush.bf16.msra.mxu0 %v10715_v20 }
 0x460   : > { %3432 = vmatmul.bf16.vlgmr.msra.gmra.mxu0 %v13923_v62 }
 0x468   : > { %v14456_v13 = vpop.f32.mrf.mxu2 }
 0x46b   : > { %v3186_v21 = vpop.f32.mrf.mxu0 }
 0x46c   : > { %v14454_v22 = vadd.f32 %v3186_v21, %v14380_v45  ;;  %v10930_v45 = vor.u32 %v13098_v29, %v10929_v28  ;;  %v10779_v21 = vor.u32 %v13067_v15, %v10776_v24  ;;  %v14501_v29 = vld [vmem:[%s13654_s19 + $0x1c] sm:$0xf]  ;;  %v13083_v24 = vld [vmem:[%s13609_s9 + $0x804] sm:$0xf] }
 0x46d   : > { %v10878_v17 = vor.u32 %v13083_v24, %v10875_v16  ;;  %v13132_v24 = vld [vmem:[#allocation2 + $0x80] sm:$0xff]  ;;  %v13118_v16 = vld [vmem:[#allocation2 + $0x18] sm:$0xff] }
 0x46e   : > { %3684 = vmatpush.bf16.msrb.mxu0 %v10930_v45 }
 0x470   : > { %v3409_v42 = vpop.f32.mrf.mxu2 }
 0x471   : > { %v3160_v2 = vpop.f32.mrf.mxu3  ;;  %v10962_v42 = vor.u32 %v13106_v40, %v10961_v33  ;;  %v10971_v33 = vld [vmem:[%s13609_s9 + $0x8c8] sm:$0xf0]  ;;  %v5463_v40 = vld [vmem:[%s13669_s6] sm:$0xff] }
 0x472   : > { %v3161_v27 = vadd.f32 %v3160_v2, %v3147_v56  ;;  %3685 = vmatpush.bf16.msrb.mxu0 %v10922_v44  ;;  %v10906_v56 = vor.u32 %v13092_v55, %v10905_v54  ;;  %v10934_v54 = vor.u32 %v13097_v53, %v10931_v31  ;;  %v13099_v31 = vld [vmem:[%s13609_s9 + $0x884] sm:$0xf] }
 0x473   : > { %v3188_v30 = vpop.f32.mrf.mxu0 }
 0x474   : > { %v3167_v34 = vpack.c.bf16 %v3161_v27, %v3161_v27  ;;  %v13112_v27 = vld [vmem:[%s13609_s9 + $0x8e4] sm:$0xf0]  ;;  %v10977_v30 = vld [vmem:[%s13609_s9 + $0x8d0] sm:$0xf] }
 0x476   : > { %v3175_v38 = vsel %vm1707_vm0, %v3167_v34, 0  ;;  %3686 = vmatpush.bf16.msrb.mxu0 %v10914_v50  ;;  %v13110_v34 = vld [vmem:[%s13609_s9 + $0x8d4] sm:$0xf0]  ;;  %v13100_v50 = vld [vmem:[%s13609_s9 + $0x884] sm:$0xf0] }
 0x477   : > { %3197 = vmatpush.bf16.msra.mxu1 %v3175_v38  ;;  %v10978_v45 = vor.u32 %v13110_v34, %v10977_v30  ;;  %v10970_v38 = vor.u32 %v13108_v37, %v10969_v36  ;;  %v13109_v36 = vld [vmem:[%s13609_s9 + $0x8d4] sm:$0xf]  ;;  %v10979_v37 = vld [vmem:[%s13609_s9 + $0x8d8] sm:$0xf0] }
 0x479   : > { %v3162_v46 = vpop.f32.mrf.mxu3 }
 0x47a   : > { %10675 = vmatmul.msk.bf16.vlgmr.msra.gmra.mxu1 %vm1703_vm1, %v14415_v35  ;;  %v10800_v35 = vld [vmem:[%s13609_s9 + $0x7b8] sm:$0xf0]  ;;  %3687 = vmatpush.bf16.msrb.mxu0 %v10906_v56  ;;  %v10945_v46 = vld [vmem:[%s13609_s9 + $0x890] sm:$0xf] }
 0x47b   : > { %3437 = vmatpush.bf16.msrb.mxu1 %v10835_v25  ;;  %v10803_v39 = vor.u32 %v13073_v58, %v10800_v35  ;;  %v10946_v48 = vor.u32 %v13102_v47, %v10945_v46  ;;  %v10923_v58 = vld [vmem:[%s13609_s9 + $0x868] sm:$0xf0]  ;;  %v13103_v46 = vld [vmem:[%s13609_s9 + $0x8a4] sm:$0xf] }
 0x47c   : > { %v10955_v47 = vld [vmem:[%s13609_s9 + $0x8a8] sm:$0xf0] }
 0x47e   : > { %3688 = vmatpush.bf16.msrb.mxu0 %v10898_v61  ;;  %v13093_v61 = vld [vmem:[%s13609_s9 + $0x854] sm:$0xf] }
 0x47f   : > { %3438 = vmatpush.bf16.msrb.mxu1 %v10827_v43  ;;  %v10953_v43 = vld [vmem:[%s13609_s9 + $0x8a0] sm:$0xf] }
 0x480   : > { %v10954_v44 = vor.u32 %v13104_v51, %v10953_v43  ;;  %v13105_v51 = vld [vmem:[%s13609_s9 + $0x8b4] sm:$0xf] }
 0x482   : > { %3689 = vmatpush.bf16.msrb.mxu0 %v10890_v41 }
 0x483   : > { %3439 = vmatpush.bf16.msrb.mxu1 %v10819_v52  ;;  %v10938_v52 = vor.u32 %v13100_v50, %v10937_v49  ;;  %v10958_v49 = vor.u32 %v13103_v46, %v10955_v47  ;;  %v13101_v50 = vld [vmem:[%s13609_s9 + $0x894] sm:$0xf] }
 0x486   : > { %3690 = vmatpush.bf16.msrb.mxu0 %v10882_v12  ;;  %v13085_v12 = vld [vmem:[%s13609_s9 + $0x814] sm:$0xf] }
 0x487   : > { %3440 = vmatpush.bf16.msrb.mxu1 %v10811_v57  ;;  %v13095_v57 = vld [vmem:[%s13609_s9 + $0x864] sm:$0xf] }
 0x488   : > { %v10926_v35 = vor.u32 %v13095_v57, %v10923_v58 }
 0x48a   : > { %3691 = vmatpush.bf16.msrb.mxu0 %v10874_v7  ;;  %v10995_v7 = vld [vmem:[%s13609_s9 + $0x8f8] sm:$0xf0] }
 0x48b   : > { %3441 = vmatpush.bf16.msrb.mxu1 %v10803_v39  ;;  %v10915_v39 = vld [vmem:[%s13609_s9 + $0x858] sm:$0xf0] }
 0x48c   : > { %v10918_v0 = vor.u32 %v13093_v61, %v10915_v39  ;;  %v14568_v39 = vld [vmem:[%s13654_s19 + $0x20] sm:$0xf] }
 0x48d   : > { %3692 = vmatmul.bf16.vlgmr.msrb.gmra.mxu0 %v13923_v62 }
 0x48f   : > { %3442 = vmatpush.bf16.msrb.mxu1 %v10795_v6  ;;  %v13089_v6 = vld [vmem:[%s13609_s9 + $0x834] sm:$0xf] }
 0x490   : > { %v10902_v9 = vor.u32 %v13089_v6, %v10899_v8  ;;  %v13136_v6 = vld [vmem:[#allocation2 + $0xa0] sm:$0xff]  ;;  %v13122_v8 = vld [vmem:[#allocation2 + $0x38] sm:$0xff] }
 0x491   : > { %v3420_v18 = vpop.f32.mrf.mxu3 }
 0x492   : > { %v3421_v20 = vadd.f32 %v3420_v18, %v14456_v13  ;;  %v10986_v13 = vor.u32 %v13112_v27, %v10985_v26  ;;  %v10987_v26 = vld [vmem:[%s13609_s9 + $0x8e8] sm:$0xf0] }
 0x493   : > { %3443 = vmatpush.bf16.msrb.mxu1 %v10787_v14  ;;  %v10883_v14 = vld [vmem:[%s13609_s9 + $0x818] sm:$0xf0] }
 0x494   : > { %v3452_v2 = vpack.c.bf16 %v3421_v20, %v3421_v20  ;;  %v10886_v15 = vor.u32 %v13085_v12, %v10883_v14  ;;  %v9155_v12 = vld [vmem:[%s13729_s27] sm:$0xff]  ;;  %v13133_v14 = vld [vmem:[#allocation2 + $0x88] sm:$0xff] }
 0x496   : > { %v3458_v28 = vsel %vm1707_vm0, %v3452_v2, 0  ;;  %v10998_v2 = vor.u32 %v13113_v32, %v10995_v7  ;;  %v13155_v32 = vld [vmem:[#allocation2 + $0x130] sm:$0xff] }
 0x497   : > { %3444 = vmatpush.bf16.msrb.mxu1 %v10779_v21  ;;  %3470 = vmatpush.bf16.msra.mxu2 %v3458_v28 }
 0x499   : > { %v3422_v25 = vpop.f32.mrf.mxu3 }
 0x49a   : > { %3445 = vmatmul.bf16.vlgmr.msrb.gmra.mxu1 %v13925_v63  ;;  %10837 = vmatmul.msk.bf16.vlgmr.msra.gmra.mxu2 %vm1703_vm1, %v14501_v29  ;;  %v13595_v25 = vmov 0  }
 0x49b   : > { %3697 = vmatpush.bf16.msra.mxu1 %v10994_v23  ;;  %3710 = vmatpush.bf16.msrb.mxu2 %v10934_v54  ;;  %v13111_v23 = vld [vmem:[%s13609_s9 + $0x8e4] sm:$0xf]  ;;  %v10939_v54 = vld [vmem:[%s13609_s9 + $0x888] sm:$0xf0] }
 0x49c   : > { %v10990_v34 = vor.u32 %v13111_v23, %v10987_v26  ;;  %13509 = vset.pattern.permute.xlu0 %v13595_v25  ;;  %13510 = vset.pattern.permute.xlu1 %v13595_v25  ;;  %v10942_v58 = vor.u32 %v13099_v31, %v10939_v54  ;;  %v13115_v23 = vld [vmem:[#allocation2] sm:$0xff]  ;;  %v13143_v54 = vld [vmem:[#allocation2 + $0xd8] sm:$0xff] }
 0x49d   : > { %13511 = vset.pattern.permute.xlu2 %v13595_v25  ;;  %v13153_v26 = vld [vmem:[#allocation2 + $0x120] sm:$0xff]  ;;  %v13151_v25 = vld [vmem:[#allocation2 + $0x110] sm:$0xff] }
 0x49e   : > { %v13144_v31 = vld [vmem:[#allocation2 + $0xe0] sm:$0xff] }
 0x49f   : > { %3698 = vmatpush.bf16.msra.mxu1 %v10986_v13  ;;  %3711 = vmatpush.bf16.msrb.mxu2 %v10926_v35  ;;  %v3777_v13 = vld [vmem:[%s13659_s24] sm:$0xff] }
 0x4a0   : > { %3780 = vperm.xlu0 %13509, %v3777_v13  }
 0x4a3   : > { %3699 = vmatpush.bf16.msra.mxu1 %v10978_v45  ;;  %3712 = vmatpush.bf16.msrb.mxu2 %v10918_v0  ;;  %v13138_v0 = vld [vmem:[#allocation2 + $0xb0] sm:$0xff] }
 0x4a7   : > { %3700 = vmatpush.bf16.msra.mxu1 %v10970_v38  ;;  %3713 = vmatpush.bf16.msrb.mxu2 %v10910_v5  ;;  %v13107_v38 = vld [vmem:[%s13609_s9 + $0x8c4] sm:$0xf]  ;;  %v13137_v5 = vld [vmem:[#allocation2 + $0xa8] sm:$0xff] }
 0x4a8   : > { %v10974_v43 = vor.u32 %v13107_v38, %v10971_v33  ;;  %5467 = vperm.xlu0 %13509, %v5463_v40   ;;  %v9319_v38 = vld [vmem:[%s13779_s29 + $0x8] sm:$0xff] }
 0x4ab   : > { %3701 = vmatpush.bf16.msra.mxu1 %v10962_v42  ;;  %3714 = vmatpush.bf16.msrb.mxu2 %v10902_v9  ;;  %v7439_v9 = vld [vmem:[%s15379_s3 + $0x8] sm:$0xff] }
 0x4af   : > { %3702 = vmatpush.bf16.msra.mxu1 %v10954_v44  ;;  %v10963_v44 = vld [vmem:[%s13609_s9 + $0x8b8] sm:$0xf0] }
 0x4b3   : > { %3703 = vmatpush.bf16.msra.mxu1 %v10946_v48  ;;  %v6310_v48 = vld [vmem:[%s13679_s20 + $0x18] sm:$0xff] }
 0x4b4   : > { %6328 = vperm.xlu0 %13509, %v6310_v48  }
 0x4b7   : > { %3704 = vmatpush.bf16.msra.mxu1 %v10938_v52  ;;  %v10947_v52 = vld [vmem:[%s13609_s9 + $0x898] sm:$0xf0] }
 0x4b8   : > { %v10950_v53 = vor.u32 %v13101_v50, %v10947_v52  ;;  %v13146_v52 = vld [vmem:[#allocation2 + $0xf0] sm:$0xff] }
 0x4ba   : > { %3705 = vmatmul.bf16.vlgmr.msra.gmra.mxu1 %v13925_v63 }
 0x4dd   : > { %v3433_v55 = vpop.f32.mrf.mxu0 }
 0x4e5   : > { %v3435_v56 = vpop.f32.mrf.mxu0 }
 0x4e6   : > { %v7314_v56 = vld [vmem:[%s13689_s4 + $0x20] sm:$0xff] }
 0x4e7   : > { %7340 = vperm.xlu0 %13509, %v7314_v56   ;;  %v13141_v56 = vld [vmem:[#allocation2 + $0xc8] sm:$0xff] }
 0x4ef   : > { %7335 = vperm.xlu0 %13509, %v7313_v1   ;;  %v13127_v1 = vld [vmem:[#allocation2 + $0x60] sm:$0xff] }
 0x4f7   : > { %v3199_v59 = vpop.f32.mrf.mxu1 }
 0x4f8   : > { %v14525_v60 = vadd.f32 %v3199_v59, %v14439_v3  ;;  %v10891_v3 = vld [vmem:[%s13609_s9 + $0x828] sm:$0xf0]  ;;  %v13139_v59 = vld [vmem:[#allocation2 + $0xb8] sm:$0xff] }
 0x4f9   : > { %v10894_v11 = vor.u32 %v13087_v10, %v10891_v3  ;;  %v13135_v10 = vld [vmem:[#allocation2 + $0x98] sm:$0xff]  ;;  %v13121_v3 = vld [vmem:[#allocation2 + $0x30] sm:$0xff] }
 0x4fb   : > { %3715 = vmatpush.bf16.msrb.mxu2 %v10894_v11  ;;  %v13120_v11 = vld [vmem:[#allocation2 + $0x28] sm:$0xff] }
 0x4ff   : > { %v3201_v41 = vpop.f32.mrf.mxu1  ;;  %3716 = vmatpush.bf16.msrb.mxu2 %v10886_v15  ;;  %v13119_v15 = vld [vmem:[#allocation2 + $0x20] sm:$0xff] }
 0x500   : > { %v7396_v41 = vld [vmem:[%s13719_s25] sm:$0xff] }
 0x501   : > { %7400 = vperm.xlu0 %13509, %v7396_v41   ;;  %v13160_v41 = vld [vmem:[#allocation2 + $0x158] sm:$0xff] }
 0x503   : > { %3717 = vmatpush.bf16.msrb.mxu2 %v10878_v17  ;;  %v13156_v17 = vld [vmem:[#allocation2 + $0x138] sm:$0xff] }
 0x506   : > { %3718 = vmatmul.bf16.vlgmr.msrb.gmra.mxu2 %v13923_v62 }
 0x507   : > { %3921 = vmatpush.bf16.msra.mxu2 %v13122_v8  ;;  %v13159_v8 = vld [vmem:[#allocation2 + $0x150] sm:$0xff] }
 0x509   : > { %7447 = vperm.xlu0 %13509, %v7439_v9   ;;  %v13124_v9 = vld [vmem:[#allocation2 + $0x48] sm:$0xff] }
 0x50a   : > { %v3693_v18 = vpop.f32.mrf.mxu0 }
 0x50b   : > { %3922 = vmatpush.bf16.msra.mxu2 %v13121_v3  ;;  %v13123_v3 = vld [vmem:[#allocation2 + $0x40] sm:$0xff] }
 0x50f   : > { %3923 = vmatpush.bf16.msra.mxu2 %v13120_v11 }
 0x511   : > { %9159 = vperm.xlu0 %13509, %v9155_v12  }
 0x512   : > { %v3695_v30 = vpop.f32.mrf.mxu0  ;;  %v14585_v40 = vpop.permute.xlu0 %3780 }
 0x513   : > { %3924 = vmatpush.bf16.msra.mxu2 %v13119_v15  ;;  %v13152_v30 = vld [vmem:[#allocation2 + $0x118] sm:$0xff] }
 0x517   : > { %v3446_v19 = vpop.f32.mrf.mxu1  ;;  %3925 = vmatpush.bf16.msra.mxu2 %v13118_v16 }
 0x518   : > { %v3447_v20 = vadd.f32 %v3446_v19, %v3433_v55  ;;  %v13117_v19 = vld [vmem:[#allocation2 + $0x10] sm:$0xff] }
 0x51a   : > { %v3453_v21 = vpack.c.bf16 %v3447_v20, %v3447_v20  ;;  %v13116_v20 = vld [vmem:[#allocation2 + $0x8] sm:$0xff] }
 0x51b   : > { %3926 = vmatpush.bf16.msra.mxu2 %v13117_v19  ;;  %v13190_v19 = vld [vmem:[#allocation2 + $0x238] sm:$0xff] }
 0x51c   : > { %v3461_v27 = vsel %vm1707_vm0, %v3453_v21, 0  ;;  %v13154_v21 = vld [vmem:[#allocation2 + $0x128] sm:$0xff] }
 0x51d   : > { %v3472_v28 = vpop.f32.mrf.mxu2  ;;  %3483 = vmatpush.bf16.msrb.mxu3 %v3461_v27 }
 0x51e   : > { %v14547_v62 = vadd.f32 %v3472_v28, %v14454_v22  ;;  %v10982_v22 = vor.u32 %v13109_v36, %v10979_v37  ;;  %v9251_v37 = vld [vmem:[%s13769_s21 + $0x10] sm:$0xff] }
 0x51f   : > { %v3448_v45 = vpop.f32.mrf.mxu1  ;;  %3927 = vmatpush.bf16.msra.mxu2 %v13116_v20 }
 0x520   : > { %10838 = vmatmul.msk.bf16.vlgmr.msrb.gmra.mxu3 %vm1703_vm1, %v14501_v29  ;;  %v10966_v29 = vor.u32 %v13105_v51, %v10963_v44  ;;  %v13150_v45 = vld [vmem:[#allocation2 + $0x108] sm:$0xff] }
 0x521   : > { %3723 = vmatpush.bf16.msra.mxu3 %v10998_v2  ;;  %v9180_v2 = vld [vmem:[%s13759_s17] sm:$0xff] }
 0x523   : > { %3928 = vmatpush.bf16.msra.mxu2 %v13115_v23  ;;  %v13188_v23 = vld [vmem:[#allocation2 + $0x228] sm:$0xff] }
 0x525   : > { %3724 = vmatpush.bf16.msra.mxu3 %v10990_v34  ;;  %v3474_v42 = vpop.f32.mrf.mxu2  ;;  %v9183_v34 = vld [vmem:[%s13759_s17 + $0x18] sm:$0x7] }
 0x529   : > { %3725 = vmatpush.bf16.msra.mxu3 %v10982_v22  ;;  %v13149_v22 = vld [vmem:[#allocation2 + $0x100] sm:$0xff] }
 0x52d   : > { %3726 = vmatpush.bf16.msra.mxu3 %v10974_v43 }
 0x531   : > { %3727 = vmatpush.bf16.msra.mxu3 %v10966_v29 }
 0x535   : > { %3728 = vmatpush.bf16.msra.mxu3 %v10958_v49  ;;  %v13147_v49 = vld [vmem:[#allocation2 + $0xf8] sm:$0xff] }
 0x537   : > { %v3706_v55 = vpop.f32.mrf.mxu1 }
 0x538   : > { %v3707_v57 = vadd.f32 %v3706_v55, %v3693_v18  ;;  %v7990_v18 = vld [vmem:[%s13749_s12 + $0x8] sm:$0xff]  ;;  %v13142_v55 = vld [vmem:[#allocation2 + $0xd0] sm:$0xff] }
 0x539   : > { %3729 = vmatpush.bf16.msra.mxu3 %v10950_v53  ;;  %7998 = vperm.xlu0 %13509, %v7990_v18   ;;  %v13145_v53 = vld [vmem:[#allocation2 + $0xe8] sm:$0xff] }
 0x53a   : > { %v3738_v35 = vpack.c.bf16 %v3707_v57, %v3707_v57  ;;  %v13130_v57 = vld [vmem:[#allocation2 + $0x78] sm:$0xff] }
 0x53c   : > { %v3744_v61 = vsel %vm1707_vm0, %v3738_v35, 0  ;;  %v13164_v35 = vld [vmem:[#allocation2 + $0x178] sm:$0xff] }
 0x53d   : > { %3730 = vmatpush.bf16.msra.mxu3 %v10942_v58  ;;  %3756 = vmatpush.bf16.msra.mxu0 %v3744_v61  ;;  %v13140_v58 = vld [vmem:[#allocation2 + $0xc0] sm:$0xff]  ;;  %v13163_v61 = vld [vmem:[#allocation2 + $0x170] sm:$0xff] }
 0x53f   : > { %v3708_v4 = vpop.f32.mrf.mxu1 }
 0x540   : > { %3731 = vmatmul.bf16.vlgmr.msra.gmra.mxu3 %v13925_v63  ;;  %11000 = vmatmul.msk.bf16.vlgmr.msra.gmra.mxu0 %vm1703_vm1, %v14568_v39  ;;  %v13134_v63 = vld [vmem:[#allocation2 + $0x90] sm:$0xff]  ;;  %v13161_v4 = vld [vmem:[#allocation2 + $0x160] sm:$0xff] }
 0x541   : > { %4079 = vmatpush.bf16.msrb.mxu0 %v13139_v59  ;;  %9186 = vperm.xlu0 %13509, %v9180_v2   ;;  %v13129_v59 = vld [vmem:[#allocation2 + $0x70] sm:$0xff] }
 0x542   : > { %3934 = vmatpush.bf16.msrb.mxu3 %v13130_v57  ;;  %v13189_v2 = vld [vmem:[#allocation2 + $0x230] sm:$0xff]  ;;  %v13179_v57 = vld [vmem:[#allocation2 + $0x1e8] sm:$0xff] }
 0x545   : > { %4080 = vmatpush.bf16.msrb.mxu0 %v13138_v0  ;;  %v13162_v0 = vld [vmem:[#allocation2 + $0x168] sm:$0xff] }
 0x546   : > { %3935 = vmatpush.bf16.msrb.mxu3 %v13129_v59 }
 0x549   : > { %4081 = vmatpush.bf16.msrb.mxu0 %v13137_v5  ;;  %9201 = vperm.xlu0 %13509, %v9183_v34   ;;  %v13126_v5 = vld [vmem:[#allocation2 + $0x58] sm:$0xff]  ;;  %v13183_v34 = vld [vmem:[#allocation2 + $0x200] sm:$0xff] }
 0x54d   : > { %4082 = vmatpush.bf16.msrb.mxu0 %v13136_v6  ;;  %v13125_v6 = vld [vmem:[#allocation2 + $0x50] sm:$0xff] }
 0x551   : > { %4083 = vmatpush.bf16.msrb.mxu0 %v13135_v10  ;;  %9265 = vperm.xlu0 %13509, %v9251_v37   ;;  %v13158_v10 = vld [vmem:[#allocation2 + $0x148] sm:$0xff] }
 0x555   : > { %4084 = vmatpush.bf16.msrb.mxu0 %v13134_v63  ;;  %v13157_v63 = vld [vmem:[#allocation2 + $0x140] sm:$0xff] }
 0x559   : > { %4085 = vmatpush.bf16.msrb.mxu0 %v13133_v14  ;;  %9329 = vperm.xlu0 %13509, %v9319_v38  }
 0x55d   : > { %4086 = vmatpush.bf16.msrb.mxu0 %v13132_v24 }
 0x561   : > { %4290 = vmatpush.bf16.msra.mxu0 %v13156_v17 }
 0x565   : > { %4291 = vmatpush.bf16.msra.mxu0 %v13155_v32 }
 0x569   : > { %4292 = vmatpush.bf16.msra.mxu0 %v13154_v21 }
 0x56d   : > { %4293 = vmatpush.bf16.msra.mxu0 %v13153_v26 }
 0x571   : > { %4294 = vmatpush.bf16.msra.mxu0 %v13152_v30  ;;  %v13184_v30 = vld [vmem:[#allocation2 + $0x208] sm:$0xff] }
 0x575   : > { %4295 = vmatpush.bf16.msra.mxu0 %v13151_v25 }
 0x579   : > { %4296 = vmatpush.bf16.msra.mxu0 %v13150_v45 }
 0x57d   : > { %4297 = vmatpush.bf16.msra.mxu0 %v13149_v22  ;;  %v13148_v22 = vld [vmem:[%s15382_s0 + $0x8] sm:$0xff] }
 0x589   : > { %v3719_v7 = vpop.f32.mrf.mxu2 }
 0x591   : > { %v3721_v27 = vpop.f32.mrf.mxu2 }
 0x592   : > { %v13187_v27 = vld [vmem:[#allocation2 + $0x220] sm:$0xff] }
 0x5a3   : > { %v3485_v28 = vpop.f32.mrf.mxu3 }
 0x5a4   : > { %v14580_v13 = vadd.f32 %v3485_v28, %v14525_v60  ;;  %v13186_v28 = vld [vmem:[#allocation2 + $0x218] sm:$0xff] }
 0x5ab   : > { %v3487_v36 = vpop.f32.mrf.mxu3 }
 0x5bd   : > { %v3758_v33 = vpop.f32.mrf.mxu0 }
 0x5be   : > { %v3775_v60 = vadd.f32 %v3758_v33, %v14547_v62 }
 0x5c0   : > { %v3783_v42 = vadd.f32 %v14585_v40, %v3775_v60 }
 0x5c2   : > { %vm3785_vm2 = vcmp.gt.f32.partialorder %v3783_v42, 0.0  ;;  %v3787_v43 = vmul.f32 0.1, %v3783_v42 }
 0x5c3   : > { %v3732_v51 = vpop.f32.mrf.mxu3 }
 0x5c4   : > { %v3789_v44 = vsel %vm3785_vm2, %v3783_v42, %v3787_v43  ;;  %v3733_v29 = vadd.f32 %v3732_v51, %v3719_v7  ;;  %v13173_v42 = vld [vmem:[#allocation2 + $0x1b8] sm:$0xff] }
 0x5c5   : > { %v14589_v46 = vpack.c.bf16 %v3789_v44, %v3789_v44  ;;  %v3760_v47 = vpop.f32.mrf.mxu0  ;;  %v13131_v51 = vld [vmem:[%s15382_s0] sm:$0xff]  ;;  %v13172_v44 = vld [vmem:[#allocation2 + $0x1b0] sm:$0xff] }
 0x5c6   : > { %v3739_v48 = vpack.c.bf16 %v3733_v29, %v3733_v29 }
 0x5c7   : > { %3929 = vmatmul.bf16.vlgmr.msra.gmra.mxu2 %v14589_v46  ;;  %4087 = vmatmul.bf16.vlgmr.msrb.gmra.mxu0 %v14589_v46 }
 0x5c8   : > { %v3747_v50 = vsel %vm1707_vm0, %v3739_v48, 0 }
 0x5c9   : > { %3769 = vmatpush.bf16.msrb.mxu1 %v3747_v50 }
 0x5cb   : > { %v3734_v62 = vpop.f32.mrf.mxu3 }
 0x5cc   : > { %11001 = vmatmul.msk.bf16.vlgmr.msrb.gmra.mxu1 %vm1703_vm1, %v14568_v39  ;;  %v13128_v39 = vld [vmem:[#allocation2 + $0x68] sm:$0xff]  ;;  %v13181_v62 = vld [vmem:[#allocation2 + $0x1f8] sm:$0xff] }
 0x5cd   : > { %4092 = vmatpush.bf16.msra.mxu1 %v13147_v49  ;;  %3936 = vmatpush.bf16.msrb.mxu3 %v13128_v39  ;;  %v13171_v49 = vld [vmem:[#allocation2 + $0x1a8] sm:$0xff]  ;;  %v13177_v39 = vld [vmem:[#allocation2 + $0x1d8] sm:$0xff] }
 0x5d1   : > { %4093 = vmatpush.bf16.msra.mxu1 %v13146_v52  ;;  %3937 = vmatpush.bf16.msrb.mxu3 %v13127_v1  ;;  %v13198_v1 = vld [vmem:[#allocation2 + $0x278] sm:$0xff] }
 0x5d5   : > { %4094 = vmatpush.bf16.msra.mxu1 %v13145_v53  ;;  %3938 = vmatpush.bf16.msrb.mxu3 %v13126_v5  ;;  %v13170_v53 = vld [vmem:[#allocation2 + $0x1a0] sm:$0xff] }
 0x5d7   : > { %4298 = vmatmul.bf16.vlgmr.msra.gmra.mxu0 %v14589_v46 }
 0x5d9   : > { %4095 = vmatpush.bf16.msra.mxu1 %v13144_v31  ;;  %3939 = vmatpush.bf16.msrb.mxu3 %v13125_v6  ;;  %v13165_v31 = vld [vmem:[%s15382_s0 + $0x10] sm:$0xff] }
 0x5da   : > { %v13175_v6 = vld [vmem:[#allocation2 + $0x1c8] sm:$0xff] }
 0x5dd   : > { %4096 = vmatpush.bf16.msra.mxu1 %v13143_v54  ;;  %3940 = vmatpush.bf16.msrb.mxu3 %v13124_v9  ;;  %v13180_v54 = vld [vmem:[#allocation2 + $0x1f0] sm:$0xff]  ;;  %v13174_v9 = vld [vmem:[#allocation2 + $0x1c0] sm:$0xff] }
 0x5e1   : > { %4097 = vmatpush.bf16.msra.mxu1 %v13142_v55  ;;  %3941 = vmatpush.bf16.msrb.mxu3 %v13123_v3  ;;  %v13195_v3 = vld [vmem:[#allocation2 + $0x260] sm:$0xff] }
 0x5e5   : > { %4098 = vmatpush.bf16.msra.mxu1 %v13141_v56  ;;  %v13169_v56 = vld [vmem:[#allocation2 + $0x198] sm:$0xff] }
 0x5e9   : > { %4099 = vmatpush.bf16.msra.mxu1 %v13140_v58  ;;  %v13168_v58 = vld [vmem:[#allocation2 + $0x190] sm:$0xff] }
 0x5ed   : > { %4303 = vmatpush.bf16.msrb.mxu1 %v13164_v35  ;;  %v13178_v35 = vld [vmem:[#allocation2 + $0x1e0] sm:$0xff] }
 0x5f1   : > { %4304 = vmatpush.bf16.msrb.mxu1 %v13163_v61  ;;  %v13167_v61 = vld [vmem:[#allocation2 + $0x188] sm:$0xff] }
 0x5f5   : > { %4305 = vmatpush.bf16.msrb.mxu1 %v13162_v0  ;;  %v13166_v0 = vld [vmem:[#allocation2 + $0x180] sm:$0xff] }
 0x5f9   : > { %4306 = vmatpush.bf16.msrb.mxu1 %v13161_v4  ;;  %v13176_v4 = vld [vmem:[#allocation2 + $0x1d0] sm:$0xff] }
 0x5fd   : > { %4307 = vmatpush.bf16.msrb.mxu1 %v13160_v41  ;;  %v13197_v41 = vld [vmem:[#allocation2 + $0x270] sm:$0xff] }
 0x601   : > { %4308 = vmatpush.bf16.msrb.mxu1 %v13159_v8  ;;  %v13196_v8 = vld [vmem:[#allocation2 + $0x268] sm:$0xff] }
 0x605   : > { %4309 = vmatpush.bf16.msrb.mxu1 %v13158_v10  ;;  %v13207_v10 = vld [vmem:[#allocation2 + $0x2b8] sm:$0xff] }
 0x609   : > { %4310 = vmatpush.bf16.msrb.mxu1 %v13157_v63  ;;  %v13206_v63 = vld [vmem:[#allocation2 + $0x2b0] sm:$0xff] }
 0x644   : > { %v4088_v11 = vpop.f32.mrf.mxu0 }
 0x649   : > { %v3771_v12 = vpop.f32.mrf.mxu1 }
 0x64a   : > { %v3776_v14 = vadd.f32 %v3771_v12, %v14580_v13  ;;  %v3930_v15 = vpop.f32.mrf.mxu2  ;;  %v13185_v13 = vld [vmem:[#allocation2 + $0x210] sm:$0xff]  ;;  %v13205_v12 = vld [vmem:[#allocation2 + $0x2a8] sm:$0xff] }
 0x64c   : > { %v3784_v24 = vadd.f32 %v14585_v40, %v3776_v14  ;;  %v4090_v16 = vpop.f32.mrf.mxu0  ;;  %v13193_v14 = vld [vmem:[#allocation2 + $0x250] sm:$0xff] }
 0x64d   : > { %v13203_v16 = vld [vmem:[#allocation2 + $0x298] sm:$0xff] }
 0x64e   : > { %vm3786_vm3 = vcmp.gt.f32.partialorder %v3784_v24, 0.0  ;;  %v3788_v17 = vmul.f32 0.1, %v3784_v24 }
 0x650   : > { %v3790_v18 = vsel %vm3786_vm3, %v3784_v24, %v3788_v17  ;;  %v13192_v24 = vld [vmem:[#allocation2 + $0x248] sm:$0xff]  ;;  %v13191_v17 = vld [vmem:[#allocation2 + $0x240] sm:$0xff] }
 0x651   : > { %v14599_v32 = vpack.c.bf16 %v3790_v18, %v3790_v18  ;;  %v3773_v7 = vpop.f32.mrf.mxu1  ;;  %v13224_v18 = vld [vmem:[#allocation2 + $0x338] sm:$0xff] }
 0x652   : > { %v3932_v20 = vpop.f32.mrf.mxu2  ;;  %v13223_v7 = vld [vmem:[#allocation2 + $0x330] sm:$0xff] }
 0x653   : > { %3942 = vmatmul.bf16.vlgmr.msrb.gmra.mxu3 %v14599_v32  ;;  %4100 = vmatmul.bf16.vlgmr.msra.gmra.mxu1 %v14599_v32  ;;  %v13201_v20 = vld [vmem:[#allocation2 + $0x288] sm:$0xff] }
 0x654   : > { %v4299_v21 = vpop.f32.mrf.mxu0  ;;  %4662 = vmatpush.bf16.msra.mxu1 %v13190_v19  ;;  %v13202_v19 = vld [vmem:[#allocation2 + $0x290] sm:$0xff] }
 0x658   : > { %4663 = vmatpush.bf16.msra.mxu1 %v13189_v2  ;;  %v13200_v2 = vld [vmem:[#allocation2 + $0x280] sm:$0xff] }
 0x65c   : > { %v4301_v26 = vpop.f32.mrf.mxu0  ;;  %4664 = vmatpush.bf16.msra.mxu1 %v13188_v23  ;;  %v13221_v23 = vld [vmem:[#allocation2 + $0x320] sm:$0xff] }
 0x65d   : > { %v13220_v26 = vld [vmem:[#allocation2 + $0x318] sm:$0xff] }
 0x660   : > { %4665 = vmatpush.bf16.msra.mxu1 %v13187_v27  ;;  %v13219_v27 = vld [vmem:[#allocation2 + $0x310] sm:$0xff] }
 0x663   : > { %4311 = vmatmul.bf16.vlgmr.msrb.gmra.mxu1 %v14599_v32 }
 0x664   : > { %4666 = vmatpush.bf16.msra.mxu1 %v13186_v28  ;;  %v13218_v28 = vld [vmem:[#allocation2 + $0x308] sm:$0xff] }
 0x668   : > { %4667 = vmatpush.bf16.msra.mxu1 %v13185_v13  ;;  %v13217_v13 = vld [vmem:[#allocation2 + $0x300] sm:$0xff] }
 0x66c   : > { %4668 = vmatpush.bf16.msra.mxu1 %v13184_v30 }
 0x670   : > { %4669 = vmatpush.bf16.msra.mxu1 %v13183_v34 }
 0x673   : > { %4670 = vmatmul.bf16.vlgmr.msra.gmra.mxu1 %v14589_v46 }
 0x6d0   : > { %v4101_v25 = vpop.f32.mrf.mxu1 }
 0x6d1   : > { %v4102_v45 = vadd.f32 %v4101_v25, %v4088_v11  ;;  %v13194_v11 = vld [vmem:[#allocation2 + $0x258] sm:$0xff] }
 0x6d3   : > { %v4108_v36 = vpack.c.bf16 %v4102_v45, %v4102_v45 }
 0x6d5   : > { %v4120_v37 = vsel %vm4118_vm4, %v4108_v36, 0 }
 0x6d6   : > { %v3943_v38 = vpop.f32.mrf.mxu3  ;;  %4129 = vmatpush.bf16.msrb.mxu2 %v4120_v37 }
 0x6d7   : > { %v3944_v33 = vadd.f32 %v3943_v38, %v3930_v15  ;;  %v13204_v15 = vld [vmem:[#allocation2 + $0x2a0] sm:$0xff] }
 0x6d8   : > { %v4103_v40 = vpop.f32.mrf.mxu1 }
 0x6d9   : > { %v3949_v60 = vpack.c.bf16 %v3944_v33, %v3944_v33  ;;  %11136 = vmatmul.msk.bf16.vlgmr.msrb.gmra.mxu2 %vm4114_vm5, %v13148_v22 }
 0x6db   : > { %v4145_v43 = vsel %vm4118_vm4, %v3949_v60, 0 }
 0x6dc   : > { %4154 = vmatpush.bf16.msra.mxu3 %v4145_v43 }
 0x6de   : > { %v3945_v29 = vpop.f32.mrf.mxu3 }
 0x6df   : > { %11141 = vmatmul.msk.bf16.vlgmr.msra.gmra.mxu3 %vm4114_vm5, %v13131_v51 }
 0x6e0   : > { %4476 = vmatpush.bf16.msrb.mxu3 %v13173_v42  ;;  %v4312_v47 = vpop.f32.mrf.mxu1 }
 0x6e1   : > { %v4313_v48 = vadd.f32 %v4312_v47, %v4299_v21  ;;  %v13222_v21 = vld [vmem:[#allocation2 + $0x328] sm:$0xff] }
 0x6e3   : > { %v4319_v50 = vpack.c.bf16 %v4313_v48, %v4313_v48 }
 0x6e4   : > { %4477 = vmatpush.bf16.msrb.mxu3 %v13172_v44  ;;  %v13182_v44 = vld [vmem:[%s15382_s0 + $0x18] sm:$0xff] }
 0x6e5   : > { %v4329_v52 = vsel %vm4118_vm4, %v4319_v50, 0  ;;  %v13215_v50 = vld [vmem:[#allocation2 + $0x2f8] sm:$0xff] }
 0x6e6   : > { %4338 = vmatpush.bf16.msra.mxu2 %v4329_v52  ;;  %v13199_v52 = vld [vmem:[%s15382_s0 + $0x20] sm:$0xff] }
 0x6e8   : > { %4478 = vmatpush.bf16.msrb.mxu3 %v13171_v49  ;;  %v4314_v55 = vpop.f32.mrf.mxu1 }
 0x6e9   : > { %11212 = vmatmul.msk.bf16.vlgmr.msra.gmra.mxu2 %vm4114_vm5, %v13165_v31  ;;  %v13213_v55 = vld [vmem:[#allocation2 + $0x2e8] sm:$0xff] }
 0x6ea   : > { %4489 = vmatpush.bf16.msrb.mxu2 %v13181_v62 }
 0x6ec   : > { %4479 = vmatpush.bf16.msrb.mxu3 %v13170_v53  ;;  %v13214_v53 = vld [vmem:[#allocation2 + $0x2f0] sm:$0xff] }
 0x6ee   : > { %4490 = vmatpush.bf16.msrb.mxu2 %v13180_v54 }
 0x6f0   : > { %4480 = vmatpush.bf16.msrb.mxu3 %v13169_v56  ;;  %v14614_v59 = vpop.f32.mrf.mxu1  ;;  %v13212_v56 = vld [vmem:[#allocation2 + $0x2e0] sm:$0xff] }
 0x6f2   : > { %4491 = vmatpush.bf16.msrb.mxu2 %v13179_v57 }
 0x6f4   : > { %4481 = vmatpush.bf16.msrb.mxu3 %v13168_v58  ;;  %v13211_v58 = vld [vmem:[#allocation2 + $0x2d8] sm:$0xff] }
 0x6f6   : > { %4492 = vmatpush.bf16.msrb.mxu2 %v13178_v35  ;;  %v13210_v35 = vld [vmem:[#allocation2 + $0x2d0] sm:$0xff] }
 0x6f8   : > { %4482 = vmatpush.bf16.msrb.mxu3 %v13167_v61  ;;  %v4673_v5 = vpop.f32.mrf.mxu1 }
 0x6f9   : > { %v13239_v5 = vld [vmem:[#allocation2 + $0x3a8] sm:$0xff] }
 0x6fa   : > { %4493 = vmatpush.bf16.msrb.mxu2 %v13177_v39  ;;  %v13208_v39 = vld [vmem:[#allocation2 + $0x2c0] sm:$0xff] }
 0x6fc   : > { %4483 = vmatpush.bf16.msrb.mxu3 %v13166_v0  ;;  %v13241_v0 = vld [vmem:[#allocation2 + $0x3b8] sm:$0xff] }
 0x6fe   : > { %4494 = vmatpush.bf16.msrb.mxu2 %v13176_v4 }
 0x6ff   : > { %4484 = vmatmul.bf16.vlgmr.msrb.gmra.mxu3 %v14589_v46 }
 0x700   : > { %4675 = vmatpush.bf16.msra.mxu3 %v13198_v1  ;;  %v13240_v1 = vld [vmem:[#allocation2 + $0x3b0] sm:$0xff] }
 0x702   : > { %4495 = vmatpush.bf16.msrb.mxu2 %v13175_v6  ;;  %v13237_v6 = vld [vmem:[#allocation2 + $0x398] sm:$0xff] }
 0x704   : > { %4676 = vmatpush.bf16.msra.mxu3 %v13197_v41  ;;  %v13238_v41 = vld [vmem:[#allocation2 + $0x3a0] sm:$0xff] }
 0x706   : > { %4496 = vmatpush.bf16.msrb.mxu2 %v13174_v9  ;;  %v13235_v9 = vld [vmem:[#allocation2 + $0x388] sm:$0xff] }
 0x708   : > { %4677 = vmatpush.bf16.msra.mxu3 %v13196_v8  ;;  %v13236_v8 = vld [vmem:[#allocation2 + $0x390] sm:$0xff] }
 0x709   : > { %4497 = vmatmul.bf16.vlgmr.msrb.gmra.mxu2 %v14599_v32 }
 0x70a   : > { %4848 = vmatpush.bf16.msra.mxu2 %v13207_v10  ;;  %v13234_v10 = vld [vmem:[#allocation2 + $0x380] sm:$0xff] }
 0x70c   : > { %4678 = vmatpush.bf16.msra.mxu3 %v13195_v3 }
 0x70e   : > { %4849 = vmatpush.bf16.msra.mxu2 %v13206_v63 }
 0x710   : > { %4679 = vmatpush.bf16.msra.mxu3 %v13194_v11 }
 0x712   : > { %4850 = vmatpush.bf16.msra.mxu2 %v13205_v12 }
 0x714   : > { %4680 = vmatpush.bf16.msra.mxu3 %v13193_v14 }
 0x716   : > { %4851 = vmatpush.bf16.msra.mxu2 %v13204_v15 }
 0x718   : > { %4681 = vmatpush.bf16.msra.mxu3 %v13192_v24 }
 0x71a   : > { %4852 = vmatpush.bf16.msra.mxu2 %v13203_v16 }
 0x71c   : > { %4682 = vmatpush.bf16.msra.mxu3 %v13191_v17 }
 0x71e   : > { %4853 = vmatpush.bf16.msra.mxu2 %v13202_v19 }
 0x71f   : > { %4683 = vmatmul.bf16.vlgmr.msra.gmra.mxu3 %v14599_v32 }
 0x720   : > { %5034 = vmatpush.bf16.msrb.mxu3 %v13224_v18  ;;  %v13232_v18 = vld [vmem:[#allocation2 + $0x378] sm:$0xff] }
 0x722   : > { %4854 = vmatpush.bf16.msra.mxu2 %v13201_v20  ;;  %v13231_v20 = vld [vmem:[#allocation2 + $0x370] sm:$0xff] }
 0x724   : > { %5035 = vmatpush.bf16.msrb.mxu3 %v13223_v7  ;;  %v13216_v7 = vld [vmem:[%s15382_s0 + $0x28] sm:$0xff] }
 0x726   : > { %4855 = vmatpush.bf16.msra.mxu2 %v13200_v2  ;;  %v13230_v2 = vld [vmem:[#allocation2 + $0x368] sm:$0xff] }
 0x728   : > { %5036 = vmatpush.bf16.msrb.mxu3 %v13222_v21 }
 0x729   : > { %4856 = vmatmul.bf16.vlgmr.msra.gmra.mxu2 %v14589_v46 }
 0x72c   : > { %5037 = vmatpush.bf16.msrb.mxu3 %v13221_v23  ;;  %v13229_v23 = vld [vmem:[#allocation2 + $0x360] sm:$0xff] }
 0x730   : > { %5038 = vmatpush.bf16.msrb.mxu3 %v13220_v26  ;;  %v13228_v26 = vld [vmem:[#allocation2 + $0x358] sm:$0xff] }
 0x734   : > { %5039 = vmatpush.bf16.msrb.mxu3 %v13219_v27  ;;  %v13227_v27 = vld [vmem:[#allocation2 + $0x350] sm:$0xff] }
 0x738   : > { %5040 = vmatpush.bf16.msrb.mxu3 %v13218_v28  ;;  %v13226_v28 = vld [vmem:[#allocation2 + $0x348] sm:$0xff] }
 0x73c   : > { %5041 = vmatpush.bf16.msrb.mxu3 %v13217_v13 }
 0x73f   : > { %5042 = vmatmul.bf16.vlgmr.msrb.gmra.mxu3 %v14589_v46 }
 0x75c   : > { %v4131_v30 = vpop.f32.mrf.mxu2 }
 0x762   : > { %v4156_v34 = vpop.f32.mrf.mxu3 }
 0x763   : > { %v4157_v25 = vadd.f32 %v4156_v34, %v4131_v30  ;;  %v13225_v30 = vld [vmem:[#allocation2 + $0x340] sm:$0xff]  ;;  %v13258_v34 = vld [vmem:[#allocation2 + $0x438] sm:$0xff] }
 0x764   : > { %v14621_v45 = vpop.f32.mrf.mxu2 }
 0x76a   : > { %v14623_v22 = vpop.f32.mrf.mxu3 }
 0x76c   : > { %v4340_v36 = vpop.f32.mrf.mxu2 }
 0x76d   : > { %v4345_v37 = vadd.f32 %v4340_v36, %v4157_v25  ;;  %v13257_v25 = vld [vmem:[#allocation2 + $0x430] sm:$0xff] }
 0x774   : > { %v14625_v33 = vpop.f32.mrf.mxu2 }
 0x782   : > { %v4485_v38 = vpop.f32.mrf.mxu3 }
 0x78a   : > { %v4487_v40 = vpop.f32.mrf.mxu3 }
 0x78b   : > { %v13254_v40 = vld [vmem:[#allocation2 + $0x418] sm:$0xff] }
 0x78c   : > { %v4498_v60 = vpop.f32.mrf.mxu2 }
 0x78d   : > { %v4499_v42 = vadd.f32 %v4498_v60, %v4485_v38  ;;  %v13255_v38 = vld [vmem:[#allocation2 + $0x420] sm:$0xff]  ;;  %v13253_v60 = vld [vmem:[#allocation2 + $0x410] sm:$0xff] }
 0x78f   : > { %v4505_v43 = vpack.c.bf16 %v4499_v42, %v4499_v42  ;;  %v13252_v42 = vld [vmem:[#allocation2 + $0x408] sm:$0xff] }
 0x791   : > { %v4515_v51 = vsel %vm4118_vm4, %v4505_v43, 0  ;;  %v13251_v43 = vld [vmem:[#allocation2 + $0x400] sm:$0xff] }
 0x792   : > { %4524 = vmatpush.bf16.msrb.mxu0 %v4515_v51 }
 0x794   : > { %v4500_v29 = vpop.f32.mrf.mxu2 }
 0x795   : > { %11283 = vmatmul.msk.bf16.vlgmr.msrb.gmra.mxu0 %vm4114_vm5, %v13182_v44 }
 0x7a2   : > { %v4684_v47 = vpop.f32.mrf.mxu3 }
 0x7a3   : > { %v4685_v48 = vadd.f32 %v4684_v47, %v14614_v59  ;;  %v13209_v59 = vld [vmem:[#allocation2 + $0x2c8] sm:$0xff] }
 0x7a5   : > { %v4691_v49 = vpack.c.bf16 %v4685_v48, %v4685_v48 }
 0x7a7   : > { %v4701_v62 = vsel %vm4118_vm4, %v4691_v49, 0 }
 0x7a8   : > { %4710 = vmatpush.bf16.msra.mxu0 %v4701_v62 }
 0x7aa   : > { %v4686_v31 = vpop.f32.mrf.mxu3 }
 0x7ab   : > { %11354 = vmatmul.msk.bf16.vlgmr.msra.gmra.mxu0 %vm4114_vm5, %v13199_v52  ;;  %v13233_v52 = vld [vmem:[%s15382_s0 + $0x30] sm:$0xff] }
 0x7ac   : > { %4861 = vmatpush.bf16.msrb.mxu0 %v13215_v50  ;;  %v4857_v54 = vpop.f32.mrf.mxu2  ;;  %v13249_v50 = vld [vmem:[#allocation2 + $0x3f8] sm:$0xff] }
 0x7b0   : > { %4862 = vmatpush.bf16.msrb.mxu0 %v13214_v53  ;;  %v13248_v53 = vld [vmem:[#allocation2 + $0x3f0] sm:$0xff] }
 0x7b4   : > { %4863 = vmatpush.bf16.msrb.mxu0 %v13213_v55  ;;  %v4859_v57 = vpop.f32.mrf.mxu2  ;;  %v13245_v55 = vld [vmem:[#allocation2 + $0x3d8] sm:$0xff] }
 0x7b5   : > { %v13243_v57 = vld [vmem:[#allocation2 + $0x3c8] sm:$0xff] }
 0x7b8   : > { %4864 = vmatpush.bf16.msrb.mxu0 %v13212_v56  ;;  %v13244_v56 = vld [vmem:[#allocation2 + $0x3d0] sm:$0xff] }
 0x7bc   : > { %4865 = vmatpush.bf16.msrb.mxu0 %v13211_v58 }
 0x7c0   : > { %4866 = vmatpush.bf16.msrb.mxu0 %v13210_v35  ;;  %v13242_v35 = vld [vmem:[#allocation2 + $0x3c0] sm:$0xff] }
 0x7c2   : > { %v14634_v61 = vpop.f32.mrf.mxu3 }
 0x7c4   : > { %4867 = vmatpush.bf16.msrb.mxu0 %v13209_v59 }
 0x7c8   : > { %4868 = vmatpush.bf16.msrb.mxu0 %v13208_v39 }
 0x7ca   : > { %v5045_v4 = vpop.f32.mrf.mxu3 }
 0x7cb   : > { %4869 = vmatmul.bf16.vlgmr.msrb.gmra.mxu0 %v14599_v32 }
 0x7cc   : > { %5220 = vmatpush.bf16.msra.mxu0 %v13241_v0 }
 0x7d0   : > { %5221 = vmatpush.bf16.msra.mxu0 %v13240_v1 }
 0x7d4   : > { %5222 = vmatpush.bf16.msra.mxu0 %v13239_v5 }
 0x7d8   : > { %5223 = vmatpush.bf16.msra.mxu0 %v13238_v41  ;;  %v13266_v41 = vld [vmem:[#allocation2 + $0x478] sm:$0xff] }
 0x7dc   : > { %5224 = vmatpush.bf16.msra.mxu0 %v13237_v6 }
 0x7e0   : > { %5225 = vmatpush.bf16.msra.mxu0 %v13236_v8  ;;  %v13250_v8 = vld [vmem:[%s15382_s0 + $0x38] sm:$0xff] }
 0x7e4   : > { %5226 = vmatpush.bf16.msra.mxu0 %v13235_v9  ;;  %v5464_v9 = vld [vmem:[%s13669_s6 + $0x8] sm:$0xff] }
 0x7e5   : > { %5472 = vperm.xlu1 %13510, %v5464_v9  }
 0x7e8   : > { %5227 = vmatpush.bf16.msra.mxu0 %v13234_v10  ;;  %v13265_v10 = vld [vmem:[#allocation2 + $0x470] sm:$0xff] }
 0x7eb   : > { %5228 = vmatmul.bf16.vlgmr.msra.gmra.mxu0 %v14589_v46 }
 0x812   : > { %v4526_v3 = vpop.f32.mrf.mxu0 }
 0x813   : > { %v4531_v63 = vadd.f32 %v4526_v3, %v4345_v37  ;;  %v13256_v37 = vld [vmem:[#allocation2 + $0x428] sm:$0xff] }
 0x81a   : > { %v14638_v11 = vpop.f32.mrf.mxu0 }
 0x828   : > { %v4712_v12 = vpop.f32.mrf.mxu0 }
 0x829   : > { %v4717_v14 = vadd.f32 %v4712_v12, %v4531_v63  ;;  %v13264_v63 = vld [vmem:[#allocation2 + $0x468] sm:$0xff]  ;;  %v6307_v12 = vld [vmem:[%s13679_s20] sm:$0xff] }
 0x82a   : > { %6313 = vperm.xlu1 %13510, %v6307_v12  }
 0x830   : > { %v14640_v15 = vpop.f32.mrf.mxu0 }
 0x848   : > { %v4870_v24 = vpop.f32.mrf.mxu0 }
 0x849   : > { %v4871_v16 = vadd.f32 %v4870_v24, %v4857_v54  ;;  %v13246_v54 = vld [vmem:[#allocation2 + $0x3e0] sm:$0xff]  ;;  %v13262_v24 = vld [vmem:[#allocation2 + $0x458] sm:$0xff] }
 0x84b   : > { %v4877_v17 = vpack.c.bf16 %v4871_v16, %v4871_v16  ;;  %v7316_v16 = vld [vmem:[%s13689_s4 + $0x30] sm:$0xff] }
 0x84c   : > { %7350 = vperm.xlu1 %13510, %v7316_v16   ;;  %v13278_v16 = vld [vmem:[%s15386_s28 + $0x10] sm:$0xff] }
 0x84d   : > { %v4887_v19 = vsel %vm4118_vm4, %v4877_v17, 0  ;;  %v13261_v17 = vld [vmem:[#allocation2 + $0x450] sm:$0xff] }
 0x84e   : > { %4896 = vmatpush.bf16.msrb.mxu1 %v4887_v19  ;;  %v7315_v19 = vld [vmem:[%s13689_s4 + $0x28] sm:$0xff] }
 0x850   : > { %v4872_v21 = vpop.f32.mrf.mxu0 }
 0x851   : > { %11425 = vmatmul.msk.bf16.vlgmr.msrb.gmra.mxu1 %vm4114_vm5, %v13216_v7  ;;  %v13259_v7 = vld [vmem:[#allocation2 + $0x440] sm:$0xff] }
 0x852   : > { %5047 = vmatpush.bf16.msra.mxu1 %v13232_v18  ;;  %v13260_v18 = vld [vmem:[#allocation2 + $0x448] sm:$0xff]  ;;  %v7397_v21 = vld [vmem:[%s13719_s25 + $0x8] sm:$0xff] }
 0x854   : > { %7345 = vperm.xlu1 %13510, %v7315_v19  }
 0x856   : > { %5048 = vmatpush.bf16.msra.mxu1 %v13231_v20  ;;  %v7310_v20 = vld [vmem:[%s13689_s4] sm:$0xff] }
 0x85a   : > { %5049 = vmatpush.bf16.msra.mxu1 %v13230_v2  ;;  %v7480_v2 = vld [vmem:[%s15383_s22] sm:$0xff] }
 0x85c   : > { %7320 = vperm.xlu1 %13510, %v7310_v20   ;;  %v13301_v20 = vld [vmem:[%s15385_s26 + $0xb8] sm:$0xff] }
 0x85e   : > { %5050 = vmatpush.bf16.msra.mxu1 %v13229_v23  ;;  %v9156_v23 = vld [vmem:[%s13729_s27 + $0x8] sm:$0xff] }
 0x862   : > { %5051 = vmatpush.bf16.msra.mxu1 %v13228_v26  ;;  %v8462_v26 = vld [vmem:[%s15384_s23] sm:$0xff] }
 0x864   : > { %7405 = vperm.xlu1 %13510, %v7397_v21  }
 0x866   : > { %5052 = vmatpush.bf16.msra.mxu1 %v13227_v27 }
 0x868   : > { %v5229_v13 = vpop.f32.mrf.mxu0 }
 0x86a   : > { %5053 = vmatpush.bf16.msra.mxu1 %v13226_v28 }
 0x86c   : > { %7484 = vperm.xlu1 %13510, %v7480_v2   ;;  %v13272_v2 = vld [vmem:[%s15386_s28] sm:$0xff] }
 0x86e   : > { %5054 = vmatpush.bf16.msra.mxu1 %v13225_v30  ;;  %v9249_v30 = vld [vmem:[%s13769_s21] sm:$0xff] }
 0x870   : > { %v5231_v36 = vpop.f32.mrf.mxu0 }
 0x871   : > { %5055 = vmatmul.bf16.vlgmr.msra.gmra.mxu1 %v14599_v32 }
 0x872   : > { %5406 = vmatpush.bf16.msrb.mxu1 %v13258_v34 }
 0x874   : > { %9164 = vperm.xlu1 %13510, %v9156_v23   ;;  %v13284_v23 = vld [vmem:[%s15386_s28 + $0x20] sm:$0xff] }
 0x876   : > { %5407 = vmatpush.bf16.msrb.mxu1 %v13257_v25  ;;  %v9320_v25 = vld [vmem:[%s13779_s29 + $0x10] sm:$0xff] }
 0x87a   : > { %5408 = vmatpush.bf16.msrb.mxu1 %v13256_v37 }
 0x87c   : > { %8466 = vperm.xlu1 %13510, %v8462_v26   ;;  %v13294_v26 = vld [vmem:[%s15385_s26 + $0x90] sm:$0xff] }
 0x87e   : > { %5409 = vmatpush.bf16.msrb.mxu1 %v13255_v38 }
 0x882   : > { %5410 = vmatpush.bf16.msrb.mxu1 %v13254_v40 }
 0x886   : > { %5411 = vmatpush.bf16.msrb.mxu1 %v13253_v60  ;;  %v13267_v60 = vld [vmem:[%s15382_s0 + $0x40] sm:$0xff]  ;;  %s15398_s0 = sld [smem:[#allocation7_spill]] }
 0x88a   : > { %5412 = vmatpush.bf16.msrb.mxu1 %v13252_v42 }
 0x88e   : > { %5413 = vmatpush.bf16.msrb.mxu1 %v13251_v43  ;;  %v13271_v43 = vld [vmem:[%s15385_s26 + $0x18] sm:$0xff] }
 0x891   : > { %5414 = vmatmul.bf16.vlgmr.msrb.gmra.mxu1 %v14589_v46  ;;  %v13247_v46 = vld [vmem:[#allocation2 + $0x3e8] sm:$0xff] }
 0x8ce   : > { %v4898_v51 = vpop.f32.mrf.mxu1 }
 0x8cf   : > { %v4903_v44 = vadd.f32 %v4898_v51, %v4717_v14  ;;  %v13263_v14 = vld [vmem:[#allocation2 + $0x460] sm:$0xff]  ;;  %v13277_v51 = vld [vmem:[%s15385_s26 + $0x38] sm:$0xff] }
 0x8d6   : > { %v14647_v29 = vpop.f32.mrf.mxu1 }
 0x8ee   : > { %v5056_v47 = vpop.f32.mrf.mxu1 }
 0x8ef   : > { %v5057_v48 = vadd.f32 %v5056_v47, %v14634_v61  ;;  %v13270_v47 = vld [vmem:[%s15385_s26 + $0x10] sm:$0xff] }
 0x8f1   : > { %v5063_v49 = vpack.c.bf16 %v5057_v48, %v5057_v48  ;;  %v13276_v48 = vld [vmem:[%s15385_s26 + $0x30] sm:$0xff] }
 0x8f3   : > { %v5073_v62 = vsel %vm4118_vm4, %v5063_v49, 0  ;;  %v13282_v49 = vld [vmem:[%s15385_s26 + $0x50] sm:$0xff] }
 0x8f4   : > { %5082 = vmatpush.bf16.msrb.mxu2 %v5073_v62  ;;  %v13275_v62 = vld [vmem:[%s15385_s26 + $0x28] sm:$0xff] }
 0x8f6   : > { %v5058_v31 = vpop.f32.mrf.mxu1 }
 0x8f7   : > { %11496 = vmatmul.msk.bf16.vlgmr.msrb.gmra.mxu2 %vm4114_vm5, %v13233_v52  ;;  %v13281_v52 = vld [vmem:[%s15385_s26 + $0x48] sm:$0xff]  ;;  %v13274_v31 = vld [vmem:[%s15385_s26 + $0x20] sm:$0xff] }
 0x8f8   : > { %5233 = vmatpush.bf16.msra.mxu2 %v13249_v50  ;;  %v13269_v50 = vld [vmem:[%s15385_s26 + $0x8] sm:$0xff] }
 0x8fc   : > { %5234 = vmatpush.bf16.msra.mxu2 %v13248_v53  ;;  %v13268_v53 = vld [vmem:[%s15385_s26] sm:$0xff] }
 0x900   : > { %5235 = vmatpush.bf16.msra.mxu2 %v13247_v46  ;;  %v13280_v46 = vld [vmem:[%s15385_s26 + $0x40] sm:$0xff] }
 0x904   : > { %5236 = vmatpush.bf16.msra.mxu2 %v13246_v54  ;;  %v13289_v54 = vld [vmem:[%s15385_s26 + $0x78] sm:$0xff] }
 0x908   : > { %5237 = vmatpush.bf16.msra.mxu2 %v13245_v55  ;;  %v13288_v55 = vld [vmem:[%s15385_s26 + $0x70] sm:$0xff] }
 0x90c   : > { %5238 = vmatpush.bf16.msra.mxu2 %v13244_v56  ;;  %v13287_v56 = vld [vmem:[%s15385_s26 + $0x68] sm:$0xff] }
 0x90e   : > { %v14653_v58 = vpop.f32.mrf.mxu1 }
 0x910   : > { %5239 = vmatpush.bf16.msra.mxu2 %v13243_v57  ;;  %v4159_v57 = vadd.f32 %v14623_v22, %v14621_v45  ;;  %v5473_v22 = vpop.permute.xlu1 %5472 }
 0x914   : > { %5240 = vmatpush.bf16.msra.mxu2 %v13242_v35  ;;  %v4346_v35 = vadd.f32 %v14625_v33, %v4159_v57 }
 0x916   : > { %v5417_v59 = vpop.f32.mrf.mxu1 }
 0x917   : > { %5241 = vmatmul.bf16.vlgmr.msra.gmra.mxu2 %v14599_v32  ;;  %v4532_v59 = vadd.f32 %v14638_v11, %v4346_v35 }
 0x918   : > { %5524 = vmatpush.bf16.msrb.mxu2 %v13271_v43  ;;  %v13305_v43 = vld [vmem:[%s15385_s26 + $0xc8] sm:$0xff] }
 0x91c   : > { %5525 = vmatpush.bf16.msrb.mxu2 %v13270_v47  ;;  %v13291_v47 = vld [vmem:[%s15386_s28 + $0x38] sm:$0xff] }
 0x920   : > { %5526 = vmatpush.bf16.msrb.mxu2 %v13269_v50 }
 0x924   : > { %5527 = vmatpush.bf16.msrb.mxu2 %v13268_v53 }
 0x97a   : > { %v5084_v61 = vpop.f32.mrf.mxu2 }
 0x97b   : > { %v5089_v39 = vadd.f32 %v5084_v61, %v4903_v44  ;;  %v13283_v44 = vld [vmem:[%s15385_s26 + $0x58] sm:$0xff] }
 0x982   : > { %v14656_v0 = vpop.f32.mrf.mxu2 }
 0x99a   : > { %v5242_v1 = vpop.f32.mrf.mxu2 }
 0x99b   : > { %v5243_v4 = vadd.f32 %v5242_v1, %v5229_v13  ;;  %v9181_v13 = vld [vmem:[%s13759_s17 + $0x8] sm:$0xff] }
 0x99c   : > { %9191 = vperm.xlu1 %13510, %v9181_v13  }
 0x99d   : > { %v5249_v5 = vpack.c.bf16 %v5243_v4, %v5243_v4 }
 0x99f   : > { %v5259_v6 = vsel %vm4118_vm4, %v5249_v5, 0 }
 0x9a0   : > { %5268 = vmatpush.bf16.msra.mxu3 %v5259_v6 }
 0x9a2   : > { %v5244_v3 = vpop.f32.mrf.mxu2 }
 0x9a3   : > { %11567 = vmatmul.msk.bf16.vlgmr.msra.gmra.mxu3 %vm4114_vm5, %v13250_v8 }
 0x9a4   : > { %5419 = vmatpush.bf16.msrb.mxu3 %v13266_v41  ;;  %9255 = vperm.xlu1 %13510, %v9249_v30   ;;  %v5468_v41 = vpop.permute.xlu0 %5467  ;;  %v13299_v30 = vld [vmem:[%s15385_s26 + $0xa8] sm:$0xff] }
 0x9a8   : > { %5420 = vmatpush.bf16.msrb.mxu3 %v13265_v10 }
 0x9ac   : > { %5421 = vmatpush.bf16.msrb.mxu3 %v13264_v63 }
 0x9b0   : > { %5422 = vmatpush.bf16.msrb.mxu3 %v13263_v14 }
 0x9b4   : > { %5423 = vmatpush.bf16.msrb.mxu3 %v13262_v24 }
 0x9b8   : > { %5424 = vmatpush.bf16.msrb.mxu3 %v13261_v17 }
 0x9bc   : > { %5425 = vmatpush.bf16.msrb.mxu3 %v13260_v18  ;;  %v13295_v18 = vld [vmem:[%s15385_s26 + $0x98] sm:$0xff] }
 0x9c0   : > { %5426 = vmatpush.bf16.msrb.mxu3 %v13259_v7 }
 0x9c3   : > { %5427 = vmatmul.bf16.vlgmr.msrb.gmra.mxu3 %v14599_v32  ;;  %v9252_v32 = vld [vmem:[%s13769_s21 + $0x18] sm:$0x7] }
 0x9c4   : > { %9270 = vperm.xlu1 %13510, %v9252_v32   ;;  %5700 = vmatpush.bf16.msra.mxu3 %v13283_v44  ;;  %v13279_v32 = vld [vmem:[%s15386_s28 + $0x18] sm:$0xff]  ;;  %v13290_v44 = vld [vmem:[%s15386_s28 + $0x30] sm:$0xff] }
 0x9c8   : > { %5701 = vmatpush.bf16.msra.mxu3 %v13282_v49 }
 0x9cc   : > { %9334 = vperm.xlu1 %13510, %v9320_v25   ;;  %5702 = vmatpush.bf16.msra.mxu3 %v13281_v52  ;;  %v13298_v25 = vld [vmem:[%s15385_s26 + $0xa0] sm:$0xff] }
 0x9d0   : > { %5703 = vmatpush.bf16.msra.mxu3 %v13280_v46 }
 0x9d4   : > { %5792 = vmatpush.bf16.msrb.mxu3 %v13289_v54 }
 0x9d8   : > { %5793 = vmatpush.bf16.msrb.mxu3 %v13288_v55 }
 0x9dc   : > { %5794 = vmatpush.bf16.msrb.mxu3 %v13287_v56 }
 0xa26   : > { %v5270_v27 = vpop.f32.mrf.mxu3 }
 0xa27   : > { %v5275_v28 = vadd.f32 %v5270_v27, %v5089_v39  ;;  %v4718_v39 = vadd.f32 %v14640_v15, %v4532_v59  ;;  %v13300_v27 = vld [vmem:[%s15385_s26 + $0xb0] sm:$0xff] }
 0xa29   : > { %v4904_v1 = vadd.f32 %v14647_v29, %v4718_v39 }
 0xa2b   : > { %v5090_v5 = vadd.f32 %v14656_v0, %v4904_v1 }
 0xa2e   : > { %v5272_v34 = vpop.f32.mrf.mxu3 }
 0xa2f   : > { %v5276_v6 = vadd.f32 %v5272_v34, %v5090_v5  ;;  %v13292_v34 = vld [vmem:[%s15385_s26 + $0x80] sm:$0xff] }
 0xa46   : > { %v5428_v36 = vpop.f32.mrf.mxu3 }
 0xa47   : > { %v5429_v37 = vadd.f32 %v5428_v36, %v14653_v58  ;;  %v13286_v58 = vld [vmem:[%s15385_s26 + $0x60] sm:$0xff]  ;;  %v13307_v36 = vld [vmem:[%s15385_s26 + $0xd8] sm:$0xff] }
 0xa48   : > { %5795 = vmatpush.bf16.msrb.mxu3 %v13286_v58 }
 0xa49   : > { %v5435_v38 = vpack.c.bf16 %v5429_v37, %v5429_v37 }
 0xa4b   : > { %v5445_v40 = vsel %vm4118_vm4, %v5435_v38, 0 }
 0xa4c   : > { %5454 = vmatpush.bf16.msrb.mxu0 %v5445_v40  ;;  %v13273_v40 = vld [vmem:[%s15386_s28 + $0x8] sm:$0xff] }
 0xa4e   : > { %v5430_v42 = vpop.f32.mrf.mxu3 }
 0xa4f   : > { %11638 = vmatmul.msk.bf16.vlgmr.msrb.gmra.mxu0 %vm4114_vm5, %v13267_v60  ;;  %v13306_v60 = vld [vmem:[%s15385_s26 + $0xd0] sm:$0xff]  ;;  %v13285_v42 = vld [vmem:[%s15386_s28 + $0x28] sm:$0xff] }
 0xa50   : > { %5576 = vmatpush.bf16.msra.mxu0 %v13277_v51  ;;  %v13304_v51 = vld [vmem:[%s15385_s26 + $0xc0] sm:$0xff] }
 0xa54   : > { %5577 = vmatpush.bf16.msra.mxu0 %v13276_v48 }
 0xa58   : > { %5578 = vmatpush.bf16.msra.mxu0 %v13275_v62 }
 0xa5c   : > { %5579 = vmatpush.bf16.msra.mxu0 %v13274_v31 }
 0xacc   : > { %v5456_v61 = vpop.f32.mrf.mxu0 }
 0xacd   : > { %v5461_v4 = vadd.f32 %v5456_v61, %v5275_v28  ;;  %v13293_v28 = vld [vmem:[%s15385_s26 + $0x88] sm:$0xff] }
 0xacf   : > { %v5475_v8 = vadd.f32 %v5468_v41, %v5461_v4  ;;  %v13319_v4 = vld [vmem:[%s15385_s26 + $0x118] sm:$0xff]  ;;  %v13302_v41 = vld [vmem:[%s15386_s28 + $0x50] sm:$0xff] }
 0xad1   : > { %v5479_v10 = vmul.f32 0.1, %v5475_v8  ;;  %vm5477_vm6 = vcmp.gt.f32.partialorder %v5475_v8, 0.0 }
 0xad3   : > { %v5481_v11 = vsel %vm5477_vm6, %v5475_v8, %v5479_v10 }
 0xad4   : > { %v5458_v9 = vpop.f32.mrf.mxu0 }
 0xad5   : > { %v5462_v45 = vadd.f32 %v5458_v9, %v5276_v6  ;;  %v13318_v6 = vld [vmem:[%s15385_s26 + $0x110] sm:$0xff]  ;;  %v13313_v9 = vld [vmem:[%s15385_s26 + $0xf8] sm:$0xff] }
 0xad7   : > { %v5476_v3 = vadd.f32 %v5473_v22, %v5462_v45  ;;  %v13296_v22 = vld [vmem:[%s15386_s28 + $0x40] sm:$0xff] }
 0xad9   : > { %vm5478_vm7 = vcmp.gt.f32.partialorder %v5476_v3, 0.0  ;;  %v5480_v33 = vmul.f32 0.1, %v5476_v3 }
 0xadb   : > { %v5482_v63 = vsel %vm5478_vm7, %v5476_v3, %v5480_v33  ;;  %v13317_v3 = vld [vmem:[%s15385_s26 + $0x108] sm:$0xff]  ;;  %v13312_v33 = vld [vmem:[%s15385_s26 + $0xf0] sm:$0xff] }
 0xadc   : > { %v14702_v15 = vpack.c.bf16 %v5482_v63, %v5481_v11  ;;  %v13316_v11 = vld [vmem:[%s15385_s26 + $0x100] sm:$0xff]  ;;  %v13311_v63 = vld [vmem:[%s15385_s26 + $0xe8] sm:$0xff] }
 0xade   : > { %11655 = vmatmul.msk.bf16.vlgmr.msrb.gmra.mxu2 %vm5516_vm8, %v14702_v15  ;;  %11680 = vmatmul.msk.bf16.vlgmr.msra.gmra.mxu0 %vm5516_vm8, %v14702_v15 }
 0xadf   : > { %11729 = vmatmul.msk.bf16.vlgmr.msra.gmra.mxu3 %vm5516_vm8, %v14702_v15 }
 0xaef   : > { %11768 = vmatmul.msk.bf16.vlgmr.msrb.gmra.mxu3 %vm5516_vm8, %v14702_v15 }
 0xb5b   : > { %v5581_v29 = vpop.f32.mrf.mxu0 }
 0xb61   : > { %v5529_v0 = vpop.f32.mrf.mxu2 }
 0xb62   : > { %v5705_v12 = vpop.f32.mrf.mxu3 }
 0xb63   : > { %v5583_v14 = vpop.f32.mrf.mxu0 }
 0xb64   : > { %v5591_v24 = vpack.c.bf16 %v5583_v14, %v5581_v29  ;;  %v13303_v14 = vld [vmem:[%s15386_s28 + $0x58] sm:$0xff] }
 0xb66   : > { %5616 = vmatpush.bf16.msra.mxu1 %v5591_v24  ;;  %v13308_v24 = vld [vmem:[%s15386_s28 + $0x60] sm:$0xff] }
 0xb69   : > { %v5531_v17 = vpop.f32.mrf.mxu2  ;;  %11693 = vmatmul.msk.bf16.vlgmr.msra.gmra.mxu1 %vm5602_vm9, %v13278_v16  ;;  %v13297_v16 = vld [vmem:[%s15386_s28 + $0x48] sm:$0xff] }
 0xb6a   : > { %v5538_v19 = vpack.c.bf16 %v5531_v17, %v5529_v0  ;;  %v5707_v7 = vpop.f32.mrf.mxu3  ;;  %v13309_v17 = vld [vmem:[%s15386_s28 + $0x68] sm:$0xff] }
 0xb6b   : > { %v5715_v21 = vpack.c.bf16 %v5707_v7, %v5705_v12  ;;  %v13310_v12 = vld [vmem:[%s15385_s26 + $0xe0] sm:$0xff]  ;;  %v7317_v7 = vld [vmem:[%s13689_s4 + $0x38] sm:$0xff] }
 0xb6c   : > { %5651 = vmatpush.bf16.msra.mxu2 %v5538_v19  ;;  %v6309_v19 = vld [vmem:[%s13679_s20 + $0x10] sm:$0xff] }
 0xb6d   : > { %5739 = vmatpush.bf16.msrb.mxu0 %v5715_v21  ;;  %v7312_v21 = vld [vmem:[%s13689_s4 + $0x10] sm:$0xff] }
 0xb6f   : > { %11703 = vmatmul.msk.bf16.vlgmr.msra.gmra.mxu2 %vm5602_vm9, %v13272_v2 }
 0xb70   : > { %5884 = vmatpush.bf16.msrb.mxu2 %v13295_v18  ;;  %11742 = vmatmul.msk.bf16.vlgmr.msrb.gmra.mxu0 %vm5602_vm9, %v13284_v23  ;;  %v6308_v18 = vld [vmem:[%s13679_s20 + $0x8] sm:$0xff] }
 0xb71   : > { %5976 = vmatpush.bf16.msra.mxu0 %v13301_v20  ;;  %6318 = vperm.xlu2 %13511, %v6308_v18  }
 0xb72   : > { %v5797_v13 = vpop.f32.mrf.mxu3 }
 0xb74   : > { %5885 = vmatpush.bf16.msrb.mxu2 %v13294_v26  ;;  %v7311_v26 = vld [vmem:[%s13689_s4 + $0x8] sm:$0xff] }
 0xb75   : > { %5977 = vmatpush.bf16.msra.mxu0 %v13300_v27 }
 0xb78   : > { %5886 = vmatpush.bf16.msrb.mxu2 %v13293_v28 }
 0xb79   : > { %5978 = vmatpush.bf16.msra.mxu0 %v13299_v30  ;;  %11694 = vmatmul.msk.bf16.gmra.mxu1 %vm5602_vm9, %v13279_v32 }
 0xb7a   : > { %v5799_v37 = vpop.f32.mrf.mxu3  ;;  %6323 = vperm.xlu2 %13511, %v6309_v19   ;;  %v6314_v19 = vpop.permute.xlu1 %6313 }
 0xb7b   : > { %v5807_v38 = vpack.c.bf16 %v5799_v37, %v5797_v13 }
 0xb7c   : > { %5887 = vmatpush.bf16.msrb.mxu2 %v13292_v34 }
 0xb7d   : > { %5979 = vmatpush.bf16.msra.mxu0 %v13298_v25  ;;  %5831 = vmatpush.bf16.msrb.mxu1 %v5807_v38  ;;  %v7438_v25 = vld [vmem:[%s15379_s3] sm:$0xff]  ;;  %v7481_v38 = vld [vmem:[%s15383_s22 + $0x8] sm:$0xff] }
 0xb7f   : > { %11704 = vmatmul.msk.bf16.gmra.mxu2 %vm5602_vm9, %v13273_v40 }
 0xb80   : > { %11743 = vmatmul.msk.bf16.gmra.mxu0 %vm5602_vm9, %v13285_v42 }
 0xb81   : > { %6068 = vmatpush.bf16.msrb.mxu0 %v13307_v36 }
 0xb82   : > { %7355 = vperm.xlu2 %13511, %v7317_v7  }
 0xb85   : > { %6069 = vmatpush.bf16.msrb.mxu0 %v13306_v60 }
 0xb89   : > { %6070 = vmatpush.bf16.msrb.mxu0 %v13305_v43  ;;  %11781 = vmatmul.msk.bf16.vlgmr.msrb.gmra.mxu1 %vm5602_vm9, %v13290_v44 }
 0xb8a   : > { %7330 = vperm.xlu2 %13511, %v7312_v21  }
 0xb8d   : > { %6071 = vmatpush.bf16.msrb.mxu0 %v13304_v51 }
 0xb8f   : > { %11807 = vmatmul.msk.bf16.vlgmr.msrb.gmra.mxu2 %vm5516_vm8, %v14702_v15 }
 0xb90   : > { %11846 = vmatmul.msk.bf16.vlgmr.msra.gmra.mxu0 %vm5516_vm8, %v14702_v15 }
 0xb92   : > { %7325 = vperm.xlu2 %13511, %v7311_v26  }
 0xb99   : > { %11782 = vmatmul.msk.bf16.gmra.mxu1 %vm5602_vm9, %v13291_v47  ;;  %v7989_v47 = vld [vmem:[%s13749_s12] sm:$0xff] }
 0xb9a   : > { %7442 = vperm.xlu2 %13511, %v7438_v25  }
 0xba0   : > { %11885 = vmatmul.msk.bf16.vlgmr.msrb.gmra.mxu0 %vm5516_vm8, %v14702_v15 }
 0xba2   : > { %7489 = vperm.xlu2 %13511, %v7481_v38  }
 0xbaa   : > { %7993 = vperm.xlu2 %13511, %v7989_v47  }
 0xbcb   : > { %v6319_v26 = vpop.permute.xlu2 %6318 }
 0xbe6   : > { %v5618_v49 = vpop.f32.mrf.mxu1 }
 0xbed   : > { %v5741_v48 = vpop.f32.mrf.mxu0 }
 0xbee   : > { %v14750_v31 = vpop.f32.mrf.mxu1 }
 0xbf2   : > { %v5653_v50 = vpop.f32.mrf.mxu2 }
 0xbf3   : > { %v5654_v62 = vadd.f32 %v5653_v50, %v5618_v49  ;;  %v8463_v50 = vld [vmem:[%s15384_s23 + $0x8] sm:$0xff] }
 0xbf4   : > { %8471 = vperm.xlu2 %13511, %v8463_v50  }
 0xbf5   : > { %v14746_v52 = vpop.f32.mrf.mxu0  ;;  %v14748_v53 = vadd.f32 %v5741_v48, %v5654_v62 }
 0xbf6   : > { %v5623_v55 = vpop.f32.mrf.mxu1 }
 0xbfa   : > { %v14752_v46 = vpop.f32.mrf.mxu2 }
 0xbfd   : > { %v5746_v54 = vpop.f32.mrf.mxu0 }
 0xbfe   : > { %v14787_v20 = vpop.f32.mrf.mxu1 }
 0xc02   : > { %v5658_v56 = vpop.f32.mrf.mxu2 }
 0xc03   : > { %v5659_v57 = vadd.f32 %v5658_v56, %v5623_v55  ;;  %v13320_v56 = vld [vmem:[%s15386_s28 + $0x80] sm:$0xff] }
 0xc05   : > { %v14754_v58 = vpop.f32.mrf.mxu0  ;;  %v14756_v35 = vadd.f32 %v5746_v54, %v5659_v57  ;;  %v9182_v54 = vld [vmem:[%s13759_s17 + $0x10] sm:$0xff] }
 0xc06   : > { %v5833_v2 = vpop.f32.mrf.mxu1  ;;  %9196 = vperm.xlu2 %13511, %v9182_v54  }
 0xc07   : > { %v5843_v27 = vadd.f32 %v5833_v2, %v14748_v53 }
 0xc0a   : > { %v14758_v59 = vpop.f32.mrf.mxu2 }
 0xc0d   : > { %v5981_v61 = vpop.f32.mrf.mxu0 }
 0xc0e   : > { %v5835_v30 = vpop.f32.mrf.mxu1 }
 0xc12   : > { %v5889_v39 = vpop.f32.mrf.mxu2 }
 0xc15   : > { %v5983_v1 = vpop.f32.mrf.mxu0 }
 0xc16   : > { %v5991_v5 = vpack.c.bf16 %v5983_v1, %v5981_v61  ;;  %v5838_v40 = vpop.f32.mrf.mxu1  ;;  %v13314_v61 = vld [vmem:[%s15386_s28 + $0x70] sm:$0xff]  ;;  %v9318_v1 = vld [vmem:[%s13779_s29] sm:$0xff] }
 0xc17   : > { %v5845_v60 = vadd.f32 %v5838_v40, %v14756_v35 }
 0xc18   : > { %6015 = vmatpush.bf16.msra.mxu2 %v5991_v5  ;;  %v13315_v5 = vld [vmem:[%s15386_s28 + $0x78] sm:$0xff] }
 0xc1a   : > { %v5891_v8 = vpop.f32.mrf.mxu2 }
 0xc1b   : > { %v5899_v45 = vpack.c.bf16 %v5891_v8, %v5889_v39  ;;  %11859 = vmatmul.msk.bf16.vlgmr.msra.gmra.mxu2 %vm5602_vm9, %v13302_v41  ;;  %v9250_v39 = vld [vmem:[%s13769_s21 + $0x8] sm:$0xff]  ;;  %v9321_v41 = vld [vmem:[%s13779_s29 + $0x18] sm:$0x7]  ;;  %v13322_v8 = vld [vmem:[%s15387_s1] sm:$0xff] }
 0xc1c   : > { %6252 = vmatpush.bf16.msrb.mxu2 %v13319_v4  ;;  %9260 = vperm.xlu2 %13511, %v9250_v39   ;;  %v13321_v4 = vld [vmem:[%s15386_s28 + $0x88] sm:$0xff] }
 0xc1d   : > { %v6073_v10 = vpop.f32.mrf.mxu0  ;;  %5923 = vmatpush.bf16.msra.mxu3 %v5899_v45 }
 0xc20   : > { %6253 = vmatpush.bf16.msrb.mxu2 %v13318_v6  ;;  %11820 = vmatmul.msk.bf16.vlgmr.msra.gmra.mxu3 %vm5602_vm9, %v13296_v22  ;;  %v5840_v6 = vpop.f32.mrf.mxu1  ;;  %v5656_v22 = vadd.f32 %v14752_v46, %v14750_v31 }
 0xc21   : > { %6160 = vmatpush.bf16.msrb.mxu3 %v13313_v9  ;;  %v13327_v9 = vld [vmem:[%s15387_s1 + $0x8] sm:$0xff] }
 0xc24   : > { %6254 = vmatpush.bf16.msrb.mxu2 %v13317_v3  ;;  %9324 = vperm.xlu2 %13511, %v9318_v1  }
 0xc25   : > { %6161 = vmatpush.bf16.msrb.mxu3 %v13312_v33  ;;  %v6075_v29 = vpop.f32.mrf.mxu0 }
 0xc26   : > { %v6083_v0 = vpack.c.bf16 %v6075_v29, %v6073_v10  ;;  %v5752_v10 = vadd.f32 %v14746_v52, %v5656_v22  ;;  %v13323_v22 = vld [vmem:[%s15388_s2] sm:$0xff] }
 0xc28   : > { %6255 = vmatpush.bf16.msrb.mxu2 %v13316_v11  ;;  %6107 = vmatpush.bf16.msra.mxu1 %v6083_v0  ;;  %v5844_v3 = vadd.f32 %v5835_v30, %v5752_v10 }
 0xc29   : > { %6162 = vmatpush.bf16.msrb.mxu3 %v13311_v63 }
 0xc2b   : > { %11860 = vmatmul.msk.bf16.gmra.mxu2 %vm5602_vm9, %v13303_v14  ;;  %11898 = vmatmul.msk.bf16.vlgmr.msra.gmra.mxu1 %vm5602_vm9, %v13308_v24  ;;  %v13332_v24 = vld [vmem:[%s15387_s1 + $0x10] sm:$0xff] }
 0xc2c   : > { %9339 = vperm.xlu2 %13511, %v9321_v41   ;;  %6370 = vmatpush.bf16.msrb.mxu1 %v13322_v8 }
 0xc2d   : > { %6163 = vmatpush.bf16.msrb.mxu3 %v13310_v12  ;;  %6408 = vmatpush.bf16.msra.mxu2 %v13327_v9 }
 0xc30   : > { %11821 = vmatmul.msk.bf16.gmra.mxu3 %vm5602_vm9, %v13297_v16  ;;  %6570 = vmatpush.bf16.msra.mxu1 %v13332_v24 }
 0xc3b   : > { %11899 = vmatmul.msk.bf16.gmra.mxu1 %vm5602_vm9, %v13309_v17  ;;  %11963 = vmatmul.msk.bf16.vlgmr.msrb.gmra.mxu2 %vm5516_vm8, %v14702_v15  ;;  %v5661_v17 = vadd.f32 %v14758_v59, %v14787_v20 }
 0xc3d   : > { %v5754_v2 = vadd.f32 %v14754_v58, %v5661_v17  ;;  %v13325_v17 = vld [vmem:[%s15388_s2 + $0x10] sm:$0xff] }
 0xc40   : > { %11924 = vmatmul.msk.bf16.vlgmr.msrb.gmra.mxu3 %vm5516_vm8, %v14702_v15 }
 0xc9e   : > { %v6017_v23 = vpop.f32.mrf.mxu2 }
 0xca3   : > { %v5925_v28 = vpop.f32.mrf.mxu3 }
 0xca4   : > { %v5935_v13 = vadd.f32 %v5925_v28, %v5843_v27  ;;  %v5846_v27 = vadd.f32 %v5840_v6, %v5754_v2 }
 0xca6   : > { %v6019_v32 = vpop.f32.mrf.mxu2  ;;  %v6027_v34 = vadd.f32 %v6017_v23, %v5935_v13 }
 0xca8   : > { %v6109_v45 = vpop.f32.mrf.mxu1 }
 0xca9   : > { %v6119_v33 = vadd.f32 %v6109_v45, %v6027_v34 }
 0xcab   : > { %v5927_v36 = vpop.f32.mrf.mxu3 }
 0xcac   : > { %v5936_v11 = vadd.f32 %v5927_v36, %v5844_v3 }
 0xcae   : > { %v6022_v37 = vpop.f32.mrf.mxu2  ;;  %v6028_v14 = vadd.f32 %v6019_v32, %v5936_v11  ;;  %v13328_v11 = vld [vmem:[%s15388_s2 + $0x20] sm:$0xff] }
 0xcb0   : > { %v6111_v63 = vpop.f32.mrf.mxu1 }
 0xcb1   : > { %v6120_v18 = vadd.f32 %v6111_v63, %v6028_v14 }
 0xcb3   : > { %v5930_v42 = vpop.f32.mrf.mxu3 }
 0xcb4   : > { %v5937_v43 = vadd.f32 %v5930_v42, %v5845_v60 }
 0xcb6   : > { %v14795_v51 = vpop.f32.mrf.mxu2  ;;  %v14797_v44 = vadd.f32 %v6022_v37, %v5937_v43  ;;  %v6324_v43 = vpop.permute.xlu2 %6323 }
 0xcb8   : > { %v6114_v21 = vpop.f32.mrf.mxu1 }
 0xcb9   : > { %v6121_v30 = vadd.f32 %v6114_v21, %v14797_v44  ;;  %v13334_v21 = vld [vmem:[%s15388_s2 + $0x48] sm:$0xff] }
 0xcbb   : > { %v5932_v48 = vpop.f32.mrf.mxu3 }
 0xcbc   : > { %v5938_v32 = vadd.f32 %v5932_v48, %v5846_v27 }
 0xcbe   : > { %v6257_v49 = vpop.f32.mrf.mxu2  ;;  %v6030_v58 = vadd.f32 %v14795_v51, %v5938_v32  ;;  %v13338_v32 = vld [vmem:[%s15388_s2 + $0x60] sm:$0xff] }
 0xcc0   : > { %v6116_v40 = vpop.f32.mrf.mxu1 }
 0xcc1   : > { %v6122_v42 = vadd.f32 %v6116_v40, %v6030_v58 }
 0xcc3   : > { %v6165_v62 = vpop.f32.mrf.mxu3 }
 0xcc6   : > { %v6259_v53 = vpop.f32.mrf.mxu2 }
 0xcc7   : > { %v6267_v55 = vpack.c.bf16 %v6259_v53, %v6257_v49 }
 0xcc9   : > { %6291 = vmatpush.bf16.msra.mxu3 %v6267_v55 }
 0xccb   : > { %v6167_v57 = vpop.f32.mrf.mxu3 }
 0xccc   : > { %v6175_v35 = vpack.c.bf16 %v6167_v57, %v6165_v62  ;;  %11976 = vmatmul.msk.bf16.vlgmr.msra.gmra.mxu3 %vm5602_vm9, %v13320_v56  ;;  %v6329_v62 = vpop.permute.xlu0 %6328 }
 0xcce   : > { %6199 = vmatpush.bf16.msra.mxu0 %v6175_v35  ;;  %v13337_v35 = vld [vmem:[%s15387_s1 + $0x18] sm:$0xff] }
 0xcd1   : > { %11937 = vmatmul.msk.bf16.vlgmr.msra.gmra.mxu0 %vm5602_vm9, %v13314_v61 }
 0xcdc   : > { %11977 = vmatmul.msk.bf16.gmra.mxu3 %vm5602_vm9, %v13321_v4 }
 0xce1   : > { %11938 = vmatmul.msk.bf16.gmra.mxu0 %vm5602_vm9, %v13315_v5 }
 0xd4e   : > { %v6201_v29 = vpop.f32.mrf.mxu0 }
 0xd4f   : > { %v6211_v0 = vadd.f32 %v6201_v29, %v6119_v33  ;;  %v6293_v12 = vpop.f32.mrf.mxu3  ;;  %v13324_v29 = vld [vmem:[%s15388_s2 + $0x8] sm:$0xff] }
 0xd51   : > { %v6303_v16 = vadd.f32 %v6293_v12, %v6211_v0  ;;  %v13329_v12 = vld [vmem:[%s15388_s2 + $0x28] sm:$0xff] }
 0xd53   : > { %v6331_v31 = vadd.f32 %v6314_v19, %v6303_v16  ;;  %v13342_v19 = vld [vmem:[%s15387_s1 + $0x20] sm:$0xff] }
 0xd55   : > { %v6339_v28 = vmul.f32 0.1, %v6331_v31  ;;  %vm6335_vm10 = vcmp.gt.f32.partialorder %v6331_v31, 0.0 }
 0xd56   : > { %v6203_v7 = vpop.f32.mrf.mxu0 }
 0xd57   : > { %v6212_v46 = vadd.f32 %v6203_v7, %v6120_v18  ;;  %v6295_v52 = vpop.f32.mrf.mxu3  ;;  %v6343_v34 = vsel %vm6335_vm10, %v6331_v31, %v6339_v28  ;;  %v13333_v18 = vld [vmem:[%s15388_s2 + $0x40] sm:$0xff]  ;;  %v13330_v31 = vld [vmem:[%s15388_s2 + $0x30] sm:$0xff] }
 0xd59   : > { %v6304_v23 = vadd.f32 %v6295_v52, %v6212_v46  ;;  %v13326_v52 = vld [vmem:[%s15388_s2 + $0x18] sm:$0xff] }
 0xd5b   : > { %v6332_v13 = vadd.f32 %v6319_v26, %v6304_v23  ;;  %v13347_v23 = vld [vmem:[%s15387_s1 + $0x28] sm:$0xff]  ;;  %v13331_v26 = vld [vmem:[%s15388_s2 + $0x38] sm:$0xff] }
 0xd5d   : > { %vm6336_vm11 = vcmp.gt.f32.partialorder %v6332_v13, 0.0  ;;  %v6340_v59 = vmul.f32 0.1, %v6332_v13 }
 0xd5e   : > { %v6206_v20 = vpop.f32.mrf.mxu0 }
 0xd5f   : > { %v6344_v25 = vsel %vm6336_vm11, %v6332_v13, %v6340_v59  ;;  %v6213_v36 = vadd.f32 %v6206_v20, %v6121_v30  ;;  %v6298_v37 = vpop.f32.mrf.mxu3  ;;  %v13335_v30 = vld [vmem:[%s15388_s2 + $0x50] sm:$0xff]  ;;  %v13336_v59 = vld [vmem:[%s15388_s2 + $0x58] sm:$0xff]  ;;  %v13339_v20 = vld [vmem:[%s15388_s2 + $0x68] sm:$0xff] }
 0xd60   : > { %v14823_v38 = vpack.c.bf16 %v6344_v25, %v6343_v34  ;;  %v13352_v34 = vld [vmem:[%s15387_s1 + $0x30] sm:$0xff] }
 0xd61   : > { %v6305_v60 = vadd.f32 %v6298_v37, %v6213_v36  ;;  %v13340_v25 = vld [vmem:[%s15388_s2 + $0x70] sm:$0xff]  ;;  %v13341_v36 = vld [vmem:[%s15388_s2 + $0x78] sm:$0xff] }
 0xd62   : > { %11982 = vmatmul.msk.bf16.vlgmr.msrb.gmra.mxu1 %vm5602_vm9, %v14823_v38  ;;  %11990 = vmatmul.msk.bf16.vlgmr.msra.gmra.mxu2 %vm5602_vm9, %v14823_v38 }
 0xd63   : > { %v6333_v47 = vadd.f32 %v6324_v43, %v6305_v60  ;;  %6678 = vmatpush.bf16.msrb.mxu1 %v13337_v35 }
 0xd65   : > { %v6341_v53 = vmul.f32 0.1, %v6333_v47  ;;  %vm6337_vm12 = vcmp.gt.f32.partialorder %v6333_v47, 0.0 }
 0xd66   : > { %v6208_v44 = vpop.f32.mrf.mxu0 }
 0xd67   : > { %v6214_v48 = vadd.f32 %v6208_v44, %v6122_v42  ;;  %v6300_v49 = vpop.f32.mrf.mxu3  ;;  %v6345_v55 = vsel %vm6337_vm12, %v6333_v47, %v6341_v53 }
 0xd69   : > { %v6306_v50 = vadd.f32 %v6300_v49, %v6214_v48 }
 0xd6b   : > { %v6334_v54 = vadd.f32 %v6329_v62, %v6306_v50 }
 0xd6d   : > { %vm6338_vm13 = vcmp.gt.f32.partialorder %v6334_v54, 0.0  ;;  %v6342_v51 = vmul.f32 0.1, %v6334_v54 }
 0xd6f   : > { %v6346_v56 = vsel %vm6338_vm13, %v6334_v54, %v6342_v51 }
 0xd70   : > { %v14830_v57 = vpack.c.bf16 %v6346_v56, %v6345_v55 }
 0xd72   : > { %11983 = vmatmul.msk.bf16.gmra.mxu1 %vm5602_vm9, %v14830_v57  ;;  %11991 = vmatmul.msk.bf16.gmra.mxu2 %vm5602_vm9, %v14830_v57 }
 0xd82   : > { %12046 = vmatmul.msk.bf16.vlgmr.msra.gmra.mxu1 %vm5602_vm9, %v14823_v38 }
 0xd92   : > { %12047 = vmatmul.msk.bf16.gmra.mxu1 %vm5602_vm9, %v14830_v57 }
 0xda2   : > { %12082 = vmatmul.msk.bf16.vlgmr.msrb.gmra.mxu1 %vm5602_vm9, %v14823_v38 }
 0xdb2   : > { %12083 = vmatmul.msk.bf16.gmra.mxu1 %vm5602_vm9, %v14830_v57 }
 0xddf   : > { %v6372_v61 = vpop.f32.mrf.mxu1 }
 0xde5   : > { %v6410_v39 = vpop.f32.mrf.mxu2 }
 0xde7   : > { %v6374_v1 = vpop.f32.mrf.mxu1 }
 0xde8   : > { %v6390_v9 = vpack.c.bf16 %v6374_v1, %v6372_v61 }
 0xded   : > { %v6412_v4 = vpop.f32.mrf.mxu2 }
 0xdee   : > { %v6429_v33 = vpack.c.bf16 %v6412_v4, %v6410_v39 }
 0xdef   : > { %v6377_v5 = vpop.f32.mrf.mxu1 }
 0xdf5   : > { %v6415_v41 = vpop.f32.mrf.mxu2 }
 0xdf7   : > { %v6379_v6 = vpop.f32.mrf.mxu1 }
 0xdf8   : > { %v6391_v8 = vpack.c.bf16 %v6379_v6, %v6377_v5 }
 0xdfa   : > { %6531 = vmatpush.bf16.msrb.mxu3 %v6391_v8 }
 0xdfd   : > { %v6417_v45 = vpop.f32.mrf.mxu2 }
 0xdfe   : > { %v6430_v10 = vpack.c.bf16 %v6417_v45, %v6415_v41  ;;  %6532 = vmatpush.bf16.msrb.mxu3 %v6390_v9 }
 0xdff   : > { %v6572_v3 = vpop.f32.mrf.mxu1 }
 0xe00   : > { %6470 = vmatpush.bf16.msrb.mxu0 %v6430_v10 }
 0xe01   : > { %12036 = vmatmul.msk.bf16.vlgmr.msrb.gmra.mxu3 %vm6451_vm14, %v13323_v22 }
 0xe02   : > { %6786 = vmatpush.bf16.msra.mxu3 %v13342_v19 }
 0xe04   : > { %6471 = vmatpush.bf16.msrb.mxu0 %v6429_v33 }
 0xe07   : > { %12016 = vmatmul.msk.bf16.vlgmr.msrb.gmra.mxu0 %vm6451_vm14, %v13328_v11  ;;  %v6574_v63 = vpop.f32.mrf.mxu1 }
 0xe08   : > { %v6591_v16 = vpack.c.bf16 %v6574_v63, %v6572_v3 }
 0xe0f   : > { %v6577_v0 = vpop.f32.mrf.mxu1 }
 0xe11   : > { %12037 = vmatmul.msk.bf16.gmra.mxu3 %vm6451_vm14, %v13324_v29 }
 0xe17   : > { %12017 = vmatmul.msk.bf16.gmra.mxu0 %vm6451_vm14, %v13329_v12  ;;  %v6579_v14 = vpop.f32.mrf.mxu1 }
 0xe18   : > { %v6592_v24 = vpack.c.bf16 %v6579_v14, %v6577_v0 }
 0xe1a   : > { %6631 = vmatpush.bf16.msrb.mxu2 %v6592_v24 }
 0xe1e   : > { %6632 = vmatpush.bf16.msrb.mxu2 %v6591_v16 }
 0xe1f   : > { %v6680_v7 = vpop.f32.mrf.mxu1 }
 0xe21   : > { %12038 = vmatmul.msk.bf16.gmra.mxu3 %vm6451_vm14, %v13325_v17  ;;  %12072 = vmatmul.msk.bf16.vlgmr.msrb.gmra.mxu2 %vm6451_vm14, %v13333_v18 }
 0xe22   : > { %6894 = vmatpush.bf16.msra.mxu2 %v13347_v23 }
 0xe26   : > { %7002 = vmatpush.bf16.msrb.mxu2 %v13352_v34  ;;  %v13345_v34 = vld [vmem:[%s15388_s2 + $0x90] sm:$0xff] }
 0xe27   : > { %12018 = vmatmul.msk.bf16.gmra.mxu0 %vm6451_vm14, %v13330_v31  ;;  %v6682_v46 = vpop.f32.mrf.mxu1  ;;  %v13343_v31 = vld [vmem:[%s15388_s2 + $0x80] sm:$0xff] }
 0xe28   : > { %v6699_v13 = vpack.c.bf16 %v6682_v46, %v6680_v7 }
 0xe2f   : > { %v6685_v2 = vpop.f32.mrf.mxu1 }
 0xe31   : > { %12039 = vmatmul.msk.bf16.gmra.mxu3 %vm6451_vm14, %v13326_v52  ;;  %12073 = vmatmul.msk.bf16.gmra.mxu2 %vm6451_vm14, %v13334_v21 }
 0xe37   : > { %12019 = vmatmul.msk.bf16.gmra.mxu0 %vm6451_vm14, %v13331_v26  ;;  %v6687_v27 = vpop.f32.mrf.mxu1  ;;  %v13344_v26 = vld [vmem:[%s15388_s2 + $0x88] sm:$0xff] }
 0xe38   : > { %v6700_v28 = vpack.c.bf16 %v6687_v27, %v6685_v2 }
 0xe3a   : > { %6739 = vmatpush.bf16.msra.mxu0 %v6700_v28 }
 0xe3e   : > { %6740 = vmatpush.bf16.msra.mxu0 %v6699_v13 }
 0xe41   : > { %12074 = vmatmul.msk.bf16.gmra.mxu2 %vm6451_vm14, %v13335_v30  ;;  %12118 = vmatmul.msk.bf16.vlgmr.msra.gmra.mxu3 %vm5602_vm9, %v14823_v38 }
 0xe47   : > { %12108 = vmatmul.msk.bf16.vlgmr.msra.gmra.mxu0 %vm6451_vm14, %v13338_v32 }
 0xe51   : > { %12075 = vmatmul.msk.bf16.gmra.mxu2 %vm6451_vm14, %v13336_v59  ;;  %12119 = vmatmul.msk.bf16.gmra.mxu3 %vm5602_vm9, %v14830_v57  ;;  %v13362_v59 = vld [vmem:[%s15387_s1 + $0x40] sm:$0xff] }
 0xe57   : > { %12109 = vmatmul.msk.bf16.gmra.mxu0 %vm6451_vm14, %v13339_v20 }
 0xe61   : > { %12154 = vmatmul.msk.bf16.vlgmr.msra.gmra.mxu2 %vm5602_vm9, %v14823_v38 }
 0xe67   : > { %12110 = vmatmul.msk.bf16.gmra.mxu0 %vm6451_vm14, %v13340_v25  ;;  %v13357_v25 = vld [vmem:[%s15387_s1 + $0x38] sm:$0xff]  ;;  %s15399_s1 = sld [smem:[#allocation26_spill]] }
 0xe71   : > { %12155 = vmatmul.msk.bf16.gmra.mxu2 %vm5602_vm9, %v14830_v57 }
 0xe77   : > { %12111 = vmatmul.msk.bf16.gmra.mxu0 %vm6451_vm14, %v13341_v36  ;;  %v13348_v36 = vld [vmem:[%s15388_s2 + $0xa0] sm:$0xff] }
 0xe81   : > { %12190 = vmatmul.msk.bf16.vlgmr.msrb.gmra.mxu2 %vm5602_vm9, %v14823_v38 }
 0xe84   : > { %v6473_v37 = vpop.f32.mrf.mxu0  ;;  %v6534_v58 = vpop.f32.mrf.mxu3 }
 0xe85   : > { %v6535_v40 = vadd.f32 %v6534_v58, %v6473_v37 }
 0xe8c   : > { %v14890_v60 = vpop.f32.mrf.mxu0  ;;  %v14892_v42 = vpop.f32.mrf.mxu3 }
 0xe91   : > { %12191 = vmatmul.msk.bf16.gmra.mxu2 %vm5602_vm9, %v14830_v57 }
 0xe94   : > { %v6478_v43 = vpop.f32.mrf.mxu0  ;;  %v6539_v44 = vpop.f32.mrf.mxu3 }
 0xe95   : > { %v6540_v47 = vadd.f32 %v6539_v44, %v6478_v43  ;;  %v13349_v43 = vld [vmem:[%s15388_s2 + $0xa8] sm:$0xff] }
 0xe9c   : > { %v14896_v48 = vpop.f32.mrf.mxu0  ;;  %v14898_v49 = vpop.f32.mrf.mxu3 }
 0xea4   : > { %v6483_v50 = vpop.f32.mrf.mxu0  ;;  %v6544_v62 = vpop.f32.mrf.mxu3 }
 0xea5   : > { %v6545_v53 = vadd.f32 %v6544_v62, %v6483_v50  ;;  %v6634_v54 = vpop.f32.mrf.mxu2 }
 0xea6   : > { %v6654_v51 = vadd.f32 %v6634_v54, %v6535_v40  ;;  %v13346_v40 = vld [vmem:[%s15388_s2 + $0x98] sm:$0xff]  ;;  %v13353_v54 = vld [vmem:[%s15388_s2 + $0xc0] sm:$0xff] }
 0xeac   : > { %v14900_v55 = vpop.f32.mrf.mxu0  ;;  %v14902_v56 = vpop.f32.mrf.mxu3 }
 0xead   : > { %v14904_v35 = vpop.f32.mrf.mxu2 }
 0xeb4   : > { %v6488_v61 = vpop.f32.mrf.mxu0  ;;  %v6549_v39 = vpop.f32.mrf.mxu3 }
 0xeb5   : > { %v6550_v1 = vadd.f32 %v6549_v39, %v6488_v61  ;;  %v6639_v4 = vpop.f32.mrf.mxu2  ;;  %v13354_v61 = vld [vmem:[%s15388_s2 + $0xc8] sm:$0xff]  ;;  %v13355_v39 = vld [vmem:[%s15388_s2 + $0xd0] sm:$0xff] }
 0xeb6   : > { %v6656_v5 = vadd.f32 %v6639_v4, %v6540_v47 }
 0xebc   : > { %v14906_v41 = vpop.f32.mrf.mxu0  ;;  %v14908_v6 = vpop.f32.mrf.mxu3 }
 0xebd   : > { %v14910_v8 = vpop.f32.mrf.mxu2 }
 0xec4   : > { %v6742_v9 = vpop.f32.mrf.mxu0  ;;  %v6788_v45 = vpop.f32.mrf.mxu3 }
 0xec5   : > { %v6644_v22 = vpop.f32.mrf.mxu2  ;;  %v14912_v10 = vadd.f32 %v6742_v9, %v6654_v51  ;;  %v13351_v51 = vld [vmem:[%s15388_s2 + $0xb8] sm:$0xff] }
 0xec6   : > { %v6658_v3 = vadd.f32 %v6644_v22, %v6545_v53  ;;  %v13350_v53 = vld [vmem:[%s15388_s2 + $0xb0] sm:$0xff] }
 0xecc   : > { %v14914_v33 = vpop.f32.mrf.mxu0  ;;  %v6790_v11 = vpop.f32.mrf.mxu3 }
 0xecd   : > { %v14916_v63 = vpop.f32.mrf.mxu2  ;;  %v6807_v7 = vpack.c.bf16 %v6790_v11, %v6788_v45 }
 0xed4   : > { %v6747_v29 = vpop.f32.mrf.mxu0  ;;  %v6793_v0 = vpop.f32.mrf.mxu3 }
 0xed5   : > { %v6649_v12 = vpop.f32.mrf.mxu2  ;;  %v14918_v14 = vadd.f32 %v6747_v29, %v6656_v5  ;;  %v13368_v5 = vld [vmem:[%s15389_s7] sm:$0xff]  ;;  %s15393_s7 = sld [smem:[#allocation9_spill]] }
 0xed6   : > { %v6660_v24 = vadd.f32 %v6649_v12, %v6550_v1  ;;  %v13356_v1 = vld [vmem:[%s15388_s2 + $0xd8] sm:$0xff] }
 0xedc   : > { %v14920_v16 = vpop.f32.mrf.mxu0  ;;  %v6795_v17 = vpop.f32.mrf.mxu3 }
 0xedd   : > { %v14922_v18 = vpop.f32.mrf.mxu2  ;;  %v6808_v19 = vpack.c.bf16 %v6795_v17, %v6793_v0 }
 0xedf   : > { %6847 = vmatpush.bf16.msra.mxu1 %v6808_v19 }
 0xee3   : > { %6848 = vmatpush.bf16.msra.mxu1 %v6807_v7 }
 0xee4   : > { %v6752_v46 = vpop.f32.mrf.mxu0 }
 0xee5   : > { %v6766_v52 = vadd.f32 %v6752_v46, %v6658_v3  ;;  %v6896_v21 = vpop.f32.mrf.mxu2 }
 0xee6   : > { %12144 = vmatmul.msk.bf16.vlgmr.msra.gmra.mxu1 %vm6451_vm14, %v13343_v31 }
 0xee7   : > { %7110 = vmatpush.bf16.msrb.mxu1 %v13357_v25 }
 0xeec   : > { %v14926_v2 = vpop.f32.mrf.mxu0 }
 0xeed   : > { %v6898_v23 = vpop.f32.mrf.mxu2 }
 0xeee   : > { %v6915_v20 = vpack.c.bf16 %v6898_v23, %v6896_v21 }
 0xef4   : > { %v6757_v27 = vpop.f32.mrf.mxu0 }
 0xef5   : > { %v6768_v28 = vadd.f32 %v6757_v27, %v6660_v24  ;;  %v6901_v13 = vpop.f32.mrf.mxu2 }
 0xef6   : > { %12145 = vmatmul.msk.bf16.gmra.mxu1 %vm6451_vm14, %v13344_v26 }
 0xefc   : > { %v14978_v46 = vpop.f32.mrf.mxu0 }
 0xefd   : > { %v6903_v30 = vpop.f32.mrf.mxu2 }
 0xefe   : > { %v6916_v32 = vpack.c.bf16 %v6903_v30, %v6901_v13 }
 0xf00   : > { %6955 = vmatpush.bf16.msrb.mxu3 %v6916_v32 }
 0xf04   : > { %6956 = vmatpush.bf16.msrb.mxu3 %v6915_v20 }
 0xf05   : > { %v7004_v37 = vpop.f32.mrf.mxu2 }
 0xf06   : > { %12146 = vmatmul.msk.bf16.gmra.mxu1 %vm6451_vm14, %v13345_v34 }
 0xf07   : > { %12180 = vmatmul.msk.bf16.vlgmr.msrb.gmra.mxu3 %vm6451_vm14, %v13348_v36  ;;  %v13358_v36 = vld [vmem:[%s15388_s2 + $0xe0] sm:$0xff] }
 0xf08   : > { %7218 = vmatpush.bf16.msra.mxu3 %v13362_v59 }
 0xf0c   : > { %7464 = vmatpush.bf16.msrb.mxu3 %v14830_v57 }
 0xf0d   : > { %v7006_v58 = vpop.f32.mrf.mxu2 }
 0xf0e   : > { %v7023_v62 = vpack.c.bf16 %v7006_v58, %v7004_v37 }
 0xf10   : > { %7465 = vmatpush.bf16.msrb.mxu3 %v14823_v38 }
 0xf15   : > { %v7009_v44 = vpop.f32.mrf.mxu2 }
 0xf16   : > { %12147 = vmatmul.msk.bf16.gmra.mxu1 %vm6451_vm14, %v13346_v40  ;;  %v13359_v40 = vld [vmem:[%s15388_s2 + $0xe8] sm:$0xff] }
 0xf17   : > { %12181 = vmatmul.msk.bf16.gmra.mxu3 %vm6451_vm14, %v13349_v43 }
 0xf1d   : > { %v7011_v47 = vpop.f32.mrf.mxu2 }
 0xf1e   : > { %v7024_v50 = vpack.c.bf16 %v7011_v47, %v7009_v44  ;;  %v13360_v47 = vld [vmem:[%s15388_s2 + $0xf0] sm:$0xff] }
 0xf20   : > { %7063 = vmatpush.bf16.msrb.mxu0 %v7024_v50 }
 0xf24   : > { %7064 = vmatpush.bf16.msrb.mxu0 %v7023_v62 }
 0xf26   : > { %12226 = vmatmul.msk.bf16.vlgmr.msrb.gmra.mxu1 %vm5602_vm9, %v14823_v38 }
 0xf27   : > { %12182 = vmatmul.msk.bf16.gmra.mxu3 %vm6451_vm14, %v13350_v53  ;;  %12216 = vmatmul.msk.bf16.vlgmr.msrb.gmra.mxu0 %vm6451_vm14, %v13353_v54  ;;  %v13363_v54 = vld [vmem:[%s15388_s2 + $0x100] sm:$0xff] }
 0xf36   : > { %12227 = vmatmul.msk.bf16.gmra.mxu1 %vm5602_vm9, %v14830_v57 }
 0xf37   : > { %12183 = vmatmul.msk.bf16.gmra.mxu3 %vm6451_vm14, %v13351_v51  ;;  %12217 = vmatmul.msk.bf16.gmra.mxu0 %vm6451_vm14, %v13354_v61  ;;  %v13361_v51 = vld [vmem:[%s15388_s2 + $0xf8] sm:$0xff]  ;;  %v13364_v61 = vld [vmem:[%s15388_s2 + $0x108] sm:$0xff] }
 0xf47   : > { %12218 = vmatmul.msk.bf16.gmra.mxu0 %vm6451_vm14, %v13355_v39  ;;  %12262 = vmatmul.msk.bf16.vlgmr.msra.gmra.mxu3 %vm5602_vm9, %v14823_v38  ;;  %v13365_v39 = vld [vmem:[%s15388_s2 + $0x110] sm:$0xff] }
 0xf57   : > { %12219 = vmatmul.msk.bf16.gmra.mxu0 %vm6451_vm14, %v13356_v1  ;;  %12263 = vmatmul.msk.bf16.gmra.mxu3 %vm5602_vm9, %v14830_v57  ;;  %v13366_v1 = vld [vmem:[%s15388_s2 + $0x118] sm:$0xff]  ;;  %s15253_s2 = sshll.u32 %s15404_s18, 5  ;;  %s15402_s18 = sld [smem:[#allocation24_spill]] }
 0xf58   : > { %s1196_s3 = scalar_lea.vmem %s13794_s8, %s15253_s2 }
 0xf63   : > { %v6850_v4 = vpop.f32.mrf.mxu1 }
 0xf64   : > { %v6870_v9 = vadd.f32 %v6850_v4, %v14912_v10 }
 0xf67   : > { %12301 = vmatmul.msk.bf16.vlgmr.msrb.gmra.mxu3 %vm6451_vm14, %v13368_v5 }
 0xf6b   : > { %v14965_v45 = vpop.f32.mrf.mxu1 }
 0xf73   : > { %v6855_v22 = vpop.f32.mrf.mxu1 }
 0xf74   : > { %v6872_v3 = vadd.f32 %v6855_v22, %v14918_v14 }
 0xf7b   : > { %v14968_v11 = vpop.f32.mrf.mxu1 }
 0xf83   : > { %v6860_v38 = vpop.f32.mrf.mxu1 }
 0xf84   : > { %v6874_v29 = vadd.f32 %v6860_v38, %v6766_v52 }
 0xf8a   : > { %v6958_v0 = vpop.f32.mrf.mxu3 }
 0xf8b   : > { %v6978_v12 = vadd.f32 %v6958_v0, %v6870_v9  ;;  %v14970_v24 = vpop.f32.mrf.mxu1 }
 0xf92   : > { %v14972_v57 = vpop.f32.mrf.mxu3 }
 0xf93   : > { %v6865_v17 = vpop.f32.mrf.mxu1 }
 0xf94   : > { %v6876_v19 = vadd.f32 %v6865_v17, %v6768_v28 }
 0xf9a   : > { %v6963_v10 = vpop.f32.mrf.mxu3 }
 0xf9b   : > { %v14974_v7 = vadd.f32 %v6963_v10, %v6872_v3  ;;  %v14976_v31 = vpop.f32.mrf.mxu1 }
 0xfa2   : > { %v14980_v14 = vpop.f32.mrf.mxu3 }
 0xfa3   : > { %v7112_v21 = vpop.f32.mrf.mxu1 }
 0xfa4   : > { %v7066_v52 = vpop.f32.mrf.mxu0 }
 0xfa5   : > { %v7086_v23 = vadd.f32 %v7066_v52, %v6978_v12 }
 0xfaa   : > { %v6968_v26 = vpop.f32.mrf.mxu3 }
 0xfab   : > { %v14982_v27 = vadd.f32 %v6968_v26, %v6874_v29  ;;  %v7114_v13 = vpop.f32.mrf.mxu1 }
 0xfac   : > { %v7131_v25 = vpack.c.bf16 %v7114_v13, %v7112_v21  ;;  %v7068_v9 = vpop.f32.mrf.mxu0 }
 0xfb2   : > { %v14984_v30 = vpop.f32.mrf.mxu3 }
 0xfb3   : > { %v7117_v28 = vpop.f32.mrf.mxu1 }
 0xfb4   : > { %v7071_v3 = vpop.f32.mrf.mxu0 }
 0xfba   : > { %v6973_v32 = vpop.f32.mrf.mxu3 }
 0xfbb   : > { %v14986_v59 = vadd.f32 %v6973_v32, %v6876_v19  ;;  %v7119_v20 = vpop.f32.mrf.mxu1 }
 0xfbc   : > { %v7132_v34 = vpack.c.bf16 %v7119_v20, %v7117_v28  ;;  %v7073_v17 = vpop.f32.mrf.mxu0 }
 0xfbe   : > { %7171 = vmatpush.bf16.msra.mxu2 %v7132_v34 }
 0xfc2   : > { %v14989_v37 = vpop.f32.mrf.mxu3  ;;  %7172 = vmatpush.bf16.msra.mxu2 %v7131_v25 }
 0xfc4   : > { %v7076_v21 = vpop.f32.mrf.mxu0 }
 0xfc5   : > { %12252 = vmatmul.msk.bf16.vlgmr.msra.gmra.mxu2 %vm6451_vm14, %v13358_v36  ;;  %v6542_v36 = vadd.f32 %v14898_v49, %v14896_v48 }
 0xfca   : > { %v7220_v58 = vpop.f32.mrf.mxu3 }
 0xfcc   : > { %v7078_v13 = vpop.f32.mrf.mxu0 }
 0xfd2   : > { %v7222_v43 = vpop.f32.mrf.mxu3 }
 0xfd3   : > { %v7239_v53 = vpack.c.bf16 %v7222_v43, %v7220_v58 }
 0xfd4   : > { %v7081_v20 = vpop.f32.mrf.mxu0 }
 0xfd5   : > { %12253 = vmatmul.msk.bf16.gmra.mxu2 %vm6451_vm14, %v13359_v40  ;;  %v6552_v40 = vadd.f32 %v14908_v6, %v14906_v41  ;;  %v7092_v41 = vadd.f32 %v7081_v20, %v14986_v59 }
 0xfda   : > { %v7225_v44 = vpop.f32.mrf.mxu3 }
 0xfe2   : > { %v7227_v50 = vpop.f32.mrf.mxu3 }
 0xfe3   : > { %v7240_v62 = vpack.c.bf16 %v7227_v50, %v7225_v44  ;;  %v7356_v44 = vpop.permute.xlu2 %7355  ;;  %v6661_v50 = vadd.f32 %v14922_v18, %v6552_v40 }
 0xfe5   : > { %7279 = vmatpush.bf16.msra.mxu1 %v7240_v62  ;;  %12254 = vmatmul.msk.bf16.gmra.mxu2 %vm6451_vm14, %v13360_v47  ;;  %v6657_v47 = vadd.f32 %v14910_v8, %v6542_v36  ;;  %v6769_v48 = vadd.f32 %v14978_v46, %v6661_v50 }
 0xfe7   : > { %v6765_v62 = vadd.f32 %v14920_v16, %v6657_v47  ;;  %v6877_v18 = vadd.f32 %v14976_v31, %v6769_v48  ;;  %v7083_v16 = vpop.f32.mrf.mxu0 }
 0xfe9   : > { %7280 = vmatpush.bf16.msra.mxu1 %v7239_v53  ;;  %v6873_v8 = vadd.f32 %v14968_v11, %v6765_v62  ;;  %v6985_v46 = vadd.f32 %v14989_v37, %v6877_v18  ;;  %v13367_v18 = vld [vmem:[%s15390_s10] sm:$0xff]  ;;  %s15394_s10 = sld [smem:[#allocation11_spill]] }
 0xfec   : > { %12288 = vmatmul.msk.bf16.vlgmr.msra.gmra.mxu1 %vm6451_vm14, %v13363_v54  ;;  %v7341_v54 = vpop.permute.xlu0 %7340 }
 0xff5   : > { %12255 = vmatmul.msk.bf16.gmra.mxu2 %vm6451_vm14, %v13361_v51 }
 0xffc   : > { %12289 = vmatmul.msk.bf16.gmra.mxu1 %vm6451_vm14, %v13364_v61 }
0x100c   : > { %12290 = vmatmul.msk.bf16.gmra.mxu1 %vm6451_vm14, %v13365_v39  ;;  %v7093_v39 = vadd.f32 %v7083_v16, %v6985_v46 }
0x101c   : > { %12291 = vmatmul.msk.bf16.gmra.mxu1 %vm6451_vm14, %v13366_v1 }
0x1048   : > { %v7174_v4 = vpop.f32.mrf.mxu2 }
0x1049   : > { %v7194_v5 = vadd.f32 %v7174_v4, %v7086_v23  ;;  %v6547_v23 = vadd.f32 %v14902_v56, %v14900_v55  ;;  %v7351_v56 = vpop.permute.xlu1 %7350  ;;  %v7331_v4 = vpop.permute.xlu2 %7330 }
0x104b   : > { %v6659_v25 = vadd.f32 %v14916_v63, %v6547_v23  ;;  %v6537_v63 = vadd.f32 %v14892_v42, %v14890_v60  ;;  %v6981_v42 = vadd.f32 %v14980_v14, %v6873_v8 }
0x104d   : > { %v6767_v43 = vadd.f32 %v14926_v2, %v6659_v25  ;;  %v6655_v6 = vadd.f32 %v14904_v35, %v6537_v63  ;;  %v7089_v61 = vadd.f32 %v7073_v17, %v6981_v42  ;;  %v12328_v42 = vld [vmem:[%s15393_s7 + $0x4] sm:$0x3] }
0x104e   : > { %v7663_v46 = vsel %vm1707_vm0, %v12328_v42, 0 }
0x104f   : > { %v6875_v55 = vadd.f32 %v14970_v24, %v6767_v43  ;;  %v6763_v60 = vadd.f32 %v14914_v33, %v6655_v6  ;;  %v7088_v33 = vadd.f32 %v7071_v3, %v14974_v7  ;;  %7672 = vmatpush.bf16.msrb.mxu1 %v7663_v46 }
0x1050   : > { %v15006_v22 = vpop.f32.mrf.mxu2 }
0x1051   : > { %v6983_v49 = vadd.f32 %v14984_v30, %v6875_v55  ;;  %v7090_v30 = vadd.f32 %v7076_v21, %v14982_v27  ;;  %v6871_v35 = vadd.f32 %v14965_v45, %v6763_v60  ;;  %v7346_v23 = vpop.permute.xlu1 %7345  ;;  %v7326_v43 = vpop.permute.xlu2 %7325  ;;  %v7572_v60 = vld [vmem:[%s15393_s7] sm:$0x3] }
0x1052   : > { %v7574_v16 = vsel %vm1707_vm0, %v7572_v60, 0  ;;  %v12373_v60 = vld [vmem:[%s15393_s7 + $0xe] sm:$0x3] }
0x1053   : > { %v7091_v24 = vadd.f32 %v7078_v13, %v6983_v49 }
0x1058   : > { %v7179_v0 = vpop.f32.mrf.mxu2 }
0x1060   : > { %v7181_v19 = vpop.f32.mrf.mxu2 }
0x1061   : > { %v7197_v14 = vadd.f32 %v7181_v19, %v7089_v61 }
0x1068   : > { %v7184_v52 = vpop.f32.mrf.mxu2 }
0x1069   : > { %v7282_v38 = vpop.f32.mrf.mxu1  ;;  %v7198_v31 = vadd.f32 %v7184_v52, %v7090_v30  ;;  %v12314_v30 = vld [vmem:[%s15393_s7 + $0x2] sm:$0x3] }
0x106a   : > { %v15008_v29 = vadd.f32 %v7282_v38, %v7194_v5  ;;  %v6979_v5 = vadd.f32 %v14972_v57, %v6871_v35  ;;  %v7336_v57 = vpop.permute.xlu0 %7335 }
0x106c   : > { %v7087_v27 = vadd.f32 %v7068_v9, %v6979_v5 }
0x106e   : > { %v7195_v17 = vadd.f32 %v15006_v22, %v7087_v27 }
0x1070   : > { %v7186_v28 = vpop.f32.mrf.mxu2 }
0x1071   : > { %v15010_v12 = vpop.f32.mrf.mxu1  ;;  %v7199_v59 = vadd.f32 %v7186_v28, %v7091_v24  ;;  %v7196_v28 = vadd.f32 %v7179_v0, %v7088_v33  ;;  %v13369_v24 = vld [vmem:[%s15391_s11] sm:$0xff]  ;;  %v12364_v33 = vld [vmem:[%s15393_s7 + $0xc] sm:$0x3]  ;;  %s15395_s11 = sld [smem:[#allocation23_spill]] }
0x1072   : > { %v7303_v7 = vadd.f32 %v15010_v12, %v7195_v17 }
0x1078   : > { %v7189_v58 = vpop.f32.mrf.mxu2 }
0x1079   : > { %v7287_v10 = vpop.f32.mrf.mxu1  ;;  %v7200_v53 = vadd.f32 %v7189_v58, %v7092_v41 }
0x107a   : > { %v7304_v52 = vadd.f32 %v7287_v10, %v7196_v28  ;;  %v7359_v10 = vadd.f32 %v7326_v43, %v7303_v7  ;;  %v13370_v28 = vld [vmem:[%s15394_s10] sm:$0xff]  ;;  %v13373_v43 = vld [vmem:[%s15395_s11 + $0x10] sm:$0xff]  ;;  %s15397_s10 = sld [smem:[#allocation21_spill]] }
0x107b   : > { %7563 = vmatpush.bf16.msra.mxu3 %v13370_v28 }
0x107c   : > { %v7360_v9 = vadd.f32 %v7331_v4, %v7304_v52  ;;  %v7375_v62 = vmul.f32 0.1, %v7359_v10  ;;  %vm7367_vm7 = vcmp.gt.f32.partialorder %v7359_v10, 0.0 }
0x107e   : > { %v7376_v55 = vmul.f32 0.1, %v7360_v9  ;;  %vm7368_vm6 = vcmp.gt.f32.partialorder %v7360_v9, 0.0  ;;  %v7383_v8 = vsel %vm7367_vm7, %v7359_v10, %v7375_v62 }
0x1080   : > { %v7191_v11 = vpop.f32.mrf.mxu2  ;;  %v7384_v41 = vsel %vm7368_vm6, %v7360_v9, %v7376_v55 }
0x1081   : > { %v7289_v26 = vpop.f32.mrf.mxu1  ;;  %v7201_v38 = vadd.f32 %v7191_v11, %v7093_v39  ;;  %v7401_v11 = vpop.permute.xlu0 %7400 }
0x1082   : > { %v7305_v20 = vadd.f32 %v7289_v26, %v7197_v14 }
0x1084   : > { %v7361_v3 = vadd.f32 %v7336_v57, %v7305_v20 }
0x1086   : > { %v7377_v47 = vmul.f32 0.1, %v7361_v3  ;;  %vm7369_vm5 = vcmp.gt.f32.partialorder %v7361_v3, 0.0 }
0x1088   : > { %v7385_v48 = vsel %vm7369_vm5, %v7361_v3, %v7377_v47 }
0x1089   : > { %v7292_v32 = vpop.f32.mrf.mxu1  ;;  %v7391_v6 = vpack.c.bf16 %v7385_v48, %v7384_v41  ;;  %v13375_v48 = vld [vmem:[%s15395_s11 + $0x20] sm:$0xff] }
0x108a   : > { %v7306_v13 = vadd.f32 %v7292_v32, %v7198_v31 }
0x1091   : > { %v7294_v34 = vpop.f32.mrf.mxu1 }
0x1092   : > { %v7307_v1 = vadd.f32 %v7294_v34, %v7199_v59  ;;  %v7362_v34 = vadd.f32 %v7341_v54, %v7306_v13  ;;  %v7596_v59 = vsel %vm1707_vm0, %v12314_v30, 0 }
0x1094   : > { %v7363_v45 = vadd.f32 %v7346_v23, %v7307_v1  ;;  %v7378_v0 = vmul.f32 0.1, %v7362_v34  ;;  %vm7370_vm4 = vcmp.gt.f32.partialorder %v7362_v34, 0.0  ;;  %v12382_v23 = vld [vmem:[%s15393_s7 + $0x10] sm:$0x3] }
0x1095   : > { %v7945_v27 = vsel %vm1707_vm0, %v12382_v23, 0  ;;  %v13377_v23 = vld [vmem:[%s15395_s11 + $0x30] sm:$0xff] }
0x1096   : > { %v7379_v19 = vmul.f32 0.1, %v7363_v45  ;;  %vm7371_vm3 = vcmp.gt.f32.partialorder %v7363_v45, 0.0 }
0x1098   : > { %v7387_v50 = vsel %vm7371_vm3, %v7363_v45, %v7379_v19  ;;  %v7467_v45 = vpop.f32.mrf.mxu3 }
0x1099   : > { %v7297_v2 = vpop.f32.mrf.mxu1 }
0x109a   : > { %v7308_v51 = vadd.f32 %v7297_v2, %v7200_v53  ;;  %v7521_v53 = vld [vmem:[%s15392_s16] sm:$0x3]  ;;  %s15396_s16 = sld [smem:[#allocation8_spill]] }
0x109b   : > { %v7526_v54 = vsel %vm1707_vm0, %v7521_v53, 0 }
0x109c   : > { %v7364_v37 = vadd.f32 %v7351_v56, %v7308_v51  ;;  %v7386_v56 = vsel %vm7370_vm4, %v7362_v34, %v7378_v0  ;;  %7535 = vmatpush.bf16.msrb.mxu2 %v7526_v54  ;;  %v7448_v34 = vpop.permute.xlu0 %7447  ;;  %vm9380_vm4 = vcmask 26624  }
0x109d   : > { %v7392_v63 = vpack.c.bf16 %v7387_v50, %v7386_v56 }
0x109e   : > { %v7380_v36 = vmul.f32 0.1, %v7364_v37  ;;  %vm7372_vm15 = vcmp.gt.f32.partialorder %v7364_v37, 0.0 }
0x10a0   : > { %v7388_v26 = vsel %vm7372_vm15, %v7364_v37, %v7380_v36  ;;  %7605 = vmatpush.bf16.msra.mxu2 %v7596_v59  ;;  %v7851_v37 = vsel %vm1707_vm0, %v12364_v33, 0  ;;  %v7469_v52 = vpop.f32.mrf.mxu3  ;;  %v7443_v36 = vpop.permute.xlu2 %7442  ;;  %v13384_v59 = vld [vmem:[%s15396_s16 + $0x10] sm:$0xff] }
0x10a1   : > { %v7299_v21 = vpop.f32.mrf.mxu1  ;;  %v7470_v57 = vadd.f32 %v7469_v52, %v7448_v34 }
0x10a2   : > { %v7309_v25 = vadd.f32 %v7299_v21, %v7201_v38 }
0x10a3   : > { %v7475_v0 = vmul.f32 0.1, %v7470_v57  ;;  %vm7473_vm14 = vcmp.gt.f32.partialorder %v7470_v57, 0.0 }
0x10a4   : > { %v7365_v58 = vadd.f32 %v7356_v44, %v7309_v25  ;;  %v7321_v44 = vpop.permute.xlu1 %7320 }
0x10a5   : > { %v7358_v12 = vadd.f32 %v7321_v44, %v15008_v29  ;;  %v7477_v10 = vsel %vm7473_vm14, %v7470_v57, %v7475_v0 }
0x10a6   : > { %vm7373_vm2 = vcmp.gt.f32.partialorder %v7365_v58, 0.0  ;;  %v7381_v32 = vmul.f32 0.1, %v7365_v58 }
0x10a7   : > { %v7374_v49 = vmul.f32 0.1, %v7358_v12  ;;  %vm7366_vm10 = vcmp.gt.f32.partialorder %v7358_v12, 0.0 }
0x10a8   : > { %v7389_v40 = vsel %vm7373_vm2, %v7365_v58, %v7381_v32  ;;  %v7468_v58 = vadd.f32 %v7467_v45, %v7443_v36  ;;  %v13379_v45 = vld [vmem:[%s15395_s11 + $0x40] sm:$0xff]  ;;  %v13376_v36 = vld [vmem:[%s15395_s11 + $0x28] sm:$0xff] }
0x10a9   : > { %v7393_v22 = vpack.c.bf16 %v7389_v40, %v7388_v26  ;;  %v7382_v29 = vsel %vm7366_vm10, %v7358_v12, %v7374_v49  ;;  %v13371_v40 = vld [vmem:[%s15395_s11] sm:$0xff]  ;;  %vm9311_vm10 = vcmask 124928  }
0x10aa   : > { %v7390_v2 = vpack.c.bf16 %v7383_v8, %v7382_v29  ;;  %v7474_v9 = vmul.f32 0.1, %v7468_v58  ;;  %vm7472_vm13 = vcmp.gt.f32.partialorder %v7468_v58, 0.0  ;;  %v12337_v49 = vld [vmem:[%s15393_s7 + $0x6] sm:$0x3] }
0x10ab   : > { %7420 = vmatpush.bf16.msra.mxu0 %v7393_v22  ;;  %v7710_v8 = vsel %vm1707_vm0, %v12337_v49, 0  ;;  %v12355_v29 = vld [vmem:[%s15393_s7 + $0xa] sm:$0x3] }
0x10ac   : > { %v7406_v39 = vpop.permute.xlu1 %7405  ;;  %v7476_v22 = vsel %vm7472_vm13, %v7468_v58, %v7474_v9 }
0x10af   : > { %7421 = vmatpush.bf16.msra.mxu0 %v7392_v63 }
0x10b3   : > { %7422 = vmatpush.bf16.msra.mxu0 %v7391_v6 }
0x10b7   : > { %7423 = vmatpush.bf16.msra.mxu0 %v7390_v2  ;;  %v13372_v2 = vld [vmem:[%s15395_s11 + $0x8] sm:$0xff] }
0x10ba   : > { %12296 = vmatmul.msk.bf16.vlgmr.msra.gmra.mxu0 %vm5516_vm8, %v13367_v18 }
0x10bb   : > { %7507 = vmatpush.bf16.msrb.mxu0 %v14702_v15  ;;  %v12346_v15 = vld [vmem:[%s15393_s7 + $0x8] sm:$0x3] }
0x10bc   : > { %v7757_v51 = vsel %vm1707_vm0, %v12346_v15, 0  ;;  %v13380_v15 = vld [vmem:[%s15396_s16] sm:$0xff] }
0x10bd   : > { %7766 = vmatpush.bf16.msra.mxu1 %v7757_v51  ;;  %v13388_v51 = vld [vmem:[%s15396_s16 + $0x20] sm:$0xff] }
0x10bf   : > { %7583 = vmatpush.bf16.msra.mxu0 %v7574_v16  ;;  %v7898_v16 = vsel %vm1707_vm0, %v12373_v60, 0 }
0x10ca   : > { %12306 = vmatmul.msk.bf16.vlgmr.msrb.gmra.mxu0 %vm5602_vm9, %v13369_v24  ;;  %v7804_v24 = vsel %vm1707_vm0, %v12355_v29, 0 }
0x1137   : > { %v7425_v35 = vpop.f32.mrf.mxu0 }
0x1138   : > { %v7426_v61 = vadd.f32 %v7425_v35, %v7401_v11  ;;  %v13392_v35 = vld [vmem:[%s15396_s16 + $0x30] sm:$0xff]  ;;  %v13396_v11 = vld [vmem:[%s15396_s16 + $0x40] sm:$0xff] }
0x113a   : > { %v7432_v1 = vmul.f32 0.1, %v7426_v61  ;;  %vm7430_vm11 = vcmp.gt.f32.partialorder %v7426_v61, 0.0 }
0x113c   : > { %v7434_v14 = vsel %vm7430_vm11, %v7426_v61, %v7432_v1  ;;  %v7485_v61 = vpop.permute.xlu1 %7484 }
0x113f   : > { %v7427_v31 = vpop.f32.mrf.mxu0 }
0x1140   : > { %v7428_v4 = vadd.f32 %v7427_v31, %v7406_v39 }
0x1142   : > { %vm7431_vm12 = vcmp.gt.f32.partialorder %v7428_v4, 0.0  ;;  %v7433_v5 = vmul.f32 0.1, %v7428_v4 }
0x1144   : > { %v7435_v38 = vsel %vm7431_vm12, %v7428_v4, %v7433_v5 }
0x1145   : > { %v15058_v13 = vpack.c.bf16 %v7435_v38, %v7434_v14 }
0x1147   : > { %12307 = vmatmul.msk.bf16.vlgmr.msrb.gmra.mxu2 %vm1703_vm1, %v15058_v13  ;;  %12313 = vmatmul.msk.bf16.vlgmr.msra.gmra.mxu0 %vm1703_vm1, %v15058_v13  ;;  %v15077_v21 = vpop.f32.mrf.mxu0 }
0x1148   : > { %12329 = vmatmul.msk.bf16.vlgmr.msrb.gmra.mxu1 %vm1703_vm1, %v15058_v13  ;;  %v7510_v39 = vadd.f32 %v15077_v21, %v7485_v61 }
0x1149   : > { %7860 = vmatpush.bf16.msrb.mxu1 %v7851_v37 }
0x114a   : > { %v7516_v31 = vmul.f32 0.1, %v7510_v39  ;;  %vm7514_vm0 = vcmp.gt.f32.partialorder %v7510_v39, 0.0 }
0x114c   : > { %v7518_v1 = vsel %vm7514_vm0, %v7510_v39, %v7516_v31 }
0x114f   : > { %v15080_v20 = vpop.f32.mrf.mxu0 }
0x1157   : > { %12315 = vmatmul.msk.bf16.vlgmr.msra.gmra.mxu2 %vm1703_vm1, %v15058_v13 }
0x1158   : > { %12347 = vmatmul.msk.bf16.vlgmr.msra.gmra.mxu1 %vm1703_vm1, %v15058_v13 }
0x1159   : > { %7954 = vmatpush.bf16.msra.mxu1 %v7945_v27 }
0x1168   : > { %12365 = vmatmul.msk.bf16.vlgmr.msrb.gmra.mxu1 %vm1703_vm1, %v15058_v13 }
0x1178   : > { %12383 = vmatmul.msk.bf16.vlgmr.msra.gmra.mxu1 %vm1703_vm1, %v15058_v13 }
0x11c4   : > { %v7585_v25 = vpop.f32.mrf.mxu0 }
0x11c5   : > { %v7674_v17 = vpop.f32.mrf.mxu1 }
0x11ca   : > { %v7537_v7 = vpop.f32.mrf.mxu2 }
0x11cb   : > { %v7542_v50 = vadd.f32 %v7537_v7, %v7476_v22  ;;  %v13382_v7 = vld [vmem:[%s15396_s16 + $0x8] sm:$0xff]  ;;  %v13385_v22 = vld [vmem:[%s15397_s10 + $0x10] sm:$0xff] }
0x11cc   : > { %v7587_v3 = vpop.f32.mrf.mxu0 }
0x11cd   : > { %v7592_v19 = vpack.c.bf16 %v7587_v3, %v7585_v25  ;;  %v7676_v32 = vpop.f32.mrf.mxu1  ;;  %v13374_v25 = vld [vmem:[%s15395_s11 + $0x18] sm:$0xff] }
0x11ce   : > { %v7682_v26 = vpack.c.bf16 %v7676_v32, %v7674_v17 }
0x11cf   : > { %7653 = vmatpush.bf16.msrb.mxu0 %v7592_v19  ;;  %v13378_v19 = vld [vmem:[%s15395_s11 + $0x38] sm:$0xff] }
0x11d0   : > { %7698 = vmatpush.bf16.msrb.mxu2 %v7682_v26 }
0x11d2   : > { %v7539_v47 = vpop.f32.mrf.mxu2  ;;  %12327 = vmatmul.msk.bf16.vlgmr.msrb.gmra.mxu0 %vm5602_vm9, %v13371_v40 }
0x11d3   : > { %v7543_v44 = vadd.f32 %v7539_v47, %v7477_v10  ;;  %12336 = vmatmul.msk.bf16.vlgmr.msrb.gmra.mxu2 %vm5602_vm9, %v13373_v43 }
0x11d5   : > { %v15086_v12 = vpack.c.bf16 %v7543_v44, %v7542_v50  ;;  %v7768_v55 = vpop.f32.mrf.mxu1  ;;  %v13389_v44 = vld [vmem:[%s15397_s10 + $0x20] sm:$0xff] }
0x11d7   : > { %12312 = vmatmul.msk.bf16.vlgmr.msra.gmra.mxu3 %vm5602_vm9, %v15086_v12 }
0x11da   : > { %v7607_v56 = vpop.f32.mrf.mxu2 }
0x11dd   : > { %v7770_v63 = vpop.f32.mrf.mxu1 }
0x11de   : > { %v7776_v62 = vpack.c.bf16 %v7770_v63, %v7768_v55 }
0x11e0   : > { %7792 = vmatpush.bf16.msra.mxu2 %v7776_v62 }
0x11e2   : > { %v7609_v41 = vpop.f32.mrf.mxu2 }
0x11e3   : > { %v7615_v6 = vpack.c.bf16 %v7609_v41, %v7607_v56  ;;  %12354 = vmatmul.msk.bf16.vlgmr.msra.gmra.mxu2 %vm5602_vm9, %v13375_v48 }
0x11e5   : > { %v7862_v18 = vpop.f32.mrf.mxu1  ;;  %7631 = vmatpush.bf16.msrb.mxu3 %v7615_v6 }
0x11e8   : > { %12322 = vmatmul.msk.bf16.vlgmr.msrb.gmra.mxu3 %vm5602_vm9, %v13372_v2 }
0x11e9   : > { %7719 = vmatpush.bf16.msra.mxu3 %v7710_v8 }
0x11ed   : > { %7813 = vmatpush.bf16.msrb.mxu3 %v7804_v24  ;;  %v7864_v53 = vpop.f32.mrf.mxu1 }
0x11ee   : > { %v7870_v54 = vpack.c.bf16 %v7864_v53, %v7862_v18 }
0x11f0   : > { %7886 = vmatpush.bf16.msrb.mxu2 %v7870_v54 }
0x11f3   : > { %12372 = vmatmul.msk.bf16.vlgmr.msrb.gmra.mxu2 %vm5602_vm9, %v13377_v23 }
0x11f5   : > { %v7956_v42 = vpop.f32.mrf.mxu1 }
0x11f8   : > { %12338 = vmatmul.msk.bf16.vlgmr.msra.gmra.mxu3 %vm1703_vm1, %v15058_v13 }
0x11f9   : > { %7907 = vmatpush.bf16.msra.mxu3 %v7898_v16 }
0x11fd   : > { %v7958_v46 = vpop.f32.mrf.mxu1 }
0x11fe   : > { %v7964_v30 = vpack.c.bf16 %v7958_v46, %v7956_v42 }
0x1200   : > { %7980 = vmatpush.bf16.msra.mxu2 %v7964_v30 }
0x1203   : > { %12390 = vmatmul.msk.bf16.vlgmr.msra.gmra.mxu2 %vm5602_vm9, %v13379_v45 }
0x1208   : > { %12356 = vmatmul.msk.bf16.vlgmr.msrb.gmra.mxu3 %vm1703_vm1, %v15058_v13 }
0x1209   : > { %8024 = vmatpush.bf16.msrb.mxu3 %v13380_v15 }
0x1218   : > { %12374 = vmatmul.msk.bf16.vlgmr.msra.gmra.mxu3 %vm1703_vm1, %v15058_v13 }
0x1219   : > { %8121 = vmatpush.bf16.msra.mxu3 %v13384_v59  ;;  %v13381_v59 = vld [vmem:[%s15397_s10] sm:$0xff] }
0x1228   : > { %12395 = vmatmul.msk.bf16.vlgmr.msrb.gmra.mxu3 %vm5602_vm9, %v15086_v12 }
0x1229   : > { %8223 = vmatpush.bf16.msrb.mxu3 %v13388_v51 }
0x1238   : > { %12421 = vmatmul.msk.bf16.vlgmr.msra.gmra.mxu3 %vm5602_vm9, %v15086_v12 }
0x1239   : > { %8325 = vmatpush.bf16.msra.mxu3 %v13392_v35 }
0x1248   : > { %12449 = vmatmul.msk.bf16.vlgmr.msrb.gmra.mxu3 %vm5602_vm9, %v15086_v12 }
0x1249   : > { %8427 = vmatpush.bf16.msrb.mxu3 %v13396_v11  ;;  %v7490_v11 = vpop.permute.xlu2 %7489 }
0x124f   : > { %v7655_v14 = vpop.f32.mrf.mxu0 }
0x1256   : > { %v7700_v62 = vpop.f32.mrf.mxu2 }
0x1257   : > { %v7657_v29 = vpop.f32.mrf.mxu0 }
0x1258   : > { %12477 = vmatmul.msk.bf16.vlgmr.msra.gmra.mxu3 %vm5602_vm9, %v15086_v12 }
0x125a   : > { %v7565_v4 = vpop.f32.mrf.mxu3 }
0x125b   : > { %v15120_v5 = vadd.f32 %v7565_v4, %v7518_v1 }
0x125e   : > { %v7702_v41 = vpop.f32.mrf.mxu2 }
0x1262   : > { %v15122_v33 = vpop.f32.mrf.mxu3 }
0x1266   : > { %v7794_v8 = vpop.f32.mrf.mxu2 }
0x1268   : > { %12505 = vmatmul.msk.bf16.vlgmr.msrb.gmra.mxu3 %vm5602_vm9, %v15086_v12 }
0x126b   : > { %v7633_v38 = vpop.f32.mrf.mxu3 }
0x126c   : > { %v7656_v13 = vadd.f32 %v7655_v14, %v7633_v38  ;;  %v15148_v38 = vpop.permute.xlu0 %9159 }
0x126e   : > { %v7705_v2 = vadd.f32 %v7700_v62, %v7656_v13  ;;  %v7796_v24 = vpop.f32.mrf.mxu2  ;;  %v13409_v62 = vld [vmem:[%s15398_s0 + $0x48] sm:$0xff] }
0x1273   : > { %v15126_v37 = vpop.f32.mrf.mxu3 }
0x1274   : > { %v7658_v15 = vadd.f32 %v7657_v29, %v15126_v37  ;;  %v13418_v29 = vld [vmem:[%s15398_s0 + $0x80] sm:$0xff] }
0x1276   : > { %v7888_v60 = vpop.f32.mrf.mxu2  ;;  %v7706_v35 = vadd.f32 %v7702_v41, %v7658_v15  ;;  %v13447_v15 = vld [vmem:[%s15399_s1] sm:$0xff] }
0x127b   : > { %v7721_v27 = vpop.f32.mrf.mxu3 }
0x127e   : > { %v7890_v30 = vpop.f32.mrf.mxu2 }
0x1283   : > { %v7723_v21 = vpop.f32.mrf.mxu3 }
0x1284   : > { %v7729_v28 = vpack.c.bf16 %v7723_v21, %v7721_v27  ;;  %v7994_v27 = vpop.permute.xlu2 %7993 }
0x1286   : > { %7745 = vmatpush.bf16.msra.mxu0 %v7729_v28  ;;  %v7982_v39 = vpop.f32.mrf.mxu2 }
0x1289   : > { %12345 = vmatmul.msk.bf16.vlgmr.msra.gmra.mxu0 %vm5602_vm9, %v13374_v25 }
0x128b   : > { %v7815_v17 = vpop.f32.mrf.mxu3 }
0x128e   : > { %v7984_v37 = vpop.f32.mrf.mxu2 }
0x1293   : > { %v7817_v52 = vpop.f32.mrf.mxu3 }
0x1294   : > { %v7823_v34 = vpack.c.bf16 %v7817_v52, %v7815_v17  ;;  %v7999_v52 = vpop.permute.xlu0 %7998 }
0x1296   : > { %7839 = vmatpush.bf16.msrb.mxu0 %v7823_v34 }
0x1299   : > { %12363 = vmatmul.msk.bf16.vlgmr.msrb.gmra.mxu0 %vm5602_vm9, %v13376_v36 }
0x129b   : > { %v7909_v58 = vpop.f32.mrf.mxu3 }
0x12a3   : > { %v7911_v57 = vpop.f32.mrf.mxu3 }
0x12a4   : > { %v7917_v3 = vpack.c.bf16 %v7911_v57, %v7909_v58 }
0x12a6   : > { %7933 = vmatpush.bf16.msra.mxu0 %v7917_v3 }
0x12a9   : > { %12381 = vmatmul.msk.bf16.vlgmr.msra.gmra.mxu0 %vm5602_vm9, %v13378_v19 }
0x12aa   : > { %8050 = vmatpush.bf16.msrb.mxu0 %v13382_v7 }
0x12ab   : > { %v8026_v32 = vpop.f32.mrf.mxu3 }
0x12b3   : > { %v8028_v9 = vpop.f32.mrf.mxu3 }
0x12b4   : > { %v8033_v0 = vpack.c.bf16 %v8028_v9, %v8026_v32  ;;  %v13386_v9 = vld [vmem:[%s15396_s16 + $0x18] sm:$0xff] }
0x12b6   : > { %8098 = vmatpush.bf16.msrb.mxu2 %v8033_v0 }
0x12b9   : > { %12402 = vmatmul.msk.bf16.vlgmr.msrb.gmra.mxu0 %vm5602_vm9, %v15086_v12  ;;  %12414 = vmatmul.msk.bf16.vlgmr.msrb.gmra.mxu2 %vm5602_vm9, %v13381_v59 }
0x12bb   : > { %v8123_v26 = vpop.f32.mrf.mxu3 }
0x12c3   : > { %v8125_v40 = vpop.f32.mrf.mxu3 }
0x12c4   : > { %v8131_v43 = vpack.c.bf16 %v8125_v40, %v8123_v26  ;;  %v13383_v26 = vld [vmem:[%s15397_s10 + $0x8] sm:$0xff] }
0x12c5   : > { %v13390_v40 = vld [vmem:[%s15396_s16 + $0x28] sm:$0xff] }
0x12c6   : > { %8147 = vmatpush.bf16.msra.mxu0 %v8131_v43  ;;  %v13394_v43 = vld [vmem:[%s15396_s16 + $0x38] sm:$0xff] }
0x12c9   : > { %12428 = vmatmul.msk.bf16.vlgmr.msra.gmra.mxu0 %vm5602_vm9, %v13385_v22  ;;  %v13401_v22 = vld [vmem:[%s15398_s0 + $0x18] sm:$0xff] }
0x12cb   : > { %v8225_v10 = vpop.f32.mrf.mxu3 }
0x12d3   : > { %v8227_v47 = vpop.f32.mrf.mxu3 }
0x12d4   : > { %v8233_v50 = vpack.c.bf16 %v8227_v47, %v8225_v10  ;;  %v13400_v10 = vld [vmem:[%s15398_s0 + $0x10] sm:$0xff]  ;;  %v13399_v47 = vld [vmem:[%s15398_s0 + $0x8] sm:$0xff] }
0x12d6   : > { %8249 = vmatpush.bf16.msrb.mxu0 %v8233_v50  ;;  %v13398_v50 = vld [vmem:[%s15398_s0] sm:$0xff] }
0x12d9   : > { %12456 = vmatmul.msk.bf16.vlgmr.msrb.gmra.mxu0 %vm5602_vm9, %v13389_v44  ;;  %v13411_v44 = vld [vmem:[%s15398_s0 + $0x58] sm:$0xff] }
0x12db   : > { %v8327_v55 = vpop.f32.mrf.mxu3 }
0x12e3   : > { %v8329_v56 = vpop.f32.mrf.mxu3 }
0x12e4   : > { %v8335_v63 = vpack.c.bf16 %v8329_v56, %v8327_v55  ;;  %v7512_v55 = vadd.f32 %v15080_v20, %v7490_v11  ;;  %v13410_v56 = vld [vmem:[%s15398_s0 + $0x50] sm:$0xff] }
0x12e6   : > { %8351 = vmatpush.bf16.msra.mxu0 %v8335_v63  ;;  %v7517_v63 = vmul.f32 0.1, %v7512_v55  ;;  %vm7515_vm3 = vcmp.gt.f32.partialorder %v7512_v55, 0.0 }
0x12eb   : > { %v8429_v48 = vpop.f32.mrf.mxu3 }
0x12f3   : > { %v8431_v49 = vpop.f32.mrf.mxu3 }
0x12f4   : > { %v8437_v6 = vpack.c.bf16 %v8431_v49, %v8429_v48  ;;  %v7519_v48 = vsel %vm7515_vm3, %v7512_v55, %v7517_v63  ;;  %v13408_v49 = vld [vmem:[%s15398_s0 + $0x40] sm:$0xff]  ;;  %v15240_v55 = vpop.permute.xlu0 %9186 }
0x12f5   : > { %v7571_v41 = vadd.f32 %v15122_v33, %v7519_v48  ;;  %v13431_v33 = vld [vmem:[%s15398_s0 + $0xd8] sm:$0xff] }
0x12f6   : > { %8453 = vmatpush.bf16.msrb.mxu0 %v8437_v6  ;;  %v13420_v6 = vld [vmem:[%s15398_s0 + $0x90] sm:$0xff] }
0x12f7   : > { %v15179_v20 = vpack.c.bf16 %v7571_v41, %v15120_v5  ;;  %v13430_v5 = vld [vmem:[%s15398_s0 + $0xd0] sm:$0xff] }
0x12fc   : > { %v15246_v48 = vpop.permute.xlu0 %9201 }
0x1306   : > { %v7747_v18 = vpop.f32.mrf.mxu0 }
0x1307   : > { %v7752_v53 = vadd.f32 %v7747_v18, %v7705_v2  ;;  %v13429_v2 = vld [vmem:[%s15398_s0 + $0xc8] sm:$0xff]  ;;  %v13428_v18 = vld [vmem:[%s15398_s0 + $0xc0] sm:$0xff] }
0x1309   : > { %v7799_v42 = vadd.f32 %v7794_v8, %v7752_v53  ;;  %v13419_v8 = vld [vmem:[%s15398_s0 + $0x88] sm:$0xff]  ;;  %v13440_v53 = vld [vmem:[%s15398_s0 + $0x110] sm:$0xff] }
0x130e   : > { %v7749_v54 = vpop.f32.mrf.mxu0 }
0x130f   : > { %v7753_v61 = vadd.f32 %v7749_v54, %v7706_v35  ;;  %v13439_v54 = vld [vmem:[%s15398_s0 + $0x108] sm:$0xff] }
0x1311   : > { %v7800_v4 = vadd.f32 %v7796_v24, %v7753_v61  ;;  %v13441_v24 = vld [vmem:[%s15398_s0 + $0x118] sm:$0xff] }
0x1312   : > { %v13387_v61 = vld [vmem:[%s15397_s10 + $0x18] sm:$0xff] }
0x1316   : > { %v7841_v16 = vpop.f32.mrf.mxu0 }
0x1317   : > { %v7846_v46 = vadd.f32 %v7841_v16, %v7799_v42 }
0x1319   : > { %v7893_v31 = vadd.f32 %v7888_v60, %v7846_v46  ;;  %v13438_v60 = vld [vmem:[%s15398_s0 + $0x100] sm:$0xff] }
0x131e   : > { %v7843_v51 = vpop.f32.mrf.mxu0 }
0x131f   : > { %v7847_v13 = vadd.f32 %v7843_v51, %v7800_v4  ;;  %v13393_v51 = vld [vmem:[%s15397_s10 + $0x30] sm:$0xff] }
0x1320   : > { %12484 = vmatmul.msk.bf16.vlgmr.msra.gmra.mxu0 %vm5602_vm9, %v13393_v51 }
0x1321   : > { %v7894_v21 = vadd.f32 %v7890_v30, %v7847_v13 }
0x1326   : > { %v7935_v1 = vpop.f32.mrf.mxu0 }
0x1327   : > { %v7940_v14 = vadd.f32 %v7935_v1, %v7893_v31  ;;  %v13448_v31 = vld [vmem:[%s15399_s1 + $0x8] sm:$0x30] }
0x1329   : > { %v7987_v23 = vadd.f32 %v7982_v39, %v7940_v14  ;;  %v12817_v39 = vld [vmem:[%s15399_s1 + $0x8] sm:$0xf]  ;;  %v13397_v14 = vld [vmem:[%s15397_s10 + $0x40] sm:$0xff]  ;;  %s15400_s1 = sld [smem:[#allocation20_spill]] }
0x132a   : > { %v12818_v1 = vor.u32 %v13448_v31, %v12817_v39 }
0x132b   : > { %v8001_v45 = vadd.f32 %v7994_v27, %v7987_v23  ;;  %v13391_v27 = vld [vmem:[%s15397_s10 + $0x28] sm:$0xff] }
0x132d   : > { %v8005_v34 = vmul.f32 0.1, %v8001_v45  ;;  %vm8003_vm15 = vcmp.gt.f32.partialorder %v8001_v45, 0.0 }
0x132e   : > { %v7937_v28 = vpop.f32.mrf.mxu0 }
0x132f   : > { %v7941_v25 = vadd.f32 %v7937_v28, %v7894_v21  ;;  %v15150_v7 = vsel %vm8003_vm15, %v8001_v45, %v8005_v34  ;;  %v13404_v34 = vld [vmem:[%s15398_s0 + $0x28] sm:$0xff] }
0x1330   : > { %12512 = vmatmul.msk.bf16.vlgmr.msrb.gmra.mxu0 %vm5602_vm9, %v13397_v14 }
0x1331   : > { %v7988_v17 = vadd.f32 %v7984_v37, %v7941_v25  ;;  %v13406_v37 = vld [vmem:[%s15398_s0 + $0x38] sm:$0xff] }
0x1332   : > { %v13395_v25 = vld [vmem:[%s15397_s10 + $0x38] sm:$0xff] }
0x1333   : > { %v8002_v36 = vadd.f32 %v7999_v52, %v7988_v17  ;;  %v13405_v17 = vld [vmem:[%s15398_s0 + $0x30] sm:$0xff] }
0x1335   : > { %vm8004_vm2 = vcmp.gt.f32.partialorder %v8002_v36, 0.0  ;;  %v8006_v58 = vmul.f32 0.1, %v8002_v36 }
0x1336   : > { %v8052_v57 = vpop.f32.mrf.mxu0 }
0x1337   : > { %v15152_v3 = vsel %vm8004_vm2, %v8002_v36, %v8006_v58  ;;  %v13403_v36 = vld [vmem:[%s15398_s0 + $0x20] sm:$0xff] }
0x1338   : > { %v9313_v19 = vpack.c.bf16 %v15152_v3, %v15150_v7 }
0x133c   : > { %v8100_v42 = vpop.f32.mrf.mxu2 }
0x133e   : > { %v8054_v32 = vpop.f32.mrf.mxu0 }
0x133f   : > { %v8060_v0 = vpack.c.bf16 %v8054_v32, %v8052_v57  ;;  %v13412_v32 = vld [vmem:[%s15400_s1 + $0x10] sm:$0xff] }
0x1341   : > { %8076 = vmatpush.bf16.msrb.mxu1 %v8060_v0 }
0x1344   : > { %12409 = vmatmul.msk.bf16.vlgmr.msrb.gmra.mxu1 %vm5602_vm9, %v13383_v26 }
0x1345   : > { %8172 = vmatpush.bf16.msra.mxu1 %v13386_v9 }
0x1349   : > { %8274 = vmatpush.bf16.msrb.mxu1 %v13390_v40  ;;  %v13422_v40 = vld [vmem:[%s15400_s1 + $0x20] sm:$0xff] }
0x1354   : > { %12435 = vmatmul.msk.bf16.vlgmr.msra.gmra.mxu1 %vm5602_vm9, %v15086_v12 }
0x1355   : > { %8376 = vmatpush.bf16.msra.mxu1 %v13394_v43  ;;  %v15233_v43 = vpop.permute.xlu1 %9164 }
0x1364   : > { %12463 = vmatmul.msk.bf16.vlgmr.msrb.gmra.mxu1 %vm5602_vm9, %v15086_v12 }
0x1365   : > { %8522 = vmatpush.bf16.msrb.mxu1 %v13401_v22 }
0x1369   : > { %8523 = vmatpush.bf16.msrb.mxu1 %v13400_v10  ;;  %v15236_v10 = vpop.permute.xlu2 %8471 }
0x136d   : > { %8524 = vmatpush.bf16.msrb.mxu1 %v13399_v47  ;;  %v15238_v47 = vpop.permute.xlu1 %8466 }
0x1371   : > { %8525 = vmatpush.bf16.msrb.mxu1 %v13398_v50 }
0x1374   : > { %12491 = vmatmul.msk.bf16.vlgmr.msra.gmra.mxu1 %vm5602_vm9, %v15086_v12  ;;  %v13421_v12 = vld [vmem:[%s15398_s0 + $0x98] sm:$0xff] }
0x1375   : > { %8667 = vmatpush.bf16.msra.mxu1 %v13411_v44 }
0x1379   : > { %8668 = vmatpush.bf16.msra.mxu1 %v13410_v56  ;;  %v15242_v56 = vpop.permute.xlu2 %9196 }
0x137d   : > { %8669 = vmatpush.bf16.msra.mxu1 %v13409_v62  ;;  %v15244_v62 = vpop.permute.xlu1 %9191 }
0x1381   : > { %8670 = vmatpush.bf16.msra.mxu1 %v13408_v49  ;;  %v8149_v49 = vpop.f32.mrf.mxu0  ;;  %v15248_v41 = vpop.permute.xlu2 %9260 }
0x1384   : > { %12529 = vmatmul.msk.bf16.vlgmr.msrb.gmra.mxu1 %vm5516_vm8, %v15179_v20 }
0x1385   : > { %8817 = vmatpush.bf16.msrb.mxu1 %v13421_v12 }
0x1389   : > { %8818 = vmatpush.bf16.msrb.mxu1 %v13420_v6 }
0x138d   : > { %8819 = vmatpush.bf16.msrb.mxu1 %v13419_v8  ;;  %v15250_v8 = vpop.permute.xlu1 %9255 }
0x1391   : > { %8820 = vmatpush.bf16.msrb.mxu1 %v13418_v29  ;;  %v15255_v29 = vpop.permute.xlu0 %9265 }
0x1394   : > { %12591 = vmatmul.msk.bf16.vlgmr.msra.gmra.mxu1 %vm5516_vm8, %v15179_v20 }
0x1395   : > { %8967 = vmatpush.bf16.msra.mxu1 %v13431_v33  ;;  %v8151_v33 = vpop.f32.mrf.mxu0 }
0x1399   : > { %8968 = vmatpush.bf16.msra.mxu1 %v13430_v5  ;;  %v9325_v5 = vpop.permute.xlu2 %9324 }
0x139d   : > { %8969 = vmatpush.bf16.msra.mxu1 %v13429_v2 }
0x13a1   : > { %8970 = vmatpush.bf16.msra.mxu1 %v13428_v18 }
0x13a4   : > { %12655 = vmatmul.msk.bf16.vlgmr.msrb.gmra.mxu1 %vm5516_vm8, %v15179_v20 }
0x13a5   : > { %9117 = vmatpush.bf16.msrb.mxu1 %v13441_v24  ;;  %v15260_v24 = vpop.permute.xlu1 %9270 }
0x13a9   : > { %9118 = vmatpush.bf16.msrb.mxu1 %v13440_v53  ;;  %v8251_v53 = vpop.f32.mrf.mxu0 }
0x13ad   : > { %9119 = vmatpush.bf16.msrb.mxu1 %v13439_v54  ;;  %v9330_v54 = vpop.permute.xlu0 %9329 }
0x13b1   : > { %9120 = vmatpush.bf16.msrb.mxu1 %v13438_v60 }
0x13b4   : > { %12719 = vmatmul.msk.bf16.vlgmr.msra.gmra.mxu1 %vm5516_vm8, %v15179_v20 }
0x13b5   : > { %9365 = vmatpush.bf16.msra.mxu1 %v9313_v19 }
0x13c1   : > { %v8078_v16 = vpop.f32.mrf.mxu1 }
0x13c2   : > { %v15203_v46 = vadd.f32 %v8100_v42, %v8078_v16  ;;  %v8102_v42 = vpop.f32.mrf.mxu2 }
0x13c4   : > { %12783 = vmatmul.msk.bf16.vlgmr.msrb.gmra.mxu1 %vm5516_vm8, %v15179_v20 }
0x13c9   : > { %v15207_v30 = vpop.f32.mrf.mxu1 }
0x13ca   : > { %v8103_v31 = vadd.f32 %v8102_v42, %v15207_v30  ;;  %v13423_v42 = vld [vmem:[%s15398_s0 + $0xa0] sm:$0xff] }
0x13d1   : > { %v8174_v59 = vpop.f32.mrf.mxu1 }
0x13d4   : > { %12819 = vmatmul.msk.bf16.vlgmr.msra.gmra.mxu1 %vm5602_vm9, %v13447_v15  ;;  %v9335_v15 = vpop.permute.xlu1 %9334 }
0x13d9   : > { %v8176_v35 = vpop.f32.mrf.mxu1 }
0x13da   : > { %v8182_v11 = vpack.c.bf16 %v8176_v35, %v8174_v59  ;;  %v8154_v59 = vadd.f32 %v8149_v49, %v15203_v46 }
0x13dc   : > { %8198 = vmatpush.bf16.msra.mxu2 %v8182_v11 }
0x13df   : > { %12442 = vmatmul.msk.bf16.vlgmr.msra.gmra.mxu2 %vm5602_vm9, %v13387_v61  ;;  %v8253_v61 = vpop.f32.mrf.mxu0 }
0x13e1   : > { %v8276_v4 = vpop.f32.mrf.mxu1 }
0x13e4   : > { %12820 = vmatmul.msk.bf16.gmra.mxu1 %vm5602_vm9, %v12818_v1  ;;  %v9340_v1 = vpop.permute.xlu2 %9339 }
0x13e9   : > { %v8278_v13 = vpop.f32.mrf.mxu1 }
0x13ea   : > { %v8284_v23 = vpack.c.bf16 %v8278_v13, %v8276_v4  ;;  %v8155_v4 = vadd.f32 %v8151_v33, %v8103_v31  ;;  %v13416_v33 = vld [vmem:[%s15398_s0 + $0x78] sm:$0xff]  ;;  %v13442_v31 = vld [vmem:[%s15400_s1 + $0x40] sm:$0xff] }
0x13ec   : > { %8300 = vmatpush.bf16.msrb.mxu2 %v8284_v23 }
0x13ef   : > { %12470 = vmatmul.msk.bf16.vlgmr.msrb.gmra.mxu2 %vm5602_vm9, %v13391_v27 }
0x13f1   : > { %v8378_v21 = vpop.f32.mrf.mxu1 }
0x13f9   : > { %v8380_v28 = vpop.f32.mrf.mxu1 }
0x13fa   : > { %v8386_v45 = vpack.c.bf16 %v8380_v28, %v8378_v21  ;;  %v8353_v21 = vpop.f32.mrf.mxu0 }
0x13fc   : > { %8402 = vmatpush.bf16.msra.mxu2 %v8386_v45 }
0x13ff   : > { %12498 = vmatmul.msk.bf16.vlgmr.msra.gmra.mxu2 %vm5602_vm9, %v13395_v25 }
0x1400   : > { %8572 = vmatpush.bf16.msrb.mxu2 %v13406_v37 }
0x1401   : > { %v8527_v52 = vpop.f32.mrf.mxu1 }
0x1402   : > { %v8355_v45 = vpop.f32.mrf.mxu0 }
0x1404   : > { %8573 = vmatpush.bf16.msrb.mxu2 %v13405_v17 }
0x1408   : > { %8574 = vmatpush.bf16.msrb.mxu2 %v13404_v34 }
0x1409   : > { %v8529_v58 = vpop.f32.mrf.mxu1 }
0x140a   : > { %v8534_v57 = vpack.c.bf16 %v8529_v58, %v8527_v52  ;;  %v8455_v34 = vpop.f32.mrf.mxu0 }
0x140c   : > { %8575 = vmatpush.bf16.msrb.mxu2 %v13403_v36  ;;  %8623 = vmatpush.bf16.msra.mxu0 %v8534_v57  ;;  %v13402_v57 = vld [vmem:[%s15400_s1] sm:$0xff] }
0x140f   : > { %12554 = vmatmul.msk.bf16.vlgmr.msrb.gmra.mxu2 %vm5516_vm8, %v15179_v20  ;;  %12566 = vmatmul.msk.bf16.vlgmr.msra.gmra.mxu0 %vm5602_vm9, %v13402_v57 }
0x1411   : > { %v8672_v7 = vpop.f32.mrf.mxu1 }
0x1419   : > { %v8674_v3 = vpop.f32.mrf.mxu1 }
0x141a   : > { %v8680_v19 = vpack.c.bf16 %v8674_v3, %v8672_v7 }
0x141c   : > { %8696 = vmatpush.bf16.msra.mxu2 %v8680_v19 }
0x141f   : > { %12598 = vmatmul.msk.bf16.vlgmr.msra.gmra.mxu2 %vm5602_vm9, %v13412_v32  ;;  %v8457_v32 = vpop.f32.mrf.mxu0 }
0x1421   : > { %v8822_v9 = vpop.f32.mrf.mxu1 }
0x1429   : > { %v8824_v0 = vpop.f32.mrf.mxu1 }
0x142a   : > { %v8830_v26 = vpack.c.bf16 %v8824_v0, %v8822_v9 }
0x142c   : > { %8846 = vmatpush.bf16.msrb.mxu2 %v8830_v26 }
0x142f   : > { %12662 = vmatmul.msk.bf16.vlgmr.msrb.gmra.mxu2 %vm5602_vm9, %v13422_v40 }
0x1431   : > { %v8972_v22 = vpop.f32.mrf.mxu1 }
0x1439   : > { %v8974_v50 = vpop.f32.mrf.mxu1 }
0x143a   : > { %v8980_v44 = vpack.c.bf16 %v8974_v50, %v8972_v22 }
0x143c   : > { %8996 = vmatpush.bf16.msra.mxu2 %v8980_v44 }
0x1441   : > { %v9122_v63 = vpop.f32.mrf.mxu1 }
0x1449   : > { %v9124_v12 = vpop.f32.mrf.mxu1 }
0x144a   : > { %v9130_v6 = vpack.c.bf16 %v9124_v12, %v9122_v63 }
0x144c   : > { %9146 = vmatpush.bf16.msrb.mxu2 %v9130_v6 }
0x1451   : > { %v9367_v2 = vpop.f32.mrf.mxu1 }
0x1452   : > { %v9368_v18 = vadd.f32 %v9367_v2, %v9325_v5  ;;  %v13407_v5 = vld [vmem:[%s15400_s1 + $0x8] sm:$0xff] }
0x1453   : > { %v13414_v2 = vld [vmem:[%s15398_s0 + $0x68] sm:$0xff] }
0x1454   : > { %9377 = vst.msk [vmem:[%s1196_s3] sm:$0xff] %vm1703_vm1, %v9368_v18  ;;  %v13413_v18 = vld [vmem:[%s15398_s0 + $0x60] sm:$0xff] }
0x1459   : > { %v9369_v60 = vpop.f32.mrf.mxu1 }
0x145a   : > { %v9370_v16 = vadd.f32 %v9369_v60, %v9330_v54  ;;  %v13425_v54 = vld [vmem:[%s15398_s0 + $0xb0] sm:$0xff]  ;;  %v13424_v60 = vld [vmem:[%s15398_s0 + $0xa8] sm:$0xff] }
0x145c   : > { %9378 = vst.msk [vmem:[%s1196_s3 + $0x8] sm:$0xff] %vm1703_vm1, %v9370_v16  ;;  %v13436_v16 = vld [vmem:[%s15398_s0 + $0xf8] sm:$0xff] }
0x1461   : > { %v9372_v51 = vpop.f32.mrf.mxu1 }
0x1462   : > { %v9373_v35 = vadd.f32 %v9372_v51, %v9335_v15  ;;  %v8200_v11 = vpop.f32.mrf.mxu2  ;;  %v13435_v15 = vld [vmem:[%s15398_s0 + $0xf0] sm:$0xff]  ;;  %v13433_v51 = vld [vmem:[%s15398_s0 + $0xe0] sm:$0xff] }
0x1463   : > { %v8205_v39 = vadd.f32 %v8200_v11, %v8154_v59  ;;  %v13434_v59 = vld [vmem:[%s15398_s0 + $0xe8] sm:$0xff]  ;;  %v13432_v11 = vld [vmem:[%s15400_s1 + $0x30] sm:$0xff] }
0x1464   : > { %9379 = vst.msk [vmem:[%s1196_s3 + $0x10] sm:$0xff] %vm1703_vm1, %v9373_v35  ;;  %12726 = vmatmul.msk.bf16.vlgmr.msra.gmra.mxu2 %vm5602_vm9, %v13432_v11 }
0x1465   : > { %v8256_v46 = vadd.f32 %v8251_v53, %v8205_v39  ;;  %v13426_v53 = vld [vmem:[%s15398_s0 + $0xb8] sm:$0xff] }
0x1469   : > { %v9374_v14 = vpop.f32.mrf.mxu1 }
0x146a   : > { %v9375_v13 = vadd.f32 %v9374_v14, %v9340_v1  ;;  %v8202_v23 = vpop.f32.mrf.mxu2  ;;  %v13417_v14 = vld [vmem:[%s15400_s1 + $0x18] sm:$0xff] }
0x146b   : > { %v8206_v27 = vadd.f32 %v8202_v23, %v8155_v4 }
0x146c   : > { %9381 = vst.msk [vmem:[%s1196_s3 + $0x18] sm:$0x7] %vm9380_vm4, %v9375_v13  ;;  %s15401_s3 = sld [smem:[#allocation25_spill]] }
0x146d   : > { %v8257_v25 = vadd.f32 %v8253_v61, %v8206_v27  ;;  %v13427_v27 = vld [vmem:[%s15400_s1 + $0x28] sm:$0xff] }
0x1472   : > { %v8302_v28 = vpop.f32.mrf.mxu2 }
0x1473   : > { %v8307_v37 = vadd.f32 %v8302_v28, %v8256_v46 }
0x1474   : > { %12790 = vmatmul.msk.bf16.vlgmr.msrb.gmra.mxu2 %vm5602_vm9, %v13442_v31 }
0x1475   : > { %v8358_v36 = vadd.f32 %v8353_v21, %v8307_v37  ;;  %v13437_v37 = vld [vmem:[%s15400_s1 + $0x38] sm:$0xff]  ;;  %s1186_s1 = scalar_lea.vmem %s13784_s14, %s15253_s2 }
0x147a   : > { %v8304_v17 = vpop.f32.mrf.mxu2 }
0x147b   : > { %v8308_v52 = vadd.f32 %v8304_v17, %v8257_v25  ;;  %v12807_v25 = vld [vmem:[%s15401_s3 + $0x8] sm:$0xf]  ;;  %v13446_v17 = vld [vmem:[%s15401_s3 + $0x8] sm:$0x30] }
0x147d   : > { %v8359_v3 = vadd.f32 %v8355_v45, %v8308_v52  ;;  %v13445_v45 = vld [vmem:[%s15401_s3] sm:$0xff]  ;;  %v12808_v52 = vor.u32 %v13446_v17, %v12807_v25 }
0x1482   : > { %v8404_v30 = vpop.f32.mrf.mxu2 }
0x1483   : > { %v8409_v58 = vadd.f32 %v8404_v30, %v8358_v36 }
0x1485   : > { %v8460_v7 = vadd.f32 %v8455_v34, %v8409_v58 }
0x1487   : > { %v8474_v9 = vadd.f32 %v15238_v47, %v8460_v7 }
0x1489   : > { %v8478_v40 = vmul.f32 0.1, %v8474_v9  ;;  %vm8476_vm1 = vcmp.gt.f32.partialorder %v8474_v9, 0.0 }
0x148a   : > { %v8406_v19 = vpop.f32.mrf.mxu2 }
0x148b   : > { %v8410_v0 = vadd.f32 %v8406_v19, %v8359_v3  ;;  %v8480_v63 = vsel %vm8476_vm1, %v8474_v9, %v8478_v40 }
0x148c   : > { %v8625_v36 = vpop.f32.mrf.mxu0 }
0x148d   : > { %v8461_v26 = vadd.f32 %v8457_v32, %v8410_v0 }
0x148f   : > { %v8475_v22 = vadd.f32 %v15236_v10, %v8461_v26  ;;  %v13415_v10 = vld [vmem:[%s15398_s0 + $0x70] sm:$0xff]  ;;  %s1191_s0 = scalar_lea.vmem %s13789_s30, %s15253_s2 }
0x1491   : > { %vm8477_vm5 = vcmp.gt.f32.partialorder %v8475_v22, 0.0  ;;  %v8479_v50 = vmul.f32 0.1, %v8475_v22 }
0x1492   : > { %v8577_v44 = vpop.f32.mrf.mxu2 }
0x1493   : > { %v8481_v49 = vsel %vm8477_vm5, %v8475_v22, %v8479_v50 }
0x1494   : > { %v9244_v12 = vpack.c.bf16 %v8481_v49, %v8480_v63  ;;  %v8627_v58 = vpop.f32.mrf.mxu0 }
0x149a   : > { %v8579_v6 = vpop.f32.mrf.mxu2 }
0x149b   : > { %v8585_v47 = vpack.c.bf16 %v8579_v6, %v8577_v44 }
0x149d   : > { %8601 = vmatpush.bf16.msra.mxu3 %v8585_v47 }
0x14a0   : > { %12561 = vmatmul.msk.bf16.vlgmr.msra.gmra.mxu3 %vm5602_vm9, %v13407_v5 }
0x14a1   : > { %8742 = vmatpush.bf16.msrb.mxu3 %v13416_v33 }
0x14a2   : > { %v8698_v34 = vpop.f32.mrf.mxu2 }
0x14a5   : > { %8743 = vmatpush.bf16.msrb.mxu3 %v13415_v10 }
0x14a9   : > { %8744 = vmatpush.bf16.msrb.mxu3 %v13414_v2 }
0x14aa   : > { %v8700_v30 = vpop.f32.mrf.mxu2 }
0x14ad   : > { %8745 = vmatpush.bf16.msrb.mxu3 %v13413_v18 }
0x14b0   : > { %12623 = vmatmul.msk.bf16.vlgmr.msrb.gmra.mxu3 %vm5516_vm8, %v15179_v20 }
0x14b1   : > { %8892 = vmatpush.bf16.msra.mxu3 %v13426_v53 }
0x14b2   : > { %v8848_v57 = vpop.f32.mrf.mxu2 }
0x14b5   : > { %8893 = vmatpush.bf16.msra.mxu3 %v13425_v54 }
0x14b9   : > { %8894 = vmatpush.bf16.msra.mxu3 %v13424_v60 }
0x14ba   : > { %v8850_v3 = vpop.f32.mrf.mxu2 }
0x14bd   : > { %8895 = vmatpush.bf16.msra.mxu3 %v13423_v42 }
0x14c0   : > { %12687 = vmatmul.msk.bf16.vlgmr.msra.gmra.mxu3 %vm5516_vm8, %v15179_v20 }
0x14c1   : > { %9042 = vmatpush.bf16.msrb.mxu3 %v13436_v16 }
0x14c5   : > { %9043 = vmatpush.bf16.msrb.mxu3 %v13435_v15 }
0x14c9   : > { %9044 = vmatpush.bf16.msrb.mxu3 %v13434_v59 }
0x14cd   : > { %9045 = vmatpush.bf16.msrb.mxu3 %v13433_v51 }
0x14d0   : > { %12751 = vmatmul.msk.bf16.vlgmr.msrb.gmra.mxu3 %vm5516_vm8, %v15179_v20 }
0x14e7   : > { %v8998_v32 = vpop.f32.mrf.mxu2 }
0x14ef   : > { %v9000_v22 = vpop.f32.mrf.mxu2 }
0x14f7   : > { %v9148_v5 = vpop.f32.mrf.mxu2 }
0x14ff   : > { %v9150_v15 = vpop.f32.mrf.mxu2 }
0x1523   : > { %v8603_v35 = vpop.f32.mrf.mxu3 }
0x1524   : > { %v8626_v9 = vadd.f32 %v8625_v36, %v8603_v35 }
0x1526   : > { %v8703_v26 = vadd.f32 %v8698_v34, %v8626_v9 }
0x152b   : > { %v8605_v61 = vpop.f32.mrf.mxu3 }
0x152c   : > { %v8628_v50 = vadd.f32 %v8627_v58, %v8605_v61 }
0x152e   : > { %v8704_v49 = vadd.f32 %v8700_v30, %v8628_v50 }
0x1533   : > { %v8747_v39 = vpop.f32.mrf.mxu3 }
0x153b   : > { %v8749_v1 = vpop.f32.mrf.mxu3 }
0x153c   : > { %v8755_v4 = vpack.c.bf16 %v8749_v1, %v8747_v39 }
0x153e   : > { %8771 = vmatpush.bf16.msrb.mxu0 %v8755_v4 }
0x1541   : > { %12630 = vmatmul.msk.bf16.vlgmr.msrb.gmra.mxu0 %vm5602_vm9, %v13417_v14 }
0x1543   : > { %v8897_v20 = vpop.f32.mrf.mxu3 }
0x154b   : > { %v8899_v13 = vpop.f32.mrf.mxu3 }
0x154c   : > { %v8905_v23 = vpack.c.bf16 %v8899_v13, %v8897_v20  ;;  %v12797_v13 = vld [vmem:[%s15402_s18 + $0x8] sm:$0xf] }
0x154e   : > { %8921 = vmatpush.bf16.msra.mxu0 %v8905_v23  ;;  %v13444_v23 = vld [vmem:[%s15402_s18 + $0x8] sm:$0x30] }
0x1551   : > { %12694 = vmatmul.msk.bf16.vlgmr.msra.gmra.mxu0 %vm5602_vm9, %v13427_v27 }
0x1553   : > { %v9047_v21 = vpop.f32.mrf.mxu3 }
0x155b   : > { %v9049_v46 = vpop.f32.mrf.mxu3 }
0x155c   : > { %v9055_v28 = vpack.c.bf16 %v9049_v46, %v9047_v21 }
0x155e   : > { %9071 = vmatpush.bf16.msrb.mxu0 %v9055_v28 }
0x1561   : > { %12758 = vmatmul.msk.bf16.vlgmr.msrb.gmra.mxu0 %vm5602_vm9, %v13437_v37 }
0x1562   : > { %9296 = vmatpush.bf16.msra.mxu0 %v9244_v12 }
0x1571   : > { %12809 = vmatmul.msk.bf16.vlgmr.msra.gmra.mxu0 %vm5602_vm9, %v13445_v45 }
0x1581   : > { %12810 = vmatmul.msk.bf16.gmra.mxu0 %vm5602_vm9, %v12808_v52 }
0x15be   : > { %v8773_v7 = vpop.f32.mrf.mxu0 }
0x15bf   : > { %v8778_v40 = vadd.f32 %v8773_v7, %v8703_v26 }
0x15c1   : > { %v8853_v63 = vadd.f32 %v8848_v57, %v8778_v40 }
0x15c6   : > { %v8775_v19 = vpop.f32.mrf.mxu0 }
0x15c7   : > { %v8779_v6 = vadd.f32 %v8775_v19, %v8704_v49 }
0x15c9   : > { %v8854_v10 = vadd.f32 %v8850_v3, %v8779_v6 }
0x15ce   : > { %v8923_v0 = vpop.f32.mrf.mxu0 }
0x15cf   : > { %v8928_v12 = vadd.f32 %v8923_v0, %v8853_v63 }
0x15d1   : > { %v9003_v33 = vadd.f32 %v8998_v32, %v8928_v12 }
0x15d6   : > { %v8925_v44 = vpop.f32.mrf.mxu0 }
0x15d7   : > { %v8929_v18 = vadd.f32 %v8925_v44, %v8854_v10 }
0x15d9   : > { %v9004_v54 = vadd.f32 %v9000_v22, %v8929_v18 }
0x15de   : > { %v9073_v47 = vpop.f32.mrf.mxu0 }
0x15df   : > { %v9078_v2 = vadd.f32 %v9073_v47, %v9003_v33 }
0x15e1   : > { %v9153_v53 = vadd.f32 %v9148_v5, %v9078_v2 }
0x15e3   : > { %v9167_v42 = vadd.f32 %v15148_v38, %v9153_v53  ;;  %v13443_v38 = vld [vmem:[%s15402_s18] sm:$0xff] }
0x15e5   : > { %v9171_v51 = vmul.f32 0.1, %v9167_v42  ;;  %vm9169_vm6 = vcmp.gt.f32.partialorder %v9167_v42, 0.0 }
0x15e6   : > { %v9075_v60 = vpop.f32.mrf.mxu0 }
0x15e7   : > { %v9079_v16 = vadd.f32 %v9075_v60, %v9004_v54  ;;  %v9173_v39 = vsel %vm9169_vm6, %v9167_v42, %v9171_v51 }
0x15e9   : > { %v9154_v59 = vadd.f32 %v9150_v15, %v9079_v16 }
0x15eb   : > { %v9168_v35 = vadd.f32 %v15233_v43, %v9154_v59 }
0x15ed   : > { %vm9170_vm7 = vcmp.gt.f32.partialorder %v9168_v35, 0.0  ;;  %v9172_v11 = vmul.f32 0.1, %v9168_v35 }
0x15ee   : > { %v9298_v61 = vpop.f32.mrf.mxu0 }
0x15ef   : > { %v9174_v31 = vsel %vm9170_vm7, %v9168_v35, %v9172_v11  ;;  %v9299_v1 = vadd.f32 %v9298_v61, %v15250_v8  ;;  %v12798_v8 = vor.u32 %v13444_v23, %v12797_v13 }
0x15f0   : > { %v9175_v4 = vpack.c.bf16 %v9174_v31, %v9173_v39 }
0x15f1   : > { %9308 = vst.msk [vmem:[%s1191_s0] sm:$0xff] %vm5602_vm9, %v9299_v1 }
0x15f2   : > { %9227 = vmatpush.bf16.msra.mxu3 %v9175_v4 }
0x15f5   : > { %12799 = vmatmul.msk.bf16.vlgmr.msra.gmra.mxu3 %vm5602_vm9, %v13443_v38 }
0x15f6   : > { %v9300_v43 = vpop.f32.mrf.mxu0 }
0x15f7   : > { %v9301_v14 = vadd.f32 %v9300_v43, %v15248_v41 }
0x15f9   : > { %9309 = vst.msk [vmem:[%s1191_s0 + $0x8] sm:$0xff] %vm5602_vm9, %v9301_v14 }
0x15fe   : > { %v9303_v20 = vpop.f32.mrf.mxu0 }
0x15ff   : > { %v9304_v27 = vadd.f32 %v9303_v20, %v15255_v29 }
0x1601   : > { %9310 = vst.msk [vmem:[%s1191_s0 + $0x10] sm:$0xff] %vm5602_vm9, %v9304_v27 }
0x1605   : > { %12800 = vmatmul.msk.bf16.gmra.mxu3 %vm5602_vm9, %v12798_v8  ;;  %vm9242_vm9 = vcmask 518144  }
0x1606   : > { %v9305_v21 = vpop.f32.mrf.mxu0 }
0x1607   : > { %v9306_v46 = vadd.f32 %v9305_v21, %v15260_v24 }
0x1609   : > { %9312 = vst.msk [vmem:[%s1191_s0 + $0x18] sm:$0x7] %vm9311_vm10, %v9306_v46 }
0x1678   : > { %v9229_v28 = vpop.f32.mrf.mxu3 }
0x1679   : > { %v9230_v41 = vadd.f32 %v9229_v28, %v15240_v55 }
0x167b   : > { %9239 = vst.msk [vmem:[%s1186_s1] sm:$0xff] %vm5516_vm8, %v9230_v41 }
0x1680   : > { %v9231_v37 = vpop.f32.mrf.mxu3 }
0x1681   : > { %v9232_v45 = vadd.f32 %v9231_v37, %v15244_v62 }
0x1683   : > { %9240 = vst.msk [vmem:[%s1186_s1 + $0x8] sm:$0xff] %vm5516_vm8, %v9232_v45 }
0x1688   : > { %v9234_v29 = vpop.f32.mrf.mxu3 }
0x1689   : > { %v9235_v25 = vadd.f32 %v9234_v29, %v15242_v56 }
0x168b   : > { %9241 = vst.msk [vmem:[%s1186_s1 + $0x10] sm:$0xff] %vm5516_vm8, %v9235_v25 }
0x1690   : > { %v9236_v17 = vpop.f32.mrf.mxu3 }
0x1691   : > { %v9237_v24 = vadd.f32 %v9236_v17, %v15246_v48 }
0x1693   : > { %9243 = vst.msk [vmem:[%s1186_s1 + $0x18] sm:$0x7] %vm9242_vm9, %v9237_v24 }
0x1694 PF: > { %s89_s15 = sadd.s32 1, %s13552_s15  }
0x1695   : > { %p86_p1 = scmp.ge.s32.totalorder %s89_s15, 4  }
0x1697   :  { %88 = sbr.rel (!%p86_p1) target bundleno = 66 (0x42), region = 373 }
0x169c   :  { %9435 = vsyncpa [#allocation3], 1 }
0x169d   :  { %9437 = vsyncpa [#allocation3 + $0x1], 1 }

</bundles_post_ra>
